<compile_context>
chip_gen: v5e
topology: v5e:2x2
jax: 0.10.0
libtpu: 0.0.40
codegen_flags: <defaults>
</compile_context>

<pallas_src>
import jax
import jax.numpy as jnp
from jax import lax
from jax.experimental import pallas as pl
from jax.experimental.pallas import tpu as pltpu

FEATMAPS = [32, 64, 128]
KSIZE = 3
FIRST_LINEAR = FEATMAPS[2] * KSIZE * KSIZE          # 1152
LINEARS = [512, 256]
NUM_CLASSES = 62


# ----------------------------------------------------------------------------
# Pallas kernels
# ----------------------------------------------------------------------------
def _conv_pool_kernel(xs_ref, w_ref, b_ref, o_ref):
    """Fused 3x3 conv + bias + ReLU + 2x2/2 max-pool for a batch tile.

    xs_ref: (4, M, 9*Cin)  pool-parity im2col patches, M = TB * pooled_HW
    w_ref : (9*Cin, Cout)  folded conv weight
    b_ref : (1, Cout)
    o_ref : (M, Cout)
    """
    w = w_ref[...]
    # One K=9*Cin matmul per pool parity; max over parities commutes with the
    # monotone bias-add + ReLU.
    m = jnp.dot(xs_ref[0], w, preferred_element_type=jnp.float32)
    for p in range(1, 4):
        m = jnp.maximum(
            m, jnp.dot(xs_ref[p], w, preferred_element_type=jnp.float32))
    o_ref[...] = jnp.maximum(m + b_ref[...], 0.0)


def _mlp_head_kernel(x_ref, w1_ref, b1_ref, w2_ref, b2_ref, w3_ref, b3_ref,
                     o_ref):
    """fc1 + ReLU -> fc2 -> fc3 -> log_softmax (dim=1) for a batch tile."""
    h = jnp.dot(x_ref[...], w1_ref[...],
                preferred_element_type=jnp.float32) + b1_ref[...]
    h = jnp.maximum(h, 0.0)
    h = jnp.dot(h, w2_ref[...], preferred_element_type=jnp.float32) + b2_ref[...]
    logits = (jnp.dot(h, w3_ref[...], preferred_element_type=jnp.float32)
              + b3_ref[...])
    mx = jnp.max(logits, axis=-1, keepdims=True)
    s = logits - mx
    lse = jnp.log(jnp.sum(jnp.exp(s), axis=-1, keepdims=True))
    o_ref[...] = s - lse


# ----------------------------------------------------------------------------
# Glue (layout only)
# ----------------------------------------------------------------------------
def _round_up(x, m):
    return (x + m - 1) // m * m


def _pool_parity_patches(x_nhwc):
    """Build (4, N*P, 9*Cin): per pool-parity im2col patch matrices.

    Row order within each parity is (image, pooled_h, pooled_w); column order
    is (ky, kx, cin) which matches the folded (9*Cin, Cout) weight layout.
    """
    n, h, w, c = x_nhwc.shape
    ho, wo = h // 2, w // 2
    xp = jnp.pad(x_nhwc, ((0, 0), (1, 1), (1, 1), (0, 0)))
    parities = []
    for py in range(2):
        for px in range(2):
            taps = []
            for ky in range(3):
                for kx in range(3):
                    v = xp[:, py + ky: py + ky + 2 * ho: 2,
                              px + kx: px + kx + 2 * wo: 2, :]
                    taps.append(v.reshape(n, ho * wo, c))
            parities.append(jnp.concatenate(taps, axis=-1))      # (N, P, 9*C)
    xs = jnp.stack(parities, axis=0)                             # (4, N, P, 9*C)
    return xs.reshape(4, n * ho * wo, 9 * c), ho, wo


def conv_pool(x_nhwc, w_folded, b, tb):
    """x_nhwc: (N, H, W, Cin) with N a multiple of tb. Returns (N, H//2, W//2, Cout)."""
    n, _, _, cin = x_nhwc.shape
    cout = w_folded.shape[-1]
    xs, ho, wo = _pool_parity_patches(x_nhwc)
    p = ho * wo
    m_total = n * p
    m_block = tb * p
    kc = 9 * cin
    out = pl.pallas_call(
        _conv_pool_kernel,
        out_shape=jax.ShapeDtypeStruct((m_total, cout), jnp.float32),
        grid_spec=pltpu.PrefetchScalarGridSpec(
            num_scalar_prefetch=0,
            grid=(n // tb,),
            in_specs=[
                pl.BlockSpec((4, m_block, kc), lambda i: (0, i, 0)),
                pl.BlockSpec((kc, cout), lambda i: (0, 0)),     # resident
                pl.BlockSpec((1, cout), lambda i: (0, 0)),      # resident
            ],
            out_specs=pl.BlockSpec((m_block, cout), lambda i: (i, 0)),
        ),
        compiler_params=pltpu.CompilerParams(
            dimension_semantics=("parallel",)),
    )(xs, w_folded, b)
    return out.reshape(n, ho, wo, cout)


def mlp_head(feats, kparams, tb):
    """feats: (N, 1152) in NHWC-flatten order, N a multiple of tb."""
    n = feats.shape[0]
    num_classes = kparams["fc3_w"].shape[-1]
    return pl.pallas_call(
        _mlp_head_kernel,
        out_shape=jax.ShapeDtypeStruct((n, num_classes), jnp.float32),
        grid_spec=pltpu.PrefetchScalarGridSpec(
            num_scalar_prefetch=0,
            grid=(n // tb,),
            in_specs=[
                pl.BlockSpec((tb, FIRST_LINEAR), lambda i: (i, 0)),
                pl.BlockSpec((FIRST_LINEAR, LINEARS[0]), lambda i: (0, 0)),
                pl.BlockSpec((1, LINEARS[0]), lambda i: (0, 0)),
                pl.BlockSpec((LINEARS[0], LINEARS[1]), lambda i: (0, 0)),
                pl.BlockSpec((1, LINEARS[1]), lambda i: (0, 0)),
                pl.BlockSpec((LINEARS[1], num_classes), lambda i: (0, 0)),
                pl.BlockSpec((1, num_classes), lambda i: (0, 0)),
            ],
            out_specs=pl.BlockSpec((tb, num_classes), lambda i: (i, 0)),
        ),
        compiler_params=pltpu.CompilerParams(
            dimension_semantics=("parallel",)),
    )(feats, kparams["fc1_w"], kparams["fc1_b"],
      kparams["fc2_w"], kparams["fc2_b"],
      kparams["fc3_w"], kparams["fc3_b"])


def prepare_params(params):
    """One-time conversion of torch-convention params to kernel layout."""
    kp = {}
    for i in range(1, 4):
        w = params[f"conv{i}_w"]                           # (9, Cin, Cout)
        kp[f"conv{i}_w"] = w.reshape(w.shape[0] * w.shape[1], w.shape[2])
        kp[f"conv{i}_b"] = params[f"conv{i}_b"]
    # fc1_w rows are in torch NCHW-flatten order (c*9 + h*3 + w); permute once
    # to NHWC-flatten order (h*384 + w*128 + c) so no runtime transpose of the
    # feature map is needed before the FC head.
    fc1 = params["fc1_w"].reshape(FEATMAPS[2], KSIZE, KSIZE, LINEARS[0])
    kp["fc1_w"] = jnp.transpose(fc1, (1, 2, 0, 3)).reshape(FIRST_LINEAR,
                                                           LINEARS[0])
    kp["fc1_b"] = params["fc1_b"]
    for i in (2, 3):
        kp[f"fc{i}_w"] = params[f"fc{i}_w"]
        kp[f"fc{i}_b"] = params[f"fc{i}_b"]
    return kp


def cnn_emnist_forward(kparams, x_nchw, *, batch_block=16):
    """Forward pass. kparams must come from prepare_params()."""
    n = x_nchw.shape[0]
    tb = min(batch_block, n)                 # batch tile (safe for all VMEMs)
    n_pad = _round_up(n, tb)
    x = jnp.transpose(x_nchw, (0, 2, 3, 1)).astype(jnp.float32)   # NCHW->NHWC
    if n_pad != n:
        x = jnp.pad(x, ((0, n_pad - n), (0, 0), (0, 0), (0, 0)))
    x = conv_pool(x, kparams["conv1_w"], kparams["conv1_b"], tb)  # (N,14,14, 32)
    x = conv_pool(x, kparams["conv2_w"], kparams["conv2_b"], tb)  # (N, 7, 7, 64)
    x = conv_pool(x, kparams["conv3_w"], kparams["conv3_b"], tb)  # (N, 3, 3,128)
    feats = x.reshape(n_pad, FIRST_LINEAR)   # NHWC flatten; fc1_w pre-permuted
    out = mlp_head(feats, kparams, tb)
    return out[:n]


# ----------------------------------------------------------------------------
# Deterministic parameter init + pure-JAX reference for checking
# ----------------------------------------------------------------------------
def init_params(key, num_classes=NUM_CLASSES):
    keys = jax.random.split(key, 12)
    params = {}
    cins = [1, FEATMAPS[0], FEATMAPS[1]]
    for i in range(3):
        cin, cout = cins[i], FEATMAPS[i]
        fan_in = cin * KSIZE * KSIZE
        params[f"conv{i+1}_w"] = (
            jax.random.normal(keys[2 * i], (KSIZE * KSIZE, cin, cout),
                              jnp.float32) / jnp.sqrt(fan_in))
        params[f"conv{i+1}_b"] = 0.01 * jax.random.normal(
            keys[2 * i + 1], (1, cout), jnp.float32)
    dims = [(FIRST_LINEAR, LINEARS[0]), (LINEARS[0], LINEARS[1]),
            (LINEARS[1], num_classes)]
    for i, (din, dout) in enumerate(dims):
        params[f"fc{i+1}_w"] = (
            jax.random.normal(keys[6 + 2 * i], (din, dout), jnp.float32)
            / jnp.sqrt(din))
        params[f"fc{i+1}_b"] = 0.01 * jax.random.normal(
            keys[7 + 2 * i], (1, dout), jnp.float32)
    return params


def reference_forward(params, x_nchw):
    x = jnp.transpose(x_nchw, (0, 2, 3, 1)).astype(jnp.float32)
    cins = [1, FEATMAPS[0], FEATMAPS[1]]
    for i in range(3):
        w = params[f"conv{i+1}_w"].reshape(3, 3, cins[i], FEATMAPS[i])
        b = params[f"conv{i+1}_b"].reshape(-1)
        x = lax.conv_general_dilated(
            x, w, (1, 1), ((1, 1), (1, 1)),
            dimension_numbers=("NHWC", "HWIO", "NHWC"),
            precision=lax.Precision.HIGHEST)
        x = jnp.maximum(x + b, 0.0)
        x = lax.reduce_window(x, -jnp.inf, lax.max,
                              (1, 2, 2, 1), (1, 2, 2, 1), "VALID")
    n = x.shape[0]
    x = jnp.transpose(x, (0, 3, 1, 2)).reshape(n, FIRST_LINEAR)  # torch flatten
    h = jnp.maximum(jnp.dot(x, params["fc1_w"],
                            precision=lax.Precision.HIGHEST) + params["fc1_b"],
                    0.0)
    h = (jnp.dot(h, params["fc2_w"], precision=lax.Precision.HIGHEST)
         + params["fc2_b"])
    logits = (jnp.dot(h, params["fc3_w"], precision=lax.Precision.HIGHEST)
              + params["fc3_b"])
    return jax.nn.log_softmax(logits, axis=1)


if __name__ == "__main__":
    key = jax.random.PRNGKey(0)
    pkey, xkey = jax.random.split(key)
    params = init_params(pkey)
    kparams = prepare_params(params)   # one-time weight layout conversion
    # EMNIST-shaped input (the 1152-wide flatten requires 28x28 spatial).
    x = jax.random.normal(xkey, (2, 1, 28, 28), jnp.float32)

    fwd = jax.jit(cnn_emnist_forward)
    out = jax.block_until_ready(fwd(kparams, x))

    assert out.shape == (2, NUM_CLASSES), out.shape
    assert bool(jnp.all(jnp.isfinite(out)))
    # log_softmax sanity: rows of exp(out) sum to 1
    row_sums = jnp.sum(jnp.exp(out), axis=1)
    assert bool(jnp.allclose(row_sums, 1.0, atol=1e-3)), row_sums
    # compare against a pure-JAX reference
    ref = reference_forward(params, x)
    assert bool(jnp.allclose(out, ref, atol=1e-2, rtol=1e-2)), float(
        jnp.max(jnp.abs(out - ref)))

    print("KERNEL_OK")
</pallas_src>

<mosaic_0001>
module attributes {stable_mosaic.version = 11 : i64} {
  func.func @_conv_pool_kernel(%arg0: i32, %arg1: memref<4x392x9xf32, #tpu.memory_space<vmem>>, %arg2: memref<9x32xf32, #tpu.memory_space<vmem>>, %arg3: memref<1x32xf32, #tpu.memory_space<vmem>>, %arg4: memref<392x32xf32, #tpu.memory_space<vmem>>) attributes {dimension_semantics = [#tpu.dimension_semantics<parallel>], iteration_bounds = array<i64: 1>, scalar_prefetch = 0 : i64, scratch_operands = 0 : i64, tpu.core_type = #tpu.core_type<tc>, window_params = [{transform_indices = @transform_0, window_bounds = array<i64: 4, 392, 9>}, {pipeline_mode = #tpu.pipeline_mode<synchronous>, transform_indices = @transform_1, window_bounds = array<i64: 9, 32>}, {pipeline_mode = #tpu.pipeline_mode<synchronous>, transform_indices = @transform_2, window_bounds = array<i64: 1, 32>}, {transform_indices = @transform_3, window_bounds = array<i64: 392, 32>}]} {
    %c0 = arith.constant 0 : index
    %c0_0 = arith.constant 0 : index
    %0 = vector.load %arg2[%c0, %c0_0] : memref<9x32xf32, #tpu.memory_space<vmem>>, vector<9x32xf32>
    %c0_1 = arith.constant 0 : index
    %c0_2 = arith.constant 0 : index
    %c0_3 = arith.constant 0 : index
    %1 = vector.load %arg1[%c0_1, %c0_2, %c0_3] : memref<4x392x9xf32, #tpu.memory_space<vmem>>, vector<1x392x9xf32>
    %2 = vector.shape_cast %1 : vector<1x392x9xf32> to vector<392x9xf32>
    %cst = arith.constant dense<0.000000e+00> : vector<392x32xf32>
    %3 = tpu.matmul %2, %0, %cst {dimension_numbers = #tpu.dot_dimension_numbers<[1], [0], [0], [1], [0, 0, 1, 1], [], []>} : vector<392x9xf32>, vector<9x32xf32>, vector<392x32xf32> -> vector<392x32xf32>
    %c1 = arith.constant 1 : index
    %c0_4 = arith.constant 0 : index
    %c0_5 = arith.constant 0 : index
    %4 = vector.load %arg1[%c1, %c0_4, %c0_5] : memref<4x392x9xf32, #tpu.memory_space<vmem>>, vector<1x392x9xf32>
    %5 = vector.shape_cast %4 : vector<1x392x9xf32> to vector<392x9xf32>
    %cst_6 = arith.constant dense<0.000000e+00> : vector<392x32xf32>
    %6 = tpu.matmul %5, %0, %cst_6 {dimension_numbers = #tpu.dot_dimension_numbers<[1], [0], [0], [1], [0, 0, 1, 1], [], []>} : vector<392x9xf32>, vector<9x32xf32>, vector<392x32xf32> -> vector<392x32xf32>
    %7 = arith.maximumf %3, %6 : vector<392x32xf32>
    %c2 = arith.constant 2 : index
    %c0_7 = arith.constant 0 : index
    %c0_8 = arith.constant 0 : index
    %8 = vector.load %arg1[%c2, %c0_7, %c0_8] : memref<4x392x9xf32, #tpu.memory_space<vmem>>, vector<1x392x9xf32>
    %9 = vector.shape_cast %8 : vector<1x392x9xf32> to vector<392x9xf32>
    %cst_9 = arith.constant dense<0.000000e+00> : vector<392x32xf32>
    %10 = tpu.matmul %9, %0, %cst_9 {dimension_numbers = #tpu.dot_dimension_numbers<[1], [0], [0], [1], [0, 0, 1, 1], [], []>} : vector<392x9xf32>, vector<9x32xf32>, vector<392x32xf32> -> vector<392x32xf32>
    %11 = arith.maximumf %7, %10 : vector<392x32xf32>
    %c3 = arith.constant 3 : index
    %c0_10 = arith.constant 0 : index
    %c0_11 = arith.constant 0 : index
    %12 = vector.load %arg1[%c3, %c0_10, %c0_11] : memref<4x392x9xf32, #tpu.memory_space<vmem>>, vector<1x392x9xf32>
    %13 = vector.shape_cast %12 : vector<1x392x9xf32> to vector<392x9xf32>
    %cst_12 = arith.constant dense<0.000000e+00> : vector<392x32xf32>
    %14 = tpu.matmul %13, %0, %cst_12 {dimension_numbers = #tpu.dot_dimension_numbers<[1], [0], [0], [1], [0, 0, 1, 1], [], []>} : vector<392x9xf32>, vector<9x32xf32>, vector<392x32xf32> -> vector<392x32xf32>
    %15 = arith.maximumf %11, %14 : vector<392x32xf32>
    %c0_13 = arith.constant 0 : index
    %c0_14 = arith.constant 0 : index
    %16 = vector.load %arg3[%c0_13, %c0_14] : memref<1x32xf32, #tpu.memory_space<vmem>>, vector<1x32xf32>
    %17 = vector.broadcast %16 : vector<1x32xf32> to vector<392x32xf32>
    %18 = arith.addf %15, %17 : vector<392x32xf32>
    %cst_15 = arith.constant 0.000000e+00 : f32
    %19 = vector.broadcast %cst_15 : f32 to vector<392x32xf32>
    %20 = arith.maximumf %18, %19 : vector<392x32xf32>
    %c0_16 = arith.constant 0 : index
    %c0_17 = arith.constant 0 : index
    %21 = vector.load %arg4[%c0_16, %c0_17] : memref<392x32xf32, #tpu.memory_space<vmem>>, vector<392x32xf32>
    tpu.vector_store %arg4[%c0_16, %c0_17], %20 {strides = array<i32>} : memref<392x32xf32, #tpu.memory_space<vmem>>, vector<392x32xf32>,
    return
  }
  func.func @transform_0(%arg0: i32) -> (i32, i32, i32) {
    %c0_i32 = arith.constant 0 : i32
    %c0_i32_0 = arith.constant 0 : i32
    %c0_i32_1 = arith.constant 0 : i32
    return %c0_i32, %arg0, %c0_i32_0 : i32, i32, i32
  }
  func.func @transform_1(%arg0: i32) -> (i32, i32) {
    %c0_i32 = arith.constant 0 : i32
    %c0_i32_0 = arith.constant 0 : i32
    %c0_i32_1 = arith.constant 0 : i32
    return %c0_i32, %c0_i32_0 : i32, i32
  }
  func.func @transform_2(%arg0: i32) -> (i32, i32) {
    %c0_i32 = arith.constant 0 : i32
    %c0_i32_0 = arith.constant 0 : i32
    %c0_i32_1 = arith.constant 0 : i32
    return %c0_i32, %c0_i32_0 : i32, i32
  }
  func.func @transform_3(%arg0: i32) -> (i32, i32) {
    %c0_i32 = arith.constant 0 : i32
    %c0_i32_0 = arith.constant 0 : i32
    return %arg0, %c0_i32 : i32, i32
  }
}

module attributes {stable_mosaic.version = 11 : i64} {
  func.func @_conv_pool_kernel(%arg0: i32, %arg1: memref<4x98x288xf32, #tpu.memory_space<vmem>>, %arg2: memref<288x64xf32, #tpu.memory_space<vmem>>, %arg3: memref<1x64xf32, #tpu.memory_space<vmem>>, %arg4: memref<98x64xf32, #tpu.memory_space<vmem>>) attributes {dimension_semantics = [#tpu.dimension_semantics<parallel>], iteration_bounds = array<i64: 1>, scalar_prefetch = 0 : i64, scratch_operands = 0 : i64, tpu.core_type = #tpu.core_type<tc>, window_params = [{transform_indices = @transform_0, window_bounds = array<i64: 4, 98, 288>}, {pipeline_mode = #tpu.pipeline_mode<synchronous>, transform_indices = @transform_1, window_bounds = array<i64: 288, 64>}, {pipeline_mode = #tpu.pipeline_mode<synchronous>, transform_indices = @transform_2, window_bounds = array<i64: 1, 64>}, {transform_indices = @transform_3, window_bounds = array<i64: 98, 64>}]} {
    %c0 = arith.constant 0 : index
    %c0_0 = arith.constant 0 : index
    %0 = vector.load %arg2[%c0, %c0_0] : memref<288x64xf32, #tpu.memory_space<vmem>>, vector<288x64xf32>
    %c0_1 = arith.constant 0 : index
    %c0_2 = arith.constant 0 : index
    %c0_3 = arith.constant 0 : index
    %1 = vector.load %arg1[%c0_1, %c0_2, %c0_3] : memref<4x98x288xf32, #tpu.memory_space<vmem>>, vector<1x98x288xf32>
    %2 = vector.shape_cast %1 : vector<1x98x288xf32> to vector<98x288xf32>
    %cst = arith.constant dense<0.000000e+00> : vector<98x64xf32>
    %3 = tpu.matmul %2, %0, %cst {dimension_numbers = #tpu.dot_dimension_numbers<[1], [0], [0], [1], [0, 0, 1, 1], [], []>} : vector<98x288xf32>, vector<288x64xf32>, vector<98x64xf32> -> vector<98x64xf32>
    %c1 = arith.constant 1 : index
    %c0_4 = arith.constant 0 : index
    %c0_5 = arith.constant 0 : index
    %4 = vector.load %arg1[%c1, %c0_4, %c0_5] : memref<4x98x288xf32, #tpu.memory_space<vmem>>, vector<1x98x288xf32>
    %5 = vector.shape_cast %4 : vector<1x98x288xf32> to vector<98x288xf32>
    %cst_6 = arith.constant dense<0.000000e+00> : vector<98x64xf32>
    %6 = tpu.matmul %5, %0, %cst_6 {dimension_numbers = #tpu.dot_dimension_numbers<[1], [0], [0], [1], [0, 0, 1, 1], [], []>} : vector<98x288xf32>, vector<288x64xf32>, vector<98x64xf32> -> vector<98x64xf32>
    %7 = arith.maximumf %3, %6 : vector<98x64xf32>
    %c2 = arith.constant 2 : index
    %c0_7 = arith.constant 0 : index
    %c0_8 = arith.constant 0 : index
    %8 = vector.load %arg1[%c2, %c0_7, %c0_8] : memref<4x98x288xf32, #tpu.memory_space<vmem>>, vector<1x98x288xf32>
    %9 = vector.shape_cast %8 : vector<1x98x288xf32> to vector<98x288xf32>
    %cst_9 = arith.constant dense<0.000000e+00> : vector<98x64xf32>
    %10 = tpu.matmul %9, %0, %cst_9 {dimension_numbers = #tpu.dot_dimension_numbers<[1], [0], [0], [1], [0, 0, 1, 1], [], []>} : vector<98x288xf32>, vector<288x64xf32>, vector<98x64xf32> -> vector<98x64xf32>
    %11 = arith.maximumf %7, %10 : vector<98x64xf32>
    %c3 = arith.constant 3 : index
    %c0_10 = arith.constant 0 : index
    %c0_11 = arith.constant 0 : index
    %12 = vector.load %arg1[%c3, %c0_10, %c0_11] : memref<4x98x288xf32, #tpu.memory_space<vmem>>, vector<1x98x288xf32>
    %13 = vector.shape_cast %12 : vector<1x98x288xf32> to vector<98x288xf32>
    %cst_12 = arith.constant dense<0.000000e+00> : vector<98x64xf32>
    %14 = tpu.matmul %13, %0, %cst_12 {dimension_numbers = #tpu.dot_dimension_numbers<[1], [0], [0], [1], [0, 0, 1, 1], [], []>} : vector<98x288xf32>, vector<288x64xf32>, vector<98x64xf32> -> vector<98x64xf32>
    %15 = arith.maximumf %11, %14 : vector<98x64xf32>
    %c0_13 = arith.constant 0 : index
    %c0_14 = arith.constant 0 : index
    %16 = vector.load %arg3[%c0_13, %c0_14] : memref<1x64xf32, #tpu.memory_space<vmem>>, vector<1x64xf32>
    %17 = vector.broadcast %16 : vector<1x64xf32> to vector<98x64xf32>
    %18 = arith.addf %15, %17 : vector<98x64xf32>
    %cst_15 = arith.constant 0.000000e+00 : f32
    %19 = vector.broadcast %cst_15 : f32 to vector<98x64xf32>
    %20 = arith.maximumf %18, %19 : vector<98x64xf32>
    %c0_16 = arith.constant 0 : index
    %c0_17 = arith.constant 0 : index
    %21 = vector.load %arg4[%c0_16, %c0_17] : memref<98x64xf32, #tpu.memory_space<vmem>>, vector<98x64xf32>
    tpu.vector_store %arg4[%c0_16, %c0_17], %20 {strides = array<i32>} : memref<98x64xf32, #tpu.memory_space<vmem>>, vector<98x64xf32>,
    return
  }
  func.func @transform_0(%arg0: i32) -> (i32, i32, i32) {
    %c0_i32 = arith.constant 0 : i32
    %c0_i32_0 = arith.constant 0 : i32
    %c0_i32_1 = arith.constant 0 : i32
    return %c0_i32, %arg0, %c0_i32_0 : i32, i32, i32
  }
  func.func @transform_1(%arg0: i32) -> (i32, i32) {
    %c0_i32 = arith.constant 0 : i32
    %c0_i32_0 = arith.constant 0 : i32
    %c0_i32_1 = arith.constant 0 : i32
    return %c0_i32, %c0_i32_0 : i32, i32
  }
  func.func @transform_2(%arg0: i32) -> (i32, i32) {
    %c0_i32 = arith.constant 0 : i32
    %c0_i32_0 = arith.constant 0 : i32
    %c0_i32_1 = arith.constant 0 : i32
    return %c0_i32, %c0_i32_0 : i32, i32
  }
  func.func @transform_3(%arg0: i32) -> (i32, i32) {
    %c0_i32 = arith.constant 0 : i32
    %c0_i32_0 = arith.constant 0 : i32
    return %arg0, %c0_i32 : i32, i32
  }
}

module attributes {stable_mosaic.version = 11 : i64} {
  func.func @_conv_pool_kernel(%arg0: i32, %arg1: memref<4x18x576xf32, #tpu.memory_space<vmem>>, %arg2: memref<576x128xf32, #tpu.memory_space<vmem>>, %arg3: memref<1x128xf32, #tpu.memory_space<vmem>>, %arg4: memref<18x128xf32, #tpu.memory_space<vmem>>) attributes {dimension_semantics = [#tpu.dimension_semantics<parallel>], iteration_bounds = array<i64: 1>, scalar_prefetch = 0 : i64, scratch_operands = 0 : i64, tpu.core_type = #tpu.core_type<tc>, window_params = [{transform_indices = @transform_0, window_bounds = array<i64: 4, 18, 576>}, {pipeline_mode = #tpu.pipeline_mode<synchronous>, transform_indices = @transform_1, window_bounds = array<i64: 576, 128>}, {pipeline_mode = #tpu.pipeline_mode<synchronous>, transform_indices = @transform_2, window_bounds = array<i64: 1, 128>}, {transform_indices = @transform_3, window_bounds = array<i64: 18, 128>}]} {
    %c0 = arith.constant 0 : index
    %c0_0 = arith.constant 0 : index
    %0 = vector.load %arg2[%c0, %c0_0] : memref<576x128xf32, #tpu.memory_space<vmem>>, vector<576x128xf32>
    %c0_1 = arith.constant 0 : index
    %c0_2 = arith.constant 0 : index
    %c0_3 = arith.constant 0 : index
    %1 = vector.load %arg1[%c0_1, %c0_2, %c0_3] : memref<4x18x576xf32, #tpu.memory_space<vmem>>, vector<1x18x576xf32>
    %2 = vector.shape_cast %1 : vector<1x18x576xf32> to vector<18x576xf32>
    %cst = arith.constant dense<0.000000e+00> : vector<18x128xf32>
    %3 = tpu.matmul %2, %0, %cst {dimension_numbers = #tpu.dot_dimension_numbers<[1], [0], [0], [1], [0, 0, 1, 1], [], []>} : vector<18x576xf32>, vector<576x128xf32>, vector<18x128xf32> -> vector<18x128xf32>
    %c1 = arith.constant 1 : index
    %c0_4 = arith.constant 0 : index
    %c0_5 = arith.constant 0 : index
    %4 = vector.load %arg1[%c1, %c0_4, %c0_5] : memref<4x18x576xf32, #tpu.memory_space<vmem>>, vector<1x18x576xf32>
    %5 = vector.shape_cast %4 : vector<1x18x576xf32> to vector<18x576xf32>
    %cst_6 = arith.constant dense<0.000000e+00> : vector<18x128xf32>
    %6 = tpu.matmul %5, %0, %cst_6 {dimension_numbers = #tpu.dot_dimension_numbers<[1], [0], [0], [1], [0, 0, 1, 1], [], []>} : vector<18x576xf32>, vector<576x128xf32>, vector<18x128xf32> -> vector<18x128xf32>
    %7 = arith.maximumf %3, %6 : vector<18x128xf32>
    %c2 = arith.constant 2 : index
    %c0_7 = arith.constant 0 : index
    %c0_8 = arith.constant 0 : index
    %8 = vector.load %arg1[%c2, %c0_7, %c0_8] : memref<4x18x576xf32, #tpu.memory_space<vmem>>, vector<1x18x576xf32>
    %9 = vector.shape_cast %8 : vector<1x18x576xf32> to vector<18x576xf32>
    %cst_9 = arith.constant dense<0.000000e+00> : vector<18x128xf32>
    %10 = tpu.matmul %9, %0, %cst_9 {dimension_numbers = #tpu.dot_dimension_numbers<[1], [0], [0], [1], [0, 0, 1, 1], [], []>} : vector<18x576xf32>, vector<576x128xf32>, vector<18x128xf32> -> vector<18x128xf32>
    %11 = arith.maximumf %7, %10 : vector<18x128xf32>
    %c3 = arith.constant 3 : index
    %c0_10 = arith.constant 0 : index
    %c0_11 = arith.constant 0 : index
    %12 = vector.load %arg1[%c3, %c0_10, %c0_11] : memref<4x18x576xf32, #tpu.memory_space<vmem>>, vector<1x18x576xf32>
    %13 = vector.shape_cast %12 : vector<1x18x576xf32> to vector<18x576xf32>
    %cst_12 = arith.constant dense<0.000000e+00> : vector<18x128xf32>
    %14 = tpu.matmul %13, %0, %cst_12 {dimension_numbers = #tpu.dot_dimension_numbers<[1], [0], [0], [1], [0, 0, 1, 1], [], []>} : vector<18x576xf32>, vector<576x128xf32>, vector<18x128xf32> -> vector<18x128xf32>
    %15 = arith.maximumf %11, %14 : vector<18x128xf32>
    %c0_13 = arith.constant 0 : index
    %c0_14 = arith.constant 0 : index
    %16 = vector.load %arg3[%c0_13, %c0_14] : memref<1x128xf32, #tpu.memory_space<vmem>>, vector<1x128xf32>
    %17 = vector.broadcast %16 : vector<1x128xf32> to vector<18x128xf32>
    %18 = arith.addf %15, %17 : vector<18x128xf32>
    %cst_15 = arith.constant 0.000000e+00 : f32
    %19 = vector.broadcast %cst_15 : f32 to vector<18x128xf32>
    %20 = arith.maximumf %18, %19 : vector<18x128xf32>
    %c0_16 = arith.constant 0 : index
    %c0_17 = arith.constant 0 : index
    %21 = vector.load %arg4[%c0_16, %c0_17] : memref<18x128xf32, #tpu.memory_space<vmem>>, vector<18x128xf32>
    tpu.vector_store %arg4[%c0_16, %c0_17], %20 {strides = array<i32>} : memref<18x128xf32, #tpu.memory_space<vmem>>, vector<18x128xf32>,
    return
  }
  func.func @transform_0(%arg0: i32) -> (i32, i32, i32) {
    %c0_i32 = arith.constant 0 : i32
    %c0_i32_0 = arith.constant 0 : i32
    %c0_i32_1 = arith.constant 0 : i32
    return %c0_i32, %arg0, %c0_i32_0 : i32, i32, i32
  }
  func.func @transform_1(%arg0: i32) -> (i32, i32) {
    %c0_i32 = arith.constant 0 : i32
    %c0_i32_0 = arith.constant 0 : i32
    %c0_i32_1 = arith.constant 0 : i32
    return %c0_i32, %c0_i32_0 : i32, i32
  }
  func.func @transform_2(%arg0: i32) -> (i32, i32) {
    %c0_i32 = arith.constant 0 : i32
    %c0_i32_0 = arith.constant 0 : i32
    %c0_i32_1 = arith.constant 0 : i32
    return %c0_i32, %c0_i32_0 : i32, i32
  }
  func.func @transform_3(%arg0: i32) -> (i32, i32) {
    %c0_i32 = arith.constant 0 : i32
    %c0_i32_0 = arith.constant 0 : i32
    return %arg0, %c0_i32 : i32, i32
  }
}

module attributes {stable_mosaic.version = 11 : i64} {
  func.func @_mlp_head_kernel(%arg0: i32, %arg1: memref<2x1152xf32, #tpu.memory_space<vmem>>, %arg2: memref<1152x512xf32, #tpu.memory_space<vmem>>, %arg3: memref<1x512xf32, #tpu.memory_space<vmem>>, %arg4: memref<512x256xf32, #tpu.memory_space<vmem>>, %arg5: memref<1x256xf32, #tpu.memory_space<vmem>>, %arg6: memref<256x62xf32, #tpu.memory_space<vmem>>, %arg7: memref<1x62xf32, #tpu.memory_space<vmem>>, %arg8: memref<2x62xf32, #tpu.memory_space<vmem>>) attributes {dimension_semantics = [#tpu.dimension_semantics<parallel>], iteration_bounds = array<i64: 1>, scalar_prefetch = 0 : i64, scratch_operands = 0 : i64, tpu.core_type = #tpu.core_type<tc>, window_params = [{transform_indices = @transform_0, window_bounds = array<i64: 2, 1152>}, {pipeline_mode = #tpu.pipeline_mode<synchronous>, transform_indices = @transform_1, window_bounds = array<i64: 1152, 512>}, {pipeline_mode = #tpu.pipeline_mode<synchronous>, transform_indices = @transform_2, window_bounds = array<i64: 1, 512>}, {pipeline_mode = #tpu.pipeline_mode<synchronous>, transform_indices = @transform_3, window_bounds = array<i64: 512, 256>}, {pipeline_mode = #tpu.pipeline_mode<synchronous>, transform_indices = @transform_4, window_bounds = array<i64: 1, 256>}, {pipeline_mode = #tpu.pipeline_mode<synchronous>, transform_indices = @transform_5, window_bounds = array<i64: 256, 62>}, {pipeline_mode = #tpu.pipeline_mode<synchronous>, transform_indices = @transform_6, window_bounds = array<i64: 1, 62>}, {transform_indices = @transform_7, window_bounds = array<i64: 2, 62>}]} {
    %c0 = arith.constant 0 : index
    %c0_0 = arith.constant 0 : index
    %0 = vector.load %arg1[%c0, %c0_0] : memref<2x1152xf32, #tpu.memory_space<vmem>>, vector<2x1152xf32>
    %c0_1 = arith.constant 0 : index
    %c0_2 = arith.constant 0 : index
    %1 = vector.load %arg2[%c0_1, %c0_2] : memref<1152x512xf32, #tpu.memory_space<vmem>>, vector<1152x512xf32>
    %cst = arith.constant dense<0.000000e+00> : vector<2x512xf32>
    %2 = tpu.matmul %0, %1, %cst {dimension_numbers = #tpu.dot_dimension_numbers<[1], [0], [0], [1], [0, 0, 1, 1], [], []>} : vector<2x1152xf32>, vector<1152x512xf32>, vector<2x512xf32> -> vector<2x512xf32>
    %c0_3 = arith.constant 0 : index
    %c0_4 = arith.constant 0 : index
    %3 = vector.load %arg3[%c0_3, %c0_4] : memref<1x512xf32, #tpu.memory_space<vmem>>, vector<1x512xf32>
    %4 = vector.broadcast %3 : vector<1x512xf32> to vector<2x512xf32>
    %5 = arith.addf %2, %4 : vector<2x512xf32>
    %cst_5 = arith.constant 0.000000e+00 : f32
    %6 = vector.broadcast %cst_5 : f32 to vector<2x512xf32>
    %7 = arith.maximumf %5, %6 : vector<2x512xf32>
    %c0_6 = arith.constant 0 : index
    %c0_7 = arith.constant 0 : index
    %8 = vector.load %arg4[%c0_6, %c0_7] : memref<512x256xf32, #tpu.memory_space<vmem>>, vector<512x256xf32>
    %cst_8 = arith.constant dense<0.000000e+00> : vector<2x256xf32>
    %9 = tpu.matmul %7, %8, %cst_8 {dimension_numbers = #tpu.dot_dimension_numbers<[1], [0], [0], [1], [0, 0, 1, 1], [], []>} : vector<2x512xf32>, vector<512x256xf32>, vector<2x256xf32> -> vector<2x256xf32>
    %c0_9 = arith.constant 0 : index
    %c0_10 = arith.constant 0 : index
    %10 = vector.load %arg5[%c0_9, %c0_10] : memref<1x256xf32, #tpu.memory_space<vmem>>, vector<1x256xf32>
    %11 = vector.broadcast %10 : vector<1x256xf32> to vector<2x256xf32>
    %12 = arith.addf %9, %11 : vector<2x256xf32>
    %c0_11 = arith.constant 0 : index
    %c0_12 = arith.constant 0 : index
    %13 = vector.load %arg6[%c0_11, %c0_12] : memref<256x62xf32, #tpu.memory_space<vmem>>, vector<256x62xf32>
    %cst_13 = arith.constant dense<0.000000e+00> : vector<2x62xf32>
    %14 = tpu.matmul %12, %13, %cst_13 {dimension_numbers = #tpu.dot_dimension_numbers<[1], [0], [0], [1], [0, 0, 1, 1], [], []>} : vector<2x256xf32>, vector<256x62xf32>, vector<2x62xf32> -> vector<2x62xf32>
    %c0_14 = arith.constant 0 : index
    %c0_15 = arith.constant 0 : index
    %15 = vector.load %arg7[%c0_14, %c0_15] : memref<1x62xf32, #tpu.memory_space<vmem>>, vector<1x62xf32>
    %16 = vector.broadcast %15 : vector<1x62xf32> to vector<2x62xf32>
    %17 = arith.addf %14, %16 : vector<2x62xf32>
    %cst_16 = arith.constant dense<0xFF800000> : vector<2xf32>
    %18 = vector.multi_reduction <maximumf>, %17, %cst_16 [1] : vector<2x62xf32> to vector<2xf32>
    %19 = vector.shape_cast %18 : vector<2xf32> to vector<2x1xf32>
    %20 = vector.broadcast %19 : vector<2x1xf32> to vector<2x62xf32>
    %21 = arith.subf %17, %20 : vector<2x62xf32>
    %22 = math.exp %21 : vector<2x62xf32>
    %cst_17 = arith.constant dense<0.000000e+00> : vector<2xf32>
    %23 = vector.multi_reduction <add>, %22, %cst_17 [1] : vector<2x62xf32> to vector<2xf32>
    %24 = vector.shape_cast %23 : vector<2xf32> to vector<2x1xf32>
    %25 = math.log %24 : vector<2x1xf32>
    %26 = vector.broadcast %25 : vector<2x1xf32> to vector<2x62xf32>
    %27 = arith.subf %21, %26 : vector<2x62xf32>
    %c0_18 = arith.constant 0 : index
    %c0_19 = arith.constant 0 : index
    %28 = vector.load %arg8[%c0_18, %c0_19] : memref<2x62xf32, #tpu.memory_space<vmem>>, vector<2x62xf32>
    tpu.vector_store %arg8[%c0_18, %c0_19], %27 {strides = array<i32>} : memref<2x62xf32, #tpu.memory_space<vmem>>, vector<2x62xf32>,
    return
  }
  func.func @transform_0(%arg0: i32) -> (i32, i32) {
    %c0_i32 = arith.constant 0 : i32
    %c0_i32_0 = arith.constant 0 : i32
    return %arg0, %c0_i32 : i32, i32
  }
  func.func @transform_1(%arg0: i32) -> (i32, i32) {
    %c0_i32 = arith.constant 0 : i32
    %c0_i32_0 = arith.constant 0 : i32
    %c0_i32_1 = arith.constant 0 : i32
    return %c0_i32, %c0_i32_0 : i32, i32
  }
  func.func @transform_2(%arg0: i32) -> (i32, i32) {
    %c0_i32 = arith.constant 0 : i32
    %c0_i32_0 = arith.constant 0 : i32
    %c0_i32_1 = arith.constant 0 : i32
    return %c0_i32, %c0_i32_0 : i32, i32
  }
  func.func @transform_3(%arg0: i32) -> (i32, i32) {
    %c0_i32 = arith.constant 0 : i32
    %c0_i32_0 = arith.constant 0 : i32
    %c0_i32_1 = arith.constant 0 : i32
    return %c0_i32, %c0_i32_0 : i32, i32
  }
  func.func @transform_4(%arg0: i32) -> (i32, i32) {
    %c0_i32 = arith.constant 0 : i32
    %c0_i32_0 = arith.constant 0 : i32
    %c0_i32_1 = arith.constant 0 : i32
    return %c0_i32, %c0_i32_0 : i32, i32
  }
  func.func @transform_5(%arg0: i32) -> (i32, i32) {
    %c0_i32 = arith.constant 0 : i32
    %c0_i32_0 = arith.constant 0 : i32
    %c0_i32_1 = arith.constant 0 : i32
    return %c0_i32, %c0_i32_0 : i32, i32
  }
  func.func @transform_6(%arg0: i32) -> (i32, i32) {
    %c0_i32 = arith.constant 0 : i32
    %c0_i32_0 = arith.constant 0 : i32
    %c0_i32_1 = arith.constant 0 : i32
    return %c0_i32, %c0_i32_0 : i32, i32
  }
  func.func @transform_7(%arg0: i32) -> (i32, i32) {
    %c0_i32 = arith.constant 0 : i32
    %c0_i32_0 = arith.constant 0 : i32
    return %arg0, %c0_i32 : i32, i32
  }
}

</mosaic_0001>

<bundles_post_ra>
// kernel: cnn_emnist_forward.4
= control target key start
LH: loop header
LB: loop body
LE: loop exit
PB: predicated region body
PF: predicated region fallthrough
CT: control target
= control target key end

     0   :  { %vm213_vm0 = vcmask 1040384   ;;  %vm65_vm1 = vcmask 72704   ;;  %vm1713_vm2 = vcmask 261120   ;;  %s3181_s1 = inlined_call_operand.vmem [shape: f32[9,32], index: 1, kind: input, shape index: {}]   ;;  %s3182_s0 = inlined_call_operand.vmem [shape: f32[4,392,9], index: 0, kind: input, shape index: {}]   ;;  %s3183_s2 = inlined_call_operand.vmem [shape: f32[1,32], index: 2, kind: input, shape index: {}]   ;;  %s3184_s3 = inlined_call_operand.vmem [shape: f32[392,32], index: 3, kind: output, shape index: {}]  }
   0x1   :  { %v15_v0 = vld [vmem:[%s3181_s1 + $0x8] sm:$0x1]  ;;  %v14_v1 = vld [vmem:[%s3181_s1] sm:$0xff]  ;;  %v1916_v2 = vld [vmem:[%s3182_s0 + $0x310] sm:$0xff] }
   0x2   :  { %1965 = vmatpush.msk.msra.mxu2 %vm213_vm0, %v15_v0  ;;  %2064 = vmatpush.msk.msra.mxu3 %vm213_vm0, %v15_v0  ;;  %v2015_v3 = vld [vmem:[%s3182_s0 + $0x498] sm:$0xff]  ;;  %v16_v4 = vld [vmem:[%s3182_s0] sm:$0xff]  ;;  %v1817_v5 = vld [vmem:[%s3182_s0 + $0x188] sm:$0xff] }
   0x3   :  { %1767 = vmatpush.msk.msra.mxu0 %vm213_vm0, %v15_v0  ;;  %1866 = vmatpush.msk.msra.mxu1 %vm213_vm0, %v15_v0  ;;  %v1917_v6 = vld [vmem:[%s3182_s0 + $0x318] sm:$0xff]  ;;  %v2016_v7 = vld [vmem:[%s3182_s0 + $0x4a0] sm:$0xff]  ;;  %v17_v8 = vld [vmem:[%s3182_s0 + $0x8] sm:$0xff] }
   0x4   :  { %1003 = vmatpush.msra.mxu2 %v14_v1  ;;  %1413 = vmatpush.msra.mxu3 %v14_v1  ;;  %v1818_v9 = vld [vmem:[%s3182_s0 + $0x190] sm:$0xff]  ;;  %v1918_v10 = vld [vmem:[%s3182_s0 + $0x320] sm:$0xff]  ;;  %v2017_v11 = vld [vmem:[%s3182_s0 + $0x4a8] sm:$0xff] }
   0x5   :  { %1966 = vmatmul.msk.f32.vlgmr.msra.gmra.mxu2 %vm65_vm1, %v1916_v2  ;;  %2065 = vmatmul.msk.f32.vlgmr.msra.gmra.mxu3 %vm65_vm1, %v2015_v3  ;;  %v18_v12 = vld [vmem:[%s3182_s0 + $0x10] sm:$0xff]  ;;  %v1819_v13 = vld [vmem:[%s3182_s0 + $0x198] sm:$0xff]  ;;  %v1919_v14 = vld [vmem:[%s3182_s0 + $0x328] sm:$0xff] }
   0x6   :  { %232 = vmatpush.msra.mxu0 %v14_v1  ;;  %593 = vmatpush.msra.mxu1 %v14_v1  ;;  %v2018_v15 = vld [vmem:[%s3182_s0 + $0x4b0] sm:$0xff]  ;;  %v19_v16 = vld [vmem:[%s3182_s0 + $0x18] sm:$0xff]  ;;  %v1820_v17 = vld [vmem:[%s3182_s0 + $0x1a0] sm:$0xff] }
   0x7   :  { %1768 = vmatmul.msk.f32.vlgmr.msra.gmra.mxu0 %vm65_vm1, %v16_v4  ;;  %1867 = vmatmul.msk.f32.vlgmr.msra.gmra.mxu1 %vm65_vm1, %v1817_v5  ;;  %v1920_v18 = vld [vmem:[%s3182_s0 + $0x330] sm:$0xff]  ;;  %v2019_v19 = vld [vmem:[%s3182_s0 + $0x4b8] sm:$0xff]  ;;  %v20_v20 = vld [vmem:[%s3182_s0 + $0x20] sm:$0xff] }
   0x8   :  { %v1821_v21 = vld [vmem:[%s3182_s0 + $0x1a8] sm:$0xff]  ;;  %v1921_v22 = vld [vmem:[%s3182_s0 + $0x338] sm:$0xff]  ;;  %v2020_v23 = vld [vmem:[%s3182_s0 + $0x4c0] sm:$0xff] }
   0x9   :  { %v21_v24 = vld [vmem:[%s3182_s0 + $0x28] sm:$0xff]  ;;  %v1822_v25 = vld [vmem:[%s3182_s0 + $0x1b0] sm:$0xff]  ;;  %v1922_v26 = vld [vmem:[%s3182_s0 + $0x340] sm:$0xff] }
   0xa   :  { %v2021_v27 = vld [vmem:[%s3182_s0 + $0x4c8] sm:$0xff]  ;;  %v22_v28 = vld [vmem:[%s3182_s0 + $0x30] sm:$0xff]  ;;  %v1823_v29 = vld [vmem:[%s3182_s0 + $0x1b8] sm:$0xff] }
   0xb   :  { %v1923_v30 = vld [vmem:[%s3182_s0 + $0x348] sm:$0xff]  ;;  %v2022_v31 = vld [vmem:[%s3182_s0 + $0x4d0] sm:$0xff]  ;;  %v23_v32 = vld [vmem:[%s3182_s0 + $0x38] sm:$0xff] }
   0xc   :  { %v1824_v33 = vld [vmem:[%s3182_s0 + $0x1c0] sm:$0xff]  ;;  %v1924_v34 = vld [vmem:[%s3182_s0 + $0x350] sm:$0xff]  ;;  %v2023_v35 = vld [vmem:[%s3182_s0 + $0x4d8] sm:$0xff] }
   0xd   :  { %1967 = vmatmul.msk.f32.gmra.mxu2 %vm65_vm1, %v1917_v6  ;;  %2066 = vmatmul.msk.f32.gmra.mxu3 %vm65_vm1, %v2016_v7  ;;  %v24_v36 = vld [vmem:[%s3182_s0 + $0x40] sm:$0xff]  ;;  %v1825_v37 = vld [vmem:[%s3182_s0 + $0x1c8] sm:$0xff]  ;;  %v1925_v38 = vld [vmem:[%s3182_s0 + $0x358] sm:$0xff] }
   0xe   :  { %v2024_v39 = vld [vmem:[%s3182_s0 + $0x4e0] sm:$0xff]  ;;  %v25_v40 = vld [vmem:[%s3182_s0 + $0x48] sm:$0xff]  ;;  %v1826_v41 = vld [vmem:[%s3182_s0 + $0x1d0] sm:$0xff] }
   0xf   :  { %1769 = vmatmul.msk.f32.gmra.mxu0 %vm65_vm1, %v17_v8  ;;  %1868 = vmatmul.msk.f32.gmra.mxu1 %vm65_vm1, %v1818_v9  ;;  %v1926_v42 = vld [vmem:[%s3182_s0 + $0x360] sm:$0xff]  ;;  %v2025_v43 = vld [vmem:[%s3182_s0 + $0x4e8] sm:$0xff]  ;;  %v26_v44 = vld [vmem:[%s3182_s0 + $0x50] sm:$0xff] }
  0x10   :  { %v1827_v45 = vld [vmem:[%s3182_s0 + $0x1d8] sm:$0xff]  ;;  %v1927_v46 = vld [vmem:[%s3182_s0 + $0x368] sm:$0xff]  ;;  %v2026_v47 = vld [vmem:[%s3182_s0 + $0x4f0] sm:$0xff] }
  0x11   :  { %v27_v48 = vld [vmem:[%s3182_s0 + $0x58] sm:$0xff]  ;;  %v1828_v49 = vld [vmem:[%s3182_s0 + $0x1e0] sm:$0xff]  ;;  %v1928_v50 = vld [vmem:[%s3182_s0 + $0x370] sm:$0xff] }
  0x12   :  { %v2027_v51 = vld [vmem:[%s3182_s0 + $0x4f8] sm:$0xff]  ;;  %v28_v52 = vld [vmem:[%s3182_s0 + $0x60] sm:$0xff]  ;;  %v1829_v53 = vld [vmem:[%s3182_s0 + $0x1e8] sm:$0xff] }
  0x13   :  { %v1929_v54 = vld [vmem:[%s3182_s0 + $0x378] sm:$0xff]  ;;  %v2028_v55 = vld [vmem:[%s3182_s0 + $0x500] sm:$0xff]  ;;  %v29_v56 = vld [vmem:[%s3182_s0 + $0x68] sm:$0xff] }
  0x14   :  { %v1830_v57 = vld [vmem:[%s3182_s0 + $0x1f0] sm:$0xff]  ;;  %v1930_v58 = vld [vmem:[%s3182_s0 + $0x380] sm:$0xff]  ;;  %v2029_v59 = vld [vmem:[%s3182_s0 + $0x508] sm:$0xff] }
  0x15   :  { %1968 = vmatmul.msk.f32.gmra.mxu2 %vm65_vm1, %v1918_v10  ;;  %2067 = vmatmul.msk.f32.gmra.mxu3 %vm65_vm1, %v2017_v11  ;;  %v30_v60 = vld [vmem:[%s3182_s0 + $0x70] sm:$0xff]  ;;  %v1831_v61 = vld [vmem:[%s3182_s0 + $0x1f8] sm:$0xff]  ;;  %v1931_v62 = vld [vmem:[%s3182_s0 + $0x388] sm:$0xff] }
  0x16   :  { %v2030_v63 = vld [vmem:[%s3182_s0 + $0x510] sm:$0xff]  ;;  %v31_v0 = vld [vmem:[%s3182_s0 + $0x78] sm:$0xff]  ;;  %v1832_v1 = vld [vmem:[%s3182_s0 + $0x200] sm:$0xff] }
  0x17   :  { %1770 = vmatmul.msk.f32.gmra.mxu0 %vm65_vm1, %v18_v12  ;;  %1869 = vmatmul.msk.f32.gmra.mxu1 %vm65_vm1, %v1819_v13  ;;  %v1932_v2 = vld [vmem:[%s3182_s0 + $0x390] sm:$0xff]  ;;  %v2031_v3 = vld [vmem:[%s3182_s0 + $0x518] sm:$0xff]  ;;  %v32_v6 = vld [vmem:[%s3182_s0 + $0x80] sm:$0xff] }
  0x18   :  { %v1833_v7 = vld [vmem:[%s3182_s0 + $0x208] sm:$0xff]  ;;  %v2417_v12 = vld [vmem:[%s3183_s2] ss:$0 sm:$0xff]  ;;  %v1933_v13 = vld [vmem:[%s3182_s0 + $0x398] sm:$0xff] }
  0x1d   :  { %1969 = vmatmul.msk.f32.gmra.mxu2 %vm65_vm1, %v1919_v14  ;;  %2068 = vmatmul.msk.f32.gmra.mxu3 %vm65_vm1, %v2018_v15  ;;  %v2032_v14 = vld [vmem:[%s3182_s0 + $0x520] sm:$0xff] }
  0x1f   :  { %1771 = vmatmul.msk.f32.gmra.mxu0 %vm65_vm1, %v19_v16  ;;  %1870 = vmatmul.msk.f32.gmra.mxu1 %vm65_vm1, %v1820_v17 }
  0x25   :  { %1970 = vmatmul.msk.f32.gmra.mxu2 %vm65_vm1, %v1920_v18  ;;  %2069 = vmatmul.msk.f32.gmra.mxu3 %vm65_vm1, %v2019_v19  ;;  %v33_v18 = vld [vmem:[%s3182_s0 + $0x88] sm:$0xff]  ;;  %v1834_v19 = vld [vmem:[%s3182_s0 + $0x210] sm:$0xff] }
  0x27   :  { %1772 = vmatmul.msk.f32.gmra.mxu0 %vm65_vm1, %v20_v20  ;;  %1871 = vmatmul.msk.f32.gmra.mxu1 %vm65_vm1, %v1821_v21 }
  0x2d   :  { %1971 = vmatmul.msk.f32.gmra.mxu2 %vm65_vm1, %v1921_v22  ;;  %2070 = vmatmul.msk.f32.gmra.mxu3 %vm65_vm1, %v2020_v23 }
  0x2f   :  { %1773 = vmatmul.msk.f32.gmra.mxu0 %vm65_vm1, %v21_v24  ;;  %1872 = vmatmul.msk.f32.gmra.mxu1 %vm65_vm1, %v1822_v25 }
  0x35   :  { %1972 = vmatmul.msk.f32.gmra.mxu2 %vm65_vm1, %v1922_v26  ;;  %2071 = vmatmul.msk.f32.gmra.mxu3 %vm65_vm1, %v2021_v27  ;;  %v1934_v26 = vld [vmem:[%s3182_s0 + $0x3a0] sm:$0xff]  ;;  %v2033_v27 = vld [vmem:[%s3182_s0 + $0x528] sm:$0xff] }
  0x37   :  { %1774 = vmatmul.msk.f32.gmra.mxu0 %vm65_vm1, %v22_v28  ;;  %1873 = vmatmul.msk.f32.gmra.mxu1 %vm65_vm1, %v1823_v29 }
  0x3d   :  { %1973 = vmatmul.msk.f32.gmra.mxu2 %vm65_vm1, %v1923_v30  ;;  %2072 = vmatmul.msk.f32.gmra.mxu3 %vm65_vm1, %v2022_v31  ;;  %v34_v31 = vld [vmem:[%s3182_s0 + $0x90] sm:$0xff] }
  0x3f   :  { %1775 = vmatmul.msk.f32.gmra.mxu0 %vm65_vm1, %v23_v32  ;;  %1874 = vmatmul.msk.f32.gmra.mxu1 %vm65_vm1, %v1824_v33  ;;  %v1835_v32 = vld [vmem:[%s3182_s0 + $0x218] sm:$0xff] }
  0x45   :  { %1974 = vmatmul.msk.f32.gmra.mxu2 %vm65_vm1, %v1924_v34  ;;  %2073 = vmatmul.msk.f32.gmra.mxu3 %vm65_vm1, %v2023_v35 }
  0x47   :  { %1776 = vmatmul.msk.f32.gmra.mxu0 %vm65_vm1, %v24_v36  ;;  %1875 = vmatmul.msk.f32.gmra.mxu1 %vm65_vm1, %v1825_v37 }
  0x4d   :  { %1975 = vmatmul.msk.f32.gmra.mxu2 %vm65_vm1, %v1925_v38  ;;  %2074 = vmatmul.msk.f32.gmra.mxu3 %vm65_vm1, %v2024_v39  ;;  %v1935_v39 = vld [vmem:[%s3182_s0 + $0x3a8] sm:$0xff] }
  0x4f   :  { %1777 = vmatmul.msk.f32.gmra.mxu0 %vm65_vm1, %v25_v40  ;;  %1876 = vmatmul.msk.f32.gmra.mxu1 %vm65_vm1, %v1826_v41  ;;  %v2034_v40 = vld [vmem:[%s3182_s0 + $0x530] sm:$0xff] }
  0x55   :  { %1976 = vmatmul.msk.f32.gmra.mxu2 %vm65_vm1, %v1926_v42  ;;  %2075 = vmatmul.msk.f32.gmra.mxu3 %vm65_vm1, %v2025_v43 }
  0x57   :  { %1778 = vmatmul.msk.f32.gmra.mxu0 %vm65_vm1, %v26_v44  ;;  %1877 = vmatmul.msk.f32.gmra.mxu1 %vm65_vm1, %v1827_v45  ;;  %v35_v44 = vld [vmem:[%s3182_s0 + $0x98] sm:$0xff]  ;;  %v1836_v45 = vld [vmem:[%s3182_s0 + $0x220] sm:$0xff] }
  0x5d   :  { %1977 = vmatmul.msk.f32.gmra.mxu2 %vm65_vm1, %v1927_v46  ;;  %2076 = vmatmul.msk.f32.gmra.mxu3 %vm65_vm1, %v2026_v47 }
  0x5f   :  { %1779 = vmatmul.msk.f32.gmra.mxu0 %vm65_vm1, %v27_v48  ;;  %1878 = vmatmul.msk.f32.gmra.mxu1 %vm65_vm1, %v1828_v49 }
  0x65   :  { %1978 = vmatmul.msk.f32.gmra.mxu2 %vm65_vm1, %v1928_v50  ;;  %2077 = vmatmul.msk.f32.gmra.mxu3 %vm65_vm1, %v2027_v51 }
  0x67   :  { %1780 = vmatmul.msk.f32.gmra.mxu0 %vm65_vm1, %v28_v52  ;;  %1879 = vmatmul.msk.f32.gmra.mxu1 %vm65_vm1, %v1829_v53  ;;  %v1936_v52 = vld [vmem:[%s3182_s0 + $0x3b0] sm:$0xff]  ;;  %v2035_v53 = vld [vmem:[%s3182_s0 + $0x538] sm:$0xff] }
  0x6d   :  { %1979 = vmatmul.msk.f32.gmra.mxu2 %vm65_vm1, %v1929_v54  ;;  %2078 = vmatmul.msk.f32.gmra.mxu3 %vm65_vm1, %v2028_v55 }
  0x6f   :  { %1781 = vmatmul.msk.f32.gmra.mxu0 %vm65_vm1, %v29_v56  ;;  %1880 = vmatmul.msk.f32.gmra.mxu1 %vm65_vm1, %v1830_v57  ;;  %v36_v57 = vld [vmem:[%s3182_s0 + $0xa0] sm:$0xff] }
  0x75   :  { %1980 = vmatmul.msk.f32.gmra.mxu2 %vm65_vm1, %v1930_v58  ;;  %2079 = vmatmul.msk.f32.gmra.mxu3 %vm65_vm1, %v2029_v59  ;;  %v1837_v58 = vld [vmem:[%s3182_s0 + $0x228] sm:$0xff] }
  0x77   :  { %1782 = vmatmul.msk.f32.gmra.mxu0 %vm65_vm1, %v30_v60  ;;  %1881 = vmatmul.msk.f32.gmra.mxu1 %vm65_vm1, %v1831_v61 }
  0x7d   :  { %1981 = vmatmul.msk.f32.gmra.mxu2 %vm65_vm1, %v1931_v62  ;;  %2080 = vmatmul.msk.f32.gmra.mxu3 %vm65_vm1, %v2030_v63 }
  0x7f   :  { %1783 = vmatmul.msk.f32.gmra.mxu0 %vm65_vm1, %v31_v0  ;;  %1882 = vmatmul.msk.f32.gmra.mxu1 %vm65_vm1, %v1832_v1  ;;  %v1937_v1 = vld [vmem:[%s3182_s0 + $0x3b8] sm:$0xff] }
  0x84   :  { %v234_v4 = vpop.f32.mrf.mxu0  ;;  %v595_v5 = vpop.f32.mrf.mxu1 }
  0x85   :  { %1982 = vmatmul.msk.f32.gmra.mxu2 %vm65_vm1, %v1932_v2  ;;  %v742_v8 = vmax.f32 %v234_v4, %v595_v5  ;;  %2081 = vmatmul.msk.f32.gmra.mxu3 %vm65_vm1, %v2031_v3  ;;  %v2036_v2 = vld [vmem:[%s3182_s0 + $0x540] sm:$0xff] }
  0x87   :  { %1784 = vmatmul.msk.f32.gmra.mxu0 %vm65_vm1, %v32_v6  ;;  %1883 = vmatmul.msk.f32.gmra.mxu1 %vm65_vm1, %v1833_v7  ;;  %v37_v6 = vld [vmem:[%s3182_s0 + $0xa8] sm:$0xff]  ;;  %v1838_v7 = vld [vmem:[%s3182_s0 + $0x230] sm:$0xff] }
  0x88   :  { %v1005_v9 = vpop.f32.mrf.mxu2  ;;  %v1415_v10 = vpop.f32.mrf.mxu3 }
  0x89   :  { %v1152_v11 = vmax.f32 %v742_v8, %v1005_v9 }
  0x8b   :  { %v1562_v15 = vmax.f32 %v1152_v11, %v1415_v10 }
  0x8c   :  { %v237_v16 = vpop.f32.mrf.mxu0  ;;  %v598_v17 = vpop.f32.mrf.mxu1 }
  0x8d   :  { %v1615_v20 = vadd.f32 %v2417_v12, %v1562_v15  ;;  %1983 = vmatmul.msk.f32.gmra.mxu2 %vm65_vm1, %v1933_v13  ;;  %v743_v21 = vmax.f32 %v237_v16, %v598_v17  ;;  %2082 = vmatmul.msk.f32.gmra.mxu3 %vm65_vm1, %v2032_v14  ;;  %v1938_v15 = vld [vmem:[%s3182_s0 + $0x3c0] sm:$0xff]  ;;  %v2037_v16 = vld [vmem:[%s3182_s0 + $0x548] sm:$0xff] }
  0x8f   :  { %v1664_v22 = vmax.f32 %v1615_v20, 0.0  ;;  %1785 = vmatmul.msk.f32.gmra.mxu0 %vm65_vm1, %v33_v18  ;;  %1884 = vmatmul.msk.f32.gmra.mxu1 %vm65_vm1, %v1834_v19  ;;  %v38_v20 = vld [vmem:[%s3182_s0 + $0xb0] sm:$0xff] }
  0x90   :  { %v1008_v23 = vpop.f32.mrf.mxu2  ;;  %v1418_v24 = vpop.f32.mrf.mxu3 }
  0x91   :  { %1714 = vst.msk [vmem:[%s3184_s3] sm:$0xff] %vm1713_vm2, %v1664_v22  ;;  %v1153_v25 = vmax.f32 %v743_v21, %v1008_v23  ;;  %v1839_v21 = vld [vmem:[%s3182_s0 + $0x238] sm:$0xff] }
  0x93   :  { %v1563_v28 = vmax.f32 %v1153_v25, %v1418_v24 }
  0x94   :  { %v240_v29 = vpop.f32.mrf.mxu0  ;;  %v601_v30 = vpop.f32.mrf.mxu1 }
  0x95   :  { %v1616_v33 = vadd.f32 %v2417_v12, %v1563_v28  ;;  %1984 = vmatmul.msk.f32.gmra.mxu2 %vm65_vm1, %v1934_v26  ;;  %v744_v34 = vmax.f32 %v240_v29, %v601_v30  ;;  %2083 = vmatmul.msk.f32.gmra.mxu3 %vm65_vm1, %v2033_v27  ;;  %v1939_v28 = vld [vmem:[%s3182_s0 + $0x3c8] sm:$0xff]  ;;  %v2038_v29 = vld [vmem:[%s3182_s0 + $0x550] sm:$0xff] }
  0x97   :  { %v1665_v35 = vmax.f32 %v1616_v33, 0.0  ;;  %1786 = vmatmul.msk.f32.gmra.mxu0 %vm65_vm1, %v34_v31  ;;  %1885 = vmatmul.msk.f32.gmra.mxu1 %vm65_vm1, %v1835_v32  ;;  %v39_v33 = vld [vmem:[%s3182_s0 + $0xb8] sm:$0xff] }
  0x98   :  { %v1011_v36 = vpop.f32.mrf.mxu2  ;;  %v1421_v37 = vpop.f32.mrf.mxu3 }
  0x99   :  { %1715 = vst.msk [vmem:[%s3184_s3 + $0x8] sm:$0xff] %vm1713_vm2, %v1665_v35  ;;  %v1154_v38 = vmax.f32 %v744_v34, %v1011_v36  ;;  %v1840_v34 = vld [vmem:[%s3182_s0 + $0x240] sm:$0xff] }
  0x9b   :  { %v1564_v41 = vmax.f32 %v1154_v38, %v1421_v37 }
  0x9c   :  { %v243_v42 = vpop.f32.mrf.mxu0  ;;  %v604_v43 = vpop.f32.mrf.mxu1 }
  0x9d   :  { %v1617_v46 = vadd.f32 %v2417_v12, %v1564_v41  ;;  %1985 = vmatmul.msk.f32.gmra.mxu2 %vm65_vm1, %v1935_v39  ;;  %v745_v47 = vmax.f32 %v243_v42, %v604_v43  ;;  %2084 = vmatmul.msk.f32.gmra.mxu3 %vm65_vm1, %v2034_v40  ;;  %v1940_v41 = vld [vmem:[%s3182_s0 + $0x3d0] sm:$0xff]  ;;  %v2039_v42 = vld [vmem:[%s3182_s0 + $0x558] sm:$0xff] }
  0x9f   :  { %v1666_v48 = vmax.f32 %v1617_v46, 0.0  ;;  %1787 = vmatmul.msk.f32.gmra.mxu0 %vm65_vm1, %v35_v44  ;;  %1886 = vmatmul.msk.f32.gmra.mxu1 %vm65_vm1, %v1836_v45  ;;  %v40_v46 = vld [vmem:[%s3182_s0 + $0xc0] sm:$0xff] }
  0xa0   :  { %v1014_v49 = vpop.f32.mrf.mxu2  ;;  %v1424_v50 = vpop.f32.mrf.mxu3 }
  0xa1   :  { %1716 = vst.msk [vmem:[%s3184_s3 + $0x10] sm:$0xff] %vm1713_vm2, %v1666_v48  ;;  %v1155_v51 = vmax.f32 %v745_v47, %v1014_v49  ;;  %v1841_v47 = vld [vmem:[%s3182_s0 + $0x248] sm:$0xff] }
  0xa3   :  { %v1565_v54 = vmax.f32 %v1155_v51, %v1424_v50 }
  0xa4   :  { %v246_v55 = vpop.f32.mrf.mxu0  ;;  %v607_v56 = vpop.f32.mrf.mxu1 }
  0xa5   :  { %v1618_v59 = vadd.f32 %v2417_v12, %v1565_v54  ;;  %1986 = vmatmul.msk.f32.gmra.mxu2 %vm65_vm1, %v1936_v52  ;;  %v746_v60 = vmax.f32 %v246_v55, %v607_v56  ;;  %2085 = vmatmul.msk.f32.gmra.mxu3 %vm65_vm1, %v2035_v53  ;;  %v1941_v54 = vld [vmem:[%s3182_s0 + $0x3d8] sm:$0xff]  ;;  %v2040_v55 = vld [vmem:[%s3182_s0 + $0x560] sm:$0xff] }
  0xa7   :  { %v1667_v61 = vmax.f32 %v1618_v59, 0.0  ;;  %1788 = vmatmul.msk.f32.gmra.mxu0 %vm65_vm1, %v36_v57  ;;  %1887 = vmatmul.msk.f32.gmra.mxu1 %vm65_vm1, %v1837_v58  ;;  %v41_v59 = vld [vmem:[%s3182_s0 + $0xc8] sm:$0xff] }
  0xa8   :  { %v1017_v62 = vpop.f32.mrf.mxu2  ;;  %v1427_v63 = vpop.f32.mrf.mxu3 }
  0xa9   :  { %1717 = vst.msk [vmem:[%s3184_s3 + $0x18] sm:$0xff] %vm1713_vm2, %v1667_v61  ;;  %v1156_v0 = vmax.f32 %v746_v60, %v1017_v62  ;;  %v1842_v60 = vld [vmem:[%s3182_s0 + $0x250] sm:$0xff] }
  0xab   :  { %v1566_v3 = vmax.f32 %v1156_v0, %v1427_v63 }
  0xac   :  { %v249_v4 = vpop.f32.mrf.mxu0  ;;  %v610_v5 = vpop.f32.mrf.mxu1 }
  0xad   :  { %v1619_v8 = vadd.f32 %v2417_v12, %v1566_v3  ;;  %1987 = vmatmul.msk.f32.gmra.mxu2 %vm65_vm1, %v1937_v1  ;;  %v747_v9 = vmax.f32 %v249_v4, %v610_v5  ;;  %2086 = vmatmul.msk.f32.gmra.mxu3 %vm65_vm1, %v2036_v2  ;;  %v1942_v3 = vld [vmem:[%s3182_s0 + $0x3e0] sm:$0xff]  ;;  %v2041_v4 = vld [vmem:[%s3182_s0 + $0x568] sm:$0xff] }
  0xaf   :  { %v1668_v10 = vmax.f32 %v1619_v8, 0.0  ;;  %1789 = vmatmul.msk.f32.gmra.mxu0 %vm65_vm1, %v37_v6  ;;  %1888 = vmatmul.msk.f32.gmra.mxu1 %vm65_vm1, %v1838_v7  ;;  %v42_v8 = vld [vmem:[%s3182_s0 + $0xd0] sm:$0xff] }
  0xb0   :  { %v1020_v11 = vpop.f32.mrf.mxu2  ;;  %v1430_v13 = vpop.f32.mrf.mxu3 }
  0xb1   :  { %1718 = vst.msk [vmem:[%s3184_s3 + $0x20] sm:$0xff] %vm1713_vm2, %v1668_v10  ;;  %v1157_v14 = vmax.f32 %v747_v9, %v1020_v11  ;;  %v1843_v9 = vld [vmem:[%s3182_s0 + $0x258] sm:$0xff] }
  0xb3   :  { %v1567_v17 = vmax.f32 %v1157_v14, %v1430_v13 }
  0xb4   :  { %v252_v18 = vpop.f32.mrf.mxu0  ;;  %v613_v19 = vpop.f32.mrf.mxu1 }
  0xb5   :  { %v1620_v22 = vadd.f32 %v2417_v12, %v1567_v17  ;;  %1988 = vmatmul.msk.f32.gmra.mxu2 %vm65_vm1, %v1938_v15  ;;  %v748_v23 = vmax.f32 %v252_v18, %v613_v19  ;;  %2087 = vmatmul.msk.f32.gmra.mxu3 %vm65_vm1, %v2037_v16  ;;  %v1943_v17 = vld [vmem:[%s3182_s0 + $0x3e8] sm:$0xff]  ;;  %v2042_v18 = vld [vmem:[%s3182_s0 + $0x570] sm:$0xff] }
  0xb7   :  { %v1669_v24 = vmax.f32 %v1620_v22, 0.0  ;;  %1790 = vmatmul.msk.f32.gmra.mxu0 %vm65_vm1, %v38_v20  ;;  %1889 = vmatmul.msk.f32.gmra.mxu1 %vm65_vm1, %v1839_v21  ;;  %v43_v22 = vld [vmem:[%s3182_s0 + $0xd8] sm:$0xff] }
  0xb8   :  { %v1023_v25 = vpop.f32.mrf.mxu2  ;;  %v1433_v26 = vpop.f32.mrf.mxu3 }
  0xb9   :  { %1719 = vst.msk [vmem:[%s3184_s3 + $0x28] sm:$0xff] %vm1713_vm2, %v1669_v24  ;;  %v1158_v27 = vmax.f32 %v748_v23, %v1023_v25  ;;  %v1844_v23 = vld [vmem:[%s3182_s0 + $0x260] sm:$0xff] }
  0xbb   :  { %v1568_v30 = vmax.f32 %v1158_v27, %v1433_v26 }
  0xbc   :  { %v255_v31 = vpop.f32.mrf.mxu0  ;;  %v616_v32 = vpop.f32.mrf.mxu1 }
  0xbd   :  { %v1621_v35 = vadd.f32 %v2417_v12, %v1568_v30  ;;  %1989 = vmatmul.msk.f32.gmra.mxu2 %vm65_vm1, %v1939_v28  ;;  %v749_v36 = vmax.f32 %v255_v31, %v616_v32  ;;  %2088 = vmatmul.msk.f32.gmra.mxu3 %vm65_vm1, %v2038_v29  ;;  %v1944_v30 = vld [vmem:[%s3182_s0 + $0x3f0] sm:$0xff]  ;;  %v2043_v31 = vld [vmem:[%s3182_s0 + $0x578] sm:$0xff] }
  0xbf   :  { %v1670_v37 = vmax.f32 %v1621_v35, 0.0  ;;  %1791 = vmatmul.msk.f32.gmra.mxu0 %vm65_vm1, %v39_v33  ;;  %1890 = vmatmul.msk.f32.gmra.mxu1 %vm65_vm1, %v1840_v34  ;;  %v44_v35 = vld [vmem:[%s3182_s0 + $0xe0] sm:$0xff] }
  0xc0   :  { %v1026_v38 = vpop.f32.mrf.mxu2  ;;  %v1436_v39 = vpop.f32.mrf.mxu3 }
  0xc1   :  { %1720 = vst.msk [vmem:[%s3184_s3 + $0x30] sm:$0xff] %vm1713_vm2, %v1670_v37  ;;  %v1159_v40 = vmax.f32 %v749_v36, %v1026_v38  ;;  %v1845_v36 = vld [vmem:[%s3182_s0 + $0x268] sm:$0xff] }
  0xc3   :  { %v1569_v43 = vmax.f32 %v1159_v40, %v1436_v39 }
  0xc4   :  { %v258_v44 = vpop.f32.mrf.mxu0  ;;  %v619_v45 = vpop.f32.mrf.mxu1 }
  0xc5   :  { %v1622_v48 = vadd.f32 %v2417_v12, %v1569_v43  ;;  %1990 = vmatmul.msk.f32.gmra.mxu2 %vm65_vm1, %v1940_v41  ;;  %v750_v49 = vmax.f32 %v258_v44, %v619_v45  ;;  %2089 = vmatmul.msk.f32.gmra.mxu3 %vm65_vm1, %v2039_v42  ;;  %v1945_v43 = vld [vmem:[%s3182_s0 + $0x3f8] sm:$0xff]  ;;  %v2044_v44 = vld [vmem:[%s3182_s0 + $0x580] sm:$0xff] }
  0xc7   :  { %v1671_v50 = vmax.f32 %v1622_v48, 0.0  ;;  %1792 = vmatmul.msk.f32.gmra.mxu0 %vm65_vm1, %v40_v46  ;;  %1891 = vmatmul.msk.f32.gmra.mxu1 %vm65_vm1, %v1841_v47  ;;  %v45_v48 = vld [vmem:[%s3182_s0 + $0xe8] sm:$0xff] }
  0xc8   :  { %v1029_v51 = vpop.f32.mrf.mxu2  ;;  %v1439_v52 = vpop.f32.mrf.mxu3 }
  0xc9   :  { %1721 = vst.msk [vmem:[%s3184_s3 + $0x38] sm:$0xff] %vm1713_vm2, %v1671_v50  ;;  %v1160_v53 = vmax.f32 %v750_v49, %v1029_v51  ;;  %v1846_v49 = vld [vmem:[%s3182_s0 + $0x270] sm:$0xff] }
  0xcb   :  { %v1570_v56 = vmax.f32 %v1160_v53, %v1439_v52 }
  0xcc   :  { %v261_v57 = vpop.f32.mrf.mxu0  ;;  %v622_v58 = vpop.f32.mrf.mxu1 }
  0xcd   :  { %v1623_v61 = vadd.f32 %v2417_v12, %v1570_v56  ;;  %1991 = vmatmul.msk.f32.gmra.mxu2 %vm65_vm1, %v1941_v54  ;;  %v751_v62 = vmax.f32 %v261_v57, %v622_v58  ;;  %2090 = vmatmul.msk.f32.gmra.mxu3 %vm65_vm1, %v2040_v55  ;;  %v1946_v56 = vld [vmem:[%s3182_s0 + $0x400] sm:$0xff]  ;;  %v2045_v57 = vld [vmem:[%s3182_s0 + $0x588] sm:$0xff] }
  0xcf   :  { %v1672_v63 = vmax.f32 %v1623_v61, 0.0  ;;  %1793 = vmatmul.msk.f32.gmra.mxu0 %vm65_vm1, %v41_v59  ;;  %1892 = vmatmul.msk.f32.gmra.mxu1 %vm65_vm1, %v1842_v60  ;;  %v46_v61 = vld [vmem:[%s3182_s0 + $0xf0] sm:$0xff] }
  0xd0   :  { %v1032_v0 = vpop.f32.mrf.mxu2  ;;  %v1442_v1 = vpop.f32.mrf.mxu3 }
  0xd1   :  { %1722 = vst.msk [vmem:[%s3184_s3 + $0x40] sm:$0xff] %vm1713_vm2, %v1672_v63  ;;  %v1161_v2 = vmax.f32 %v751_v62, %v1032_v0  ;;  %v1847_v62 = vld [vmem:[%s3182_s0 + $0x278] sm:$0xff] }
  0xd3   :  { %v1571_v5 = vmax.f32 %v1161_v2, %v1442_v1 }
  0xd4   :  { %v264_v6 = vpop.f32.mrf.mxu0  ;;  %v625_v7 = vpop.f32.mrf.mxu1 }
  0xd5   :  { %v1624_v10 = vadd.f32 %v2417_v12, %v1571_v5  ;;  %1992 = vmatmul.msk.f32.gmra.mxu2 %vm65_vm1, %v1942_v3  ;;  %v752_v11 = vmax.f32 %v264_v6, %v625_v7  ;;  %2091 = vmatmul.msk.f32.gmra.mxu3 %vm65_vm1, %v2041_v4  ;;  %v1947_v5 = vld [vmem:[%s3182_s0 + $0x408] sm:$0xff]  ;;  %v2046_v6 = vld [vmem:[%s3182_s0 + $0x590] sm:$0xff] }
  0xd7   :  { %v1673_v13 = vmax.f32 %v1624_v10, 0.0  ;;  %1794 = vmatmul.msk.f32.gmra.mxu0 %vm65_vm1, %v42_v8  ;;  %1893 = vmatmul.msk.f32.gmra.mxu1 %vm65_vm1, %v1843_v9  ;;  %v47_v10 = vld [vmem:[%s3182_s0 + $0xf8] sm:$0xff] }
  0xd8   :  { %v1035_v14 = vpop.f32.mrf.mxu2  ;;  %v1445_v15 = vpop.f32.mrf.mxu3 }
  0xd9   :  { %1723 = vst.msk [vmem:[%s3184_s3 + $0x48] sm:$0xff] %vm1713_vm2, %v1673_v13  ;;  %v1162_v16 = vmax.f32 %v752_v11, %v1035_v14  ;;  %v1848_v11 = vld [vmem:[%s3182_s0 + $0x280] sm:$0xff] }
  0xdb   :  { %v1572_v19 = vmax.f32 %v1162_v16, %v1445_v15 }
  0xdc   :  { %v267_v20 = vpop.f32.mrf.mxu0  ;;  %v628_v21 = vpop.f32.mrf.mxu1 }
  0xdd   :  { %v1625_v24 = vadd.f32 %v2417_v12, %v1572_v19  ;;  %1993 = vmatmul.msk.f32.gmra.mxu2 %vm65_vm1, %v1943_v17  ;;  %v753_v25 = vmax.f32 %v267_v20, %v628_v21  ;;  %2092 = vmatmul.msk.f32.gmra.mxu3 %vm65_vm1, %v2042_v18  ;;  %v1948_v19 = vld [vmem:[%s3182_s0 + $0x410] sm:$0xff]  ;;  %v2047_v20 = vld [vmem:[%s3182_s0 + $0x598] sm:$0xff] }
  0xdf   :  { %v1674_v26 = vmax.f32 %v1625_v24, 0.0  ;;  %1795 = vmatmul.msk.f32.gmra.mxu0 %vm65_vm1, %v43_v22  ;;  %1894 = vmatmul.msk.f32.gmra.mxu1 %vm65_vm1, %v1844_v23  ;;  %v48_v24 = vld [vmem:[%s3182_s0 + $0x100] sm:$0xff] }
  0xe0   :  { %v1038_v27 = vpop.f32.mrf.mxu2  ;;  %v1448_v28 = vpop.f32.mrf.mxu3 }
  0xe1   :  { %1724 = vst.msk [vmem:[%s3184_s3 + $0x50] sm:$0xff] %vm1713_vm2, %v1674_v26  ;;  %v1163_v29 = vmax.f32 %v753_v25, %v1038_v27  ;;  %v1849_v25 = vld [vmem:[%s3182_s0 + $0x288] sm:$0xff] }
  0xe3   :  { %v1573_v32 = vmax.f32 %v1163_v29, %v1448_v28 }
  0xe4   :  { %v270_v33 = vpop.f32.mrf.mxu0  ;;  %v631_v34 = vpop.f32.mrf.mxu1 }
  0xe5   :  { %v1626_v37 = vadd.f32 %v2417_v12, %v1573_v32  ;;  %1994 = vmatmul.msk.f32.gmra.mxu2 %vm65_vm1, %v1944_v30  ;;  %v754_v38 = vmax.f32 %v270_v33, %v631_v34  ;;  %2093 = vmatmul.msk.f32.gmra.mxu3 %vm65_vm1, %v2043_v31  ;;  %v1949_v32 = vld [vmem:[%s3182_s0 + $0x418] sm:$0xff]  ;;  %v2048_v33 = vld [vmem:[%s3182_s0 + $0x5a0] sm:$0xff] }
  0xe7   :  { %v1675_v39 = vmax.f32 %v1626_v37, 0.0  ;;  %1796 = vmatmul.msk.f32.gmra.mxu0 %vm65_vm1, %v44_v35  ;;  %1895 = vmatmul.msk.f32.gmra.mxu1 %vm65_vm1, %v1845_v36  ;;  %v49_v37 = vld [vmem:[%s3182_s0 + $0x108] sm:$0xff] }
  0xe8   :  { %v1041_v40 = vpop.f32.mrf.mxu2  ;;  %v1451_v41 = vpop.f32.mrf.mxu3 }
  0xe9   :  { %1725 = vst.msk [vmem:[%s3184_s3 + $0x58] sm:$0xff] %vm1713_vm2, %v1675_v39  ;;  %v1164_v42 = vmax.f32 %v754_v38, %v1041_v40  ;;  %v1850_v38 = vld [vmem:[%s3182_s0 + $0x290] sm:$0xff] }
  0xeb   :  { %v1574_v45 = vmax.f32 %v1164_v42, %v1451_v41 }
  0xec   :  { %v273_v46 = vpop.f32.mrf.mxu0  ;;  %v634_v47 = vpop.f32.mrf.mxu1 }
  0xed   :  { %v1627_v50 = vadd.f32 %v2417_v12, %v1574_v45  ;;  %1995 = vmatmul.msk.f32.gmra.mxu2 %vm65_vm1, %v1945_v43  ;;  %v755_v51 = vmax.f32 %v273_v46, %v634_v47  ;;  %2094 = vmatmul.msk.f32.gmra.mxu3 %vm65_vm1, %v2044_v44  ;;  %v1950_v45 = vld [vmem:[%s3182_s0 + $0x420] sm:$0xff]  ;;  %v2049_v46 = vld [vmem:[%s3182_s0 + $0x5a8] sm:$0xff] }
  0xef   :  { %v1676_v52 = vmax.f32 %v1627_v50, 0.0  ;;  %1797 = vmatmul.msk.f32.gmra.mxu0 %vm65_vm1, %v45_v48  ;;  %1896 = vmatmul.msk.f32.gmra.mxu1 %vm65_vm1, %v1846_v49  ;;  %v50_v50 = vld [vmem:[%s3182_s0 + $0x110] sm:$0xff] }
  0xf0   :  { %v1044_v53 = vpop.f32.mrf.mxu2  ;;  %v1454_v54 = vpop.f32.mrf.mxu3 }
  0xf1   :  { %1726 = vst.msk [vmem:[%s3184_s3 + $0x60] sm:$0xff] %vm1713_vm2, %v1676_v52  ;;  %v1165_v55 = vmax.f32 %v755_v51, %v1044_v53  ;;  %v1851_v51 = vld [vmem:[%s3182_s0 + $0x298] sm:$0xff] }
  0xf3   :  { %v1575_v58 = vmax.f32 %v1165_v55, %v1454_v54 }
  0xf4   :  { %v276_v59 = vpop.f32.mrf.mxu0  ;;  %v637_v60 = vpop.f32.mrf.mxu1 }
  0xf5   :  { %v1628_v63 = vadd.f32 %v2417_v12, %v1575_v58  ;;  %1996 = vmatmul.msk.f32.gmra.mxu2 %vm65_vm1, %v1946_v56  ;;  %v756_v0 = vmax.f32 %v276_v59, %v637_v60  ;;  %2095 = vmatmul.msk.f32.gmra.mxu3 %vm65_vm1, %v2045_v57  ;;  %v1951_v58 = vld [vmem:[%s3182_s0 + $0x428] sm:$0xff]  ;;  %v2050_v59 = vld [vmem:[%s3182_s0 + $0x5b0] sm:$0xff] }
  0xf7   :  { %v1677_v1 = vmax.f32 %v1628_v63, 0.0  ;;  %1798 = vmatmul.msk.f32.gmra.mxu0 %vm65_vm1, %v46_v61  ;;  %1897 = vmatmul.msk.f32.gmra.mxu1 %vm65_vm1, %v1847_v62  ;;  %v51_v63 = vld [vmem:[%s3182_s0 + $0x118] sm:$0xff] }
  0xf8   :  { %v1047_v2 = vpop.f32.mrf.mxu2  ;;  %v1457_v3 = vpop.f32.mrf.mxu3 }
  0xf9   :  { %1727 = vst.msk [vmem:[%s3184_s3 + $0x68] sm:$0xff] %vm1713_vm2, %v1677_v1  ;;  %v1166_v4 = vmax.f32 %v756_v0, %v1047_v2  ;;  %v1852_v0 = vld [vmem:[%s3182_s0 + $0x2a0] sm:$0xff] }
  0xfb   :  { %v1576_v7 = vmax.f32 %v1166_v4, %v1457_v3 }
  0xfc   :  { %v279_v8 = vpop.f32.mrf.mxu0  ;;  %v640_v9 = vpop.f32.mrf.mxu1 }
  0xfd   :  { %v1629_v13 = vadd.f32 %v2417_v12, %v1576_v7  ;;  %1997 = vmatmul.msk.f32.gmra.mxu2 %vm65_vm1, %v1947_v5  ;;  %v757_v14 = vmax.f32 %v279_v8, %v640_v9  ;;  %2096 = vmatmul.msk.f32.gmra.mxu3 %vm65_vm1, %v2046_v6  ;;  %v1952_v7 = vld [vmem:[%s3182_s0 + $0x430] sm:$0xff]  ;;  %v2051_v8 = vld [vmem:[%s3182_s0 + $0x5b8] sm:$0xff] }
  0xff   :  { %v1678_v15 = vmax.f32 %v1629_v13, 0.0  ;;  %1799 = vmatmul.msk.f32.gmra.mxu0 %vm65_vm1, %v47_v10  ;;  %1898 = vmatmul.msk.f32.gmra.mxu1 %vm65_vm1, %v1848_v11  ;;  %v52_v13 = vld [vmem:[%s3182_s0 + $0x120] sm:$0xff] }
 0x100   :  { %v1050_v16 = vpop.f32.mrf.mxu2  ;;  %v1460_v17 = vpop.f32.mrf.mxu3 }
 0x101   :  { %1728 = vst.msk [vmem:[%s3184_s3 + $0x70] sm:$0xff] %vm1713_vm2, %v1678_v15  ;;  %v1167_v18 = vmax.f32 %v757_v14, %v1050_v16  ;;  %v1853_v14 = vld [vmem:[%s3182_s0 + $0x2a8] sm:$0xff] }
 0x103   :  { %v1577_v21 = vmax.f32 %v1167_v18, %v1460_v17 }
 0x104   :  { %v282_v22 = vpop.f32.mrf.mxu0  ;;  %v643_v23 = vpop.f32.mrf.mxu1 }
 0x105   :  { %v1630_v26 = vadd.f32 %v2417_v12, %v1577_v21  ;;  %1998 = vmatmul.msk.f32.gmra.mxu2 %vm65_vm1, %v1948_v19  ;;  %v758_v27 = vmax.f32 %v282_v22, %v643_v23  ;;  %2097 = vmatmul.msk.f32.gmra.mxu3 %vm65_vm1, %v2047_v20  ;;  %v1953_v21 = vld [vmem:[%s3182_s0 + $0x438] sm:$0xff]  ;;  %v2052_v22 = vld [vmem:[%s3182_s0 + $0x5c0] sm:$0xff] }
 0x107   :  { %v1679_v28 = vmax.f32 %v1630_v26, 0.0  ;;  %1800 = vmatmul.msk.f32.gmra.mxu0 %vm65_vm1, %v48_v24  ;;  %1899 = vmatmul.msk.f32.gmra.mxu1 %vm65_vm1, %v1849_v25  ;;  %v53_v26 = vld [vmem:[%s3182_s0 + $0x128] sm:$0xff] }
 0x108   :  { %v1053_v29 = vpop.f32.mrf.mxu2  ;;  %v1463_v30 = vpop.f32.mrf.mxu3 }
 0x109   :  { %1729 = vst.msk [vmem:[%s3184_s3 + $0x78] sm:$0xff] %vm1713_vm2, %v1679_v28  ;;  %v1168_v31 = vmax.f32 %v758_v27, %v1053_v29  ;;  %v1854_v27 = vld [vmem:[%s3182_s0 + $0x2b0] sm:$0xff] }
 0x10b   :  { %v1578_v34 = vmax.f32 %v1168_v31, %v1463_v30 }
 0x10c   :  { %v285_v35 = vpop.f32.mrf.mxu0  ;;  %v646_v36 = vpop.f32.mrf.mxu1 }
 0x10d   :  { %v1631_v39 = vadd.f32 %v2417_v12, %v1578_v34  ;;  %1999 = vmatmul.msk.f32.gmra.mxu2 %vm65_vm1, %v1949_v32  ;;  %v759_v40 = vmax.f32 %v285_v35, %v646_v36  ;;  %2098 = vmatmul.msk.f32.gmra.mxu3 %vm65_vm1, %v2048_v33  ;;  %v1954_v34 = vld [vmem:[%s3182_s0 + $0x440] sm:$0xff]  ;;  %v2053_v35 = vld [vmem:[%s3182_s0 + $0x5c8] sm:$0xff] }
 0x10f   :  { %v1680_v41 = vmax.f32 %v1631_v39, 0.0  ;;  %1801 = vmatmul.msk.f32.gmra.mxu0 %vm65_vm1, %v49_v37  ;;  %1900 = vmatmul.msk.f32.gmra.mxu1 %vm65_vm1, %v1850_v38  ;;  %v54_v39 = vld [vmem:[%s3182_s0 + $0x130] sm:$0xff] }
 0x110   :  { %v1056_v42 = vpop.f32.mrf.mxu2  ;;  %v1466_v43 = vpop.f32.mrf.mxu3 }
 0x111   :  { %1730 = vst.msk [vmem:[%s3184_s3 + $0x80] sm:$0xff] %vm1713_vm2, %v1680_v41  ;;  %v1169_v44 = vmax.f32 %v759_v40, %v1056_v42  ;;  %v1855_v40 = vld [vmem:[%s3182_s0 + $0x2b8] sm:$0xff] }
 0x113   :  { %v1579_v47 = vmax.f32 %v1169_v44, %v1466_v43 }
 0x114   :  { %v288_v48 = vpop.f32.mrf.mxu0  ;;  %v649_v49 = vpop.f32.mrf.mxu1 }
 0x115   :  { %v1632_v52 = vadd.f32 %v2417_v12, %v1579_v47  ;;  %2000 = vmatmul.msk.f32.gmra.mxu2 %vm65_vm1, %v1950_v45  ;;  %v760_v53 = vmax.f32 %v288_v48, %v649_v49  ;;  %2099 = vmatmul.msk.f32.gmra.mxu3 %vm65_vm1, %v2049_v46  ;;  %v1955_v47 = vld [vmem:[%s3182_s0 + $0x448] sm:$0xff]  ;;  %v2054_v48 = vld [vmem:[%s3182_s0 + $0x5d0] sm:$0xff] }
 0x117   :  { %v1681_v54 = vmax.f32 %v1632_v52, 0.0  ;;  %1802 = vmatmul.msk.f32.gmra.mxu0 %vm65_vm1, %v50_v50  ;;  %1901 = vmatmul.msk.f32.gmra.mxu1 %vm65_vm1, %v1851_v51  ;;  %v55_v52 = vld [vmem:[%s3182_s0 + $0x138] sm:$0xff] }
 0x118   :  { %v1059_v55 = vpop.f32.mrf.mxu2  ;;  %v1469_v56 = vpop.f32.mrf.mxu3 }
 0x119   :  { %1731 = vst.msk [vmem:[%s3184_s3 + $0x88] sm:$0xff] %vm1713_vm2, %v1681_v54  ;;  %v1170_v57 = vmax.f32 %v760_v53, %v1059_v55  ;;  %v1856_v53 = vld [vmem:[%s3182_s0 + $0x2c0] sm:$0xff] }
 0x11b   :  { %v1580_v60 = vmax.f32 %v1170_v57, %v1469_v56 }
 0x11c   :  { %v291_v61 = vpop.f32.mrf.mxu0  ;;  %v652_v62 = vpop.f32.mrf.mxu1 }
 0x11d   :  { %v1633_v1 = vadd.f32 %v2417_v12, %v1580_v60  ;;  %2001 = vmatmul.msk.f32.gmra.mxu2 %vm65_vm1, %v1951_v58  ;;  %v761_v2 = vmax.f32 %v291_v61, %v652_v62  ;;  %2100 = vmatmul.msk.f32.gmra.mxu3 %vm65_vm1, %v2050_v59  ;;  %v1956_v60 = vld [vmem:[%s3182_s0 + $0x450] sm:$0xff]  ;;  %v2055_v61 = vld [vmem:[%s3182_s0 + $0x5d8] sm:$0xff] }
 0x11f   :  { %v1682_v3 = vmax.f32 %v1633_v1, 0.0  ;;  %1803 = vmatmul.msk.f32.gmra.mxu0 %vm65_vm1, %v51_v63  ;;  %1902 = vmatmul.msk.f32.gmra.mxu1 %vm65_vm1, %v1852_v0  ;;  %v56_v1 = vld [vmem:[%s3182_s0 + $0x140] sm:$0xff] }
 0x120   :  { %v1062_v4 = vpop.f32.mrf.mxu2  ;;  %v1472_v5 = vpop.f32.mrf.mxu3 }
 0x121   :  { %1732 = vst.msk [vmem:[%s3184_s3 + $0x90] sm:$0xff] %vm1713_vm2, %v1682_v3  ;;  %v1171_v6 = vmax.f32 %v761_v2, %v1062_v4  ;;  %v1857_v2 = vld [vmem:[%s3182_s0 + $0x2c8] sm:$0xff] }
 0x123   :  { %v1581_v9 = vmax.f32 %v1171_v6, %v1472_v5 }
 0x124   :  { %v294_v10 = vpop.f32.mrf.mxu0  ;;  %v655_v11 = vpop.f32.mrf.mxu1 }
 0x125   :  { %v1634_v15 = vadd.f32 %v2417_v12, %v1581_v9  ;;  %2002 = vmatmul.msk.f32.gmra.mxu2 %vm65_vm1, %v1952_v7  ;;  %v762_v16 = vmax.f32 %v294_v10, %v655_v11  ;;  %2101 = vmatmul.msk.f32.gmra.mxu3 %vm65_vm1, %v2051_v8  ;;  %v1957_v9 = vld [vmem:[%s3182_s0 + $0x458] sm:$0xff]  ;;  %v2056_v10 = vld [vmem:[%s3182_s0 + $0x5e0] sm:$0xff] }
 0x127   :  { %v1683_v17 = vmax.f32 %v1634_v15, 0.0  ;;  %1804 = vmatmul.msk.f32.gmra.mxu0 %vm65_vm1, %v52_v13  ;;  %1903 = vmatmul.msk.f32.gmra.mxu1 %vm65_vm1, %v1853_v14  ;;  %v57_v15 = vld [vmem:[%s3182_s0 + $0x148] sm:$0xff] }
 0x128   :  { %v1065_v18 = vpop.f32.mrf.mxu2  ;;  %v1475_v19 = vpop.f32.mrf.mxu3 }
 0x129   :  { %1733 = vst.msk [vmem:[%s3184_s3 + $0x98] sm:$0xff] %vm1713_vm2, %v1683_v17  ;;  %v1172_v20 = vmax.f32 %v762_v16, %v1065_v18  ;;  %v1858_v16 = vld [vmem:[%s3182_s0 + $0x2d0] sm:$0xff] }
 0x12b   :  { %v1582_v23 = vmax.f32 %v1172_v20, %v1475_v19 }
 0x12c   :  { %v297_v24 = vpop.f32.mrf.mxu0  ;;  %v658_v25 = vpop.f32.mrf.mxu1 }
 0x12d   :  { %v1635_v28 = vadd.f32 %v2417_v12, %v1582_v23  ;;  %2003 = vmatmul.msk.f32.gmra.mxu2 %vm65_vm1, %v1953_v21  ;;  %v763_v29 = vmax.f32 %v297_v24, %v658_v25  ;;  %2102 = vmatmul.msk.f32.gmra.mxu3 %vm65_vm1, %v2052_v22  ;;  %v1958_v23 = vld [vmem:[%s3182_s0 + $0x460] sm:$0xff]  ;;  %v2057_v24 = vld [vmem:[%s3182_s0 + $0x5e8] sm:$0xff] }
 0x12f   :  { %v1684_v30 = vmax.f32 %v1635_v28, 0.0  ;;  %1805 = vmatmul.msk.f32.gmra.mxu0 %vm65_vm1, %v53_v26  ;;  %1904 = vmatmul.msk.f32.gmra.mxu1 %vm65_vm1, %v1854_v27  ;;  %v58_v28 = vld [vmem:[%s3182_s0 + $0x150] sm:$0xff] }
 0x130   :  { %v1068_v31 = vpop.f32.mrf.mxu2  ;;  %v1478_v32 = vpop.f32.mrf.mxu3 }
 0x131   :  { %1734 = vst.msk [vmem:[%s3184_s3 + $0xa0] sm:$0xff] %vm1713_vm2, %v1684_v30  ;;  %v1173_v33 = vmax.f32 %v763_v29, %v1068_v31  ;;  %v1859_v29 = vld [vmem:[%s3182_s0 + $0x2d8] sm:$0xff] }
 0x133   :  { %v1583_v36 = vmax.f32 %v1173_v33, %v1478_v32 }
 0x134   :  { %v300_v37 = vpop.f32.mrf.mxu0  ;;  %v661_v38 = vpop.f32.mrf.mxu1 }
 0x135   :  { %v1636_v41 = vadd.f32 %v2417_v12, %v1583_v36  ;;  %2004 = vmatmul.msk.f32.gmra.mxu2 %vm65_vm1, %v1954_v34  ;;  %v764_v42 = vmax.f32 %v300_v37, %v661_v38  ;;  %2103 = vmatmul.msk.f32.gmra.mxu3 %vm65_vm1, %v2053_v35  ;;  %v1959_v36 = vld [vmem:[%s3182_s0 + $0x468] sm:$0xff]  ;;  %v2058_v37 = vld [vmem:[%s3182_s0 + $0x5f0] sm:$0xff] }
 0x137   :  { %v1685_v43 = vmax.f32 %v1636_v41, 0.0  ;;  %1806 = vmatmul.msk.f32.gmra.mxu0 %vm65_vm1, %v54_v39  ;;  %1905 = vmatmul.msk.f32.gmra.mxu1 %vm65_vm1, %v1855_v40  ;;  %v59_v41 = vld [vmem:[%s3182_s0 + $0x158] sm:$0xff] }
 0x138   :  { %v1071_v44 = vpop.f32.mrf.mxu2  ;;  %v1481_v45 = vpop.f32.mrf.mxu3 }
 0x139   :  { %1735 = vst.msk [vmem:[%s3184_s3 + $0xa8] sm:$0xff] %vm1713_vm2, %v1685_v43  ;;  %v1174_v46 = vmax.f32 %v764_v42, %v1071_v44  ;;  %v1860_v42 = vld [vmem:[%s3182_s0 + $0x2e0] sm:$0xff] }
 0x13b   :  { %v1584_v49 = vmax.f32 %v1174_v46, %v1481_v45 }
 0x13c   :  { %v303_v50 = vpop.f32.mrf.mxu0  ;;  %v664_v51 = vpop.f32.mrf.mxu1 }
 0x13d   :  { %v1637_v54 = vadd.f32 %v2417_v12, %v1584_v49  ;;  %2005 = vmatmul.msk.f32.gmra.mxu2 %vm65_vm1, %v1955_v47  ;;  %v765_v55 = vmax.f32 %v303_v50, %v664_v51  ;;  %2104 = vmatmul.msk.f32.gmra.mxu3 %vm65_vm1, %v2054_v48  ;;  %v1960_v49 = vld [vmem:[%s3182_s0 + $0x470] sm:$0xff]  ;;  %v2059_v50 = vld [vmem:[%s3182_s0 + $0x5f8] sm:$0xff] }
 0x13f   :  { %v1686_v56 = vmax.f32 %v1637_v54, 0.0  ;;  %1807 = vmatmul.msk.f32.gmra.mxu0 %vm65_vm1, %v55_v52  ;;  %1906 = vmatmul.msk.f32.gmra.mxu1 %vm65_vm1, %v1856_v53  ;;  %v60_v54 = vld [vmem:[%s3182_s0 + $0x160] sm:$0xff] }
 0x140   :  { %v1074_v57 = vpop.f32.mrf.mxu2  ;;  %v1484_v58 = vpop.f32.mrf.mxu3 }
 0x141   :  { %1736 = vst.msk [vmem:[%s3184_s3 + $0xb0] sm:$0xff] %vm1713_vm2, %v1686_v56  ;;  %v1175_v59 = vmax.f32 %v765_v55, %v1074_v57  ;;  %v1861_v55 = vld [vmem:[%s3182_s0 + $0x2e8] sm:$0xff] }
 0x143   :  { %v1585_v62 = vmax.f32 %v1175_v59, %v1484_v58 }
 0x144   :  { %v306_v63 = vpop.f32.mrf.mxu0  ;;  %v667_v0 = vpop.f32.mrf.mxu1 }
 0x145   :  { %v1638_v3 = vadd.f32 %v2417_v12, %v1585_v62  ;;  %2006 = vmatmul.msk.f32.gmra.mxu2 %vm65_vm1, %v1956_v60  ;;  %v766_v4 = vmax.f32 %v306_v63, %v667_v0  ;;  %2105 = vmatmul.msk.f32.gmra.mxu3 %vm65_vm1, %v2055_v61  ;;  %v2060_v62 = vld [vmem:[%s3182_s0 + $0x600] sm:$0xff] }
 0x147   :  { %v1687_v5 = vmax.f32 %v1638_v3, 0.0  ;;  %1808 = vmatmul.msk.f32.gmra.mxu0 %vm65_vm1, %v56_v1  ;;  %1907 = vmatmul.msk.f32.gmra.mxu1 %vm65_vm1, %v1857_v2  ;;  %v61_v2 = vld [vmem:[%s3182_s0 + $0x168] sm:$0xff]  ;;  %v1862_v3 = vld [vmem:[%s3182_s0 + $0x2f0] sm:$0xff] }
 0x148   :  { %v1077_v6 = vpop.f32.mrf.mxu2  ;;  %v1487_v7 = vpop.f32.mrf.mxu3 }
 0x149   :  { %1737 = vst.msk [vmem:[%s3184_s3 + $0xb8] sm:$0xff] %vm1713_vm2, %v1687_v5  ;;  %v1176_v8 = vmax.f32 %v766_v4, %v1077_v6  ;;  %v3022_v4 = vld [vmem:[%s3183_s2] ss:$0 sm:$0xff] }
 0x14b   :  { %v1586_v11 = vmax.f32 %v1176_v8, %v1487_v7 }
 0x14c   :  { %v309_v13 = vpop.f32.mrf.mxu0  ;;  %v670_v14 = vpop.f32.mrf.mxu1 }
 0x14d   :  { %v1639_v17 = vadd.f32 %v2417_v12, %v1586_v11  ;;  %2007 = vmatmul.msk.f32.gmra.mxu2 %vm65_vm1, %v1957_v9  ;;  %v767_v18 = vmax.f32 %v309_v13, %v670_v14  ;;  %2106 = vmatmul.msk.f32.gmra.mxu3 %vm65_vm1, %v2056_v10  ;;  %v1962_v11 = vld [vmem:[%s3182_s0 + $0x480] sm:$0xff]  ;;  %v2061_v13 = vld [vmem:[%s3182_s0 + $0x608] sm:$0xff] }
 0x14f   :  { %v1688_v19 = vmax.f32 %v1639_v17, 0.0  ;;  %1809 = vmatmul.msk.f32.gmra.mxu0 %vm65_vm1, %v57_v15  ;;  %1908 = vmatmul.msk.f32.gmra.mxu1 %vm65_vm1, %v1858_v16  ;;  %v62_v17 = vld [vmem:[%s3182_s0 + $0x170] sm:$0xff] }
 0x150   :  { %v1080_v20 = vpop.f32.mrf.mxu2  ;;  %v1490_v21 = vpop.f32.mrf.mxu3 }
 0x151   :  { %1738 = vst.msk [vmem:[%s3184_s3 + $0xc0] sm:$0xff] %vm1713_vm2, %v1688_v19  ;;  %v1177_v22 = vmax.f32 %v767_v18, %v1080_v20  ;;  %v1863_v18 = vld [vmem:[%s3182_s0 + $0x2f8] sm:$0xff] }
 0x153   :  { %v1587_v25 = vmax.f32 %v1177_v22, %v1490_v21 }
 0x154   :  { %v312_v26 = vpop.f32.mrf.mxu0  ;;  %v673_v27 = vpop.f32.mrf.mxu1 }
 0x155   :  { %v1640_v30 = vadd.f32 %v2417_v12, %v1587_v25  ;;  %2008 = vmatmul.msk.f32.gmra.mxu2 %vm65_vm1, %v1958_v23  ;;  %v768_v31 = vmax.f32 %v312_v26, %v673_v27  ;;  %2107 = vmatmul.msk.f32.gmra.mxu3 %vm65_vm1, %v2057_v24  ;;  %v1963_v25 = vld [vmem:[%s3182_s0 + $0x488] sm:$0xff]  ;;  %v2062_v26 = vld [vmem:[%s3182_s0 + $0x610] sm:$0xff] }
 0x157   :  { %v1689_v32 = vmax.f32 %v1640_v30, 0.0  ;;  %1810 = vmatmul.msk.f32.gmra.mxu0 %vm65_vm1, %v58_v28  ;;  %1909 = vmatmul.msk.f32.gmra.mxu1 %vm65_vm1, %v1859_v29  ;;  %v63_v30 = vld [vmem:[%s3182_s0 + $0x178] sm:$0xff] }
 0x158   :  { %v1083_v33 = vpop.f32.mrf.mxu2  ;;  %v1493_v34 = vpop.f32.mrf.mxu3 }
 0x159   :  { %1739 = vst.msk [vmem:[%s3184_s3 + $0xc8] sm:$0xff] %vm1713_vm2, %v1689_v32  ;;  %v1178_v35 = vmax.f32 %v768_v31, %v1083_v33  ;;  %v1864_v31 = vld [vmem:[%s3182_s0 + $0x300] sm:$0xff] }
 0x15b   :  { %v1588_v38 = vmax.f32 %v1178_v35, %v1493_v34 }
 0x15c   :  { %v315_v39 = vpop.f32.mrf.mxu0  ;;  %v676_v40 = vpop.f32.mrf.mxu1 }
 0x15d   :  { %v1641_v43 = vadd.f32 %v2417_v12, %v1588_v38  ;;  %2009 = vmatmul.msk.f32.gmra.mxu2 %vm65_vm1, %v1959_v36  ;;  %v769_v44 = vmax.f32 %v315_v39, %v676_v40  ;;  %2108 = vmatmul.msk.f32.gmra.mxu3 %vm65_vm1, %v2058_v37  ;;  %v1964_v38 = vld [vmem:[%s3182_s0 + $0x490] sm:$0xff]  ;;  %v2063_v39 = vld [vmem:[%s3182_s0 + $0x618] sm:$0xff] }
 0x15f   :  { %v1690_v45 = vmax.f32 %v1641_v43, 0.0  ;;  %1811 = vmatmul.msk.f32.gmra.mxu0 %vm65_vm1, %v59_v41  ;;  %1910 = vmatmul.msk.f32.gmra.mxu1 %vm65_vm1, %v1860_v42  ;;  %v64_v43 = vld [vmem:[%s3182_s0 + $0x180] sm:$0xff] }
 0x160   :  { %v1086_v46 = vpop.f32.mrf.mxu2  ;;  %v1496_v47 = vpop.f32.mrf.mxu3 }
 0x161   :  { %1740 = vst.msk [vmem:[%s3184_s3 + $0xd0] sm:$0xff] %vm1713_vm2, %v1690_v45  ;;  %v1179_v48 = vmax.f32 %v769_v44, %v1086_v46  ;;  %v1865_v44 = vld [vmem:[%s3182_s0 + $0x308] sm:$0xff] }
 0x163   :  { %v1589_v51 = vmax.f32 %v1179_v48, %v1496_v47 }
 0x164   :  { %v318_v52 = vpop.f32.mrf.mxu0  ;;  %v679_v53 = vpop.f32.mrf.mxu1 }
 0x165   :  { %v1642_v56 = vadd.f32 %v2417_v12, %v1589_v51  ;;  %2010 = vmatmul.msk.f32.gmra.mxu2 %vm65_vm1, %v1960_v49  ;;  %v770_v57 = vmax.f32 %v318_v52, %v679_v53  ;;  %2109 = vmatmul.msk.f32.gmra.mxu3 %vm65_vm1, %v2059_v50  ;;  %v1961_v12 = vld [vmem:[%s3182_s0 + $0x478] sm:$0xff] }
 0x167   :  { %v1691_v58 = vmax.f32 %v1642_v56, 0.0  ;;  %1812 = vmatmul.msk.f32.gmra.mxu0 %vm65_vm1, %v60_v54  ;;  %1911 = vmatmul.msk.f32.gmra.mxu1 %vm65_vm1, %v1861_v55 }
 0x168   :  { %v1089_v59 = vpop.f32.mrf.mxu2  ;;  %v1499_v60 = vpop.f32.mrf.mxu3 }
 0x169   :  { %1741 = vst.msk [vmem:[%s3184_s3 + $0xd8] sm:$0xff] %vm1713_vm2, %v1691_v58  ;;  %v1180_v61 = vmax.f32 %v770_v57, %v1089_v59 }
 0x16b   :  { %v1590_v63 = vmax.f32 %v1180_v61, %v1499_v60 }
 0x16c   :  { %v321_v0 = vpop.f32.mrf.mxu0  ;;  %v682_v1 = vpop.f32.mrf.mxu1 }
 0x16d   :  { %v1643_v5 = vadd.f32 %v3022_v4, %v1590_v63  ;;  %2011 = vmatmul.msk.f32.gmra.mxu2 %vm65_vm1, %v1961_v12  ;;  %v771_v6 = vmax.f32 %v321_v0, %v682_v1  ;;  %2110 = vmatmul.msk.f32.gmra.mxu3 %vm65_vm1, %v2060_v62 }
 0x16f   :  { %v1692_v7 = vmax.f32 %v1643_v5, 0.0  ;;  %1813 = vmatmul.msk.f32.gmra.mxu0 %vm65_vm1, %v61_v2  ;;  %1912 = vmatmul.msk.f32.gmra.mxu1 %vm65_vm1, %v1862_v3 }
 0x170   :  { %v1092_v8 = vpop.f32.mrf.mxu2  ;;  %v1502_v9 = vpop.f32.mrf.mxu3 }
 0x171   :  { %1742 = vst.msk [vmem:[%s3184_s3 + $0xe0] sm:$0xff] %vm1713_vm2, %v1692_v7  ;;  %v1181_v10 = vmax.f32 %v771_v6, %v1092_v8 }
 0x173   :  { %v1591_v14 = vmax.f32 %v1181_v10, %v1502_v9 }
 0x174   :  { %v324_v15 = vpop.f32.mrf.mxu0  ;;  %v685_v16 = vpop.f32.mrf.mxu1 }
 0x175   :  { %v1644_v19 = vadd.f32 %v3022_v4, %v1591_v14  ;;  %2012 = vmatmul.msk.f32.gmra.mxu2 %vm65_vm1, %v1962_v11  ;;  %v772_v20 = vmax.f32 %v324_v15, %v685_v16  ;;  %2111 = vmatmul.msk.f32.gmra.mxu3 %vm65_vm1, %v2061_v13 }
 0x177   :  { %v1693_v21 = vmax.f32 %v1644_v19, 0.0  ;;  %1814 = vmatmul.msk.f32.gmra.mxu0 %vm65_vm1, %v62_v17  ;;  %1913 = vmatmul.msk.f32.gmra.mxu1 %vm65_vm1, %v1863_v18 }
 0x178   :  { %v1095_v22 = vpop.f32.mrf.mxu2  ;;  %v1505_v23 = vpop.f32.mrf.mxu3 }
 0x179   :  { %1743 = vst.msk [vmem:[%s3184_s3 + $0xe8] sm:$0xff] %vm1713_vm2, %v1693_v21  ;;  %v1182_v24 = vmax.f32 %v772_v20, %v1095_v22 }
 0x17b   :  { %v1592_v27 = vmax.f32 %v1182_v24, %v1505_v23 }
 0x17c   :  { %v327_v28 = vpop.f32.mrf.mxu0  ;;  %v688_v29 = vpop.f32.mrf.mxu1 }
 0x17d   :  { %v1645_v32 = vadd.f32 %v3022_v4, %v1592_v27  ;;  %2013 = vmatmul.msk.f32.gmra.mxu2 %vm65_vm1, %v1963_v25  ;;  %v773_v33 = vmax.f32 %v327_v28, %v688_v29  ;;  %2112 = vmatmul.msk.f32.gmra.mxu3 %vm65_vm1, %v2062_v26 }
 0x17f   :  { %v1694_v34 = vmax.f32 %v1645_v32, 0.0  ;;  %1815 = vmatmul.msk.f32.gmra.mxu0 %vm65_vm1, %v63_v30  ;;  %1914 = vmatmul.msk.f32.gmra.mxu1 %vm65_vm1, %v1864_v31 }
 0x180   :  { %v1098_v35 = vpop.f32.mrf.mxu2  ;;  %v1508_v36 = vpop.f32.mrf.mxu3 }
 0x181   :  { %1744 = vst.msk [vmem:[%s3184_s3 + $0xf0] sm:$0xff] %vm1713_vm2, %v1694_v34  ;;  %v1183_v37 = vmax.f32 %v773_v33, %v1098_v35 }
 0x183   :  { %v1593_v40 = vmax.f32 %v1183_v37, %v1508_v36 }
 0x184   :  { %v330_v41 = vpop.f32.mrf.mxu0  ;;  %v691_v42 = vpop.f32.mrf.mxu1 }
 0x185   :  { %v1646_v45 = vadd.f32 %v3022_v4, %v1593_v40  ;;  %2014 = vmatmul.msk.f32.gmra.mxu2 %vm65_vm1, %v1964_v38  ;;  %v774_v46 = vmax.f32 %v330_v41, %v691_v42  ;;  %2113 = vmatmul.msk.f32.gmra.mxu3 %vm65_vm1, %v2063_v39 }
 0x187   :  { %v1695_v47 = vmax.f32 %v1646_v45, 0.0  ;;  %1816 = vmatmul.msk.f32.gmra.mxu0 %vm65_vm1, %v64_v43  ;;  %1915 = vmatmul.msk.f32.gmra.mxu1 %vm65_vm1, %v1865_v44 }
 0x188   :  { %v1101_v48 = vpop.f32.mrf.mxu2  ;;  %v1511_v49 = vpop.f32.mrf.mxu3 }
 0x189   :  { %1745 = vst.msk [vmem:[%s3184_s3 + $0xf8] sm:$0xff] %vm1713_vm2, %v1695_v47  ;;  %v1184_v50 = vmax.f32 %v774_v46, %v1101_v48 }
 0x18b   :  { %v1594_v51 = vmax.f32 %v1184_v50, %v1511_v49 }
 0x18c   :  { %v333_v52 = vpop.f32.mrf.mxu0  ;;  %v694_v53 = vpop.f32.mrf.mxu1 }
 0x18d   :  { %v1647_v54 = vadd.f32 %v3022_v4, %v1594_v51  ;;  %v775_v55 = vmax.f32 %v333_v52, %v694_v53 }
 0x18f   :  { %v1696_v56 = vmax.f32 %v1647_v54, 0.0 }
 0x190   :  { %v1104_v57 = vpop.f32.mrf.mxu2  ;;  %v1514_v58 = vpop.f32.mrf.mxu3 }
 0x191   :  { %1746 = vst.msk [vmem:[%s3184_s3 + $0x100] sm:$0xff] %vm1713_vm2, %v1696_v56  ;;  %v1185_v59 = vmax.f32 %v775_v55, %v1104_v57 }
 0x193   :  { %v1595_v60 = vmax.f32 %v1185_v59, %v1514_v58 }
 0x194   :  { %v336_v61 = vpop.f32.mrf.mxu0  ;;  %v697_v12 = vpop.f32.mrf.mxu1 }
 0x195   :  { %v1648_v62 = vadd.f32 %v3022_v4, %v1595_v60  ;;  %v776_v63 = vmax.f32 %v336_v61, %v697_v12 }
 0x197   :  { %v1697_v0 = vmax.f32 %v1648_v62, 0.0 }
 0x198   :  { %v1107_v1 = vpop.f32.mrf.mxu2  ;;  %v1517_v2 = vpop.f32.mrf.mxu3 }
 0x199   :  { %1747 = vst.msk [vmem:[%s3184_s3 + $0x108] sm:$0xff] %vm1713_vm2, %v1697_v0  ;;  %v1186_v3 = vmax.f32 %v776_v63, %v1107_v1 }
 0x19b   :  { %v1596_v5 = vmax.f32 %v1186_v3, %v1517_v2 }
 0x19c   :  { %v339_v6 = vpop.f32.mrf.mxu0  ;;  %v700_v7 = vpop.f32.mrf.mxu1 }
 0x19d   :  { %v1649_v8 = vadd.f32 %v3022_v4, %v1596_v5  ;;  %v777_v9 = vmax.f32 %v339_v6, %v700_v7 }
 0x19f   :  { %v1698_v10 = vmax.f32 %v1649_v8, 0.0 }
 0x1a0   :  { %v1110_v11 = vpop.f32.mrf.mxu2  ;;  %v1520_v13 = vpop.f32.mrf.mxu3 }
 0x1a1   :  { %1748 = vst.msk [vmem:[%s3184_s3 + $0x110] sm:$0xff] %vm1713_vm2, %v1698_v10  ;;  %v1187_v14 = vmax.f32 %v777_v9, %v1110_v11 }
 0x1a3   :  { %v1597_v15 = vmax.f32 %v1187_v14, %v1520_v13 }
 0x1a4   :  { %v342_v16 = vpop.f32.mrf.mxu0  ;;  %v703_v17 = vpop.f32.mrf.mxu1 }
 0x1a5   :  { %v1650_v18 = vadd.f32 %v3022_v4, %v1597_v15  ;;  %v778_v19 = vmax.f32 %v342_v16, %v703_v17 }
 0x1a7   :  { %v1699_v20 = vmax.f32 %v1650_v18, 0.0 }
 0x1a8   :  { %v1113_v21 = vpop.f32.mrf.mxu2  ;;  %v1523_v22 = vpop.f32.mrf.mxu3 }
 0x1a9   :  { %1749 = vst.msk [vmem:[%s3184_s3 + $0x118] sm:$0xff] %vm1713_vm2, %v1699_v20  ;;  %v1188_v23 = vmax.f32 %v778_v19, %v1113_v21 }
 0x1ab   :  { %v1598_v24 = vmax.f32 %v1188_v23, %v1523_v22 }
 0x1ac   :  { %v345_v25 = vpop.f32.mrf.mxu0  ;;  %v706_v26 = vpop.f32.mrf.mxu1 }
 0x1ad   :  { %v1651_v27 = vadd.f32 %v3022_v4, %v1598_v24  ;;  %v779_v28 = vmax.f32 %v345_v25, %v706_v26 }
 0x1af   :  { %v1700_v29 = vmax.f32 %v1651_v27, 0.0 }
 0x1b0   :  { %v1116_v30 = vpop.f32.mrf.mxu2  ;;  %v1526_v31 = vpop.f32.mrf.mxu3 }
 0x1b1   :  { %1750 = vst.msk [vmem:[%s3184_s3 + $0x120] sm:$0xff] %vm1713_vm2, %v1700_v29  ;;  %v1189_v32 = vmax.f32 %v779_v28, %v1116_v30 }
 0x1b3   :  { %v1599_v33 = vmax.f32 %v1189_v32, %v1526_v31 }
 0x1b4   :  { %v348_v34 = vpop.f32.mrf.mxu0  ;;  %v709_v35 = vpop.f32.mrf.mxu1 }
 0x1b5   :  { %v1652_v36 = vadd.f32 %v3022_v4, %v1599_v33  ;;  %v780_v37 = vmax.f32 %v348_v34, %v709_v35 }
 0x1b7   :  { %v1701_v38 = vmax.f32 %v1652_v36, 0.0 }
 0x1b8   :  { %v1119_v39 = vpop.f32.mrf.mxu2  ;;  %v1529_v40 = vpop.f32.mrf.mxu3 }
 0x1b9   :  { %1751 = vst.msk [vmem:[%s3184_s3 + $0x128] sm:$0xff] %vm1713_vm2, %v1701_v38  ;;  %v1190_v41 = vmax.f32 %v780_v37, %v1119_v39 }
 0x1bb   :  { %v1600_v42 = vmax.f32 %v1190_v41, %v1529_v40 }
 0x1bc   :  { %v351_v43 = vpop.f32.mrf.mxu0  ;;  %v712_v44 = vpop.f32.mrf.mxu1 }
 0x1bd   :  { %v1653_v45 = vadd.f32 %v3022_v4, %v1600_v42  ;;  %v781_v46 = vmax.f32 %v351_v43, %v712_v44 }
 0x1bf   :  { %v1702_v47 = vmax.f32 %v1653_v45, 0.0 }
 0x1c0   :  { %v1122_v48 = vpop.f32.mrf.mxu2  ;;  %v1532_v49 = vpop.f32.mrf.mxu3 }
 0x1c1   :  { %1752 = vst.msk [vmem:[%s3184_s3 + $0x130] sm:$0xff] %vm1713_vm2, %v1702_v47  ;;  %v1191_v50 = vmax.f32 %v781_v46, %v1122_v48 }
 0x1c3   :  { %v1601_v51 = vmax.f32 %v1191_v50, %v1532_v49 }
 0x1c4   :  { %v354_v52 = vpop.f32.mrf.mxu0  ;;  %v715_v53 = vpop.f32.mrf.mxu1 }
 0x1c5   :  { %v1654_v54 = vadd.f32 %v3022_v4, %v1601_v51  ;;  %v782_v55 = vmax.f32 %v354_v52, %v715_v53 }
 0x1c7   :  { %v1703_v56 = vmax.f32 %v1654_v54, 0.0 }
 0x1c8   :  { %v1125_v57 = vpop.f32.mrf.mxu2  ;;  %v1535_v58 = vpop.f32.mrf.mxu3 }
 0x1c9   :  { %1753 = vst.msk [vmem:[%s3184_s3 + $0x138] sm:$0xff] %vm1713_vm2, %v1703_v56  ;;  %v1192_v59 = vmax.f32 %v782_v55, %v1125_v57 }
 0x1cb   :  { %v1602_v60 = vmax.f32 %v1192_v59, %v1535_v58 }
 0x1cc   :  { %v357_v61 = vpop.f32.mrf.mxu0  ;;  %v718_v12 = vpop.f32.mrf.mxu1 }
 0x1cd   :  { %v1655_v62 = vadd.f32 %v3022_v4, %v1602_v60  ;;  %v783_v63 = vmax.f32 %v357_v61, %v718_v12 }
 0x1cf   :  { %v1704_v0 = vmax.f32 %v1655_v62, 0.0 }
 0x1d0   :  { %v1128_v1 = vpop.f32.mrf.mxu2  ;;  %v1538_v2 = vpop.f32.mrf.mxu3 }
 0x1d1   :  { %1754 = vst.msk [vmem:[%s3184_s3 + $0x140] sm:$0xff] %vm1713_vm2, %v1704_v0  ;;  %v1193_v3 = vmax.f32 %v783_v63, %v1128_v1 }
 0x1d3   :  { %v1603_v5 = vmax.f32 %v1193_v3, %v1538_v2 }
 0x1d4   :  { %v360_v6 = vpop.f32.mrf.mxu0  ;;  %v721_v7 = vpop.f32.mrf.mxu1 }
 0x1d5   :  { %v1656_v8 = vadd.f32 %v3022_v4, %v1603_v5  ;;  %v784_v9 = vmax.f32 %v360_v6, %v721_v7 }
 0x1d7   :  { %v1705_v10 = vmax.f32 %v1656_v8, 0.0 }
 0x1d8   :  { %v1131_v11 = vpop.f32.mrf.mxu2  ;;  %v1541_v13 = vpop.f32.mrf.mxu3 }
 0x1d9   :  { %1755 = vst.msk [vmem:[%s3184_s3 + $0x148] sm:$0xff] %vm1713_vm2, %v1705_v10  ;;  %v1194_v14 = vmax.f32 %v784_v9, %v1131_v11 }
 0x1db   :  { %v1604_v15 = vmax.f32 %v1194_v14, %v1541_v13 }
 0x1dc   :  { %v363_v16 = vpop.f32.mrf.mxu0  ;;  %v724_v17 = vpop.f32.mrf.mxu1 }
 0x1dd   :  { %v1657_v18 = vadd.f32 %v3022_v4, %v1604_v15  ;;  %v785_v19 = vmax.f32 %v363_v16, %v724_v17 }
 0x1df   :  { %v1706_v20 = vmax.f32 %v1657_v18, 0.0 }
 0x1e0   :  { %v1134_v21 = vpop.f32.mrf.mxu2  ;;  %v1544_v22 = vpop.f32.mrf.mxu3 }
 0x1e1   :  { %1756 = vst.msk [vmem:[%s3184_s3 + $0x150] sm:$0xff] %vm1713_vm2, %v1706_v20  ;;  %v1195_v23 = vmax.f32 %v785_v19, %v1134_v21 }
 0x1e3   :  { %v1605_v24 = vmax.f32 %v1195_v23, %v1544_v22 }
 0x1e4   :  { %v366_v25 = vpop.f32.mrf.mxu0  ;;  %v727_v26 = vpop.f32.mrf.mxu1 }
 0x1e5   :  { %v1658_v27 = vadd.f32 %v3022_v4, %v1605_v24  ;;  %v786_v28 = vmax.f32 %v366_v25, %v727_v26 }
 0x1e7   :  { %v1707_v29 = vmax.f32 %v1658_v27, 0.0 }
 0x1e8   :  { %v1137_v30 = vpop.f32.mrf.mxu2  ;;  %v1547_v31 = vpop.f32.mrf.mxu3 }
 0x1e9   :  { %1757 = vst.msk [vmem:[%s3184_s3 + $0x158] sm:$0xff] %vm1713_vm2, %v1707_v29  ;;  %v1196_v32 = vmax.f32 %v786_v28, %v1137_v30 }
 0x1eb   :  { %v1606_v33 = vmax.f32 %v1196_v32, %v1547_v31 }
 0x1ec   :  { %v369_v34 = vpop.f32.mrf.mxu0  ;;  %v730_v35 = vpop.f32.mrf.mxu1 }
 0x1ed   :  { %v1659_v36 = vadd.f32 %v3022_v4, %v1606_v33  ;;  %v787_v37 = vmax.f32 %v369_v34, %v730_v35 }
 0x1ef   :  { %v1708_v38 = vmax.f32 %v1659_v36, 0.0 }
 0x1f0   :  { %v1140_v39 = vpop.f32.mrf.mxu2  ;;  %v1550_v40 = vpop.f32.mrf.mxu3 }
 0x1f1   :  { %1758 = vst.msk [vmem:[%s3184_s3 + $0x160] sm:$0xff] %vm1713_vm2, %v1708_v38  ;;  %v1197_v41 = vmax.f32 %v787_v37, %v1140_v39 }
 0x1f3   :  { %v1607_v42 = vmax.f32 %v1197_v41, %v1550_v40 }
 0x1f4   :  { %v372_v43 = vpop.f32.mrf.mxu0  ;;  %v733_v44 = vpop.f32.mrf.mxu1 }
 0x1f5   :  { %v1660_v45 = vadd.f32 %v3022_v4, %v1607_v42  ;;  %v788_v46 = vmax.f32 %v372_v43, %v733_v44 }
 0x1f7   :  { %v1709_v47 = vmax.f32 %v1660_v45, 0.0 }
 0x1f8   :  { %v1143_v48 = vpop.f32.mrf.mxu2  ;;  %v1553_v49 = vpop.f32.mrf.mxu3 }
 0x1f9   :  { %1759 = vst.msk [vmem:[%s3184_s3 + $0x168] sm:$0xff] %vm1713_vm2, %v1709_v47  ;;  %v1198_v50 = vmax.f32 %v788_v46, %v1143_v48 }
 0x1fb   :  { %v1608_v51 = vmax.f32 %v1198_v50, %v1553_v49 }
 0x1fc   :  { %v375_v52 = vpop.f32.mrf.mxu0  ;;  %v736_v53 = vpop.f32.mrf.mxu1 }
 0x1fd   :  { %v1661_v54 = vadd.f32 %v3022_v4, %v1608_v51  ;;  %v789_v55 = vmax.f32 %v375_v52, %v736_v53 }
 0x1ff   :  { %v1710_v56 = vmax.f32 %v1661_v54, 0.0 }
 0x200   :  { %v1146_v57 = vpop.f32.mrf.mxu2  ;;  %v1556_v58 = vpop.f32.mrf.mxu3 }
 0x201   :  { %1760 = vst.msk [vmem:[%s3184_s3 + $0x170] sm:$0xff] %vm1713_vm2, %v1710_v56  ;;  %v1199_v59 = vmax.f32 %v789_v55, %v1146_v57 }
 0x203   :  { %v1609_v60 = vmax.f32 %v1199_v59, %v1556_v58 }
 0x204   :  { %v378_v61 = vpop.f32.mrf.mxu0  ;;  %v739_v12 = vpop.f32.mrf.mxu1 }
 0x205   :  { %v1662_v62 = vadd.f32 %v3022_v4, %v1609_v60  ;;  %v790_v63 = vmax.f32 %v378_v61, %v739_v12 }
 0x207   :  { %v1711_v0 = vmax.f32 %v1662_v62, 0.0 }
 0x208   :  { %v1149_v1 = vpop.f32.mrf.mxu2  ;;  %v1559_v2 = vpop.f32.mrf.mxu3 }
 0x209   :  { %1761 = vst.msk [vmem:[%s3184_s3 + $0x178] sm:$0xff] %vm1713_vm2, %v1711_v0  ;;  %v1200_v3 = vmax.f32 %v790_v63, %v1149_v1 }
 0x20b   :  { %v1610_v5 = vmax.f32 %v1200_v3, %v1559_v2 }
 0x20d   :  { %v1663_v6 = vadd.f32 %v3022_v4, %v1610_v5 }
 0x20f   :  { %v1712_v7 = vmax.f32 %v1663_v6, 0.0 }
 0x211   :  { %1762 = vst.msk [vmem:[%s3184_s3 + $0x180] sm:$0xff] %vm1713_vm2, %v1712_v7 }

// kernel: cnn_emnist_forward.5
= control target key start
LH: loop header
LB: loop body
LE: loop exit
PB: predicated region body
PF: predicated region fallthrough
CT: control target
= control target key end

     0   :  { %vm89_vm0 = vcmask 261120   ;;  %vm1107_vm1 = vcmask 523264   ;;  %vm1120_vm2 = vcmask 517120   ;;  %s2424_s1 = inlined_call_operand.vmem [shape: f32[288,64], index: 1, kind: input, shape index: {}]   ;;  %s2425_s0 = inlined_call_operand.vmem [shape: f32[4,98,288], index: 0, kind: input, shape index: {}]   ;;  %s2426_s2 = inlined_call_operand.vmem [shape: f32[1,64], index: 2, kind: input, shape index: {}]   ;;  %s2427_s3 = inlined_call_operand.vmem [shape: f32[98,64], index: 3, kind: output, shape index: {}]  }
   0x1   :  { %v1319_v0 = vld [vmem:[%s2424_s1 + $0x78] sm:$0xff]  ;;  %v1329_v2 = vld [vmem:[%s2424_s1 + $0x70] sm:$0xff]  ;;  %v1348_v5 = vld [vmem:[%s2424_s1 + $0x68] sm:$0xff] }
   0x2   :  { %v1324_v1 = vld [vmem:[%s2424_s1 + $0x118] sm:$0xff]  ;;  %129 = vmatpush.msra.mxu0 %v1319_v0  ;;  %v1341_v4 = vld [vmem:[%s2424_s1 + $0x110] sm:$0xff]  ;;  %376 = vmatpush.msra.mxu3 %v1319_v0  ;;  %v1358_v7 = vld [vmem:[%s2424_s1 + $0x108] sm:$0xff] }
   0x3   :  { %253 = vmatpush.msra.mxu2 %v1324_v1  ;;  %v1336_v3 = vld [vmem:[%s2424_s1 + $0xf8] sm:$0xff]  ;;  %v1353_v6 = vld [vmem:[%s2424_s1 + $0xf0] sm:$0xff]  ;;  %v1365_v8 = vld [vmem:[%s2424_s1 + $0xe8] sm:$0xff] }
   0x4   :  { %185 = vmatpush.msra.mxu1 %v1336_v3  ;;  %130 = vmatpush.msra.mxu0 %v1329_v2  ;;  %v1372_v9 = vld [vmem:[%s2424_s1 + $0x60] sm:$0xff]  ;;  %v52_v11 = vld [vmem:[%s2425_s0 + $0x10] sm:$0xff]  ;;  %v1389_v12 = vld [vmem:[%s2424_s1 + $0x58] sm:$0xff] }
   0x5   :  { %254 = vmatpush.msra.mxu2 %v1341_v4  ;;  %377 = vmatpush.msra.mxu3 %v1329_v2  ;;  %v1377_v10 = vld [vmem:[%s2424_s1 + $0x100] sm:$0xff]  ;;  %v1403_v14 = vld [vmem:[%s2424_s1 + $0x50] sm:$0xff]  ;;  %v1408_v15 = vld [vmem:[%s2424_s1 + $0xd8] sm:$0xff] }
   0x6   :  { %186 = vmatpush.msra.mxu1 %v1353_v6  ;;  %131 = vmatpush.msra.mxu0 %v1348_v5  ;;  %v1394_v13 = vld [vmem:[%s2424_s1 + $0xe0] sm:$0xff]  ;;  %v1416_v16 = vld [vmem:[%s2424_s1 + $0x48] sm:$0xff]  ;;  %v1421_v17 = vld [vmem:[%s2424_s1 + $0xd0] sm:$0xff] }
   0x7   :  { %255 = vmatpush.msra.mxu2 %v1358_v7  ;;  %378 = vmatpush.msra.mxu3 %v1348_v5  ;;  %v1430_v18 = vld [vmem:[%s2424_s1 + $0x40] sm:$0xff]  ;;  %v1435_v19 = vld [vmem:[%s2424_s1 + $0xc8] sm:$0xff]  ;;  %v1447_v21 = vld [vmem:[%s2424_s1 + $0x38] sm:$0xff] }
   0x8   :  { %187 = vmatpush.msra.mxu1 %v1365_v8  ;;  %132 = vmatpush.msra.mxu0 %v1372_v9  ;;  %v55_v20 = vld [vmem:[%s2425_s0 + $0x28] sm:$0xff]  ;;  %v1452_v22 = vld [vmem:[%s2424_s1 + $0xc0] sm:$0xff]  ;;  %v1462_v23 = vld [vmem:[%s2424_s1 + $0x30] sm:$0xff] }
   0x9   :  { %256 = vmatpush.msra.mxu2 %v1377_v10  ;;  %379 = vmatpush.msra.mxu3 %v1372_v9  ;;  %v1467_v24 = vld [vmem:[%s2424_s1 + $0xb8] sm:$0xff]  ;;  %v1475_v25 = vld [vmem:[%s2424_s1 + $0x28] sm:$0xff]  ;;  %v1480_v26 = vld [vmem:[%s2424_s1 + $0xb0] sm:$0xff] }
   0xa   :  { %1126 = vmatmul.msk.f32.vlgmr.msra.gmra.mxu2 %vm89_vm0, %v52_v11  ;;  %133 = vmatpush.msra.mxu0 %v1389_v12  ;;  %v1489_v27 = vld [vmem:[%s2424_s1 + $0x20] sm:$0xff]  ;;  %v1494_v28 = vld [vmem:[%s2424_s1 + $0xa8] sm:$0xff]  ;;  %v1506_v30 = vld [vmem:[%s2424_s1 + $0x18] sm:$0xff] }
   0xb   :  { %188 = vmatpush.msra.mxu1 %v1394_v13  ;;  %380 = vmatpush.msra.mxu3 %v1389_v12  ;;  %v58_v29 = vld [vmem:[%s2425_s0 + $0x40] sm:$0xff]  ;;  %v1521_v32 = vld [vmem:[%s2424_s1 + $0x10] sm:$0xff]  ;;  %v1526_v33 = vld [vmem:[%s2424_s1 + $0x98] sm:$0xff] }
   0xc   :  { %432 = vmatpush.msrb.mxu2 %v1336_v3  ;;  %134 = vmatpush.msra.mxu0 %v1403_v14  ;;  %v1511_v31 = vld [vmem:[%s2424_s1 + $0xa0] sm:$0xff]  ;;  %v1534_v34 = vld [vmem:[%s2424_s1 + $0x8] sm:$0xff]  ;;  %v1539_v35 = vld [vmem:[%s2424_s1 + $0x90] sm:$0xff] }
   0xd   :  { %189 = vmatpush.msra.mxu1 %v1408_v15  ;;  %381 = vmatpush.msra.mxu3 %v1403_v14  ;;  %v1548_v36 = vld [vmem:[%s2424_s1] sm:$0xff]  ;;  %v1553_v37 = vld [vmem:[%s2424_s1 + $0x88] sm:$0xff]  ;;  %v61_v39 = vld [vmem:[%s2425_s0 + $0x58] sm:$0xff] }
   0xe   :  { %433 = vmatpush.msrb.mxu2 %v1353_v6  ;;  %135 = vmatpush.msra.mxu0 %v1416_v16  ;;  %v50_v38 = vld [vmem:[%s2425_s0] sm:$0xff]  ;;  %v1139_v40 = vld [vmem:[%s2425_s0 + $0x138] sm:$0xff]  ;;  %v51_v42 = vld [vmem:[%s2425_s0 + $0x8] sm:$0xff] }
   0xf   :  { %190 = vmatpush.msra.mxu1 %v1421_v17  ;;  %382 = vmatpush.msra.mxu3 %v1416_v16  ;;  %v1574_v41 = vld [vmem:[%s2424_s1 + $0x80] sm:$0xff]  ;;  %v53_v43 = vld [vmem:[%s2425_s0 + $0x18] sm:$0xff]  ;;  %v64_v44 = vld [vmem:[%s2425_s0 + $0x70] sm:$0xff] }
  0x10   :  { %434 = vmatpush.msrb.mxu2 %v1365_v8  ;;  %136 = vmatpush.msra.mxu0 %v1430_v18  ;;  %v1142_v45 = vld [vmem:[%s2425_s0 + $0x150] sm:$0xff]  ;;  %v54_v46 = vld [vmem:[%s2425_s0 + $0x20] sm:$0xff]  ;;  %v67_v48 = vld [vmem:[%s2425_s0 + $0x88] sm:$0xff] }
  0x11   :  { %191 = vmatpush.msra.mxu1 %v1435_v19  ;;  %383 = vmatpush.msra.mxu3 %v1430_v18  ;;  %v56_v47 = vld [vmem:[%s2425_s0 + $0x30] sm:$0xff]  ;;  %v1145_v49 = vld [vmem:[%s2425_s0 + $0x168] sm:$0xff]  ;;  %v57_v50 = vld [vmem:[%s2425_s0 + $0x38] sm:$0xff] }
  0x12   :  { %1127 = vmatmul.msk.f32.gmra.mxu2 %vm89_vm0, %v55_v20  ;;  %137 = vmatpush.msra.mxu0 %v1447_v21  ;;  %v59_v51 = vld [vmem:[%s2425_s0 + $0x48] sm:$0xff]  ;;  %v70_v52 = vld [vmem:[%s2425_s0 + $0xa0] sm:$0xff]  ;;  %v60_v54 = vld [vmem:[%s2425_s0 + $0x50] sm:$0xff] }
  0x13   :  { %192 = vmatpush.msra.mxu1 %v1452_v22  ;;  %384 = vmatpush.msra.mxu3 %v1447_v21  ;;  %v1148_v53 = vld [vmem:[%s2425_s0 + $0x180] sm:$0xff]  ;;  %v73_v56 = vld [vmem:[%s2425_s0 + $0xb8] sm:$0xff]  ;;  %v63_v58 = vld [vmem:[%s2425_s0 + $0x68] sm:$0xff] }
  0x14   :  { %435 = vmatpush.msrb.mxu2 %v1394_v13  ;;  %138 = vmatpush.msra.mxu0 %v1462_v23  ;;  %v62_v55 = vld [vmem:[%s2425_s0 + $0x60] sm:$0xff]  ;;  %v1151_v57 = vld [vmem:[%s2425_s0 + $0x198] sm:$0xff]  ;;  %v76_v60 = vld [vmem:[%s2425_s0 + $0xd0] sm:$0xff] }
  0x15   :  { %193 = vmatpush.msra.mxu1 %v1467_v24  ;;  %385 = vmatpush.msra.mxu3 %v1462_v23  ;;  %v65_v59 = vld [vmem:[%s2425_s0 + $0x78] sm:$0xff]  ;;  %v1154_v61 = vld [vmem:[%s2425_s0 + $0x1b0] sm:$0xff]  ;;  %v66_v62 = vld [vmem:[%s2425_s0 + $0x80] sm:$0xff] }
  0x16   :  { %436 = vmatpush.msrb.mxu2 %v1408_v15  ;;  %139 = vmatpush.msra.mxu0 %v1475_v25  ;;  %v68_v63 = vld [vmem:[%s2425_s0 + $0x90] sm:$0xff]  ;;  %v77_v11 = vld [vmem:[%s2425_s0 + $0xd8] sm:$0xff]  ;;  %v1172_v20 = vld [vmem:[%s2425_s0 + $0x240] sm:$0xff] }
  0x17   :  { %194 = vmatpush.msra.mxu1 %v1480_v26  ;;  %386 = vmatpush.msra.mxu3 %v1475_v25 }
  0x18   :  { %437 = vmatpush.msrb.mxu2 %v1421_v17  ;;  %140 = vmatpush.msra.mxu0 %v1489_v27 }
  0x19   :  { %195 = vmatpush.msra.mxu1 %v1494_v28  ;;  %387 = vmatpush.msra.mxu3 %v1489_v27 }
  0x1a   :  { %1128 = vmatmul.msk.f32.gmra.mxu2 %vm89_vm0, %v58_v29  ;;  %141 = vmatpush.msra.mxu0 %v1506_v30  ;;  %v1192_v29 = vld [vmem:[%s2425_s0 + $0x278] sm:$0xff] }
  0x1b   :  { %196 = vmatpush.msra.mxu1 %v1511_v31  ;;  %388 = vmatpush.msra.mxu3 %v1506_v30 }
  0x1c   :  { %438 = vmatpush.msrb.mxu2 %v1435_v19  ;;  %142 = vmatpush.msra.mxu0 %v1521_v32 }
  0x1d   :  { %197 = vmatpush.msra.mxu1 %v1526_v33  ;;  %389 = vmatpush.msra.mxu3 %v1521_v32 }
  0x1e   :  { %439 = vmatpush.msrb.mxu2 %v1452_v22  ;;  %143 = vmatpush.msra.mxu0 %v1534_v34 }
  0x1f   :  { %198 = vmatpush.msra.mxu1 %v1539_v35  ;;  %390 = vmatpush.msra.mxu3 %v1534_v34 }
  0x20   :  { %440 = vmatpush.msrb.mxu2 %v1467_v24  ;;  %144 = vmatpush.msra.mxu0 %v1548_v36 }
  0x21   :  { %199 = vmatpush.msra.mxu1 %v1553_v37  ;;  %391 = vmatpush.msra.mxu3 %v1548_v36 }
  0x22   :  { %145 = vmatmul.f32.vlgmr.msra.gmra.mxu0 %v50_v38  ;;  %1129 = vmatmul.msk.f32.gmra.mxu2 %vm89_vm0, %v61_v39  ;;  %v1155_v38 = vld [vmem:[%s2425_s0 + $0x1b8] sm:$0xff]  ;;  %v1198_v39 = vld [vmem:[%s2425_s0 + $0x2a8] sm:$0xff] }
  0x23   :  { %392 = vmatmul.f32.vlgmr.msra.gmra.mxu3 %v1139_v40  ;;  %200 = vmatpush.msra.mxu1 %v1574_v41  ;;  %v1197_v40 = vld [vmem:[%s2425_s0 + $0x2a0] sm:$0xff] }
  0x24   :  { %692 = vmatpush.msrb.mxu3 %v1336_v3  ;;  %201 = vmatmul.f32.vlgmr.msra.gmra.mxu1 %v51_v42 }
  0x25   :  { %500 = vmatpush.msrb.mxu0 %v1324_v1  ;;  %636 = vmatpush.msrb.mxu1 %v1319_v0 }
  0x26   :  { %693 = vmatpush.msrb.mxu3 %v1353_v6  ;;  %441 = vmatpush.msrb.mxu2 %v1480_v26 }
  0x27   :  { %501 = vmatpush.msrb.mxu0 %v1341_v4  ;;  %637 = vmatpush.msrb.mxu1 %v1329_v2 }
  0x28   :  { %694 = vmatpush.msrb.mxu3 %v1365_v8  ;;  %442 = vmatpush.msrb.mxu2 %v1494_v28 }
  0x29   :  { %502 = vmatpush.msrb.mxu0 %v1358_v7  ;;  %638 = vmatpush.msrb.mxu1 %v1348_v5 }
  0x2a   :  { %148 = vmatmul.f32.gmra.mxu0 %v53_v43  ;;  %1130 = vmatmul.msk.f32.gmra.mxu2 %vm89_vm0, %v64_v44  ;;  %v1150_v43 = vld [vmem:[%s2425_s0 + $0x190] sm:$0xff] }
  0x2b   :  { %395 = vmatmul.f32.gmra.mxu3 %v1142_v45  ;;  %639 = vmatpush.msrb.mxu1 %v1372_v9  ;;  %v1158_v44 = vld [vmem:[%s2425_s0 + $0x1d0] sm:$0xff]  ;;  %v1201_v45 = vld [vmem:[%s2425_s0 + $0x2c0] sm:$0xff] }
  0x2c   :  { %695 = vmatpush.msrb.mxu3 %v1394_v13  ;;  %204 = vmatmul.f32.gmra.mxu1 %v54_v46 }
  0x2d   :  { %443 = vmatpush.msrb.mxu2 %v1511_v31  ;;  %640 = vmatpush.msrb.mxu1 %v1389_v12 }
  0x2e   :  { %696 = vmatpush.msrb.mxu3 %v1408_v15  ;;  %503 = vmatpush.msrb.mxu0 %v1377_v10 }
  0x2f   :  { %444 = vmatpush.msrb.mxu2 %v1526_v33  ;;  %641 = vmatpush.msrb.mxu1 %v1403_v14 }
  0x30   :  { %697 = vmatpush.msrb.mxu3 %v1421_v17  ;;  %896 = vmatpush.msra.mxu0 %v1319_v0  ;;  %v79_v0 = vld [vmem:[%s2425_s0 + $0xe8] sm:$0xff] }
  0x31   :  { %445 = vmatpush.msrb.mxu2 %v1539_v35  ;;  %642 = vmatpush.msrb.mxu1 %v1416_v16 }
  0x32   :  { %151 = vmatmul.f32.gmra.mxu0 %v56_v47  ;;  %698 = vmatpush.msrb.mxu3 %v1435_v19  ;;  %v1200_v47 = vld [vmem:[%s2425_s0 + $0x2b8] sm:$0xff] }
  0x33   :  { %1131 = vmatmul.msk.f32.gmra.mxu2 %vm89_vm0, %v67_v48  ;;  %398 = vmatmul.f32.gmra.mxu3 %v1145_v49 }
  0x34   :  { %699 = vmatpush.msrb.mxu3 %v1452_v22  ;;  %207 = vmatmul.f32.gmra.mxu1 %v57_v50 }
  0x35   :  { %446 = vmatpush.msrb.mxu2 %v1553_v37  ;;  %643 = vmatpush.msrb.mxu1 %v1430_v18 }
  0x36   :  { %700 = vmatpush.msrb.mxu3 %v1467_v24  ;;  %897 = vmatpush.msra.mxu0 %v1329_v2  ;;  %v69_v2 = vld [vmem:[%s2425_s0 + $0x98] sm:$0xff] }
  0x37   :  { %447 = vmatpush.msrb.mxu2 %v1574_v41  ;;  %644 = vmatpush.msrb.mxu1 %v1447_v21 }
  0x38   :  { %701 = vmatpush.msrb.mxu3 %v1480_v26  ;;  %898 = vmatpush.msra.mxu0 %v1348_v5  ;;  %v1160_v5 = vld [vmem:[%s2425_s0 + $0x1e0] sm:$0xff] }
  0x39   :  { %760 = vmatpush.msra.mxu2 %v1324_v1  ;;  %645 = vmatpush.msrb.mxu1 %v1462_v23 }
  0x3a   :  { %154 = vmatmul.f32.gmra.mxu0 %v59_v51  ;;  %702 = vmatpush.msrb.mxu3 %v1494_v28 }
  0x3b   :  { %1132 = vmatmul.msk.f32.gmra.mxu2 %vm89_vm0, %v70_v52  ;;  %401 = vmatmul.f32.gmra.mxu3 %v1148_v53  ;;  %v1153_v53 = vld [vmem:[%s2425_s0 + $0x1a8] sm:$0xff] }
  0x3c   :  { %646 = vmatpush.msrb.mxu1 %v1475_v25  ;;  %761 = vmatpush.msra.mxu2 %v1341_v4 }
  0x3d   :  { %210 = vmatmul.f32.gmra.mxu1 %v60_v54  ;;  %703 = vmatpush.msrb.mxu3 %v1511_v31  ;;  %v1161_v54 = vld [vmem:[%s2425_s0 + $0x1e8] sm:$0xff] }
  0x3e   :  { %647 = vmatpush.msrb.mxu1 %v1489_v27  ;;  %899 = vmatpush.msra.mxu0 %v1372_v9  ;;  %v1163_v9 = vld [vmem:[%s2425_s0 + $0x1f8] sm:$0xff] }
  0x3f   :  { %762 = vmatpush.msra.mxu2 %v1358_v7  ;;  %704 = vmatpush.msrb.mxu3 %v1526_v33 }
  0x40   :  { %648 = vmatpush.msrb.mxu1 %v1506_v30  ;;  %900 = vmatpush.msra.mxu0 %v1389_v12  ;;  %v88_v12 = vld [vmem:[%s2425_s0 + $0x130] sm:$0x3] }
  0x41   :  { %763 = vmatpush.msra.mxu2 %v1377_v10  ;;  %705 = vmatpush.msrb.mxu3 %v1539_v35 }
  0x42   :  { %157 = vmatmul.f32.gmra.mxu0 %v62_v55  ;;  %649 = vmatpush.msrb.mxu1 %v1521_v32  ;;  %v1204_v55 = vld [vmem:[%s2425_s0 + $0x2d8] sm:$0xff] }
  0x43   :  { %1133 = vmatmul.msk.f32.gmra.mxu2 %vm89_vm0, %v73_v56  ;;  %404 = vmatmul.f32.gmra.mxu3 %v1151_v57  ;;  %v1203_v57 = vld [vmem:[%s2425_s0 + $0x2d0] sm:$0xff] }
  0x44   :  { %706 = vmatpush.msrb.mxu3 %v1553_v37  ;;  %901 = vmatpush.msra.mxu0 %v1403_v14  ;;  %v78_v14 = vld [vmem:[%s2425_s0 + $0xe0] sm:$0xff] }
  0x45   :  { %213 = vmatmul.f32.gmra.mxu1 %v63_v58 }
  0x46   :  { %650 = vmatpush.msrb.mxu1 %v1534_v34  ;;  %707 = vmatpush.msrb.mxu3 %v1574_v41 }
  0x47   :  { %902 = vmatpush.msra.mxu0 %v1416_v16  ;;  %v1169_v16 = vld [vmem:[%s2425_s0 + $0x228] sm:$0xff] }
  0x48   :  { %1020 = vmatpush.msra.mxu3 %v1324_v1  ;;  %651 = vmatpush.msrb.mxu1 %v1548_v36  ;;  %v1157_v1 = vld [vmem:[%s2425_s0 + $0x1c8] sm:$0xff] }
  0x49   :  { %903 = vmatpush.msra.mxu0 %v1430_v18  ;;  %v81_v18 = vld [vmem:[%s2425_s0 + $0xf8] sm:$0xff] }
  0x4a   :  { %952 = vmatpush.msra.mxu1 %v1336_v3  ;;  %1021 = vmatpush.msra.mxu3 %v1341_v4  ;;  %v71_v3 = vld [vmem:[%s2425_s0 + $0xa8] sm:$0xff]  ;;  %v82_v4 = vld [vmem:[%s2425_s0 + $0x100] sm:$0xff] }
  0x4b   :  { %160 = vmatmul.f32.gmra.mxu0 %v65_v59  ;;  %1134 = vmatmul.msk.f32.gmra.mxu2 %vm89_vm0, %v76_v60 }
  0x4c   :  { %407 = vmatmul.f32.gmra.mxu3 %v1154_v61  ;;  %953 = vmatpush.msra.mxu1 %v1353_v6  ;;  %v72_v6 = vld [vmem:[%s2425_s0 + $0xb0] sm:$0xff] }
  0x4d   :  { %216 = vmatmul.f32.gmra.mxu1 %v66_v62  ;;  %1022 = vmatpush.msra.mxu3 %v1358_v7  ;;  %v74_v7 = vld [vmem:[%s2425_s0 + $0xc0] sm:$0xff] }
  0x4e   :  { %954 = vmatpush.msra.mxu1 %v1365_v8  ;;  %904 = vmatpush.msra.mxu0 %v1447_v21  ;;  %v85_v8 = vld [vmem:[%s2425_s0 + $0x118] sm:$0xff] }
  0x4f   :  { %1023 = vmatpush.msra.mxu3 %v1377_v10  ;;  %v75_v10 = vld [vmem:[%s2425_s0 + $0xc8] sm:$0xff]  ;;  %v1143_v21 = vld [vmem:[%s2425_s0 + $0x158] sm:$0xff] }
  0x50   :  { %955 = vmatpush.msra.mxu1 %v1394_v13  ;;  %905 = vmatpush.msra.mxu0 %v1462_v23  ;;  %v1166_v13 = vld [vmem:[%s2425_s0 + $0x210] sm:$0xff]  ;;  %v86_v23 = vld [vmem:[%s2425_s0 + $0x120] sm:$0x3] }
  0x52   :  { %956 = vmatpush.msra.mxu1 %v1408_v15  ;;  %906 = vmatpush.msra.mxu0 %v1475_v25  ;;  %v80_v15 = vld [vmem:[%s2425_s0 + $0xf0] sm:$0xff] }
  0x53   :  { %163 = vmatmul.f32.gmra.mxu0 %v68_v63  ;;  %1135 = vmatmul.msk.f32.gmra.mxu2 %vm89_vm0, %v79_v0  ;;  %v1146_v25 = vld [vmem:[%s2425_s0 + $0x170] sm:$0xff]  ;;  %v1156_v63 = vld [vmem:[%s2425_s0 + $0x1c0] sm:$0xff] }
  0x54   :  { %410 = vmatmul.f32.gmra.mxu3 %v1157_v1  ;;  %957 = vmatpush.msra.mxu1 %v1421_v17  ;;  %v1140_v17 = vld [vmem:[%s2425_s0 + $0x140] sm:$0xff]  ;;  %v1207_v1 = vld [vmem:[%s2425_s0 + $0x2f0] sm:$0xff] }
  0x55   :  { %219 = vmatmul.f32.gmra.mxu1 %v69_v2  ;;  %907 = vmatpush.msra.mxu0 %v1489_v27  ;;  %v1141_v27 = vld [vmem:[%s2425_s0 + $0x148] sm:$0xff]  ;;  %v1164_v0 = vld [vmem:[%s2425_s0 + $0x200] sm:$0xff] }
  0x56   :  { %958 = vmatpush.msra.mxu1 %v1435_v19  ;;  %v83_v19 = vld [vmem:[%s2425_s0 + $0x108] sm:$0xff] }
  0x57   :  { %908 = vmatpush.msra.mxu0 %v1506_v30  ;;  %v1191_v30 = vld [vmem:[%s2425_s0 + $0x270] sm:$0xff] }
  0x58   :  { %959 = vmatpush.msra.mxu1 %v1452_v22  ;;  %v84_v22 = vld [vmem:[%s2425_s0 + $0x110] sm:$0xff] }
  0x59   :  { %909 = vmatpush.msra.mxu0 %v1521_v32  ;;  %v1144_v32 = vld [vmem:[%s2425_s0 + $0x160] sm:$0xff] }
  0x5a   :  { %960 = vmatpush.msra.mxu1 %v1467_v24  ;;  %v1175_v24 = vld [vmem:[%s2425_s0 + $0x258] sm:$0x3] }
  0x5b   :  { %166 = vmatmul.f32.gmra.mxu0 %v71_v3  ;;  %1136 = vmatmul.msk.f32.gmra.mxu2 %vm89_vm0, %v82_v4  ;;  %v1206_v3 = vld [vmem:[%s2425_s0 + $0x2e8] sm:$0xff] }
  0x5c   :  { %413 = vmatmul.f32.gmra.mxu3 %v1160_v5  ;;  %961 = vmatpush.msra.mxu1 %v1480_v26  ;;  %v87_v26 = vld [vmem:[%s2425_s0 + $0x128] sm:$0x3] }
  0x5d   :  { %222 = vmatmul.f32.gmra.mxu1 %v72_v6  ;;  %910 = vmatpush.msra.mxu0 %v1534_v34  ;;  %v1195_v34 = vld [vmem:[%s2425_s0 + $0x290] sm:$0xff] }
  0x5e   :  { %962 = vmatpush.msra.mxu1 %v1494_v28  ;;  %v1149_v28 = vld [vmem:[%s2425_s0 + $0x188] sm:$0xff] }
  0x5f   :  { %911 = vmatpush.msra.mxu0 %v1548_v36 }
  0x60   :  { %963 = vmatpush.msra.mxu1 %v1511_v31 }
  0x62   :  { %964 = vmatpush.msra.mxu1 %v1526_v33  ;;  %v1152_v33 = vld [vmem:[%s2425_s0 + $0x1a0] sm:$0xff] }
  0x63   :  { %169 = vmatmul.f32.gmra.mxu0 %v74_v7  ;;  %1137 = vmatmul.msk.f32.gmra.mxu2 %vm89_vm0, %v85_v8 }
  0x64   :  { %416 = vmatmul.f32.gmra.mxu3 %v1163_v9  ;;  %965 = vmatpush.msra.mxu1 %v1539_v35  ;;  %v1194_v35 = vld [vmem:[%s2425_s0 + $0x288] sm:$0xff]  ;;  %v1159_v9 = vld [vmem:[%s2425_s0 + $0x1d8] sm:$0xff] }
  0x65   :  { %225 = vmatmul.f32.gmra.mxu1 %v75_v10  ;;  %v1167_v10 = vld [vmem:[%s2425_s0 + $0x218] sm:$0xff] }
  0x66   :  { %966 = vmatpush.msra.mxu1 %v1553_v37  ;;  %v1147_v37 = vld [vmem:[%s2425_s0 + $0x178] sm:$0xff] }
  0x68   :  { %967 = vmatpush.msra.mxu1 %v1574_v41 }
  0x6b   :  { %172 = vmatmul.f32.gmra.mxu0 %v77_v11  ;;  %1138 = vmatmul.msk.f32.gmra.mxu2 %vm89_vm0, %v88_v12  ;;  %v1210_v11 = vld [vmem:[%s2425_s0 + $0x308] sm:$0xff] }
  0x6c   :  { %419 = vmatmul.f32.gmra.mxu3 %v1166_v13  ;;  %v1209_v13 = vld [vmem:[%s2425_s0 + $0x300] sm:$0xff] }
  0x6d   :  { %228 = vmatmul.f32.gmra.mxu1 %v78_v14 }
  0x73   :  { %175 = vmatmul.f32.gmra.mxu0 %v80_v15  ;;  %448 = vmatmul.f32.vlgmr.msrb.gmra.mxu2 %v1140_v17 }
  0x74   :  { %422 = vmatmul.f32.gmra.mxu3 %v1169_v16 }
  0x75   :  { %231 = vmatmul.f32.gmra.mxu1 %v81_v18 }
  0x7b   :  { %178 = vmatmul.f32.gmra.mxu0 %v83_v19  ;;  %451 = vmatmul.f32.gmra.mxu2 %v1143_v21  ;;  %v1162_v19 = vld [vmem:[%s2425_s0 + $0x1f0] sm:$0xff]  ;;  %v1213_v21 = vld [vmem:[%s2425_s0 + $0x320] sm:$0xff] }
  0x7c   :  { %425 = vmatmul.f32.gmra.mxu3 %v1172_v20  ;;  %v1170_v20 = vld [vmem:[%s2425_s0 + $0x230] sm:$0xff] }
  0x7d   :  { %234 = vmatmul.f32.gmra.mxu1 %v84_v22 }
  0x83   :  { %181 = vmatmul.f32.gmra.mxu0 %v86_v23  ;;  %454 = vmatmul.f32.gmra.mxu2 %v1146_v25  ;;  %v1212_v23 = vld [vmem:[%s2425_s0 + $0x318] sm:$0xff] }
  0x84   :  { %428 = vmatmul.f32.gmra.mxu3 %v1175_v24 }
  0x85   :  { %237 = vmatmul.f32.gmra.mxu1 %v87_v26 }
  0x8b   :  { %1178 = vmatmul.msk.f32.vlgmr.msrb.gmra.mxu0 %vm89_vm0, %v1141_v27  ;;  %457 = vmatmul.f32.gmra.mxu2 %v1149_v28 }
  0x8c   :  { %708 = vmatmul.f32.vlgmr.msrb.gmra.mxu3 %v1192_v29  ;;  %v1165_v29 = vld [vmem:[%s2425_s0 + $0x208] sm:$0xff] }
  0x8d   :  { %v258_v31 = vpop.f32.mrf.mxu2  ;;  %652 = vmatmul.f32.vlgmr.msrb.gmra.mxu1 %v1191_v30  ;;  %v1173_v30 = vld [vmem:[%s2425_s0 + $0x248] sm:$0xff] }
  0x93   :  { %1179 = vmatmul.msk.f32.gmra.mxu0 %vm89_vm0, %v1144_v32  ;;  %460 = vmatmul.f32.gmra.mxu2 %v1152_v33  ;;  %v1215_v33 = vld [vmem:[%s2425_s0 + $0x330] sm:$0xff] }
  0x94   :  { %711 = vmatmul.f32.gmra.mxu3 %v1195_v34 }
  0x95   :  { %v261_v36 = vpop.f32.mrf.mxu2  ;;  %655 = vmatmul.f32.gmra.mxu1 %v1194_v35 }
  0x9b   :  { %1180 = vmatmul.msk.f32.gmra.mxu0 %vm89_vm0, %v1147_v37  ;;  %463 = vmatmul.f32.gmra.mxu2 %v1155_v38 }
  0x9c   :  { %714 = vmatmul.f32.gmra.mxu3 %v1198_v39  ;;  %v1168_v39 = vld [vmem:[%s2425_s0 + $0x220] sm:$0xff] }
  0x9d   :  { %v264_v41 = vpop.f32.mrf.mxu2  ;;  %658 = vmatmul.f32.gmra.mxu1 %v1197_v40  ;;  %v1176_v40 = vld [vmem:[%s2425_s0 + $0x260] sm:$0x3] }
  0x9f   :  { %v146_v42 = vpop.f32.mrf.mxu0 }
  0xa1   :  { %v202_v46 = vpop.f32.mrf.mxu1 }
  0xa2   :  { %v203_v48 = vadd.f32 %v202_v46, %v146_v42 }
  0xa3   :  { %1181 = vmatmul.msk.f32.gmra.mxu0 %vm89_vm0, %v1150_v43  ;;  %466 = vmatmul.f32.gmra.mxu2 %v1158_v44  ;;  %v1218_v43 = vld [vmem:[%s2425_s0 + $0x348] sm:$0xff] }
  0xa4   :  { %717 = vmatmul.f32.gmra.mxu3 %v1201_v45  ;;  %v1870_v49 = vadd.f32 %v258_v31, %v203_v48  ;;  %v1216_v31 = vld [vmem:[%s2425_s0 + $0x338] sm:$0xff] }
  0xa5   :  { %661 = vmatmul.f32.gmra.mxu1 %v1200_v47  ;;  %v267_v50 = vpop.f32.mrf.mxu2 }
  0xa6   :  { %v1872_v51 = vpop.f32.mrf.mxu3 }
  0xa7   :  { %v149_v52 = vpop.f32.mrf.mxu0 }
  0xa9   :  { %v205_v56 = vpop.f32.mrf.mxu1 }
  0xaa   :  { %v206_v58 = vadd.f32 %v205_v56, %v149_v52  ;;  %v1222_v52 = vld [vmem:[%s2425_s0 + $0x368] sm:$0xff] }
  0xab   :  { %1182 = vmatmul.msk.f32.gmra.mxu0 %vm89_vm0, %v1153_v53  ;;  %469 = vmatmul.f32.gmra.mxu2 %v1161_v54  ;;  %v1193_v53 = vld [vmem:[%s2425_s0 + $0x280] sm:$0xff] }
  0xac   :  { %720 = vmatmul.f32.gmra.mxu3 %v1204_v55  ;;  %v1887_v59 = vadd.f32 %v261_v36, %v206_v58  ;;  %v1221_v55 = vld [vmem:[%s2425_s0 + $0x360] sm:$0xff] }
  0xad   :  { %664 = vmatmul.f32.gmra.mxu1 %v1203_v57  ;;  %v270_v60 = vpop.f32.mrf.mxu2 }
  0xae   :  { %v1889_v61 = vpop.f32.mrf.mxu3 }
  0xaf   :  { %v152_v62 = vpop.f32.mrf.mxu0 }
  0xb1   :  { %v208_v2 = vpop.f32.mrf.mxu1 }
  0xb2   :  { %v209_v4 = vadd.f32 %v208_v2, %v152_v62 }
  0xb3   :  { %1183 = vmatmul.msk.f32.gmra.mxu0 %vm89_vm0, %v1156_v63  ;;  %472 = vmatmul.f32.gmra.mxu2 %v1164_v0  ;;  %v1174_v63 = vld [vmem:[%s2425_s0 + $0x250] sm:$0xff]  ;;  %v1225_v0 = vld [vmem:[%s2425_s0 + $0x380] sm:$0xff] }
  0xb4   :  { %723 = vmatmul.f32.gmra.mxu3 %v1207_v1  ;;  %v1904_v5 = vadd.f32 %v264_v41, %v209_v4  ;;  %v1219_v41 = vld [vmem:[%s2425_s0 + $0x350] sm:$0xff]  ;;  %v1196_v1 = vld [vmem:[%s2425_s0 + $0x298] sm:$0xff] }
  0xb5   :  { %667 = vmatmul.f32.gmra.mxu1 %v1206_v3  ;;  %v1224_v3 = vld [vmem:[%s2425_s0 + $0x378] sm:$0xff] }
  0xb6   :  { %v273_v6 = vpop.f32.mrf.mxu2  ;;  %v1906_v7 = vpop.f32.mrf.mxu3 }
  0xb7   :  { %v155_v8 = vpop.f32.mrf.mxu0 }
  0xba   :  { %v211_v12 = vpop.f32.mrf.mxu1 }
  0xbb   :  { %1184 = vmatmul.msk.f32.gmra.mxu0 %vm89_vm0, %v1159_v9  ;;  %v212_v14 = vadd.f32 %v211_v12, %v155_v8  ;;  %475 = vmatmul.f32.gmra.mxu2 %v1167_v10  ;;  %v1228_v12 = vld [vmem:[%s2425_s0 + $0x398] sm:$0x3] }
  0xbc   :  { %726 = vmatmul.f32.gmra.mxu3 %v1210_v11  ;;  %v1177_v11 = vld [vmem:[%s2425_s0 + $0x268] sm:$0x3] }
  0xbd   :  { %v1921_v15 = vadd.f32 %v267_v50, %v212_v14  ;;  %670 = vmatmul.f32.gmra.mxu1 %v1209_v13  ;;  %v1171_v50 = vld [vmem:[%s2425_s0 + $0x238] sm:$0xff]  ;;  %v1199_v13 = vld [vmem:[%s2425_s0 + $0x2b0] sm:$0xff] }
  0xbe   :  { %v276_v16 = vpop.f32.mrf.mxu2  ;;  %v1923_v17 = vpop.f32.mrf.mxu3 }
  0xbf   :  { %v158_v18 = vpop.f32.mrf.mxu0 }
  0xc2   :  { %v214_v22 = vpop.f32.mrf.mxu1 }
  0xc3   :  { %1185 = vmatmul.msk.f32.gmra.mxu0 %vm89_vm0, %v1162_v19  ;;  %v215_v24 = vadd.f32 %v214_v22, %v158_v18  ;;  %478 = vmatmul.f32.gmra.mxu2 %v1170_v20 }
  0xc4   :  { %729 = vmatmul.f32.gmra.mxu3 %v1213_v21 }
  0xc5   :  { %v1938_v25 = vadd.f32 %v270_v60, %v215_v24  ;;  %673 = vmatmul.f32.gmra.mxu1 %v1212_v23  ;;  %v1243_v23 = vld [vmem:[%s2425_s0 + $0x3a8] sm:$0xff] }
  0xc6   :  { %v279_v26 = vpop.f32.mrf.mxu2  ;;  %v1940_v27 = vpop.f32.mrf.mxu3  ;;  %v1202_v24 = vld [vmem:[%s2425_s0 + $0x2c8] sm:$0xff] }
  0xc8   :  { %v161_v28 = vpop.f32.mrf.mxu0 }
  0xca   :  { %v217_v32 = vpop.f32.mrf.mxu1 }
  0xcb   :  { %1186 = vmatmul.msk.f32.gmra.mxu0 %vm89_vm0, %v1165_v29  ;;  %v218_v34 = vadd.f32 %v217_v32, %v161_v28  ;;  %481 = vmatmul.f32.gmra.mxu2 %v1173_v30  ;;  %v1244_v29 = vld [vmem:[%s2425_s0 + $0x3b0] sm:$0xff] }
  0xcc   :  { %732 = vmatmul.f32.gmra.mxu3 %v1216_v31 }
  0xcd   :  { %v1955_v35 = vadd.f32 %v273_v6, %v218_v34  ;;  %676 = vmatmul.f32.gmra.mxu1 %v1215_v33 }
  0xce   :  { %v282_v36 = vpop.f32.mrf.mxu2 }
  0xcf   :  { %v1957_v37 = vpop.f32.mrf.mxu3 }
  0xd0   :  { %v164_v38 = vpop.f32.mrf.mxu0 }
  0xd2   :  { %v220_v42 = vpop.f32.mrf.mxu1 }
  0xd3   :  { %1187 = vmatmul.msk.f32.gmra.mxu0 %vm89_vm0, %v1168_v39  ;;  %v221_v44 = vadd.f32 %v220_v42, %v164_v38  ;;  %484 = vmatmul.f32.gmra.mxu2 %v1176_v40  ;;  %v1205_v38 = vld [vmem:[%s2425_s0 + $0x2e0] sm:$0xff]  ;;  %v1248_v39 = vld [vmem:[%s2425_s0 + $0x3d0] sm:$0xff] }
  0xd4   :  { %735 = vmatmul.f32.gmra.mxu3 %v1219_v41  ;;  %v1247_v41 = vld [vmem:[%s2425_s0 + $0x3c8] sm:$0xff] }
  0xd5   :  { %v1972_v45 = vadd.f32 %v276_v16, %v221_v44  ;;  %679 = vmatmul.f32.gmra.mxu1 %v1218_v43  ;;  %v1227_v16 = vld [vmem:[%s2425_s0 + $0x390] sm:$0x3] }
  0xd6   :  { %v285_v46 = vpop.f32.mrf.mxu2 }
  0xd7   :  { %v1974_v47 = vpop.f32.mrf.mxu3 }
  0xd8   :  { %v167_v48 = vpop.f32.mrf.mxu0 }
  0xda   :  { %v223_v54 = vpop.f32.mrf.mxu1 }
  0xdb   :  { %1188 = vmatmul.msk.f32.gmra.mxu0 %vm89_vm0, %v1171_v50  ;;  %v224_v56 = vadd.f32 %v223_v54, %v167_v48  ;;  %1230 = vmatmul.msk.f32.vlgmr.msra.gmra.mxu2 %vm89_vm0, %v1193_v53  ;;  %v1249_v50 = vld [vmem:[%s2425_s0 + $0x3d8] sm:$0xff]  ;;  %v1251_v53 = vld [vmem:[%s2425_s0 + $0x3e8] sm:$0xff] }
  0xdc   :  { %738 = vmatmul.f32.gmra.mxu3 %v1222_v52  ;;  %v1208_v52 = vld [vmem:[%s2425_s0 + $0x2f8] sm:$0xff] }
  0xdd   :  { %v1990_v57 = vadd.f32 %v279_v26, %v224_v56  ;;  %682 = vmatmul.f32.gmra.mxu1 %v1221_v55  ;;  %v1245_v26 = vld [vmem:[%s2425_s0 + $0x3b8] sm:$0xff]  ;;  %v1250_v55 = vld [vmem:[%s2425_s0 + $0x3e0] sm:$0xff] }
  0xde   :  { %v288_v58 = vpop.f32.mrf.mxu2 }
  0xdf   :  { %v1992_v60 = vpop.f32.mrf.mxu3 }
  0xe0   :  { %v170_v62 = vpop.f32.mrf.mxu0 }
  0xe2   :  { %v226_v2 = vpop.f32.mrf.mxu1 }
  0xe3   :  { %1189 = vmatmul.msk.f32.gmra.mxu0 %vm89_vm0, %v1174_v63  ;;  %v227_v4 = vadd.f32 %v226_v2, %v170_v62  ;;  %1231 = vmatmul.msk.f32.gmra.mxu2 %vm89_vm0, %v1196_v1  ;;  %v1252_v2 = vld [vmem:[%s2425_s0 + $0x3f0] sm:$0xff] }
  0xe4   :  { %741 = vmatmul.f32.gmra.mxu3 %v1225_v0 }
  0xe5   :  { %v2008_v6 = vadd.f32 %v282_v36, %v227_v4  ;;  %685 = vmatmul.f32.gmra.mxu1 %v1224_v3  ;;  %v1246_v36 = vld [vmem:[%s2425_s0 + $0x3c0] sm:$0xff]  ;;  %v1211_v4 = vld [vmem:[%s2425_s0 + $0x310] sm:$0xff] }
  0xe6   :  { %v291_v8 = vpop.f32.mrf.mxu2 }
  0xe7   :  { %v2010_v9 = vpop.f32.mrf.mxu3 }
  0xe8   :  { %v173_v10 = vpop.f32.mrf.mxu0 }
  0xea   :  { %v229_v14 = vpop.f32.mrf.mxu1 }
  0xeb   :  { %1190 = vmatmul.msk.f32.gmra.mxu0 %vm89_vm0, %v1177_v11  ;;  %v230_v18 = vadd.f32 %v229_v14, %v173_v10  ;;  %1232 = vmatmul.msk.f32.gmra.mxu2 %vm89_vm0, %v1199_v13  ;;  %v1253_v11 = vld [vmem:[%s2425_s0 + $0x3f8] sm:$0xff] }
  0xec   :  { %744 = vmatmul.f32.gmra.mxu3 %v1228_v12 }
  0xed   :  { %v2026_v19 = vadd.f32 %v285_v46, %v230_v18  ;;  %688 = vmatmul.f32.gmra.mxu1 %v1227_v16 }
  0xee   :  { %v294_v20 = vpop.f32.mrf.mxu2 }
  0xef   :  { %v2028_v21 = vpop.f32.mrf.mxu3 }
  0xf0   :  { %v176_v22 = vpop.f32.mrf.mxu0 }
  0xf2   :  { %v232_v28 = vpop.f32.mrf.mxu1 }
  0xf3   :  { %912 = vmatmul.f32.vlgmr.msra.gmra.mxu0 %v1243_v23  ;;  %v233_v30 = vadd.f32 %v232_v28, %v176_v22  ;;  %1233 = vmatmul.msk.f32.gmra.mxu2 %vm89_vm0, %v1202_v24  ;;  %v1214_v23 = vld [vmem:[%s2425_s0 + $0x328] sm:$0xff]  ;;  %v1257_v24 = vld [vmem:[%s2425_s0 + $0x418] sm:$0xff]  ;;  %v1256_v28 = vld [vmem:[%s2425_s0 + $0x410] sm:$0xff] }
  0xf4   :  { %1282 = vmatmul.msk.f32.vlgmr.msra.gmra.mxu3 %vm89_vm0, %v1245_v26 }
  0xf5   :  { %v2044_v31 = vadd.f32 %v288_v58, %v233_v30  ;;  %968 = vmatmul.f32.vlgmr.msra.gmra.mxu1 %v1244_v29 }
  0xf6   :  { %v449_v33 = vpop.f32.mrf.mxu2 }
  0xf7   :  { %v2046_v32 = vpop.f32.mrf.mxu3  ;;  %v450_v62 = vadd.f32 %v449_v33, %v1872_v51 }
  0xf8   :  { %v179_v34 = vpop.f32.mrf.mxu0 }
  0xfa   :  { %v235_v40 = vpop.f32.mrf.mxu1 }
  0xfb   :  { %915 = vmatmul.f32.gmra.mxu0 %v1246_v36  ;;  %v236_v42 = vadd.f32 %v235_v40, %v179_v34  ;;  %1234 = vmatmul.msk.f32.gmra.mxu2 %vm89_vm0, %v1205_v38  ;;  %v1258_v38 = vld [vmem:[%s2425_s0 + $0x420] sm:$0xff] }
  0xfc   :  { %1283 = vmatmul.msk.f32.gmra.mxu3 %vm89_vm0, %v1248_v39  ;;  %v1217_v40 = vld [vmem:[%s2425_s0 + $0x340] sm:$0xff] }
  0xfd   :  { %v2062_v43 = vadd.f32 %v291_v8, %v236_v42  ;;  %971 = vmatmul.f32.gmra.mxu1 %v1247_v41  ;;  %v1254_v8 = vld [vmem:[%s2425_s0 + $0x400] sm:$0xff]  ;;  %v1260_v41 = vld [vmem:[%s2425_s0 + $0x430] sm:$0xff] }
  0xfe   :  { %v452_v46 = vpop.f32.mrf.mxu2 }
  0xff   :  { %v2064_v44 = vpop.f32.mrf.mxu3  ;;  %v453_v12 = vadd.f32 %v452_v46, %v1889_v61  ;;  %v1259_v46 = vld [vmem:[%s2425_s0 + $0x428] sm:$0xff] }
 0x100   :  { %v182_v48 = vpop.f32.mrf.mxu0 }
 0x102   :  { %v238_v54 = vpop.f32.mrf.mxu1 }
 0x103   :  { %918 = vmatmul.f32.gmra.mxu0 %v1249_v50  ;;  %v239_v56 = vadd.f32 %v238_v54, %v182_v48  ;;  %1235 = vmatmul.msk.f32.gmra.mxu2 %vm89_vm0, %v1208_v52 }
 0x104   :  { %1284 = vmatmul.msk.f32.gmra.mxu3 %vm89_vm0, %v1251_v53 }
 0x105   :  { %v2080_v58 = vadd.f32 %v294_v20, %v239_v56  ;;  %974 = vmatmul.f32.gmra.mxu1 %v1250_v55  ;;  %v1255_v20 = vld [vmem:[%s2425_s0 + $0x408] sm:$0xff]  ;;  %v1261_v55 = vld [vmem:[%s2425_s0 + $0x438] sm:$0xff] }
 0x106   :  { %v455_v0 = vpop.f32.mrf.mxu2 }
 0x107   :  { %v2083_v63 = vpop.f32.mrf.mxu3  ;;  %v456_v29 = vadd.f32 %v455_v0, %v1906_v7  ;;  %v1263_v0 = vld [vmem:[%s2425_s0 + $0x448] sm:$0xff] }
 0x108   :  { %v505_v1 = vpop.f32.mrf.mxu0 }
 0x109   :  { %v2088_v3 = vadd.f32 %v505_v1, %v450_v62  ;;  %v1220_v62 = vld [vmem:[%s2425_s0 + $0x358] sm:$0xff] }
 0x10a   :  { %v653_v10 = vpop.f32.mrf.mxu1 }
 0x10b   :  { %v544_v51 = vmax.f32 %v1870_v49, %v2088_v3  ;;  %921 = vmatmul.f32.gmra.mxu0 %v1252_v2  ;;  %1236 = vmatmul.msk.f32.gmra.mxu2 %vm89_vm0, %v1211_v4  ;;  %v1262_v2 = vld [vmem:[%s2425_s0 + $0x440] sm:$0xff] }
 0x10c   :  { %1285 = vmatmul.msk.f32.gmra.mxu3 %vm89_vm0, %v1254_v8 }
 0x10d   :  { %977 = vmatmul.f32.gmra.mxu1 %v1253_v11 }
 0x10e   :  { %v458_v13 = vpop.f32.mrf.mxu2 }
 0x10f   :  { %v709_v14 = vpop.f32.mrf.mxu3  ;;  %v459_v48 = vadd.f32 %v458_v13, %v1923_v17  ;;  %v1264_v13 = vld [vmem:[%s2425_s0 + $0x450] sm:$0xff] }
 0x110   :  { %v2104_v16 = vadd.f32 %v709_v14, %v653_v10  ;;  %v508_v18 = vpop.f32.mrf.mxu0 }
 0x111   :  { %v2109_v22 = vadd.f32 %v508_v18, %v453_v12  ;;  %v1223_v18 = vld [vmem:[%s2425_s0 + $0x370] sm:$0xff] }
 0x112   :  { %v656_v26 = vpop.f32.mrf.mxu1 }
 0x113   :  { %v545_v61 = vmax.f32 %v1887_v59, %v2109_v22  ;;  %924 = vmatmul.f32.gmra.mxu0 %v1255_v20  ;;  %1237 = vmatmul.msk.f32.gmra.mxu2 %vm89_vm0, %v1214_v23  ;;  %v1266_v20 = vld [vmem:[%s2425_s0 + $0x460] sm:$0xff] }
 0x114   :  { %1286 = vmatmul.msk.f32.gmra.mxu3 %vm89_vm0, %v1257_v24  ;;  %v1265_v24 = vld [vmem:[%s2425_s0 + $0x458] sm:$0xff] }
 0x115   :  { %980 = vmatmul.f32.gmra.mxu1 %v1256_v28 }
 0x116   :  { %v461_v30 = vpop.f32.mrf.mxu2 }
 0x117   :  { %v712_v33 = vpop.f32.mrf.mxu3  ;;  %v462_v4 = vadd.f32 %v461_v30, %v1940_v27 }
 0x118   :  { %v2125_v34 = vadd.f32 %v712_v33, %v656_v26  ;;  %v511_v36 = vpop.f32.mrf.mxu0 }
 0x119   :  { %v2130_v39 = vadd.f32 %v511_v36, %v456_v29  ;;  %v1267_v36 = vld [vmem:[%s2425_s0 + $0x468] sm:$0xff] }
 0x11a   :  { %v659_v42 = vpop.f32.mrf.mxu1 }
 0x11b   :  { %v546_v7 = vmax.f32 %v1904_v5, %v2130_v39  ;;  %927 = vmatmul.f32.gmra.mxu0 %v1258_v38  ;;  %1238 = vmatmul.msk.f32.gmra.mxu2 %vm89_vm0, %v1217_v40  ;;  %v1226_v40 = vld [vmem:[%s2425_s0 + $0x388] sm:$0xff] }
 0x11c   :  { %1287 = vmatmul.msk.f32.gmra.mxu3 %vm89_vm0, %v1260_v41  ;;  %v1269_v41 = vld [vmem:[%s2425_s0 + $0x478] sm:$0xff] }
 0x11d   :  { %983 = vmatmul.f32.gmra.mxu1 %v1259_v46  ;;  %v1268_v46 = vld [vmem:[%s2425_s0 + $0x470] sm:$0xff] }
 0x11e   :  { %v464_v50 = vpop.f32.mrf.mxu2 }
 0x11f   :  { %v715_v52 = vpop.f32.mrf.mxu3  ;;  %v465_v26 = vadd.f32 %v464_v50, %v1957_v37 }
 0x120   :  { %v2146_v53 = vadd.f32 %v715_v52, %v659_v42  ;;  %v514_v54 = vpop.f32.mrf.mxu0 }
 0x121   :  { %v2151_v56 = vadd.f32 %v514_v54, %v459_v48 }
 0x122   :  { %v662_v1 = vpop.f32.mrf.mxu1 }
 0x123   :  { %v547_v17 = vmax.f32 %v1921_v15, %v2151_v56  ;;  %930 = vmatmul.f32.gmra.mxu0 %v1261_v55  ;;  %1239 = vmatmul.msk.f32.gmra.mxu2 %vm89_vm0, %v1220_v62  ;;  %v1270_v62 = vld [vmem:[%s2425_s0 + $0x480] sm:$0xff] }
 0x124   :  { %1288 = vmatmul.msk.f32.gmra.mxu3 %vm89_vm0, %v1263_v0 }
 0x125   :  { %986 = vmatmul.f32.gmra.mxu1 %v1262_v2  ;;  %v1272_v2 = vld [vmem:[%s2425_s0 + $0x490] sm:$0xff] }
 0x126   :  { %v467_v8 = vpop.f32.mrf.mxu2 }
 0x127   :  { %v718_v10 = vpop.f32.mrf.mxu3  ;;  %v468_v48 = vadd.f32 %v467_v8, %v1974_v47  ;;  %v1271_v8 = vld [vmem:[%s2425_s0 + $0x488] sm:$0xff] }
 0x128   :  { %v2167_v11 = vadd.f32 %v718_v10, %v662_v1  ;;  %v517_v12 = vpop.f32.mrf.mxu0  ;;  %v1229_v1 = vld [vmem:[%s2425_s0 + $0x3a0] sm:$0x3] }
 0x129   :  { %v2172_v14 = vadd.f32 %v517_v12, %v462_v4 }
 0x12a   :  { %v665_v23 = vpop.f32.mrf.mxu1 }
 0x12b   :  { %v548_v27 = vmax.f32 %v1938_v25, %v2172_v14  ;;  %933 = vmatmul.f32.gmra.mxu0 %v1264_v13  ;;  %1240 = vmatmul.msk.f32.gmra.mxu2 %vm89_vm0, %v1223_v18 }
 0x12c   :  { %1289 = vmatmul.msk.f32.gmra.mxu3 %vm89_vm0, %v1266_v20 }
 0x12d   :  { %989 = vmatmul.f32.gmra.mxu1 %v1265_v24 }
 0x12e   :  { %v470_v28 = vpop.f32.mrf.mxu2 }
 0x12f   :  { %v721_v29 = vpop.f32.mrf.mxu3  ;;  %v471_v10 = vadd.f32 %v470_v28, %v1992_v60  ;;  %v1274_v60 = vld [vmem:[%s2425_s0 + $0x4a0] sm:$0xff] }
 0x130   :  { %v2188_v30 = vadd.f32 %v721_v29, %v665_v23  ;;  %v520_v33 = vpop.f32.mrf.mxu0  ;;  %v1273_v23 = vld [vmem:[%s2425_s0 + $0x498] sm:$0xff] }
 0x131   :  { %v2193_v38 = vadd.f32 %v520_v33, %v465_v26  ;;  %v1275_v26 = vld [vmem:[%s2425_s0 + $0x4a8] sm:$0xff] }
 0x132   :  { %v668_v42 = vpop.f32.mrf.mxu1 }
 0x133   :  { %v549_v37 = vmax.f32 %v1955_v35, %v2193_v38  ;;  %936 = vmatmul.f32.gmra.mxu0 %v1267_v36  ;;  %1241 = vmatmul.msk.f32.gmra.mxu2 %vm89_vm0, %v1226_v40 }
 0x134   :  { %1290 = vmatmul.msk.f32.gmra.mxu3 %vm89_vm0, %v1269_v41 }
 0x135   :  { %992 = vmatmul.f32.gmra.mxu1 %v1268_v46  ;;  %v1276_v46 = vld [vmem:[%s2425_s0 + $0x4b0] sm:$0xff] }
 0x136   :  { %v473_v50 = vpop.f32.mrf.mxu2 }
 0x137   :  { %v724_v52 = vpop.f32.mrf.mxu3  ;;  %v474_v28 = vadd.f32 %v473_v50, %v2010_v9  ;;  %v1277_v9 = vld [vmem:[%s2425_s0 + $0x4b8] sm:$0xff] }
 0x138   :  { %v2209_v54 = vadd.f32 %v724_v52, %v668_v42  ;;  %v523_v55 = vpop.f32.mrf.mxu0  ;;  %v1278_v52 = vld [vmem:[%s2425_s0 + $0x4c0] sm:$0xff] }
 0x139   :  { %v2214_v0 = vadd.f32 %v523_v55, %v468_v48 }
 0x13a   :  { %v671_v4 = vpop.f32.mrf.mxu1 }
 0x13b   :  { %v550_v47 = vmax.f32 %v1972_v45, %v2214_v0  ;;  %939 = vmatmul.f32.gmra.mxu0 %v1270_v62  ;;  %1242 = vmatmul.msk.f32.gmra.mxu2 %vm89_vm0, %v1229_v1 }
 0x13c   :  { %1291 = vmatmul.msk.f32.gmra.mxu3 %vm89_vm0, %v1272_v2 }
 0x13d   :  { %995 = vmatmul.f32.gmra.mxu1 %v1271_v8 }
 0x13e   :  { %v476_v12 = vpop.f32.mrf.mxu2 }
 0x13f   :  { %v727_v13 = vpop.f32.mrf.mxu3  ;;  %v477_v50 = vadd.f32 %v476_v12, %v2028_v21  ;;  %v1280_v21 = vld [vmem:[%s2425_s0 + $0x4d0] sm:$0x3] }
 0x140   :  { %v2230_v18 = vadd.f32 %v727_v13, %v671_v4  ;;  %v526_v20 = vpop.f32.mrf.mxu0 }
 0x141   :  { %v2235_v24 = vadd.f32 %v526_v20, %v471_v10  ;;  %v1279_v10 = vld [vmem:[%s2425_s0 + $0x4c8] sm:$0x3]  ;;  %v1281_v20 = vld [vmem:[%s2425_s0 + $0x4d8] sm:$0x3] }
 0x142   :  { %v674_v33 = vpop.f32.mrf.mxu1 }
 0x143   :  { %v551_v29 = vmax.f32 %v1990_v57, %v2235_v24  ;;  %942 = vmatmul.f32.gmra.mxu0 %v1273_v23 }
 0x144   :  { %1292 = vmatmul.msk.f32.gmra.mxu3 %vm89_vm0, %v1275_v26 }
 0x145   :  { %998 = vmatmul.f32.gmra.mxu1 %v1274_v60 }
 0x146   :  { %v479_v36 = vpop.f32.mrf.mxu2 }
 0x147   :  { %v730_v40 = vpop.f32.mrf.mxu3  ;;  %v480_v12 = vadd.f32 %v479_v36, %v2046_v32 }
 0x148   :  { %v2247_v41 = vadd.f32 %v730_v40, %v674_v33  ;;  %v529_v42 = vpop.f32.mrf.mxu0 }
 0x149   :  { %v2252_v48 = vadd.f32 %v529_v42, %v474_v28 }
 0x14a   :  { %v677_v62 = vpop.f32.mrf.mxu1 }
 0x14b   :  { %v552_v55 = vmax.f32 %v2008_v6, %v2252_v48  ;;  %945 = vmatmul.f32.gmra.mxu0 %v1276_v46 }
 0x14c   :  { %1293 = vmatmul.msk.f32.gmra.mxu3 %vm89_vm0, %v1278_v52 }
 0x14d   :  { %1001 = vmatmul.f32.gmra.mxu1 %v1277_v9 }
 0x14e   :  { %v482_v1 = vpop.f32.mrf.mxu2 }
 0x14f   :  { %v733_v2 = vpop.f32.mrf.mxu3 }
 0x150   :  { %v2264_v4 = vadd.f32 %v733_v2, %v677_v62  ;;  %v532_v8 = vpop.f32.mrf.mxu0  ;;  %v483_v62 = vadd.f32 %v482_v1, %v2064_v44 }
 0x151   :  { %v2269_v13 = vadd.f32 %v532_v8, %v477_v50 }
 0x152   :  { %v680_v26 = vpop.f32.mrf.mxu1 }
 0x153   :  { %v553_v23 = vmax.f32 %v2026_v19, %v2269_v13  ;;  %948 = vmatmul.f32.gmra.mxu0 %v1279_v10 }
 0x154   :  { %1294 = vmatmul.msk.f32.gmra.mxu3 %vm89_vm0, %v1281_v20 }
 0x155   :  { %1004 = vmatmul.f32.gmra.mxu1 %v1280_v21 }
 0x156   :  { %v485_v33 = vpop.f32.mrf.mxu2 }
 0x157   :  { %v736_v60 = vpop.f32.mrf.mxu3  ;;  %v486_v21 = vadd.f32 %v485_v33, %v2083_v63 }
 0x158   :  { %v2281_v28 = vadd.f32 %v736_v60, %v680_v26  ;;  %v535_v40 = vpop.f32.mrf.mxu0 }
 0x159   :  { %v2283_v42 = vadd.f32 %v535_v40, %v480_v12 }
 0x15a   :  { %v683_v52 = vpop.f32.mrf.mxu1 }
 0x15b   :  { %v554_v46 = vmax.f32 %v2044_v31, %v2283_v42 }
 0x15e   :  { %v765_v50 = vpop.f32.mrf.mxu2 }
 0x15f   :  { %v739_v9 = vpop.f32.mrf.mxu3  ;;  %v766_v8 = vadd.f32 %v765_v50, %v2104_v16 }
 0x160   :  { %v2288_v2 = vadd.f32 %v739_v9, %v683_v52  ;;  %v538_v32 = vpop.f32.mrf.mxu0 }
 0x161   :  { %v2291_v36 = vadd.f32 %v538_v32, %v483_v62  ;;  %v804_v10 = vmax.f32 %v544_v51, %v766_v8 }
 0x162   :  { %v686_v26 = vpop.f32.mrf.mxu1 }
 0x163   :  { %v555_v20 = vmax.f32 %v2062_v43, %v2291_v36 }
 0x166   :  { %v768_v1 = vpop.f32.mrf.mxu2 }
 0x167   :  { %v742_v44 = vpop.f32.mrf.mxu3  ;;  %v769_v60 = vadd.f32 %v768_v1, %v2125_v34 }
 0x168   :  { %v2299_v12 = vadd.f32 %v742_v44, %v686_v26  ;;  %v541_v16 = vpop.f32.mrf.mxu0  ;;  %v2319_v26 = vld [vmem:[%s2426_s2] ss:$0 sm:$0xff] }
 0x169   :  { %v2302_v40 = vadd.f32 %v541_v16, %v486_v21  ;;  %v805_v49 = vmax.f32 %v545_v61, %v769_v60 }
 0x16a   :  { %v689_v51 = vpop.f32.mrf.mxu1 }
 0x16b   :  { %v556_v3 = vmax.f32 %v2080_v58, %v2302_v40 }
 0x16e   :  { %v771_v62 = vpop.f32.mrf.mxu2 }
 0x16f   :  { %v745_v52 = vpop.f32.mrf.mxu3  ;;  %v772_v33 = vadd.f32 %v771_v62, %v2146_v53 }
 0x170   :  { %v2309_v63 = vadd.f32 %v745_v52, %v689_v51  ;;  %v913_v9 = vpop.f32.mrf.mxu0 }
 0x171   :  { %v806_v34 = vmax.f32 %v546_v7, %v772_v33 }
 0x172   :  { %v969_v50 = vpop.f32.mrf.mxu1 }
 0x173   :  { %v970_v8 = vadd.f32 %v969_v50, %v913_v9 }
 0x176   :  { %v774_v32 = vpop.f32.mrf.mxu2 }
 0x177   :  { %v1025_v59 = vpop.f32.mrf.mxu3  ;;  %v775_v22 = vadd.f32 %v774_v32, %v2167_v11 }
 0x178   :  { %v1026_v61 = vadd.f32 %v1025_v59, %v970_v8  ;;  %v916_v21 = vpop.f32.mrf.mxu0 }
 0x179   :  { %v807_v53 = vmax.f32 %v547_v17, %v775_v22 }
 0x17a   :  { %v1064_v44 = vmax.f32 %v804_v10, %v1026_v61  ;;  %v972_v5 = vpop.f32.mrf.mxu1 }
 0x17b   :  { %v973_v7 = vadd.f32 %v972_v5, %v916_v21 }
 0x17c   :  { %v1081_v39 = vadd.f32 %v2319_v26, %v1064_v44 }
 0x17e   :  { %v1094_v1 = vmax.f32 %v1081_v39, 0.0  ;;  %v777_v60 = vpop.f32.mrf.mxu2 }
 0x17f   :  { %v1028_v11 = vpop.f32.mrf.mxu3  ;;  %v778_v16 = vadd.f32 %v777_v60, %v2188_v30 }
 0x180   :  { %1108 = vst.msk [vmem:[%s2427_s3] sm:$0xff] %vm1107_vm1, %v1094_v1  ;;  %v1029_v51 = vadd.f32 %v1028_v11, %v973_v7  ;;  %v919_v52 = vpop.f32.mrf.mxu0 }
 0x181   :  { %v808_v15 = vmax.f32 %v548_v27, %v778_v16 }
 0x182   :  { %v1065_v56 = vmax.f32 %v805_v49, %v1029_v51  ;;  %v975_v17 = vpop.f32.mrf.mxu1 }
 0x183   :  { %v976_v62 = vadd.f32 %v975_v17, %v919_v52 }
 0x184   :  { %v1082_v10 = vadd.f32 %v2319_v26, %v1065_v56 }
 0x186   :  { %v1095_v33 = vmax.f32 %v1082_v10, 0.0  ;;  %v780_v9 = vpop.f32.mrf.mxu2 }
 0x187   :  { %v1031_v50 = vpop.f32.mrf.mxu3  ;;  %v781_v30 = vadd.f32 %v780_v9, %v2209_v54 }
 0x188   :  { %1109 = vst.msk [vmem:[%s2427_s3 + $0x8] sm:$0xff] %vm1107_vm1, %v1095_v33  ;;  %v1032_v8 = vadd.f32 %v1031_v50, %v976_v62  ;;  %v922_v32 = vpop.f32.mrf.mxu0 }
 0x189   :  { %v809_v25 = vmax.f32 %v549_v37, %v781_v30 }
 0x18a   :  { %v1066_v14 = vmax.f32 %v806_v34, %v1032_v8  ;;  %v978_v27 = vpop.f32.mrf.mxu1 }
 0x18b   :  { %v979_v59 = vadd.f32 %v978_v27, %v922_v32 }
 0x18c   :  { %v1083_v49 = vadd.f32 %v2319_v26, %v1066_v14 }
 0x18e   :  { %v1096_v22 = vmax.f32 %v1083_v49, 0.0  ;;  %v783_v61 = vpop.f32.mrf.mxu2 }
 0x18f   :  { %v1034_v21 = vpop.f32.mrf.mxu3  ;;  %v784_v54 = vadd.f32 %v783_v61, %v2230_v18 }
 0x190   :  { %1110 = vst.msk [vmem:[%s2427_s3 + $0x10] sm:$0xff] %vm1107_vm1, %v1096_v22  ;;  %v1035_v44 = vadd.f32 %v1034_v21, %v979_v59  ;;  %v925_v5 = vpop.f32.mrf.mxu0 }
 0x191   :  { %v810_v35 = vmax.f32 %v550_v47, %v784_v54 }
 0x192   :  { %v1067_v38 = vmax.f32 %v807_v53, %v1035_v44  ;;  %v981_v37 = vpop.f32.mrf.mxu1 }
 0x193   :  { %v982_v39 = vadd.f32 %v981_v37, %v925_v5 }
 0x194   :  { %v1084_v34 = vadd.f32 %v2319_v26, %v1067_v38 }
 0x196   :  { %v1097_v7 = vmax.f32 %v1084_v34, 0.0  ;;  %v786_v1 = vpop.f32.mrf.mxu2 }
 0x197   :  { %v1037_v60 = vpop.f32.mrf.mxu3  ;;  %v787_v18 = vadd.f32 %v786_v1, %v2247_v41 }
 0x198   :  { %1111 = vst.msk [vmem:[%s2427_s3 + $0x18] sm:$0xff] %vm1107_vm1, %v1097_v7  ;;  %v1038_v11 = vadd.f32 %v1037_v60, %v982_v39  ;;  %v928_v16 = vpop.f32.mrf.mxu0 }
 0x199   :  { %v811_v45 = vmax.f32 %v551_v29, %v787_v18 }
 0x19a   :  { %v1068_v0 = vmax.f32 %v808_v15, %v1038_v11  ;;  %v984_v47 = vpop.f32.mrf.mxu1 }
 0x19b   :  { %v985_v51 = vadd.f32 %v984_v47, %v928_v16 }
 0x19c   :  { %v1085_v53 = vadd.f32 %v2319_v26, %v1068_v0 }
 0x19e   :  { %v1098_v52 = vmax.f32 %v1085_v53, 0.0  ;;  %v789_v56 = vpop.f32.mrf.mxu2 }
 0x19f   :  { %v1040_v17 = vpop.f32.mrf.mxu3  ;;  %v790_v41 = vadd.f32 %v789_v56, %v2264_v4 }
 0x1a0   :  { %1112 = vst.msk [vmem:[%s2427_s3 + $0x20] sm:$0xff] %vm1107_vm1, %v1098_v52  ;;  %v1041_v10 = vadd.f32 %v1040_v17, %v985_v51  ;;  %v931_v62 = vpop.f32.mrf.mxu0 }
 0x1a1   :  { %v812_v57 = vmax.f32 %v552_v55, %v790_v41 }
 0x1a2   :  { %v1069_v24 = vmax.f32 %v809_v25, %v1041_v10  ;;  %v987_v29 = vpop.f32.mrf.mxu1 }
 0x1a3   :  { %v988_v33 = vadd.f32 %v987_v29, %v931_v62 }
 0x1a4   :  { %v1086_v15 = vadd.f32 %v2319_v26, %v1069_v24 }
 0x1a6   :  { %v1099_v9 = vmax.f32 %v1086_v15, 0.0  ;;  %v792_v50 = vpop.f32.mrf.mxu2 }
 0x1a7   :  { %v1043_v30 = vpop.f32.mrf.mxu3  ;;  %v793_v4 = vadd.f32 %v792_v50, %v2281_v28 }
 0x1a8   :  { %1113 = vst.msk [vmem:[%s2427_s3 + $0x28] sm:$0xff] %vm1107_vm1, %v1099_v9  ;;  %v1044_v8 = vadd.f32 %v1043_v30, %v988_v33  ;;  %v934_v32 = vpop.f32.mrf.mxu0 }
 0x1a9   :  { %v813_v6 = vmax.f32 %v553_v23, %v793_v4 }
 0x1aa   :  { %v1070_v48 = vmax.f32 %v810_v35, %v1044_v8  ;;  %v990_v55 = vpop.f32.mrf.mxu1 }
 0x1ab   :  { %v991_v14 = vadd.f32 %v990_v55, %v934_v32 }
 0x1ac   :  { %v1087_v25 = vadd.f32 %v2319_v26, %v1070_v48 }
 0x1ae   :  { %v1100_v27 = vmax.f32 %v1087_v25, 0.0  ;;  %v795_v49 = vpop.f32.mrf.mxu2 }
 0x1af   :  { %v1046_v59 = vpop.f32.mrf.mxu3  ;;  %v796_v28 = vadd.f32 %v795_v49, %v2288_v2 }
 0x1b0   :  { %1114 = vst.msk [vmem:[%s2427_s3 + $0x30] sm:$0xff] %vm1107_vm1, %v1100_v27  ;;  %v1047_v22 = vadd.f32 %v1046_v59, %v991_v14  ;;  %v937_v61 = vpop.f32.mrf.mxu0 }
 0x1b1   :  { %v814_v19 = vmax.f32 %v554_v46, %v796_v28 }
 0x1b2   :  { %v1071_v13 = vmax.f32 %v811_v45, %v1047_v22  ;;  %v993_v23 = vpop.f32.mrf.mxu1 }
 0x1b3   :  { %v994_v54 = vadd.f32 %v993_v23, %v937_v61 }
 0x1b4   :  { %v1088_v21 = vadd.f32 %v2319_v26, %v1071_v13 }
 0x1b6   :  { %v1101_v44 = vmax.f32 %v1088_v21, 0.0  ;;  %v798_v5 = vpop.f32.mrf.mxu2 }
 0x1b7   :  { %v1049_v35 = vpop.f32.mrf.mxu3  ;;  %v799_v2 = vadd.f32 %v798_v5, %v2299_v12 }
 0x1b8   :  { %1115 = vst.msk [vmem:[%s2427_s3 + $0x38] sm:$0xff] %vm1107_vm1, %v1101_v44  ;;  %v1050_v38 = vadd.f32 %v1049_v35, %v994_v54  ;;  %v940_v37 = vpop.f32.mrf.mxu0 }
 0x1b9   :  { %v815_v31 = vmax.f32 %v555_v20, %v799_v2 }
 0x1ba   :  { %v1072_v42 = vmax.f32 %v812_v57, %v1050_v38  ;;  %v996_v46 = vpop.f32.mrf.mxu1 }
 0x1bb   :  { %v997_v39 = vadd.f32 %v996_v46, %v940_v37 }
 0x1bc   :  { %v1089_v34 = vadd.f32 %v2319_v26, %v1072_v42 }
 0x1be   :  { %v1102_v7 = vmax.f32 %v1089_v34, 0.0  ;;  %v801_v1 = vpop.f32.mrf.mxu2 }
 0x1bf   :  { %v1052_v60 = vpop.f32.mrf.mxu3  ;;  %v802_v12 = vadd.f32 %v801_v1, %v2309_v63 }
 0x1c0   :  { %1116 = vst.msk [vmem:[%s2427_s3 + $0x40] sm:$0xff] %vm1107_vm1, %v1102_v7  ;;  %v1053_v18 = vadd.f32 %v1052_v60, %v997_v39  ;;  %v943_v11 = vpop.f32.mrf.mxu0 }
 0x1c1   :  { %v816_v43 = vmax.f32 %v556_v3, %v802_v12 }
 0x1c2   :  { %v1073_v36 = vmax.f32 %v813_v6, %v1053_v18  ;;  %v999_v20 = vpop.f32.mrf.mxu1 }
 0x1c3   :  { %v1000_v45 = vadd.f32 %v999_v20, %v943_v11 }
 0x1c4   :  { %v1090_v16 = vadd.f32 %v2319_v26, %v1073_v36 }
 0x1c6   :  { %v1103_v0 = vmax.f32 %v1090_v16, 0.0 }
 0x1c7   :  { %v1055_v47 = vpop.f32.mrf.mxu3 }
 0x1c8   :  { %1117 = vst.msk [vmem:[%s2427_s3 + $0x48] sm:$0xff] %vm1107_vm1, %v1103_v0  ;;  %v1056_v53 = vadd.f32 %v1055_v47, %v1000_v45  ;;  %v946_v63 = vpop.f32.mrf.mxu0 }
 0x1ca   :  { %v1074_v51 = vmax.f32 %v814_v19, %v1056_v53  ;;  %v1002_v52 = vpop.f32.mrf.mxu1 }
 0x1cb   :  { %v1003_v58 = vadd.f32 %v1002_v52, %v946_v63 }
 0x1cc   :  { %v1091_v56 = vadd.f32 %v2319_v26, %v1074_v51 }
 0x1ce   :  { %v1104_v40 = vmax.f32 %v1091_v56, 0.0 }
 0x1cf   :  { %v1058_v3 = vpop.f32.mrf.mxu3 }
 0x1d0   :  { %1118 = vst.msk [vmem:[%s2427_s3 + $0x50] sm:$0xff] %vm1107_vm1, %v1104_v40  ;;  %v1059_v17 = vadd.f32 %v1058_v3, %v1003_v58  ;;  %v949_v41 = vpop.f32.mrf.mxu0 }
 0x1d2   :  { %v1075_v10 = vmax.f32 %v815_v31, %v1059_v17  ;;  %v1005_v62 = vpop.f32.mrf.mxu1 }
 0x1d3   :  { %v1006_v24 = vadd.f32 %v1005_v62, %v949_v41 }
 0x1d4   :  { %v1092_v57 = vadd.f32 %v2319_v26, %v1075_v10 }
 0x1d6   :  { %v1105_v29 = vmax.f32 %v1092_v57, 0.0 }
 0x1d7   :  { %v1061_v15 = vpop.f32.mrf.mxu3 }
 0x1d8   :  { %1119 = vst.msk [vmem:[%s2427_s3 + $0x58] sm:$0xff] %vm1107_vm1, %v1105_v29  ;;  %v1062_v33 = vadd.f32 %v1061_v15, %v1006_v24 }
 0x1da   :  { %v1076_v9 = vmax.f32 %v816_v43, %v1062_v33 }
 0x1dc   :  { %v1093_v50 = vadd.f32 %v2319_v26, %v1076_v9 }
 0x1de   :  { %v1106_v30 = vmax.f32 %v1093_v50, 0.0 }
 0x1e0   :  { %1121 = vst.msk [vmem:[%s2427_s3 + $0x60] sm:$0x3] %vm1120_vm2, %v1106_v30 }

// kernel: cnn_emnist_forward.6
= control target key start
LH: loop header
LB: loop body
LE: loop exit
PB: predicated region body
PF: predicated region fallthrough
CT: control target
= control target key end

     0   :  { %vm101_vm0 = vcmask 523264   ;;  %s1677_s1 = inlined_call_operand.vmem [shape: f32[576,128], index: 1, kind: input, shape index: {}]   ;;  %s1678_s0 = inlined_call_operand.vmem [shape: f32[4,18,576], index: 0, kind: input, shape index: {}]   ;;  %s1679_s2 = inlined_call_operand.vmem [shape: f32[1,128], index: 2, kind: input, shape index: {}]   ;;  %s1680_s3 = inlined_call_operand.vmem [shape: f32[18,128], index: 3, kind: output, shape index: {}]  }
   0x1   :  { %v813_v0 = vld [vmem:[%s1677_s1 + $0x78] sm:$0xff]  ;;  %v835_v4 = vld [vmem:[%s1677_s1 + $0x70] sm:$0xff]  ;;  %v857_v8 = vld [vmem:[%s1677_s1 + $0x68] sm:$0xff] }
   0x2   :  { %v818_v1 = vld [vmem:[%s1677_s1 + $0xf8] sm:$0xff]  ;;  %111 = vmatpush.msra.mxu0 %v813_v0  ;;  %v840_v5 = vld [vmem:[%s1677_s1 + $0xf0] sm:$0xff]  ;;  %v864_v9 = vld [vmem:[%s1677_s1 + $0xe8] sm:$0xff] }
   0x3   :  { %1716 = vst [vmem:[#allocation2_spill] sm:$0xff] %v818_v1  ;;  %v823_v2 = vld [vmem:[%s1677_s1 + $0x178] sm:$0xff]  ;;  %137 = vmatpush.msra.mxu1 %v818_v1  ;;  %v847_v6 = vld [vmem:[%s1677_s1 + $0x170] sm:$0xff]  ;;  %v869_v10 = vld [vmem:[%s1677_s1 + $0x168] sm:$0xff] }
   0x4   :  { %1717 = vst [vmem:[#allocation3_spill] sm:$0xff] %v823_v2  ;;  %v830_v3 = vld [vmem:[%s1677_s1 + $0x1f8] sm:$0xff]  ;;  %163 = vmatpush.msra.mxu2 %v823_v2  ;;  %v852_v7 = vld [vmem:[%s1677_s1 + $0x1f0] sm:$0xff]  ;;  %112 = vmatpush.msra.mxu0 %v835_v4  ;;  %v874_v11 = vld [vmem:[%s1677_s1 + $0x1e8] sm:$0xff] }
   0x5   :  { %1718 = vst [vmem:[#allocation4_spill] sm:$0xff] %v840_v5  ;;  %189 = vmatpush.msra.mxu3 %v830_v3  ;;  %138 = vmatpush.msra.mxu1 %v840_v5  ;;  %v881_v12 = vld [vmem:[%s1677_s1 + $0x60] sm:$0xff]  ;;  %v905_v16 = vld [vmem:[%s1677_s1 + $0x58] sm:$0xff]  ;;  %v929_v20 = vld [vmem:[%s1677_s1 + $0x50] sm:$0xff] }
   0x6   :  { %1719 = vst [vmem:[#allocation5_spill] sm:$0xff] %v847_v6  ;;  %164 = vmatpush.msra.mxu2 %v847_v6  ;;  %v886_v13 = vld [vmem:[%s1677_s1 + $0xe0] sm:$0xff]  ;;  %113 = vmatpush.msra.mxu0 %v857_v8  ;;  %v910_v17 = vld [vmem:[%s1677_s1 + $0xd8] sm:$0xff]  ;;  %v934_v21 = vld [vmem:[%s1677_s1 + $0xd0] sm:$0xff] }
   0x7   :  { %1720 = vst [vmem:[#allocation6_spill] sm:$0xff] %v864_v9  ;;  %190 = vmatpush.msra.mxu3 %v852_v7  ;;  %139 = vmatpush.msra.mxu1 %v864_v9  ;;  %v893_v14 = vld [vmem:[%s1677_s1 + $0x160] sm:$0xff]  ;;  %v917_v18 = vld [vmem:[%s1677_s1 + $0x158] sm:$0xff]  ;;  %v941_v22 = vld [vmem:[%s1677_s1 + $0x150] sm:$0xff] }
   0x8   :  { %1721 = vst [vmem:[#allocation7_spill] sm:$0xff] %v869_v10  ;;  %v898_v15 = vld [vmem:[%s1677_s1 + $0x1e0] sm:$0xff]  ;;  %165 = vmatpush.msra.mxu2 %v869_v10  ;;  %114 = vmatpush.msra.mxu0 %v881_v12  ;;  %v922_v19 = vld [vmem:[%s1677_s1 + $0x1d8] sm:$0xff]  ;;  %v946_v23 = vld [vmem:[%s1677_s1 + $0x1d0] sm:$0xff] }
   0x9   :  { %1722 = vst [vmem:[#allocation8_spill] sm:$0xff] %v893_v14  ;;  %191 = vmatpush.msra.mxu3 %v874_v11  ;;  %140 = vmatpush.msra.mxu1 %v886_v13  ;;  %v953_v24 = vld [vmem:[%s1677_s1 + $0x48] sm:$0xff]  ;;  %v977_v28 = vld [vmem:[%s1677_s1 + $0x40] sm:$0xff]  ;;  %v1001_v32 = vld [vmem:[%s1677_s1 + $0x38] sm:$0xff] }
   0xa   :  { %1723 = vst [vmem:[#allocation9_spill] sm:$0xff] %v910_v17  ;;  %166 = vmatpush.msra.mxu2 %v893_v14  ;;  %115 = vmatpush.msra.mxu0 %v905_v16  ;;  %v958_v25 = vld [vmem:[%s1677_s1 + $0xc8] sm:$0xff]  ;;  %v982_v29 = vld [vmem:[%s1677_s1 + $0xc0] sm:$0xff]  ;;  %v1006_v33 = vld [vmem:[%s1677_s1 + $0xb8] sm:$0xff] }
   0xb   :  { %1724 = vst [vmem:[#allocation10_spill] sm:$0xff] %v917_v18  ;;  %192 = vmatpush.msra.mxu3 %v898_v15  ;;  %141 = vmatpush.msra.mxu1 %v910_v17  ;;  %v965_v26 = vld [vmem:[%s1677_s1 + $0x148] sm:$0xff]  ;;  %v989_v30 = vld [vmem:[%s1677_s1 + $0x140] sm:$0xff]  ;;  %v1013_v34 = vld [vmem:[%s1677_s1 + $0x138] sm:$0xff] }
   0xc   :  { %1725 = vst [vmem:[#allocation11_spill] sm:$0xff] %v934_v21  ;;  %167 = vmatpush.msra.mxu2 %v917_v18  ;;  %116 = vmatpush.msra.mxu0 %v929_v20  ;;  %v970_v27 = vld [vmem:[%s1677_s1 + $0x1c8] sm:$0xff]  ;;  %v994_v31 = vld [vmem:[%s1677_s1 + $0x1c0] sm:$0xff]  ;;  %v1018_v35 = vld [vmem:[%s1677_s1 + $0x1b8] sm:$0xff] }
   0xd   :  { %1726 = vst [vmem:[#allocation12_spill] sm:$0xff] %v941_v22  ;;  %193 = vmatpush.msra.mxu3 %v922_v19  ;;  %142 = vmatpush.msra.mxu1 %v934_v21  ;;  %v1025_v36 = vld [vmem:[%s1677_s1 + $0x30] sm:$0xff]  ;;  %v1049_v40 = vld [vmem:[%s1677_s1 + $0x28] sm:$0xff]  ;;  %v1073_v44 = vld [vmem:[%s1677_s1 + $0x20] sm:$0xff] }
   0xe   :  { %1727 = vst [vmem:[#allocation13_spill] sm:$0xff] %v958_v25  ;;  %168 = vmatpush.msra.mxu2 %v941_v22  ;;  %117 = vmatpush.msra.mxu0 %v953_v24  ;;  %v1030_v37 = vld [vmem:[%s1677_s1 + $0xb0] sm:$0xff]  ;;  %v1054_v41 = vld [vmem:[%s1677_s1 + $0xa8] sm:$0xff]  ;;  %v1078_v45 = vld [vmem:[%s1677_s1 + $0xa0] sm:$0xff] }
   0xf   :  { %194 = vmatpush.msra.mxu3 %v946_v23  ;;  %1728 = vst [vmem:[#allocation14_spill] sm:$0xff] %v982_v29  ;;  %143 = vmatpush.msra.mxu1 %v958_v25  ;;  %v1037_v38 = vld [vmem:[%s1677_s1 + $0x130] sm:$0xff]  ;;  %v1061_v42 = vld [vmem:[%s1677_s1 + $0x128] sm:$0xff]  ;;  %v1085_v46 = vld [vmem:[%s1677_s1 + $0x120] sm:$0xff] }
  0x10   :  { %169 = vmatpush.msra.mxu2 %v965_v26  ;;  %1729 = vst [vmem:[#allocation15_spill] sm:$0xff] %v1006_v33  ;;  %118 = vmatpush.msra.mxu0 %v977_v28  ;;  %v1042_v39 = vld [vmem:[%s1677_s1 + $0x1b0] sm:$0xff]  ;;  %v1066_v43 = vld [vmem:[%s1677_s1 + $0x1a8] sm:$0xff]  ;;  %v1090_v47 = vld [vmem:[%s1677_s1 + $0x1a0] sm:$0xff] }
  0x11   :  { %195 = vmatpush.msra.mxu3 %v970_v27  ;;  %144 = vmatpush.msra.mxu1 %v982_v29  ;;  %1730 = vst [vmem:[#allocation16_spill] sm:$0xff] %v1037_v38  ;;  %v1097_v48 = vld [vmem:[%s1677_s1 + $0x18] sm:$0xff]  ;;  %v1121_v52 = vld [vmem:[%s1677_s1 + $0x10] sm:$0xff]  ;;  %v1145_v56 = vld [vmem:[%s1677_s1 + $0x8] sm:$0xff] }
  0x12   :  { %170 = vmatpush.msra.mxu2 %v989_v30  ;;  %119 = vmatpush.msra.mxu0 %v1001_v32  ;;  %1731 = vst [vmem:[#allocation17_spill] sm:$0xff] %v1054_v41  ;;  %v1102_v49 = vld [vmem:[%s1677_s1 + $0x98] sm:$0xff]  ;;  %v1126_v53 = vld [vmem:[%s1677_s1 + $0x90] sm:$0xff]  ;;  %v1150_v57 = vld [vmem:[%s1677_s1 + $0x88] sm:$0xff] }
  0x13   :  { %196 = vmatpush.msra.mxu3 %v994_v31  ;;  %145 = vmatpush.msra.mxu1 %v1006_v33  ;;  %1732 = vst [vmem:[#allocation18_spill] sm:$0xff] %v1078_v45  ;;  %v1109_v50 = vld [vmem:[%s1677_s1 + $0x118] sm:$0xff]  ;;  %v1133_v54 = vld [vmem:[%s1677_s1 + $0x110] sm:$0xff]  ;;  %v1157_v58 = vld [vmem:[%s1677_s1 + $0x108] sm:$0xff] }
  0x14   :  { %171 = vmatpush.msra.mxu2 %v1013_v34  ;;  %120 = vmatpush.msra.mxu0 %v1025_v36  ;;  %1733 = vst [vmem:[#allocation19_spill] sm:$0xff] %v1090_v47  ;;  %v1114_v51 = vld [vmem:[%s1677_s1 + $0x198] sm:$0xff]  ;;  %v1138_v55 = vld [vmem:[%s1677_s1 + $0x190] sm:$0xff]  ;;  %v1162_v59 = vld [vmem:[%s1677_s1 + $0x188] sm:$0xff] }
  0x15   :  { %197 = vmatpush.msra.mxu3 %v1018_v35  ;;  %146 = vmatpush.msra.mxu1 %v1030_v37  ;;  %1734 = vst [vmem:[#allocation20_spill] sm:$0xff] %v1114_v51  ;;  %v1169_v60 = vld [vmem:[%s1677_s1] sm:$0xff] }
  0x16   :  { %172 = vmatpush.msra.mxu2 %v1037_v38  ;;  %121 = vmatpush.msra.mxu0 %v1049_v40  ;;  %1735 = vst [vmem:[#allocation21_spill] sm:$0xff] %v1138_v55  ;;  %v1174_v61 = vld [vmem:[%s1677_s1 + $0x80] sm:$0xff] }
  0x17   :  { %198 = vmatpush.msra.mxu3 %v1042_v39  ;;  %147 = vmatpush.msra.mxu1 %v1054_v41  ;;  %1736 = vst [vmem:[#allocation22_spill] sm:$0xff] %v1162_v59  ;;  %v1181_v62 = vld [vmem:[%s1677_s1 + $0x100] sm:$0xff] }
  0x18   :  { %173 = vmatpush.msra.mxu2 %v1061_v42  ;;  %122 = vmatpush.msra.mxu0 %v1073_v44  ;;  %1737 = vst [vmem:[#allocation23_spill] sm:$0xff] %v1174_v61  ;;  %v1186_v63 = vld [vmem:[%s1677_s1 + $0x180] sm:$0xff] }
  0x19   :  { %199 = vmatpush.msra.mxu3 %v1066_v43  ;;  %148 = vmatpush.msra.mxu1 %v1078_v45  ;;  %1738 = vst [vmem:[#allocation24_spill] sm:$0xff] %v1186_v63 }
  0x1a   :  { %174 = vmatpush.msra.mxu2 %v1085_v46  ;;  %123 = vmatpush.msra.mxu0 %v1097_v48 }
  0x1b   :  { %200 = vmatpush.msra.mxu3 %v1090_v47  ;;  %149 = vmatpush.msra.mxu1 %v1102_v49  ;;  %v87_v47 = vld [vmem:[%s1678_s0 + $0x8] sm:$0xff] }
  0x1c   :  { %175 = vmatpush.msra.mxu2 %v1109_v50  ;;  %124 = vmatpush.msra.mxu0 %v1121_v52 }
  0x1d   :  { %201 = vmatpush.msra.mxu3 %v1114_v51  ;;  %150 = vmatpush.msra.mxu1 %v1126_v53  ;;  %v1202_v51 = vld [vmem:[%s1677_s1 + $0x230] sm:$0xff] }
  0x1e   :  { %176 = vmatpush.msra.mxu2 %v1133_v54  ;;  %125 = vmatpush.msra.mxu0 %v1145_v56 }
  0x1f   :  { %202 = vmatpush.msra.mxu3 %v1138_v55  ;;  %151 = vmatpush.msra.mxu1 %v1150_v57  ;;  %v1193_v55 = vld [vmem:[%s1677_s1 + $0x238] sm:$0xff] }
  0x20   :  { %177 = vmatpush.msra.mxu2 %v1157_v58  ;;  %126 = vmatpush.msra.mxu0 %v1169_v60 }
  0x21   :  { %203 = vmatpush.msra.mxu3 %v1162_v59  ;;  %152 = vmatpush.msra.mxu1 %v1174_v61  ;;  %v86_v59 = vld [vmem:[%s1678_s0] sm:$0xff] }
  0x22   :  { %178 = vmatpush.msra.mxu2 %v1181_v62  ;;  %223 = vmatpush.msrb.mxu0 %v1193_v55 }
  0x23   :  { %204 = vmatpush.msra.mxu3 %v1186_v63  ;;  %266 = vmatpush.msrb.mxu1 %v813_v0  ;;  %v1216_v63 = vld [vmem:[%s1677_s1 + $0x228] sm:$0xff] }
  0x24   :  { %292 = vmatpush.msrb.mxu2 %v818_v1  ;;  %224 = vmatpush.msrb.mxu0 %v1202_v51 }
  0x25   :  { %318 = vmatpush.msrb.mxu3 %v823_v2  ;;  %267 = vmatpush.msrb.mxu1 %v835_v4  ;;  %v1224_v2 = vld [vmem:[%s1677_s1 + $0x220] sm:$0xff] }
  0x26   :  { %293 = vmatpush.msrb.mxu2 %v840_v5  ;;  %127 = vmatmul.f32.vlgmr.msra.gmra.mxu0 %v86_v59  ;;  %v1236_v59 = vld [vmem:[%s1677_s1 + $0x218] sm:$0xff] }
  0x27   :  { %319 = vmatpush.msrb.mxu3 %v847_v6  ;;  %268 = vmatpush.msrb.mxu1 %v857_v8  ;;  %v1244_v6 = vld [vmem:[%s1677_s1 + $0x210] sm:$0xff] }
  0x28   :  { %225 = vmatpush.msrb.mxu0 %v1216_v63  ;;  %294 = vmatpush.msrb.mxu2 %v864_v9 }
  0x29   :  { %320 = vmatpush.msrb.mxu3 %v869_v10  ;;  %269 = vmatpush.msrb.mxu1 %v881_v12  ;;  %v91_v10 = vld [vmem:[%s1678_s0 + $0x28] sm:$0xff] }
  0x2a   :  { %226 = vmatpush.msrb.mxu0 %v1224_v2  ;;  %295 = vmatpush.msrb.mxu2 %v886_v13 }
  0x2b   :  { %321 = vmatpush.msrb.mxu3 %v893_v14  ;;  %153 = vmatmul.f32.vlgmr.msra.gmra.mxu1 %v87_v47  ;;  %v1258_v47 = vld [vmem:[%s1677_s1 + $0x208] sm:$0xff]  ;;  %v1269_v14 = vld [vmem:[%s1677_s1 + $0x200] sm:$0xff] }
  0x2c   :  { %227 = vmatpush.msrb.mxu0 %v1236_v59  ;;  %270 = vmatpush.msrb.mxu1 %v905_v16 }
  0x2d   :  { %296 = vmatpush.msrb.mxu2 %v910_v17  ;;  %322 = vmatpush.msrb.mxu3 %v917_v18  ;;  %v88_v18 = vld [vmem:[%s1678_s0 + $0x10] sm:$0xff] }
  0x2e   :  { %228 = vmatpush.msrb.mxu0 %v1244_v6  ;;  %271 = vmatpush.msrb.mxu1 %v929_v20 }
  0x2f   :  { %297 = vmatpush.msrb.mxu2 %v934_v21  ;;  %323 = vmatpush.msrb.mxu3 %v941_v22  ;;  %v92_v22 = vld [vmem:[%s1678_s0 + $0x30] sm:$0xff] }
  0x30   :  { %130 = vmatmul.f32.gmra.mxu0 %v91_v10  ;;  %272 = vmatpush.msrb.mxu1 %v953_v24  ;;  %v96_v10 = vld [vmem:[%s1678_s0 + $0x50] sm:$0x3] }
  0x31   :  { %229 = vmatpush.msrb.mxu0 %v1258_v47  ;;  %298 = vmatpush.msrb.mxu2 %v958_v25 }
  0x32   :  { %324 = vmatpush.msrb.mxu3 %v965_v26  ;;  %179 = vmatmul.f32.vlgmr.msra.gmra.mxu2 %v88_v18  ;;  %v89_v18 = vld [vmem:[%s1678_s0 + $0x18] sm:$0xff] }
  0x33   :  { %230 = vmatpush.msrb.mxu0 %v1269_v14  ;;  %273 = vmatpush.msrb.mxu1 %v977_v28 }
  0x34   :  { %299 = vmatpush.msrb.mxu2 %v982_v29  ;;  %325 = vmatpush.msrb.mxu3 %v989_v30 }
  0x35   :  { %156 = vmatmul.f32.gmra.mxu1 %v92_v22  ;;  %344 = vmatpush.msra.mxu0 %v830_v3  ;;  %v93_v22 = vld [vmem:[%s1678_s0 + $0x38] sm:$0xff] }
  0x36   :  { %274 = vmatpush.msrb.mxu1 %v1001_v32  ;;  %300 = vmatpush.msrb.mxu2 %v1006_v33 }
  0x37   :  { %326 = vmatpush.msrb.mxu3 %v1013_v34  ;;  %345 = vmatpush.msra.mxu0 %v852_v7 }
  0x38   :  { %275 = vmatpush.msrb.mxu1 %v1025_v36  ;;  %301 = vmatpush.msrb.mxu2 %v1030_v37 }
  0x39   :  { %327 = vmatpush.msrb.mxu3 %v1037_v38  ;;  %133 = vmatmul.f32.gmra.mxu0 %v96_v10  ;;  %v97_v38 = vld [vmem:[%s1678_s0 + $0x58] sm:$0x3]  ;;  %v90_v10 = vld [vmem:[%s1678_s0 + $0x20] sm:$0xff] }
  0x3a   :  { %205 = vmatmul.f32.vlgmr.msra.gmra.mxu3 %v89_v18  ;;  %346 = vmatpush.msra.mxu0 %v874_v11  ;;  %v94_v18 = vld [vmem:[%s1678_s0 + $0x40] sm:$0xff] }
  0x3b   :  { %276 = vmatpush.msrb.mxu1 %v1049_v40  ;;  %302 = vmatpush.msrb.mxu2 %v1054_v41 }
  0x3c   :  { %328 = vmatpush.msrb.mxu3 %v1061_v42  ;;  %347 = vmatpush.msra.mxu0 %v898_v15 }
  0x3d   :  { %182 = vmatmul.f32.gmra.mxu2 %v93_v22  ;;  %277 = vmatpush.msrb.mxu1 %v1073_v44  ;;  %v735_v22 = vld [vmem:[%s1678_s0 + $0x78] sm:$0xff] }
  0x3e   :  { %303 = vmatpush.msrb.mxu2 %v1078_v45  ;;  %329 = vmatpush.msrb.mxu3 %v1085_v46 }
  0x3f   :  { %159 = vmatmul.f32.gmra.mxu1 %v97_v38  ;;  %348 = vmatpush.msra.mxu0 %v922_v19  ;;  %v98_v38 = vld [vmem:[%s1678_s0 + $0x60] sm:$0x3] }
  0x40   :  { %278 = vmatpush.msrb.mxu1 %v1097_v48  ;;  %304 = vmatpush.msrb.mxu2 %v1102_v49 }
  0x41   :  { %330 = vmatpush.msrb.mxu3 %v1109_v50  ;;  %349 = vmatpush.msra.mxu0 %v946_v23 }
  0x42   :  { %279 = vmatpush.msrb.mxu1 %v1121_v52  ;;  %305 = vmatpush.msrb.mxu2 %v1126_v53 }
  0x43   :  { %331 = vmatpush.msrb.mxu3 %v1133_v54  ;;  %732 = vmatmul.msk.f32.vlgmr.msrb.gmra.mxu0 %vm101_vm0, %v90_v10  ;;  %v99_v10 = vld [vmem:[%s1678_s0 + $0x68] sm:$0x3] }
  0x44   :  { %208 = vmatmul.f32.gmra.mxu3 %v94_v18  ;;  %350 = vmatpush.msra.mxu0 %v970_v27  ;;  %v95_v18 = vld [vmem:[%s1678_s0 + $0x48] sm:$0xff] }
  0x45   :  { %280 = vmatpush.msrb.mxu1 %v1145_v56  ;;  %306 = vmatpush.msrb.mxu2 %v1150_v57 }
  0x46   :  { %332 = vmatpush.msrb.mxu3 %v1157_v58  ;;  %351 = vmatpush.msra.mxu0 %v994_v31 }
  0x47   :  { %185 = vmatmul.f32.gmra.mxu2 %v98_v38  ;;  %281 = vmatpush.msrb.mxu1 %v1169_v60  ;;  %v736_v38 = vld [vmem:[%s1678_s0 + $0x80] sm:$0xff] }
  0x48   :  { %307 = vmatpush.msrb.mxu2 %v1174_v61  ;;  %333 = vmatpush.msrb.mxu3 %v1181_v62 }
  0x49   :  { %282 = vmatmul.f32.vlgmr.msrb.gmra.mxu1 %v735_v22  ;;  %352 = vmatpush.msra.mxu0 %v1018_v35  ;;  %v740_v22 = vld [vmem:[%s1678_s0 + $0xa0] sm:$0xff] }
  0x4a   :  { %424 = vmatpush.msra.mxu2 %v813_v0  ;;  %450 = vmatpush.msra.mxu3 %v818_v1  ;;  %v1741_v1 = vld [vmem:[#allocation21_spill] sm:$0xff] }
  0x4b   :  { %353 = vmatpush.msra.mxu0 %v1042_v39  ;;  %378 = vmatpush.msra.mxu1 %v1193_v55 }
  0x4c   :  { %425 = vmatpush.msra.mxu2 %v835_v4  ;;  %451 = vmatpush.msra.mxu3 %v840_v5  ;;  %v1739_v5 = vld [vmem:[#allocation19_spill] sm:$0xff] }
  0x4d   :  { %211 = vmatmul.f32.gmra.mxu3 %v99_v10  ;;  %733 = vmatmul.msk.f32.gmra.mxu0 %vm101_vm0, %v95_v18  ;;  %v1740_v10 = vld [vmem:[#allocation20_spill] sm:$0xff] }
  0x4e   :  { %354 = vmatpush.msra.mxu0 %v1066_v43  ;;  %379 = vmatpush.msra.mxu1 %v1202_v51  ;;  %v100_v18 = vld [vmem:[%s1678_s0 + $0x70] sm:$0x3] }
  0x4f   :  { %426 = vmatpush.msra.mxu2 %v857_v8  ;;  %452 = vmatpush.msra.mxu3 %v864_v9  ;;  %v737_v9 = vld [vmem:[%s1678_s0 + $0x88] sm:$0xff] }
  0x50   :  { %355 = vmatpush.msra.mxu0 %v1739_v5  ;;  %380 = vmatpush.msra.mxu1 %v1216_v63 }
  0x51   :  { %427 = vmatpush.msra.mxu2 %v881_v12  ;;  %453 = vmatpush.msra.mxu3 %v886_v13 }
  0x52   :  { %308 = vmatmul.f32.vlgmr.msrb.gmra.mxu2 %v736_v38  ;;  %285 = vmatmul.f32.gmra.mxu1 %v740_v22  ;;  %v1742_v38 = vld [vmem:[#allocation22_spill] sm:$0xff]  ;;  %v741_v22 = vld [vmem:[%s1678_s0 + $0xa8] sm:$0xff] }
  0x53   :  { %356 = vmatpush.msra.mxu0 %v1740_v10  ;;  %381 = vmatpush.msra.mxu1 %v1224_v2 }
  0x54   :  { %428 = vmatpush.msra.mxu2 %v905_v16  ;;  %454 = vmatpush.msra.mxu3 %v910_v17  ;;  %v1743_v17 = vld [vmem:[#allocation24_spill] sm:$0xff] }
  0x55   :  { %357 = vmatpush.msra.mxu0 %v1741_v1  ;;  %382 = vmatpush.msra.mxu1 %v1236_v59 }
  0x56   :  { %429 = vmatpush.msra.mxu2 %v929_v20  ;;  %455 = vmatpush.msra.mxu3 %v934_v21  ;;  %v742_v21 = vld [vmem:[%s1678_s0 + $0xb0] sm:$0xff] }
  0x57   :  { %734 = vmatmul.msk.f32.gmra.mxu0 %vm101_vm0, %v100_v18  ;;  %334 = vmatmul.f32.vlgmr.msrb.gmra.mxu3 %v737_v9  ;;  %v745_v9 = vld [vmem:[%s1678_s0 + $0xc8] sm:$0x3] }
  0x58   :  { %358 = vmatpush.msra.mxu0 %v1742_v38  ;;  %383 = vmatpush.msra.mxu1 %v1244_v6  ;;  %v1744_v18 = vld [vmem:[#allocation3_spill] sm:$0xff] }
  0x59   :  { %430 = vmatpush.msra.mxu2 %v953_v24  ;;  %456 = vmatpush.msra.mxu3 %v958_v25  ;;  %v1745_v25 = vld [vmem:[#allocation5_spill] sm:$0xff] }
  0x5a   :  { %359 = vmatpush.msra.mxu0 %v1743_v17  ;;  %384 = vmatpush.msra.mxu1 %v1258_v47 }
  0x5b   :  { %431 = vmatpush.msra.mxu2 %v977_v28  ;;  %457 = vmatpush.msra.mxu3 %v982_v29  ;;  %v1747_v29 = vld [vmem:[#allocation8_spill] sm:$0xff] }
  0x5c   :  { %311 = vmatmul.f32.gmra.mxu2 %v741_v22  ;;  %476 = vmatpush.msrb.mxu0 %v1744_v18  ;;  %v738_v22 = vld [vmem:[%s1678_s0 + $0x90] sm:$0xff] }
  0x5d   :  { %288 = vmatmul.f32.gmra.mxu1 %v745_v9  ;;  %432 = vmatpush.msra.mxu2 %v1001_v32  ;;  %v1746_v9 = vld [vmem:[#allocation7_spill] sm:$0xff] }
  0x5e   :  { %385 = vmatpush.msra.mxu1 %v1269_v14  ;;  %458 = vmatpush.msra.mxu3 %v1006_v33  ;;  %v746_v33 = vld [vmem:[%s1678_s0 + $0xd0] sm:$0x3] }
  0x5f   :  { %477 = vmatpush.msrb.mxu0 %v1745_v25  ;;  %433 = vmatpush.msra.mxu2 %v1025_v36 }
  0x60   :  { %502 = vmatpush.msrb.mxu1 %v830_v3  ;;  %459 = vmatpush.msra.mxu3 %v1030_v37 }
  0x61   :  { %478 = vmatpush.msrb.mxu0 %v1746_v9  ;;  %337 = vmatmul.f32.gmra.mxu3 %v742_v21  ;;  %v739_v21 = vld [vmem:[%s1678_s0 + $0x98] sm:$0xff] }
  0x62   :  { %503 = vmatpush.msrb.mxu1 %v852_v7  ;;  %360 = vmatmul.f32.vlgmr.msra.gmra.mxu0 %v738_v22  ;;  %v1748_v22 = vld [vmem:[#allocation10_spill] sm:$0xff] }
  0x63   :  { %434 = vmatpush.msra.mxu2 %v1049_v40  ;;  %460 = vmatpush.msra.mxu3 %v1054_v41  ;;  %v1749_v41 = vld [vmem:[#allocation12_spill] sm:$0xff] }
  0x64   :  { %479 = vmatpush.msrb.mxu0 %v1747_v29  ;;  %504 = vmatpush.msrb.mxu1 %v874_v11 }
  0x65   :  { %435 = vmatpush.msra.mxu2 %v1073_v44  ;;  %461 = vmatpush.msra.mxu3 %v1078_v45  ;;  %v747_v45 = vld [vmem:[%s1678_s0 + $0xd8] sm:$0x3] }
  0x66   :  { %314 = vmatmul.f32.gmra.mxu2 %v746_v33  ;;  %480 = vmatpush.msrb.mxu0 %v1748_v22  ;;  %v743_v33 = vld [vmem:[%s1678_s0 + $0xb8] sm:$0xff] }
  0x67   :  { %505 = vmatpush.msrb.mxu1 %v898_v15  ;;  %436 = vmatpush.msra.mxu2 %v1097_v48 }
  0x68   :  { %750 = vmatmul.msk.f32.vlgmr.msra.gmra.mxu1 %vm101_vm0, %v739_v21  ;;  %462 = vmatpush.msra.mxu3 %v1102_v49  ;;  %v753_v21 = vld [vmem:[%s1678_s0 + $0xf0] sm:$0xff] }
  0x69   :  { %481 = vmatpush.msrb.mxu0 %v1749_v41  ;;  %506 = vmatpush.msrb.mxu1 %v922_v19 }
  0x6a   :  { %437 = vmatpush.msra.mxu2 %v1121_v52  ;;  %463 = vmatpush.msra.mxu3 %v1126_v53 }
  0x6b   :  { %482 = vmatpush.msrb.mxu0 %v965_v26  ;;  %507 = vmatpush.msrb.mxu1 %v946_v23 }
  0x6c   :  { %340 = vmatmul.f32.gmra.mxu3 %v747_v45  ;;  %363 = vmatmul.f32.gmra.mxu0 %v743_v33  ;;  %v744_v45 = vld [vmem:[%s1678_s0 + $0xc0] sm:$0xff]  ;;  %v1750_v33 = vld [vmem:[#allocation16_spill] sm:$0xff] }
  0x6d   :  { %438 = vmatpush.msra.mxu2 %v1145_v56  ;;  %464 = vmatpush.msra.mxu3 %v1150_v57 }
  0x6e   :  { %483 = vmatpush.msrb.mxu0 %v989_v30  ;;  %508 = vmatpush.msrb.mxu1 %v970_v27 }
  0x6f   :  { %439 = vmatpush.msra.mxu2 %v1169_v60  ;;  %465 = vmatpush.msra.mxu3 %v1174_v61  ;;  %v748_v61 = vld [vmem:[%s1678_s0 + $0xe0] sm:$0x3] }
  0x70   :  { %440 = vmatmul.f32.vlgmr.msra.gmra.mxu2 %v753_v21  ;;  %484 = vmatpush.msrb.mxu0 %v1013_v34  ;;  %v758_v21 = vld [vmem:[%s1678_s0 + $0x118] sm:$0xff] }
  0x71   :  { %509 = vmatpush.msrb.mxu1 %v994_v31  ;;  %582 = vmatpush.msrb.mxu3 %v813_v0  ;;  %v754_v0 = vld [vmem:[%s1678_s0 + $0xf8] sm:$0xff] }
  0x72   :  { %751 = vmatmul.msk.f32.gmra.mxu1 %vm101_vm0, %v744_v45  ;;  %485 = vmatpush.msrb.mxu0 %v1750_v33  ;;  %v764_v45 = vld [vmem:[%s1678_s0 + $0x148] sm:$0x3] }
  0x73   :  { %510 = vmatpush.msrb.mxu1 %v1018_v35  ;;  %536 = vmatpush.msrb.mxu2 %v1193_v55 }
  0x74   :  { %583 = vmatpush.msrb.mxu3 %v835_v4  ;;  %486 = vmatpush.msrb.mxu0 %v1061_v42  ;;  %v749_v4 = vld [vmem:[%s1678_s0 + $0xe8] sm:$0x3] }
  0x75   :  { %511 = vmatpush.msrb.mxu1 %v1042_v39  ;;  %537 = vmatpush.msrb.mxu2 %v1202_v51 }
  0x76   :  { %584 = vmatpush.msrb.mxu3 %v857_v8  ;;  %366 = vmatmul.f32.gmra.mxu0 %v748_v61  ;;  %v759_v8 = vld [vmem:[%s1678_s0 + $0x120] sm:$0xff]  ;;  %v1752_v61 = vld [vmem:[#allocation4_spill] sm:$0xff] }
  0x77   :  { %466 = vmatmul.f32.vlgmr.msra.gmra.mxu3 %v754_v0  ;;  %487 = vmatpush.msrb.mxu0 %v1085_v46 }
  0x78   :  { %512 = vmatpush.msrb.mxu1 %v1066_v43  ;;  %538 = vmatpush.msrb.mxu2 %v1216_v63 }
  0x79   :  { %585 = vmatpush.msrb.mxu3 %v881_v12  ;;  %443 = vmatmul.f32.gmra.mxu2 %v758_v21  ;;  %v755_v12 = vld [vmem:[%s1678_s0 + $0x100] sm:$0xff] }
  0x7a   :  { %488 = vmatpush.msrb.mxu0 %v1109_v50  ;;  %513 = vmatpush.msrb.mxu1 %v1739_v5 }
  0x7b   :  { %539 = vmatpush.msrb.mxu2 %v1224_v2  ;;  %586 = vmatpush.msrb.mxu3 %v905_v16  ;;  %v763_v16 = vld [vmem:[%s1678_s0 + $0x140] sm:$0x3] }
  0x7c   :  { %752 = vmatmul.msk.f32.gmra.mxu1 %vm101_vm0, %v749_v4  ;;  %489 = vmatpush.msrb.mxu0 %v1133_v54 }
  0x7d   :  { %514 = vmatpush.msrb.mxu1 %v1740_v10  ;;  %540 = vmatpush.msrb.mxu2 %v1236_v59 }
  0x7e   :  { %587 = vmatpush.msrb.mxu3 %v929_v20  ;;  %490 = vmatpush.msrb.mxu0 %v1157_v58  ;;  %v756_v20 = vld [vmem:[%s1678_s0 + $0x108] sm:$0xff] }
  0x7f   :  { %515 = vmatpush.msrb.mxu1 %v1741_v1  ;;  %541 = vmatpush.msrb.mxu2 %v1244_v6 }
  0x80   :  { %588 = vmatpush.msrb.mxu3 %v953_v24  ;;  %491 = vmatpush.msrb.mxu0 %v1181_v62  ;;  %v1751_v24 = vld [vmem:[#allocation2_spill] sm:$0xff] }
  0x81   :  { %469 = vmatmul.f32.gmra.mxu3 %v759_v8  ;;  %516 = vmatpush.msrb.mxu1 %v1742_v38 }
  0x82   :  { %542 = vmatpush.msrb.mxu2 %v1258_v47  ;;  %589 = vmatpush.msrb.mxu3 %v977_v28  ;;  %v1753_v28 = vld [vmem:[#allocation6_spill] sm:$0xff] }
  0x83   :  { %492 = vmatmul.f32.vlgmr.msrb.gmra.mxu0 %v755_v12  ;;  %446 = vmatmul.f32.gmra.mxu2 %v763_v16 }
  0x84   :  { %608 = vmatpush.msra.mxu0 %v1751_v24  ;;  %517 = vmatpush.msrb.mxu1 %v1743_v17 }
  0x85   :  { %543 = vmatpush.msrb.mxu2 %v1269_v14  ;;  %590 = vmatpush.msrb.mxu3 %v1001_v32  ;;  %v1757_v32 = vld [vmem:[#allocation14_spill] sm:$0xff] }
  0x86   :  { %518 = vmatmul.f32.vlgmr.msrb.gmra.mxu1 %v756_v20  ;;  %609 = vmatpush.msra.mxu0 %v1752_v61 }
  0x87   :  { %634 = vmatpush.msra.mxu1 %v1744_v18  ;;  %660 = vmatpush.msra.mxu2 %v830_v3  ;;  %v760_v3 = vld [vmem:[%s1678_s0 + $0x128] sm:$0xff] }
  0x88   :  { %591 = vmatpush.msrb.mxu3 %v1025_v36  ;;  %610 = vmatpush.msra.mxu0 %v1753_v28  ;;  %v1758_v36 = vld [vmem:[#allocation15_spill] sm:$0xff] }
  0x89   :  { %635 = vmatpush.msra.mxu1 %v1745_v25  ;;  %661 = vmatpush.msra.mxu2 %v852_v7  ;;  %v757_v25 = vld [vmem:[%s1678_s0 + $0x110] sm:$0xff] }
  0x8a   :  { %592 = vmatpush.msrb.mxu3 %v1049_v40  ;;  %611 = vmatpush.msra.mxu0 %v886_v13  ;;  %v761_v7 = vld [vmem:[%s1678_s0 + $0x130] sm:$0xff]  ;;  %v1754_v13 = vld [vmem:[#allocation9_spill] sm:$0xff] }
  0x8b   :  { %472 = vmatmul.f32.gmra.mxu3 %v764_v45  ;;  %636 = vmatpush.msra.mxu1 %v1746_v9  ;;  %v766_v40 = vld [vmem:[%s1678_s0 + $0x158] sm:$0x3] }
  0x8c   :  { %662 = vmatpush.msra.mxu2 %v874_v11  ;;  %593 = vmatpush.msrb.mxu3 %v1073_v44  ;;  %v1755_v11 = vld [vmem:[#allocation11_spill] sm:$0xff]  ;;  %v778_v44 = vld [vmem:[%s1678_s0 + $0x1a0] sm:$0xff] }
  0x8d   :  { %495 = vmatmul.f32.gmra.mxu0 %v760_v3  ;;  %637 = vmatpush.msra.mxu1 %v1747_v29  ;;  %v1756_v29 = vld [vmem:[#allocation13_spill] sm:$0xff] }
  0x8e   :  { %612 = vmatpush.msra.mxu0 %v1754_v13  ;;  %663 = vmatpush.msra.mxu2 %v898_v15  ;;  %v765_v15 = vld [vmem:[%s1678_s0 + $0x150] sm:$0x3] }
  0x8f   :  { %768 = vmatmul.msk.f32.vlgmr.msrb.gmra.mxu2 %vm101_vm0, %v757_v25  ;;  %594 = vmatpush.msrb.mxu3 %v1097_v48  ;;  %v782_v48 = vld [vmem:[%s1678_s0 + $0x1c0] sm:$0x3] }
  0x90   :  { %521 = vmatmul.f32.gmra.mxu1 %v761_v7  ;;  %613 = vmatpush.msra.mxu0 %v1755_v11 }
  0x91   :  { %638 = vmatpush.msra.mxu1 %v1748_v22  ;;  %664 = vmatpush.msra.mxu2 %v922_v19  ;;  %v771_v19 = vld [vmem:[%s1678_s0 + $0x168] sm:$0xff] }
  0x92   :  { %595 = vmatpush.msrb.mxu3 %v1121_v52  ;;  %614 = vmatpush.msra.mxu0 %v1756_v29 }
  0x93   :  { %639 = vmatpush.msra.mxu1 %v1749_v41  ;;  %665 = vmatpush.msra.mxu2 %v946_v23  ;;  %v762_v23 = vld [vmem:[%s1678_s0 + $0x138] sm:$0xff] }
  0x94   :  { %596 = vmatpush.msrb.mxu3 %v1145_v56  ;;  %615 = vmatpush.msra.mxu0 %v1757_v32  ;;  %v777_v41 = vld [vmem:[%s1678_s0 + $0x198] sm:$0xff] }
  0x95   :  { %640 = vmatpush.msra.mxu1 %v965_v26  ;;  %666 = vmatpush.msra.mxu2 %v970_v27  ;;  %v1759_v26 = vld [vmem:[#allocation17_spill] sm:$0xff]  ;;  %v776_v27 = vld [vmem:[%s1678_s0 + $0x190] sm:$0xff] }
  0x96   :  { %597 = vmatpush.msrb.mxu3 %v1169_v60  ;;  %498 = vmatmul.f32.gmra.mxu0 %v765_v15 }
  0x97   :  { %598 = vmatmul.f32.vlgmr.msrb.gmra.mxu3 %v771_v19  ;;  %616 = vmatpush.msra.mxu0 %v1758_v36 }
  0x98   :  { %641 = vmatpush.msra.mxu1 %v989_v30  ;;  %667 = vmatpush.msra.mxu2 %v994_v31  ;;  %v1760_v30 = vld [vmem:[#allocation18_spill] sm:$0xff] }
  0x99   :  { %694 = vmatpush.msra.mxu3 %v1193_v55  ;;  %769 = vmatmul.msk.f32.gmra.mxu2 %vm101_vm0, %v762_v23  ;;  %v767_v31 = vld [vmem:[%s1678_s0 + $0x160] sm:$0x3] }
  0x9a   :  { %524 = vmatmul.f32.gmra.mxu1 %v766_v40  ;;  %617 = vmatpush.msra.mxu0 %v1030_v37  ;;  %v773_v37 = vld [vmem:[%s1678_s0 + $0x178] sm:$0xff] }
  0x9b   :  { %642 = vmatpush.msra.mxu1 %v1013_v34  ;;  %668 = vmatpush.msra.mxu2 %v1018_v35  ;;  %v1761_v35 = vld [vmem:[#allocation23_spill] sm:$0xff] }
  0x9c   :  { %695 = vmatpush.msra.mxu3 %v1202_v51  ;;  %618 = vmatpush.msra.mxu0 %v1759_v26 }
  0x9d   :  { %643 = vmatpush.msra.mxu1 %v1750_v33  ;;  %669 = vmatpush.msra.mxu2 %v1042_v39 }
  0x9e   :  { %619 = vmatpush.msra.mxu0 %v1760_v30  ;;  %696 = vmatpush.msra.mxu3 %v1216_v63 }
  0x9f   :  { %644 = vmatpush.msra.mxu1 %v1061_v42  ;;  %670 = vmatpush.msra.mxu2 %v1066_v43  ;;  %v775_v43 = vld [vmem:[%s1678_s0 + $0x188] sm:$0xff] }
  0xa0   :  { %601 = vmatmul.f32.gmra.mxu3 %v776_v27  ;;  %620 = vmatpush.msra.mxu0 %v1102_v49 }
  0xa1   :  { %645 = vmatpush.msra.mxu1 %v1085_v46  ;;  %671 = vmatpush.msra.mxu2 %v1739_v5  ;;  %v772_v5 = vld [vmem:[%s1678_s0 + $0x170] sm:$0xff] }
  0xa2   :  { %770 = vmatmul.msk.f32.gmra.mxu2 %vm101_vm0, %v767_v31  ;;  %697 = vmatpush.msra.mxu3 %v1224_v2  ;;  %v781_v2 = vld [vmem:[%s1678_s0 + $0x1b8] sm:$0x3] }
  0xa3   :  { %621 = vmatpush.msra.mxu0 %v1126_v53  ;;  %646 = vmatpush.msra.mxu1 %v1109_v50  ;;  %v128_v34 = vpop.f32.mrf.mxu0  ;;  %v780_v50 = vld [vmem:[%s1678_s0 + $0x1b0] sm:$0xff]  ;;  %v783_v53 = vld [vmem:[%s1678_s0 + $0x1c8] sm:$0x3] }
  0xa4   :  { %672 = vmatpush.msra.mxu2 %v1740_v10  ;;  %698 = vmatpush.msra.mxu3 %v1236_v59 }
  0xa5   :  { %622 = vmatpush.msra.mxu0 %v1150_v57  ;;  %647 = vmatpush.msra.mxu1 %v1133_v54  ;;  %v784_v54 = vld [vmem:[%s1678_s0 + $0x1d0] sm:$0x3] }
  0xa6   :  { %673 = vmatpush.msra.mxu2 %v1741_v1  ;;  %699 = vmatpush.msra.mxu3 %v1244_v6  ;;  %v774_v1 = vld [vmem:[%s1678_s0 + $0x180] sm:$0xff] }
  0xa7   :  { %623 = vmatpush.msra.mxu0 %v1761_v35  ;;  %648 = vmatpush.msra.mxu1 %v1157_v58  ;;  %v785_v58 = vld [vmem:[%s1678_s0 + $0x1d8] sm:$0x3] }
  0xa8   :  { %674 = vmatpush.msra.mxu2 %v1742_v38  ;;  %624 = vmatmul.f32.vlgmr.msra.gmra.mxu0 %v772_v5  ;;  %v154_v6 = vpop.f32.mrf.mxu1 }
  0xa9   :  { %604 = vmatmul.f32.gmra.mxu3 %v781_v2  ;;  %649 = vmatpush.msra.mxu1 %v1181_v62  ;;  %v155_v39 = vadd.f32 %v154_v6, %v128_v34 }
  0xaa   :  { %675 = vmatpush.msra.mxu2 %v1743_v17  ;;  %650 = vmatmul.f32.vlgmr.msra.gmra.mxu1 %v773_v37  ;;  %v779_v17 = vld [vmem:[%s1678_s0 + $0x1a8] sm:$0xff] }
  0xab   :  { %676 = vmatmul.f32.vlgmr.msra.gmra.mxu2 %v774_v1  ;;  %700 = vmatpush.msra.mxu3 %v1258_v47 }
  0xad   :  { %701 = vmatpush.msra.mxu3 %v1269_v14  ;;  %v131_v42 = vpop.f32.mrf.mxu0 }
  0xb0   :  { %627 = vmatmul.f32.gmra.mxu0 %v777_v41 }
  0xb1   :  { %786 = vmatmul.msk.f32.vlgmr.msra.gmra.mxu3 %vm101_vm0, %v775_v43 }
  0xb2   :  { %653 = vmatmul.f32.gmra.mxu1 %v778_v44  ;;  %v157_v14 = vpop.f32.mrf.mxu1 }
  0xb3   :  { %679 = vmatmul.f32.gmra.mxu2 %v779_v17  ;;  %v158_v46 = vadd.f32 %v157_v14, %v131_v42 }
  0xb5   :  { %v180_v49 = vpop.f32.mrf.mxu2 }
  0xb6   :  { %v134_v51 = vpop.f32.mrf.mxu0  ;;  %v181_v52 = vadd.f32 %v180_v49, %v155_v39 }
  0xb8   :  { %630 = vmatmul.f32.gmra.mxu0 %v782_v48 }
  0xb9   :  { %787 = vmatmul.msk.f32.gmra.mxu3 %vm101_vm0, %v780_v50 }
  0xba   :  { %656 = vmatmul.f32.gmra.mxu1 %v783_v53 }
  0xbb   :  { %682 = vmatmul.f32.gmra.mxu2 %v784_v54 }
  0xbc   :  { %v160_v55 = vpop.f32.mrf.mxu1 }
  0xbd   :  { %v161_v56 = vadd.f32 %v160_v55, %v134_v51  ;;  %v206_v57 = vpop.f32.mrf.mxu3 }
  0xbe   :  { %v207_v60 = vadd.f32 %v206_v57, %v181_v52 }
  0xc0   :  { %v232_v62 = vpop.f32.mrf.mxu0  ;;  %v183_v63 = vpop.f32.mrf.mxu2 }
  0xc1   :  { %788 = vmatmul.msk.f32.gmra.mxu3 %vm101_vm0, %v785_v58  ;;  %v1650_v59 = vadd.f32 %v232_v62, %v207_v60  ;;  %v184_v47 = vadd.f32 %v183_v63, %v158_v46 }
  0xc6   :  { %v283_v10 = vpop.f32.mrf.mxu1 }
  0xc7   :  { %v209_v38 = vpop.f32.mrf.mxu3 }
  0xc8   :  { %v210_v18 = vadd.f32 %v209_v38, %v184_v47 }
  0xca   :  { %v235_v9 = vpop.f32.mrf.mxu0  ;;  %v186_v22 = vpop.f32.mrf.mxu2 }
  0xcb   :  { %v1652_v33 = vadd.f32 %v235_v9, %v210_v18  ;;  %v187_v0 = vadd.f32 %v186_v22, %v161_v56 }
  0xcf   :  { %v286_v4 = vpop.f32.mrf.mxu1 }
  0xd0   :  { %v212_v21 = vpop.f32.mrf.mxu3 }
  0xd1   :  { %v213_v8 = vadd.f32 %v212_v21, %v187_v0 }
  0xd4   :  { %v238_v12 = vpop.f32.mrf.mxu0 }
  0xd5   :  { %v1654_v16 = vadd.f32 %v238_v12, %v213_v8  ;;  %v309_v20 = vpop.f32.mrf.mxu2 }
  0xd6   :  { %v310_v24 = vadd.f32 %v309_v20, %v283_v10 }
  0xda   :  { %v335_v61 = vpop.f32.mrf.mxu3  ;;  %v289_v28 = vpop.f32.mrf.mxu1 }
  0xdb   :  { %v336_v45 = vadd.f32 %v335_v61, %v310_v24  ;;  %v789_v24 = vld [vmem:[%s1679_s2] ss:$0 sm:$0xff] }
  0xdf   :  { %v312_v3 = vpop.f32.mrf.mxu2  ;;  %v361_v7 = vpop.f32.mrf.mxu0 }
  0xe0   :  { %v313_v25 = vadd.f32 %v312_v3, %v286_v4  ;;  %v362_v13 = vadd.f32 %v361_v7, %v336_v45 }
  0xe4   :  { %v338_v29 = vpop.f32.mrf.mxu3 }
  0xe5   :  { %v387_v11 = vpop.f32.mrf.mxu1  ;;  %v339_v32 = vadd.f32 %v338_v29, %v313_v25 }
  0xe6   :  { %v388_v15 = vadd.f32 %v387_v11, %v362_v13 }
  0xe8   :  { %v396_v19 = vmax.f32 %v1650_v59, %v388_v15 }
  0xe9   :  { %v315_v23 = vpop.f32.mrf.mxu2  ;;  %v364_v40 = vpop.f32.mrf.mxu0 }
  0xea   :  { %v316_v36 = vadd.f32 %v315_v23, %v289_v28  ;;  %v365_v26 = vadd.f32 %v364_v40, %v339_v32 }
  0xef   :  { %v390_v27 = vpop.f32.mrf.mxu1  ;;  %v341_v30 = vpop.f32.mrf.mxu3 }
  0xf0   :  { %v391_v31 = vadd.f32 %v390_v27, %v365_v26  ;;  %v342_v34 = vadd.f32 %v341_v30, %v316_v36 }
  0xf2   :  { %v397_v5 = vmax.f32 %v1652_v33, %v391_v31 }
  0xf3   :  { %v441_v2 = vpop.f32.mrf.mxu2  ;;  %v367_v35 = vpop.f32.mrf.mxu0 }
  0xf4   :  { %v368_v37 = vadd.f32 %v367_v35, %v342_v34 }
  0xf9   :  { %v393_v1 = vpop.f32.mrf.mxu1 }
  0xfa   :  { %v1658_v6 = vadd.f32 %v393_v1, %v368_v37  ;;  %v467_v41 = vpop.f32.mrf.mxu3 }
  0xfb   :  { %v468_v58 = vadd.f32 %v467_v41, %v441_v2 }
  0xfc   :  { %v398_v39 = vmax.f32 %v1654_v16, %v1658_v6  ;;  %v444_v42 = vpop.f32.mrf.mxu2 }
 0x100   :  { %v493_v17 = vpop.f32.mrf.mxu0 }
 0x101   :  { %v494_v62 = vadd.f32 %v493_v17, %v468_v58 }
 0x103   :  { %v519_v14 = vpop.f32.mrf.mxu1 }
 0x104   :  { %v470_v43 = vpop.f32.mrf.mxu3  ;;  %v520_v10 = vadd.f32 %v519_v14, %v494_v62 }
 0x105   :  { %v471_v18 = vadd.f32 %v470_v43, %v444_v42 }
 0x106   :  { %v447_v44 = vpop.f32.mrf.mxu2 }
 0x10a   :  { %v496_v49 = vpop.f32.mrf.mxu0 }
 0x10b   :  { %v497_v33 = vadd.f32 %v496_v49, %v471_v18 }
 0x10d   :  { %v522_v50 = vpop.f32.mrf.mxu1 }
 0x10e   :  { %v473_v46 = vpop.f32.mrf.mxu3  ;;  %v523_v28 = vadd.f32 %v522_v50, %v497_v33 }
 0x10f   :  { %v474_v3 = vadd.f32 %v473_v46, %v447_v44 }
 0x112   :  { %v545_v48 = vpop.f32.mrf.mxu2 }
 0x113   :  { %v499_v53 = vpop.f32.mrf.mxu0  ;;  %v546_v9 = vadd.f32 %v545_v48, %v520_v10 }
 0x114   :  { %v500_v29 = vadd.f32 %v499_v53, %v474_v3 }
 0x115   :  { %v554_v8 = vmax.f32 %v396_v19, %v546_v9 }
 0x117   :  { %v525_v54 = vpop.f32.mrf.mxu1 }
 0x118   :  { %v526_v27 = vadd.f32 %v525_v54, %v500_v29 }
 0x11a   :  { %v599_v51 = vpop.f32.mrf.mxu3 }
 0x11c   :  { %v548_v52 = vpop.f32.mrf.mxu2 }
 0x11d   :  { %v549_v25 = vadd.f32 %v548_v52, %v523_v28 }
 0x11f   :  { %v555_v36 = vmax.f32 %v397_v5, %v549_v25 }
 0x123   :  { %v602_v55 = vpop.f32.mrf.mxu3 }
 0x125   :  { %v551_v56 = vpop.f32.mrf.mxu2  ;;  %v625_v57 = vpop.f32.mrf.mxu0 }
 0x126   :  { %v626_v59 = vadd.f32 %v625_v57, %v599_v51  ;;  %v552_v34 = vadd.f32 %v551_v56, %v526_v27 }
 0x127   :  { %v651_v60 = vpop.f32.mrf.mxu1 }
 0x128   :  { %v652_v22 = vadd.f32 %v651_v60, %v626_v59  ;;  %v556_v5 = vmax.f32 %v398_v39, %v552_v34 }
 0x12c   :  { %v605_v63 = vpop.f32.mrf.mxu3 }
 0x12d   :  { %v628_v38 = vpop.f32.mrf.mxu0 }
 0x12e   :  { %v677_v47 = vpop.f32.mrf.mxu2  ;;  %v629_v12 = vadd.f32 %v628_v38, %v602_v55 }
 0x12f   :  { %v678_v0 = vadd.f32 %v677_v47, %v652_v22  ;;  %v654_v21 = vpop.f32.mrf.mxu1 }
 0x130   :  { %v655_v7 = vadd.f32 %v654_v21, %v629_v12 }
 0x134   :  { %v703_v4 = vpop.f32.mrf.mxu3 }
 0x135   :  { %v704_v20 = vadd.f32 %v703_v4, %v678_v0  ;;  %v631_v11 = vpop.f32.mrf.mxu0 }
 0x136   :  { %v680_v61 = vpop.f32.mrf.mxu2  ;;  %v632_v19 = vadd.f32 %v631_v11, %v605_v63 }
 0x137   :  { %v712_v45 = vmax.f32 %v554_v8, %v704_v20  ;;  %v681_v32 = vadd.f32 %v680_v61, %v655_v7  ;;  %v657_v26 = vpop.f32.mrf.mxu1 }
 0x138   :  { %v658_v2 = vadd.f32 %v657_v26, %v632_v19 }
 0x139   :  { %v719_v13 = vadd.f32 %v789_v24, %v712_v45 }
 0x13b   :  { %v722_v15 = vmax.f32 %v719_v13, 0.0 }
 0x13c   :  { %v706_v23 = vpop.f32.mrf.mxu3 }
 0x13d   :  { %725 = vst [vmem:[%s1680_s3] sm:$0xff] %v722_v15  ;;  %v707_v40 = vadd.f32 %v706_v23, %v681_v32 }
 0x13e   :  { %v683_v31 = vpop.f32.mrf.mxu2 }
 0x13f   :  { %v713_v30 = vmax.f32 %v555_v36, %v707_v40  ;;  %v684_v1 = vadd.f32 %v683_v31, %v658_v2 }
 0x141   :  { %v720_v35 = vadd.f32 %v789_v24, %v713_v30 }
 0x143   :  { %v723_v37 = vmax.f32 %v720_v35, 0.0 }
 0x144   :  { %v709_v41 = vpop.f32.mrf.mxu3 }
 0x145   :  { %726 = vst [vmem:[%s1680_s3 + $0x8] sm:$0xff] %v723_v37  ;;  %v710_v42 = vadd.f32 %v709_v41, %v684_v1 }
 0x147   :  { %v714_v43 = vmax.f32 %v556_v5, %v710_v42 }
 0x149   :  { %v721_v44 = vadd.f32 %v789_v24, %v714_v43 }
 0x14b   :  { %v724_v17 = vmax.f32 %v721_v44, 0.0 }
 0x14d   :  { %727 = vst [vmem:[%s1680_s3 + $0x10] sm:$0x3] %v724_v17 }

// kernel: cnn_emnist_forward.7
= control target key start
LH: loop header
LB: loop body
LE: loop exit
PB: predicated region body
PF: predicated region fallthrough
CT: control target
= control target key end

     0   :  { %s4186_s0 = inlined_call_operand.vmem [shape: f32[2,1152], index: 0, kind: input, shape index: {}]   ;;  %s4187_s1 = inlined_call_operand.vmem [shape: f32[1152,512], index: 1, kind: input, shape index: {}]   ;;  %s4188_s2 = inlined_call_operand.vmem [shape: f32[1,512], index: 2, kind: input, shape index: {}]   ;;  %s4189_s3 = inlined_call_operand.vmem [shape: f32[512,256], index: 3, kind: input, shape index: {}]   ;;  %s4190_s4 = inlined_call_operand.vmem [shape: f32[1,256], index: 4, kind: input, shape index: {}]   ;;  %s4191_s5 = inlined_call_operand.vmem [shape: f32[256,62], index: 5, kind: input, shape index: {}]   ;;  %s4192_s6 = inlined_call_operand.vmem [shape: f32[1,62], index: 6, kind: input, shape index: {}]   ;;  %s4193_s7 = inlined_call_operand.hbm [shape: f32[2,62], index: 7, kind: output, shape index: {}]  }
   0x1   :  { %v90_v0 = vld [vmem:[%s4187_s1 + $0x1e0] sm:$0xff] }
   0x2   :  { %v154_v1 = vld [vmem:[%s4187_s1 + $0x3e0] sm:$0xff]  ;;  %641 = vmatpush.msra.mxu0 %v90_v0 }
   0x3   :  { %v218_v2 = vld [vmem:[%s4187_s1 + $0x5e0] sm:$0xff]  ;;  %661 = vmatpush.msra.mxu1 %v154_v1 }
   0x4   :  { %v86_v3 = vld [vmem:[%s4187_s1 + $0x1c0] sm:$0xff]  ;;  %681 = vmatpush.msra.mxu2 %v218_v2 }
   0x5   :  { %v150_v4 = vld [vmem:[%s4187_s1 + $0x3c0] sm:$0xff]  ;;  %642 = vmatpush.msra.mxu0 %v86_v3 }
   0x6   :  { %v214_v5 = vld [vmem:[%s4187_s1 + $0x5c0] sm:$0xff]  ;;  %662 = vmatpush.msra.mxu1 %v150_v4 }
   0x7   :  { %v282_v6 = vld [vmem:[%s4187_s1 + $0x7e0] sm:$0xff]  ;;  %682 = vmatpush.msra.mxu2 %v214_v5 }
   0x8   :  { %v82_v7 = vld [vmem:[%s4187_s1 + $0x1a0] sm:$0xff]  ;;  %701 = vmatpush.msra.mxu3 %v282_v6 }
   0x9   :  { %v146_v8 = vld [vmem:[%s4187_s1 + $0x3a0] sm:$0xff]  ;;  %643 = vmatpush.msra.mxu0 %v82_v7 }
   0xa   :  { %v210_v9 = vld [vmem:[%s4187_s1 + $0x5a0] sm:$0xff]  ;;  %663 = vmatpush.msra.mxu1 %v146_v8 }
   0xb   :  { %v278_v10 = vld [vmem:[%s4187_s1 + $0x7c0] sm:$0xff]  ;;  %683 = vmatpush.msra.mxu2 %v210_v9 }
   0xc   :  { %v78_v11 = vld [vmem:[%s4187_s1 + $0x180] sm:$0xff]  ;;  %702 = vmatpush.msra.mxu3 %v278_v10 }
   0xd   :  { %v142_v12 = vld [vmem:[%s4187_s1 + $0x380] sm:$0xff]  ;;  %644 = vmatpush.msra.mxu0 %v78_v11 }
   0xe   :  { %v206_v13 = vld [vmem:[%s4187_s1 + $0x580] sm:$0xff]  ;;  %664 = vmatpush.msra.mxu1 %v142_v12 }
   0xf   :  { %v274_v14 = vld [vmem:[%s4187_s1 + $0x7a0] sm:$0xff]  ;;  %684 = vmatpush.msra.mxu2 %v206_v13 }
  0x10   :  { %v74_v15 = vld [vmem:[%s4187_s1 + $0x160] sm:$0xff]  ;;  %703 = vmatpush.msra.mxu3 %v274_v14 }
  0x11   :  { %v138_v16 = vld [vmem:[%s4187_s1 + $0x360] sm:$0xff]  ;;  %645 = vmatpush.msra.mxu0 %v74_v15 }
  0x12   :  { %v202_v17 = vld [vmem:[%s4187_s1 + $0x560] sm:$0xff]  ;;  %665 = vmatpush.msra.mxu1 %v138_v16 }
  0x13   :  { %v270_v18 = vld [vmem:[%s4187_s1 + $0x780] sm:$0xff]  ;;  %685 = vmatpush.msra.mxu2 %v202_v17 }
  0x14   :  { %v70_v19 = vld [vmem:[%s4187_s1 + $0x140] sm:$0xff]  ;;  %704 = vmatpush.msra.mxu3 %v270_v18 }
  0x15   :  { %v134_v20 = vld [vmem:[%s4187_s1 + $0x340] sm:$0xff]  ;;  %646 = vmatpush.msra.mxu0 %v70_v19 }
  0x16   :  { %v198_v21 = vld [vmem:[%s4187_s1 + $0x540] sm:$0xff]  ;;  %666 = vmatpush.msra.mxu1 %v134_v20 }
  0x17   :  { %v266_v22 = vld [vmem:[%s4187_s1 + $0x760] sm:$0xff]  ;;  %686 = vmatpush.msra.mxu2 %v198_v21 }
  0x18   :  { %v66_v23 = vld [vmem:[%s4187_s1 + $0x120] sm:$0xff]  ;;  %705 = vmatpush.msra.mxu3 %v266_v22 }
  0x19   :  { %v130_v24 = vld [vmem:[%s4187_s1 + $0x320] sm:$0xff]  ;;  %647 = vmatpush.msra.mxu0 %v66_v23 }
  0x1a   :  { %v194_v25 = vld [vmem:[%s4187_s1 + $0x520] sm:$0xff]  ;;  %667 = vmatpush.msra.mxu1 %v130_v24 }
  0x1b   :  { %v262_v26 = vld [vmem:[%s4187_s1 + $0x740] sm:$0xff]  ;;  %687 = vmatpush.msra.mxu2 %v194_v25 }
  0x1c   :  { %v62_v27 = vld [vmem:[%s4187_s1 + $0x100] sm:$0xff]  ;;  %706 = vmatpush.msra.mxu3 %v262_v26 }
  0x1d   :  { %v126_v28 = vld [vmem:[%s4187_s1 + $0x300] sm:$0xff]  ;;  %648 = vmatpush.msra.mxu0 %v62_v27 }
  0x1e   :  { %v190_v29 = vld [vmem:[%s4187_s1 + $0x500] sm:$0xff]  ;;  %668 = vmatpush.msra.mxu1 %v126_v28 }
  0x1f   :  { %v258_v30 = vld [vmem:[%s4187_s1 + $0x720] sm:$0xff]  ;;  %688 = vmatpush.msra.mxu2 %v190_v29 }
  0x20   :  { %v58_v31 = vld [vmem:[%s4187_s1 + $0xe0] sm:$0xff]  ;;  %707 = vmatpush.msra.mxu3 %v258_v30 }
  0x21   :  { %v122_v32 = vld [vmem:[%s4187_s1 + $0x2e0] sm:$0xff]  ;;  %649 = vmatpush.msra.mxu0 %v58_v31 }
  0x22   :  { %v186_v33 = vld [vmem:[%s4187_s1 + $0x4e0] sm:$0xff]  ;;  %669 = vmatpush.msra.mxu1 %v122_v32 }
  0x23   :  { %v254_v34 = vld [vmem:[%s4187_s1 + $0x700] sm:$0xff]  ;;  %689 = vmatpush.msra.mxu2 %v186_v33 }
  0x24   :  { %v54_v35 = vld [vmem:[%s4187_s1 + $0xc0] sm:$0xff]  ;;  %708 = vmatpush.msra.mxu3 %v254_v34 }
  0x25   :  { %v118_v36 = vld [vmem:[%s4187_s1 + $0x2c0] sm:$0xff]  ;;  %650 = vmatpush.msra.mxu0 %v54_v35 }
  0x26   :  { %v182_v37 = vld [vmem:[%s4187_s1 + $0x4c0] sm:$0xff]  ;;  %670 = vmatpush.msra.mxu1 %v118_v36 }
  0x27   :  { %v250_v38 = vld [vmem:[%s4187_s1 + $0x6e0] sm:$0xff]  ;;  %690 = vmatpush.msra.mxu2 %v182_v37 }
  0x28   :  { %v50_v39 = vld [vmem:[%s4187_s1 + $0xa0] sm:$0xff]  ;;  %709 = vmatpush.msra.mxu3 %v250_v38 }
  0x29   :  { %v114_v40 = vld [vmem:[%s4187_s1 + $0x2a0] sm:$0xff]  ;;  %651 = vmatpush.msra.mxu0 %v50_v39 }
  0x2a   :  { %v178_v41 = vld [vmem:[%s4187_s1 + $0x4a0] sm:$0xff]  ;;  %671 = vmatpush.msra.mxu1 %v114_v40 }
  0x2b   :  { %v246_v42 = vld [vmem:[%s4187_s1 + $0x6c0] sm:$0xff]  ;;  %691 = vmatpush.msra.mxu2 %v178_v41 }
  0x2c   :  { %v46_v43 = vld [vmem:[%s4187_s1 + $0x80] sm:$0xff]  ;;  %710 = vmatpush.msra.mxu3 %v246_v42  ;;  %v28_v42 = vld [vmem:[%s4186_s0 + $0x8] sm:$0xff] }
  0x2d   :  { %v110_v44 = vld [vmem:[%s4187_s1 + $0x280] sm:$0xff]  ;;  %652 = vmatpush.msra.mxu0 %v46_v43  ;;  %621 = vst [vmem:[#allocation1 + $0x20] ss:$4 sm:$0xff] %v28_v42 }
  0x2e   :  { %v174_v45 = vld [vmem:[%s4187_s1 + $0x480] sm:$0xff]  ;;  %672 = vmatpush.msra.mxu1 %v110_v44 }
  0x2f   :  { %v242_v46 = vld [vmem:[%s4187_s1 + $0x6a0] sm:$0xff]  ;;  %692 = vmatpush.msra.mxu2 %v174_v45  ;;  %v29_v45 = vld [vmem:[%s4186_s0 + $0x10] sm:$0x3] }
  0x30   :  { %v42_v47 = vld [vmem:[%s4187_s1 + $0x60] sm:$0xff]  ;;  %711 = vmatpush.msra.mxu3 %v242_v46 }
  0x31   :  { %v106_v48 = vld [vmem:[%s4187_s1 + $0x260] sm:$0xff]  ;;  %653 = vmatpush.msra.mxu0 %v42_v47 }
  0x32   :  { %v170_v49 = vld [vmem:[%s4187_s1 + $0x460] sm:$0xff]  ;;  %673 = vmatpush.msra.mxu1 %v106_v48 }
  0x33   :  { %v238_v50 = vld [vmem:[%s4187_s1 + $0x680] sm:$0xff]  ;;  %693 = vmatpush.msra.mxu2 %v170_v49 }
  0x34   :  { %v38_v51 = vld [vmem:[%s4187_s1 + $0x40] sm:$0xff]  ;;  %712 = vmatpush.msra.mxu3 %v238_v50 }
  0x35   :  { %v102_v52 = vld [vmem:[%s4187_s1 + $0x240] sm:$0xff]  ;;  %654 = vmatpush.msra.mxu0 %v38_v51 }
  0x36   :  { %v166_v53 = vld [vmem:[%s4187_s1 + $0x440] sm:$0xff]  ;;  %674 = vmatpush.msra.mxu1 %v102_v52 }
  0x37   :  { %v234_v54 = vld [vmem:[%s4187_s1 + $0x660] sm:$0xff]  ;;  %694 = vmatpush.msra.mxu2 %v166_v53 }
  0x38   :  { %v34_v55 = vld [vmem:[%s4187_s1 + $0x20] sm:$0xff]  ;;  %713 = vmatpush.msra.mxu3 %v234_v54 }
  0x39   :  { %v98_v56 = vld [vmem:[%s4187_s1 + $0x220] sm:$0xff]  ;;  %655 = vmatpush.msra.mxu0 %v34_v55 }
  0x3a   :  { %v162_v57 = vld [vmem:[%s4187_s1 + $0x420] sm:$0xff]  ;;  %675 = vmatpush.msra.mxu1 %v98_v56 }
  0x3b   :  { %v230_v58 = vld [vmem:[%s4187_s1 + $0x640] sm:$0xff]  ;;  %695 = vmatpush.msra.mxu2 %v162_v57 }
  0x3c   :  { %v30_v59 = vld [vmem:[%s4187_s1] sm:$0xff]  ;;  %714 = vmatpush.msra.mxu3 %v230_v58 }
  0x3d   :  { %v94_v60 = vld [vmem:[%s4187_s1 + $0x200] sm:$0xff]  ;;  %656 = vmatpush.msra.mxu0 %v30_v59 }
  0x3e   :  { %v158_v61 = vld [vmem:[%s4187_s1 + $0x400] sm:$0xff]  ;;  %676 = vmatpush.msra.mxu1 %v94_v60 }
  0x3f   :  { %v226_v62 = vld [vmem:[%s4187_s1 + $0x620] sm:$0xff]  ;;  %696 = vmatpush.msra.mxu2 %v158_v61 }
  0x40   :  { %v346_v63 = vld [vmem:[%s4187_s1 + $0x9e0] sm:$0xff]  ;;  %715 = vmatpush.msra.mxu3 %v226_v62 }
  0x41   :  { %v410_v0 = vld [vmem:[%s4187_s1 + $0xbe0] sm:$0xff]  ;;  %721 = vmatpush.msrb.mxu0 %v346_v63 }
  0x42   :  { %v474_v1 = vld [vmem:[%s4187_s1 + $0xde0] sm:$0xff]  ;;  %741 = vmatpush.msrb.mxu1 %v410_v0 }
  0x43   :  { %v222_v2 = vld [vmem:[%s4187_s1 + $0x600] sm:$0xff]  ;;  %761 = vmatpush.msrb.mxu2 %v474_v1 }
  0x44   :  { %v342_v3 = vld [vmem:[%s4187_s1 + $0x9c0] sm:$0xff]  ;;  %716 = vmatpush.msra.mxu3 %v222_v2 }
  0x45   :  { %v406_v4 = vld [vmem:[%s4187_s1 + $0xbc0] sm:$0xff]  ;;  %722 = vmatpush.msrb.mxu0 %v342_v3 }
  0x46   :  { %v470_v5 = vld [vmem:[%s4187_s1 + $0xdc0] sm:$0xff]  ;;  %742 = vmatpush.msrb.mxu1 %v406_v4 }
  0x47   :  { %v538_v6 = vld [vmem:[%s4187_s1 + $0xfe0] sm:$0xff]  ;;  %762 = vmatpush.msrb.mxu2 %v470_v5 }
  0x48   :  { %v338_v7 = vld [vmem:[%s4187_s1 + $0x9a0] sm:$0xff]  ;;  %781 = vmatpush.msrb.mxu3 %v538_v6 }
  0x49   :  { %v402_v8 = vld [vmem:[%s4187_s1 + $0xba0] sm:$0xff]  ;;  %723 = vmatpush.msrb.mxu0 %v338_v7  ;;  %v91_v7 = vld [vmem:[%s4187_s1 + $0x1e8] sm:$0xff] }
  0x4a   :  { %v466_v9 = vld [vmem:[%s4187_s1 + $0xda0] sm:$0xff]  ;;  %743 = vmatpush.msrb.mxu1 %v402_v8  ;;  %v155_v8 = vld [vmem:[%s4187_s1 + $0x3e8] sm:$0xff] }
  0x4b   :  { %v534_v10 = vld [vmem:[%s4187_s1 + $0xfc0] sm:$0xff]  ;;  %763 = vmatpush.msrb.mxu2 %v466_v9 }
  0x4c   :  { %v334_v11 = vld [vmem:[%s4187_s1 + $0x980] sm:$0xff]  ;;  %782 = vmatpush.msrb.mxu3 %v534_v10 }
  0x4d   :  { %v398_v12 = vld [vmem:[%s4187_s1 + $0xb80] sm:$0xff]  ;;  %724 = vmatpush.msrb.mxu0 %v334_v11  ;;  %v87_v11 = vld [vmem:[%s4187_s1 + $0x1c8] sm:$0xff] }
  0x4e   :  { %v462_v13 = vld [vmem:[%s4187_s1 + $0xd80] sm:$0xff]  ;;  %744 = vmatpush.msrb.mxu1 %v398_v12  ;;  %v151_v12 = vld [vmem:[%s4187_s1 + $0x3c8] sm:$0xff] }
  0x4f   :  { %v530_v14 = vld [vmem:[%s4187_s1 + $0xfa0] sm:$0xff]  ;;  %764 = vmatpush.msrb.mxu2 %v462_v13  ;;  %v219_v13 = vld [vmem:[%s4187_s1 + $0x5e8] sm:$0xff] }
  0x50   :  { %v330_v15 = vld [vmem:[%s4187_s1 + $0x960] sm:$0xff]  ;;  %783 = vmatpush.msrb.mxu3 %v530_v14 }
  0x51   :  { %v394_v16 = vld [vmem:[%s4187_s1 + $0xb60] sm:$0xff]  ;;  %725 = vmatpush.msrb.mxu0 %v330_v15  ;;  %v83_v15 = vld [vmem:[%s4187_s1 + $0x1a8] sm:$0xff] }
  0x52   :  { %v458_v17 = vld [vmem:[%s4187_s1 + $0xd60] sm:$0xff]  ;;  %745 = vmatpush.msrb.mxu1 %v394_v16  ;;  %v147_v16 = vld [vmem:[%s4187_s1 + $0x3a8] sm:$0xff] }
  0x53   :  { %v526_v18 = vld [vmem:[%s4187_s1 + $0xf80] sm:$0xff]  ;;  %765 = vmatpush.msrb.mxu2 %v458_v17  ;;  %v215_v17 = vld [vmem:[%s4187_s1 + $0x5c8] sm:$0xff] }
  0x54   :  { %v326_v19 = vld [vmem:[%s4187_s1 + $0x940] sm:$0xff]  ;;  %784 = vmatpush.msrb.mxu3 %v526_v18 }
  0x55   :  { %v390_v20 = vld [vmem:[%s4187_s1 + $0xb40] sm:$0xff]  ;;  %726 = vmatpush.msrb.mxu0 %v326_v19  ;;  %v79_v19 = vld [vmem:[%s4187_s1 + $0x188] sm:$0xff] }
  0x56   :  { %v454_v21 = vld [vmem:[%s4187_s1 + $0xd40] sm:$0xff]  ;;  %746 = vmatpush.msrb.mxu1 %v390_v20 }
  0x57   :  { %v522_v22 = vld [vmem:[%s4187_s1 + $0xf60] sm:$0xff]  ;;  %766 = vmatpush.msrb.mxu2 %v454_v21 }
  0x58   :  { %v322_v23 = vld [vmem:[%s4187_s1 + $0x920] sm:$0xff]  ;;  %785 = vmatpush.msrb.mxu3 %v522_v22 }
  0x59   :  { %v386_v24 = vld [vmem:[%s4187_s1 + $0xb20] sm:$0xff]  ;;  %727 = vmatpush.msrb.mxu0 %v322_v23 }
  0x5a   :  { %v27_v25 = vld [vmem:[%s4186_s0] sm:$0xff]  ;;  %747 = vmatpush.msrb.mxu1 %v386_v24 }
  0x5b   :  { %v450_v26 = vld [vmem:[%s4187_s1 + $0xd20] sm:$0xff]  ;;  %619 = vst [vmem:[#allocation1] ss:$4 sm:$0xff] %v27_v25 }
  0x5c   :  { %v518_v27 = vld [vmem:[%s4187_s1 + $0xf40] sm:$0xff]  ;;  %767 = vmatpush.msrb.mxu2 %v450_v26 }
  0x5d   :  { %v318_v28 = vld [vmem:[%s4187_s1 + $0x900] sm:$0xff]  ;;  %786 = vmatpush.msrb.mxu3 %v518_v27 }
  0x5e   :  { %v382_v29 = vld [vmem:[%s4187_s1 + $0xb00] sm:$0xff]  ;;  %728 = vmatpush.msrb.mxu0 %v318_v28 }
  0x5f   :  { %v446_v30 = vld [vmem:[%s4187_s1 + $0xd00] sm:$0xff]  ;;  %748 = vmatpush.msrb.mxu1 %v382_v29 }
  0x60   :  { %v514_v31 = vld [vmem:[%s4187_s1 + $0xf20] sm:$0xff]  ;;  %768 = vmatpush.msrb.mxu2 %v446_v30 }
  0x61   :  { %v314_v32 = vld [vmem:[%s4187_s1 + $0x8e0] sm:$0xff]  ;;  %787 = vmatpush.msrb.mxu3 %v514_v31 }
  0x62   :  { %v378_v33 = vld [vmem:[%s4187_s1 + $0xae0] sm:$0xff]  ;;  %729 = vmatpush.msrb.mxu0 %v314_v32  ;;  %v2175_v47 = vld.sshfl [vmem:[#allocation1 + $0x8] sm:$0xff pattern:$0x73625140] }
  0x63   :  { %v442_v34 = vld [vmem:[%s4187_s1 + $0xce0] sm:$0xff]  ;;  %749 = vmatpush.msrb.mxu1 %v378_v33  ;;  %v2177_v48 = vld.sshfl [vmem:[#allocation1 + $0x10] sm:$0xff pattern:$0x73625140] }
  0x64   :  { %v510_v35 = vld [vmem:[%s4187_s1 + $0xf00] sm:$0xff]  ;;  %769 = vmatpush.msrb.mxu2 %v442_v34  ;;  %v2179_v49 = vld.sshfl [vmem:[#allocation1 + $0x18] sm:$0xff pattern:$0x73625140]  ;;  %677 = vmatmul.f32.vlgmr.msra.gmra.mxu1 %v2175_v47 }
  0x65   :  { %v310_v36 = vld [vmem:[%s4187_s1 + $0x8c0] sm:$0xff]  ;;  %788 = vmatpush.msrb.mxu3 %v510_v35  ;;  %697 = vmatmul.f32.vlgmr.msra.gmra.mxu2 %v2177_v48 }
  0x66   :  { %v374_v37 = vld [vmem:[%s4187_s1 + $0xac0] sm:$0xff]  ;;  %730 = vmatpush.msrb.mxu0 %v310_v36  ;;  %717 = vmatmul.f32.vlgmr.msra.gmra.mxu3 %v2179_v49 }
  0x67   :  { %v438_v38 = vld [vmem:[%s4187_s1 + $0xcc0] sm:$0xff]  ;;  %750 = vmatpush.msrb.mxu1 %v374_v37 }
  0x68   :  { %v506_v39 = vld [vmem:[%s4187_s1 + $0xee0] sm:$0xff]  ;;  %770 = vmatpush.msrb.mxu2 %v438_v38 }
  0x69   :  { %v306_v40 = vld [vmem:[%s4187_s1 + $0x8a0] sm:$0xff]  ;;  %789 = vmatpush.msrb.mxu3 %v506_v39 }
  0x6a   :  { %v370_v41 = vld [vmem:[%s4187_s1 + $0xaa0] sm:$0xff]  ;;  %731 = vmatpush.msrb.mxu0 %v306_v40 }
  0x6b   :  { %v434_v43 = vld [vmem:[%s4187_s1 + $0xca0] sm:$0xff]  ;;  %751 = vmatpush.msrb.mxu1 %v370_v41 }
  0x6c   :  { %v502_v44 = vld [vmem:[%s4187_s1 + $0xec0] sm:$0xff]  ;;  %771 = vmatpush.msrb.mxu2 %v434_v43 }
  0x6d   :  { %v2173_v46 = vld.sshfl [vmem:[#allocation1] sm:$0xff pattern:$0x73625140]  ;;  %790 = vmatpush.msrb.mxu3 %v502_v44 }
  0x6e   :  { %v302_v50 = vld [vmem:[%s4187_s1 + $0x880] sm:$0xff]  ;;  %630 = vst [vmem:[#allocation1] ss:$4 sm:$0xff] %v29_v45  ;;  %657 = vmatmul.f32.vlgmr.msra.gmra.mxu0 %v2173_v46 }
  0x6f   :  { %v366_v51 = vld [vmem:[%s4187_s1 + $0xa80] sm:$0xff]  ;;  %732 = vmatpush.msrb.mxu0 %v302_v50 }
  0x70   :  { %v430_v52 = vld [vmem:[%s4187_s1 + $0xc80] sm:$0xff]  ;;  %752 = vmatpush.msrb.mxu1 %v366_v51 }
  0x71   :  { %v498_v53 = vld [vmem:[%s4187_s1 + $0xea0] sm:$0xff]  ;;  %772 = vmatpush.msrb.mxu2 %v430_v52 }
  0x72   :  { %v298_v54 = vld [vmem:[%s4187_s1 + $0x860] sm:$0xff]  ;;  %791 = vmatpush.msrb.mxu3 %v498_v53 }
  0x73   :  { %v362_v55 = vld [vmem:[%s4187_s1 + $0xa60] sm:$0xff]  ;;  %733 = vmatpush.msrb.mxu0 %v298_v54 }
  0x74   :  { %v426_v56 = vld [vmem:[%s4187_s1 + $0xc60] sm:$0xff]  ;;  %753 = vmatpush.msrb.mxu1 %v362_v55 }
  0x75   :  { %v494_v57 = vld [vmem:[%s4187_s1 + $0xe80] sm:$0xff]  ;;  %773 = vmatpush.msrb.mxu2 %v426_v56 }
  0x76   :  { %v294_v58 = vld [vmem:[%s4187_s1 + $0x840] sm:$0xff]  ;;  %792 = vmatpush.msrb.mxu3 %v494_v57 }
  0x77   :  { %v358_v59 = vld [vmem:[%s4187_s1 + $0xa40] sm:$0xff]  ;;  %734 = vmatpush.msrb.mxu0 %v294_v58 }
  0x78   :  { %v422_v60 = vld [vmem:[%s4187_s1 + $0xc40] sm:$0xff]  ;;  %754 = vmatpush.msrb.mxu1 %v358_v59 }
  0x79   :  { %v490_v61 = vld [vmem:[%s4187_s1 + $0xe60] sm:$0xff]  ;;  %774 = vmatpush.msrb.mxu2 %v422_v60 }
  0x7a   :  { %v290_v62 = vld [vmem:[%s4187_s1 + $0x820] sm:$0xff]  ;;  %793 = vmatpush.msrb.mxu3 %v490_v61 }
  0x7b   :  { %v354_v63 = vld [vmem:[%s4187_s1 + $0xa20] sm:$0xff]  ;;  %735 = vmatpush.msrb.mxu0 %v290_v62 }
  0x7c   :  { %v418_v0 = vld [vmem:[%s4187_s1 + $0xc20] sm:$0xff]  ;;  %755 = vmatpush.msrb.mxu1 %v354_v63 }
  0x7d   :  { %v486_v1 = vld [vmem:[%s4187_s1 + $0xe40] sm:$0xff]  ;;  %775 = vmatpush.msrb.mxu2 %v418_v0 }
  0x7e   :  { %v286_v2 = vld [vmem:[%s4187_s1 + $0x800] sm:$0xff]  ;;  %794 = vmatpush.msrb.mxu3 %v486_v1 }
  0x7f   :  { %v350_v3 = vld [vmem:[%s4187_s1 + $0xa00] sm:$0xff]  ;;  %736 = vmatpush.msrb.mxu0 %v286_v2 }
  0x80   :  { %v414_v4 = vld [vmem:[%s4187_s1 + $0xc00] sm:$0xff]  ;;  %756 = vmatpush.msrb.mxu1 %v350_v3 }
  0x81   :  { %v482_v5 = vld [vmem:[%s4187_s1 + $0xe20] sm:$0xff]  ;;  %776 = vmatpush.msrb.mxu2 %v414_v4 }
  0x82   :  { %v602_v6 = vld [vmem:[%s4187_s1 + $0x11e0] sm:$0xff]  ;;  %795 = vmatpush.msrb.mxu3 %v482_v5  ;;  %821 = vmatpush.msra.mxu1 %v91_v7 }
  0x83   :  { %v478_v9 = vld [vmem:[%s4187_s1 + $0xe00] sm:$0xff]  ;;  %801 = vmatpush.msra.mxu0 %v602_v6  ;;  %841 = vmatpush.msra.mxu2 %v155_v8 }
  0x84   :  { %v598_v10 = vld [vmem:[%s4187_s1 + $0x11c0] sm:$0xff]  ;;  %796 = vmatpush.msrb.mxu3 %v478_v9  ;;  %822 = vmatpush.msra.mxu1 %v87_v11 }
  0x85   :  { %802 = vmatpush.msra.mxu0 %v598_v10  ;;  %v594_v14 = vld [vmem:[%s4187_s1 + $0x11a0] sm:$0xff]  ;;  %842 = vmatpush.msra.mxu2 %v151_v12 }
  0x86   :  { %v590_v18 = vld [vmem:[%s4187_s1 + $0x1180] sm:$0xff]  ;;  %861 = vmatpush.msra.mxu3 %v219_v13 }
  0x87   :  { %12 = vsyncpa [#allocation3], 0  ;;  %803 = vmatpush.msra.mxu0 %v594_v14  ;;  %823 = vmatpush.msra.mxu1 %v83_v15  ;;  %v143_v20 = vld [vmem:[%s4187_s1 + $0x388] sm:$0xff]  ;;  %v2293_v22 = vld.sshfl [vmem:[#allocation1 + $0x30] sm:$0xff pattern:$0x73625140] }
  0x88   :  { %v211_v21 = vld [vmem:[%s4187_s1 + $0x5a8] sm:$0xff]  ;;  %843 = vmatpush.msra.mxu2 %v147_v16  ;;  %862 = vmatpush.msra.mxu3 %v215_v17  ;;  %v586_v23 = vld [vmem:[%s4187_s1 + $0x1160] sm:$0xff]  ;;  %v2310_v28 = vld.sshfl [vmem:[#allocation1 + $0x38] sm:$0xff pattern:$0x73625140]  ;;  %vm1735_vm0 = vcmask 500736  }
  0x89   :  { %804 = vmatpush.msra.mxu0 %v590_v18  ;;  %824 = vmatpush.msra.mxu1 %v79_v19  ;;  %v75_v24 = vld [vmem:[%s4187_s1 + $0x168] sm:$0xff]  ;;  %v2307_v27 = vld.sshfl [vmem:[#allocation1 + $0x20] sm:$0xff pattern:$0x73625140] }
  0x8a   :  { %v139_v25 = vld [vmem:[%s4187_s1 + $0x368] sm:$0xff]  ;;  %844 = vmatpush.msra.mxu2 %v143_v20  ;;  %863 = vmatpush.msra.mxu3 %v211_v21  ;;  %v582_v29 = vld [vmem:[%s4187_s1 + $0x1140] sm:$0xff] }
  0x8b   :  { %v207_v26 = vld [vmem:[%s4187_s1 + $0x588] sm:$0xff]  ;;  %777 = vmatmul.f32.vlgmr.msrb.gmra.mxu2 %v2293_v22  ;;  %805 = vmatpush.msra.mxu0 %v586_v23  ;;  %v578_v34 = vld [vmem:[%s4187_s1 + $0x1120] sm:$0xff] }
  0x8c   :  { %825 = vmatpush.msra.mxu1 %v75_v24  ;;  %845 = vmatpush.msra.mxu2 %v139_v25  ;;  %v71_v30 = vld [vmem:[%s4187_s1 + $0x148] sm:$0xff]  ;;  %v574_v38 = vld [vmem:[%s4187_s1 + $0x1100] sm:$0xff] }
  0x8d   :  { %v135_v31 = vld [vmem:[%s4187_s1 + $0x348] sm:$0xff]  ;;  %864 = vmatpush.msra.mxu3 %v207_v26  ;;  %737 = vmatmul.f32.vlgmr.msrb.gmra.mxu0 %v2307_v27  ;;  %v570_v42 = vld [vmem:[%s4187_s1 + $0x10e0] sm:$0xff] }
  0x8e   :  { %v203_v32 = vld [vmem:[%s4187_s1 + $0x568] sm:$0xff]  ;;  %797 = vmatmul.f32.vlgmr.msrb.gmra.mxu3 %v2310_v28  ;;  %806 = vmatpush.msra.mxu0 %v582_v29  ;;  %v566_v50 = vld [vmem:[%s4187_s1 + $0x10c0] sm:$0xff] }
  0x8f   :  { %v2325_v33 = vld.sshfl [vmem:[#allocation1 + $0x28] sm:$0xff pattern:$0x73625140]  ;;  %826 = vmatpush.msra.mxu1 %v71_v30  ;;  %846 = vmatpush.msra.mxu2 %v135_v31  ;;  %v562_v54 = vld [vmem:[%s4187_s1 + $0x10a0] sm:$0xff] }
  0x90   :  { %v67_v35 = vld [vmem:[%s4187_s1 + $0x128] sm:$0xff]  ;;  %865 = vmatpush.msra.mxu3 %v203_v32  ;;  %757 = vmatmul.f32.vlgmr.msrb.gmra.mxu1 %v2325_v33  ;;  %v558_v58 = vld [vmem:[%s4187_s1 + $0x1080] sm:$0xff] }
  0x91   :  { %v131_v36 = vld [vmem:[%s4187_s1 + $0x328] sm:$0xff]  ;;  %807 = vmatpush.msra.mxu0 %v578_v34  ;;  %827 = vmatpush.msra.mxu1 %v67_v35  ;;  %v554_v62 = vld [vmem:[%s4187_s1 + $0x1060] sm:$0xff] }
  0x92   :  { %v199_v37 = vld [vmem:[%s4187_s1 + $0x548] sm:$0xff]  ;;  %847 = vmatpush.msra.mxu2 %v131_v36  ;;  %v550_v2 = vld [vmem:[%s4187_s1 + $0x1040] sm:$0xff] }
  0x93   :  { %v63_v39 = vld [vmem:[%s4187_s1 + $0x108] sm:$0xff]  ;;  %866 = vmatpush.msra.mxu3 %v199_v37  ;;  %808 = vmatpush.msra.mxu0 %v574_v38  ;;  %v546_v6 = vld [vmem:[%s4187_s1 + $0x1020] sm:$0xff] }
  0x94   :  { %v127_v40 = vld [vmem:[%s4187_s1 + $0x308] sm:$0xff]  ;;  %828 = vmatpush.msra.mxu1 %v63_v39  ;;  %v542_v10 = vld [vmem:[%s4187_s1 + $0x1000] sm:$0xff] }
  0x95   :  { %v195_v41 = vld [vmem:[%s4187_s1 + $0x528] sm:$0xff]  ;;  %848 = vmatpush.msra.mxu2 %v127_v40  ;;  %809 = vmatpush.msra.mxu0 %v570_v42  ;;  %v2449_v14 = vld.sshfl [vmem:[#allocation1] sm:$0xff pattern:$0x73625140] }
  0x96   :  { %v59_v43 = vld [vmem:[%s4187_s1 + $0xe8] sm:$0xff]  ;;  %867 = vmatpush.msra.mxu3 %v195_v41 }
  0x97   :  { %v123_v44 = vld [vmem:[%s4187_s1 + $0x2e8] sm:$0xff]  ;;  %829 = vmatpush.msra.mxu1 %v59_v43  ;;  %810 = vmatpush.msra.mxu0 %v566_v50 }
  0x98   :  { %v191_v45 = vld [vmem:[%s4187_s1 + $0x508] sm:$0xff]  ;;  %849 = vmatpush.msra.mxu2 %v123_v44 }
  0x99   :  { %v55_v51 = vld [vmem:[%s4187_s1 + $0xc8] sm:$0xff]  ;;  %868 = vmatpush.msra.mxu3 %v191_v45  ;;  %811 = vmatpush.msra.mxu0 %v562_v54 }
  0x9a   :  { %v119_v52 = vld [vmem:[%s4187_s1 + $0x2c8] sm:$0xff]  ;;  %830 = vmatpush.msra.mxu1 %v55_v51 }
  0x9b   :  { %v187_v53 = vld [vmem:[%s4187_s1 + $0x4e8] sm:$0xff]  ;;  %850 = vmatpush.msra.mxu2 %v119_v52  ;;  %812 = vmatpush.msra.mxu0 %v558_v58 }
  0x9c   :  { %v51_v55 = vld [vmem:[%s4187_s1 + $0xa8] sm:$0xff]  ;;  %869 = vmatpush.msra.mxu3 %v187_v53 }
  0x9d   :  { %v115_v56 = vld [vmem:[%s4187_s1 + $0x2a8] sm:$0xff]  ;;  %831 = vmatpush.msra.mxu1 %v51_v55  ;;  %813 = vmatpush.msra.mxu0 %v554_v62 }
  0x9e   :  { %v183_v57 = vld [vmem:[%s4187_s1 + $0x4c8] sm:$0xff]  ;;  %851 = vmatpush.msra.mxu2 %v115_v56 }
  0x9f   :  { %v47_v59 = vld [vmem:[%s4187_s1 + $0x88] sm:$0xff]  ;;  %870 = vmatpush.msra.mxu3 %v183_v57  ;;  %814 = vmatpush.msra.mxu0 %v550_v2 }
  0xa0   :  { %v111_v60 = vld [vmem:[%s4187_s1 + $0x288] sm:$0xff]  ;;  %832 = vmatpush.msra.mxu1 %v47_v59 }
  0xa1   :  { %v179_v61 = vld [vmem:[%s4187_s1 + $0x4a8] sm:$0xff]  ;;  %852 = vmatpush.msra.mxu2 %v111_v60  ;;  %815 = vmatpush.msra.mxu0 %v546_v6 }
  0xa2   :  { %v43_v63 = vld [vmem:[%s4187_s1 + $0x68] sm:$0xff]  ;;  %871 = vmatpush.msra.mxu3 %v179_v61 }
  0xa3   :  { %v107_v0 = vld [vmem:[%s4187_s1 + $0x268] sm:$0xff]  ;;  %833 = vmatpush.msra.mxu1 %v43_v63  ;;  %816 = vmatpush.msra.mxu0 %v542_v10 }
  0xa4   :  { %v175_v1 = vld [vmem:[%s4187_s1 + $0x488] sm:$0xff]  ;;  %853 = vmatpush.msra.mxu2 %v107_v0  ;;  %817 = vmatmul.f32.vlgmr.msra.gmra.mxu0 %v2449_v14 }
  0xa5   :  { %v39_v3 = vld [vmem:[%s4187_s1 + $0x48] sm:$0xff]  ;;  %872 = vmatpush.msra.mxu3 %v175_v1 }
  0xa6   :  { %v103_v4 = vld [vmem:[%s4187_s1 + $0x248] sm:$0xff]  ;;  %834 = vmatpush.msra.mxu1 %v39_v3 }
  0xa7   :  { %v171_v5 = vld [vmem:[%s4187_s1 + $0x468] sm:$0xff]  ;;  %854 = vmatpush.msra.mxu2 %v103_v4 }
  0xa8   :  { %v35_v7 = vld [vmem:[%s4187_s1 + $0x28] sm:$0xff]  ;;  %873 = vmatpush.msra.mxu3 %v171_v5 }
  0xa9   :  { %v99_v8 = vld [vmem:[%s4187_s1 + $0x228] sm:$0xff]  ;;  %835 = vmatpush.msra.mxu1 %v35_v7 }
  0xaa   :  { %v167_v9 = vld [vmem:[%s4187_s1 + $0x448] sm:$0xff]  ;;  %855 = vmatpush.msra.mxu2 %v99_v8 }
  0xab   :  { %v31_v11 = vld [vmem:[%s4187_s1 + $0x8] sm:$0xff]  ;;  %874 = vmatpush.msra.mxu3 %v167_v9 }
  0xac   :  { %v95_v12 = vld [vmem:[%s4187_s1 + $0x208] sm:$0xff]  ;;  %836 = vmatpush.msra.mxu1 %v31_v11 }
  0xad   :  { %v163_v13 = vld [vmem:[%s4187_s1 + $0x428] sm:$0xff]  ;;  %856 = vmatpush.msra.mxu2 %v95_v12  ;;  %837 = vmatmul.f32.vlgmr.msra.gmra.mxu1 %v2173_v46 }
  0xae   :  { %v347_v15 = vld [vmem:[%s4187_s1 + $0x9e8] sm:$0xff]  ;;  %875 = vmatpush.msra.mxu3 %v163_v13  ;;  %857 = vmatmul.f32.vlgmr.msra.gmra.mxu2 %v2175_v47 }
  0xaf   :  { %v283_v16 = vld [vmem:[%s4187_s1 + $0x7e8] sm:$0xff]  ;;  %901 = vmatpush.msrb.mxu1 %v347_v15 }
  0xb0   :  { %v411_v17 = vld [vmem:[%s4187_s1 + $0xbe8] sm:$0xff]  ;;  %881 = vmatpush.msrb.mxu0 %v283_v16 }
  0xb1   :  { %v159_v18 = vld [vmem:[%s4187_s1 + $0x408] sm:$0xff]  ;;  %921 = vmatpush.msrb.mxu2 %v411_v17 }
  0xb2   :  { %v343_v19 = vld [vmem:[%s4187_s1 + $0x9c8] sm:$0xff]  ;;  %876 = vmatpush.msra.mxu3 %v159_v18 }
  0xb3   :  { %v279_v20 = vld [vmem:[%s4187_s1 + $0x7c8] sm:$0xff]  ;;  %902 = vmatpush.msrb.mxu1 %v343_v19  ;;  %877 = vmatmul.f32.vlgmr.msra.gmra.mxu3 %v2177_v48 }
  0xb4   :  { %v407_v21 = vld [vmem:[%s4187_s1 + $0xbc8] sm:$0xff]  ;;  %882 = vmatpush.msrb.mxu0 %v279_v20 }
  0xb5   :  { %v475_v23 = vld [vmem:[%s4187_s1 + $0xde8] sm:$0xff]  ;;  %922 = vmatpush.msrb.mxu2 %v407_v21 }
  0xb6   :  { %v339_v24 = vld [vmem:[%s4187_s1 + $0x9a8] sm:$0xff]  ;;  %941 = vmatpush.msrb.mxu3 %v475_v23 }
  0xb7   :  { %v275_v25 = vld [vmem:[%s4187_s1 + $0x7a8] sm:$0xff]  ;;  %903 = vmatpush.msrb.mxu1 %v339_v24 }
  0xb8   :  { %v403_v26 = vld [vmem:[%s4187_s1 + $0xba8] sm:$0xff]  ;;  %883 = vmatpush.msrb.mxu0 %v275_v25 }
  0xb9   :  { %v471_v29 = vld [vmem:[%s4187_s1 + $0xdc8] sm:$0xff]  ;;  %923 = vmatpush.msrb.mxu2 %v403_v26 }
  0xba   :  { %v335_v30 = vld [vmem:[%s4187_s1 + $0x988] sm:$0xff]  ;;  %942 = vmatpush.msrb.mxu3 %v471_v29  ;;  %v92_v29 = vld [vmem:[%s4187_s1 + $0x1f0] sm:$0xff] }
  0xbb   :  { %v271_v31 = vld [vmem:[%s4187_s1 + $0x788] sm:$0xff]  ;;  %904 = vmatpush.msrb.mxu1 %v335_v30 }
  0xbc   :  { %v399_v32 = vld [vmem:[%s4187_s1 + $0xb88] sm:$0xff]  ;;  %884 = vmatpush.msrb.mxu0 %v271_v31 }
  0xbd   :  { %v467_v34 = vld [vmem:[%s4187_s1 + $0xda8] sm:$0xff]  ;;  %924 = vmatpush.msrb.mxu2 %v399_v32 }
  0xbe   :  { %v331_v35 = vld [vmem:[%s4187_s1 + $0x968] sm:$0xff]  ;;  %943 = vmatpush.msrb.mxu3 %v467_v34  ;;  %v88_v34 = vld [vmem:[%s4187_s1 + $0x1d0] sm:$0xff] }
  0xbf   :  { %v267_v36 = vld [vmem:[%s4187_s1 + $0x768] sm:$0xff]  ;;  %905 = vmatpush.msrb.mxu1 %v331_v35  ;;  %v156_v35 = vld [vmem:[%s4187_s1 + $0x3f0] sm:$0xff] }
  0xc0   :  { %v395_v37 = vld [vmem:[%s4187_s1 + $0xb68] sm:$0xff]  ;;  %885 = vmatpush.msrb.mxu0 %v267_v36 }
  0xc1   :  { %v463_v38 = vld [vmem:[%s4187_s1 + $0xd88] sm:$0xff]  ;;  %925 = vmatpush.msrb.mxu2 %v395_v37 }
  0xc2   :  { %v327_v39 = vld [vmem:[%s4187_s1 + $0x948] sm:$0xff]  ;;  %944 = vmatpush.msrb.mxu3 %v463_v38  ;;  %v84_v38 = vld [vmem:[%s4187_s1 + $0x1b0] sm:$0xff] }
  0xc3   :  { %v263_v40 = vld [vmem:[%s4187_s1 + $0x748] sm:$0xff]  ;;  %906 = vmatpush.msrb.mxu1 %v327_v39  ;;  %v152_v39 = vld [vmem:[%s4187_s1 + $0x3d0] sm:$0xff] }
  0xc4   :  { %v391_v41 = vld [vmem:[%s4187_s1 + $0xb48] sm:$0xff]  ;;  %886 = vmatpush.msrb.mxu0 %v263_v40 }
  0xc5   :  { %v459_v42 = vld [vmem:[%s4187_s1 + $0xd68] sm:$0xff]  ;;  %926 = vmatpush.msrb.mxu2 %v391_v41 }
  0xc6   :  { %v323_v43 = vld [vmem:[%s4187_s1 + $0x928] sm:$0xff]  ;;  %945 = vmatpush.msrb.mxu3 %v459_v42  ;;  %v80_v42 = vld [vmem:[%s4187_s1 + $0x190] sm:$0xff] }
  0xc7   :  { %v259_v44 = vld [vmem:[%s4187_s1 + $0x728] sm:$0xff]  ;;  %907 = vmatpush.msrb.mxu1 %v323_v43  ;;  %v148_v43 = vld [vmem:[%s4187_s1 + $0x3b0] sm:$0xff] }
  0xc8   :  { %v387_v45 = vld [vmem:[%s4187_s1 + $0xb28] sm:$0xff]  ;;  %887 = vmatpush.msrb.mxu0 %v259_v44 }
  0xc9   :  { %v455_v50 = vld [vmem:[%s4187_s1 + $0xd48] sm:$0xff]  ;;  %927 = vmatpush.msrb.mxu2 %v387_v45 }
  0xca   :  { %v319_v51 = vld [vmem:[%s4187_s1 + $0x908] sm:$0xff]  ;;  %946 = vmatpush.msrb.mxu3 %v455_v50  ;;  %v76_v50 = vld [vmem:[%s4187_s1 + $0x170] sm:$0xff] }
  0xcb   :  { %v255_v52 = vld [vmem:[%s4187_s1 + $0x708] sm:$0xff]  ;;  %908 = vmatpush.msrb.mxu1 %v319_v51  ;;  %v144_v51 = vld [vmem:[%s4187_s1 + $0x390] sm:$0xff] }
  0xcc   :  { %v383_v53 = vld [vmem:[%s4187_s1 + $0xb08] sm:$0xff]  ;;  %888 = vmatpush.msrb.mxu0 %v255_v52 }
  0xcd   :  { %v451_v54 = vld [vmem:[%s4187_s1 + $0xd28] sm:$0xff]  ;;  %928 = vmatpush.msrb.mxu2 %v383_v53 }
  0xce   :  { %v315_v55 = vld [vmem:[%s4187_s1 + $0x8e8] sm:$0xff]  ;;  %947 = vmatpush.msrb.mxu3 %v451_v54  ;;  %v72_v54 = vld [vmem:[%s4187_s1 + $0x150] sm:$0xff] }
  0xcf   :  { %v251_v56 = vld [vmem:[%s4187_s1 + $0x6e8] sm:$0xff]  ;;  %909 = vmatpush.msrb.mxu1 %v315_v55 }
  0xd0   :  { %v379_v57 = vld [vmem:[%s4187_s1 + $0xae8] sm:$0xff]  ;;  %889 = vmatpush.msrb.mxu0 %v251_v56 }
  0xd1   :  { %v447_v58 = vld [vmem:[%s4187_s1 + $0xd08] sm:$0xff]  ;;  %929 = vmatpush.msrb.mxu2 %v379_v57  ;;  %v68_v57 = vld [vmem:[%s4187_s1 + $0x130] sm:$0xff] }
  0xd2   :  { %v311_v59 = vld [vmem:[%s4187_s1 + $0x8c8] sm:$0xff]  ;;  %948 = vmatpush.msrb.mxu3 %v447_v58  ;;  %v136_v58 = vld [vmem:[%s4187_s1 + $0x350] sm:$0xff] }
  0xd3   :  { %v247_v60 = vld [vmem:[%s4187_s1 + $0x6c8] sm:$0xff]  ;;  %910 = vmatpush.msrb.mxu1 %v311_v59 }
  0xd4   :  { %v375_v61 = vld [vmem:[%s4187_s1 + $0xac8] sm:$0xff]  ;;  %890 = vmatpush.msrb.mxu0 %v247_v60  ;;  %v64_v60 = vld [vmem:[%s4187_s1 + $0x110] sm:$0xff] }
  0xd5   :  { %v443_v62 = vld [vmem:[%s4187_s1 + $0xce8] sm:$0xff]  ;;  %930 = vmatpush.msrb.mxu2 %v375_v61  ;;  %v132_v61 = vld [vmem:[%s4187_s1 + $0x330] sm:$0xff] }
  0xd6   :  { %v307_v63 = vld [vmem:[%s4187_s1 + $0x8a8] sm:$0xff]  ;;  %949 = vmatpush.msrb.mxu3 %v443_v62 }
  0xd7   :  { %v243_v0 = vld [vmem:[%s4187_s1 + $0x6a8] sm:$0xff]  ;;  %911 = vmatpush.msrb.mxu1 %v307_v63  ;;  %v60_v63 = vld [vmem:[%s4187_s1 + $0xf0] sm:$0xff] }
  0xd8   :  { %v371_v1 = vld [vmem:[%s4187_s1 + $0xaa8] sm:$0xff]  ;;  %891 = vmatpush.msrb.mxu0 %v243_v0  ;;  %v128_v0 = vld [vmem:[%s4187_s1 + $0x310] sm:$0xff] }
  0xd9   :  { %v439_v2 = vld [vmem:[%s4187_s1 + $0xcc8] sm:$0xff]  ;;  %931 = vmatpush.msrb.mxu2 %v371_v1 }
  0xda   :  { %v303_v3 = vld [vmem:[%s4187_s1 + $0x888] sm:$0xff]  ;;  %950 = vmatpush.msrb.mxu3 %v439_v2 }
  0xdb   :  { %v239_v4 = vld [vmem:[%s4187_s1 + $0x688] sm:$0xff]  ;;  %912 = vmatpush.msrb.mxu1 %v303_v3  ;;  %v56_v3 = vld [vmem:[%s4187_s1 + $0xd0] sm:$0xff] }
  0xdc   :  { %v367_v5 = vld [vmem:[%s4187_s1 + $0xa88] sm:$0xff]  ;;  %892 = vmatpush.msrb.mxu0 %v239_v4  ;;  %v124_v4 = vld [vmem:[%s4187_s1 + $0x2f0] sm:$0xff] }
  0xdd   :  { %v435_v6 = vld [vmem:[%s4187_s1 + $0xca8] sm:$0xff]  ;;  %932 = vmatpush.msrb.mxu2 %v367_v5 }
  0xde   :  { %v299_v7 = vld [vmem:[%s4187_s1 + $0x868] sm:$0xff]  ;;  %951 = vmatpush.msrb.mxu3 %v435_v6 }
  0xdf   :  { %v235_v8 = vld [vmem:[%s4187_s1 + $0x668] sm:$0xff]  ;;  %913 = vmatpush.msrb.mxu1 %v299_v7  ;;  %v52_v7 = vld [vmem:[%s4187_s1 + $0xb0] sm:$0xff] }
  0xe0   :  { %v363_v9 = vld [vmem:[%s4187_s1 + $0xa68] sm:$0xff]  ;;  %893 = vmatpush.msrb.mxu0 %v235_v8  ;;  %v120_v8 = vld [vmem:[%s4187_s1 + $0x2d0] sm:$0xff] }
  0xe1   :  { %v431_v10 = vld [vmem:[%s4187_s1 + $0xc88] sm:$0xff]  ;;  %933 = vmatpush.msrb.mxu2 %v363_v9 }
  0xe2   :  { %v295_v11 = vld [vmem:[%s4187_s1 + $0x848] sm:$0xff]  ;;  %952 = vmatpush.msrb.mxu3 %v431_v10 }
  0xe3   :  { %v231_v12 = vld [vmem:[%s4187_s1 + $0x648] sm:$0xff]  ;;  %914 = vmatpush.msrb.mxu1 %v295_v11  ;;  %v48_v11 = vld [vmem:[%s4187_s1 + $0x90] sm:$0xff] }
  0xe4   :  { %v359_v13 = vld [vmem:[%s4187_s1 + $0xa48] sm:$0xff]  ;;  %894 = vmatpush.msrb.mxu0 %v231_v12  ;;  %v116_v12 = vld [vmem:[%s4187_s1 + $0x2b0] sm:$0xff] }
  0xe5   :  { %v427_v15 = vld [vmem:[%s4187_s1 + $0xc68] sm:$0xff]  ;;  %934 = vmatpush.msrb.mxu2 %v359_v13 }
  0xe6   :  { %v291_v16 = vld [vmem:[%s4187_s1 + $0x828] sm:$0xff]  ;;  %953 = vmatpush.msrb.mxu3 %v427_v15 }
  0xe7   :  { %v227_v17 = vld [vmem:[%s4187_s1 + $0x628] sm:$0xff]  ;;  %915 = vmatpush.msrb.mxu1 %v291_v16  ;;  %v44_v16 = vld [vmem:[%s4187_s1 + $0x70] sm:$0xff] }
  0xe8   :  { %v355_v18 = vld [vmem:[%s4187_s1 + $0xa28] sm:$0xff]  ;;  %895 = vmatpush.msrb.mxu0 %v227_v17  ;;  %v112_v17 = vld [vmem:[%s4187_s1 + $0x290] sm:$0xff] }
  0xe9   :  { %v423_v19 = vld [vmem:[%s4187_s1 + $0xc48] sm:$0xff]  ;;  %935 = vmatpush.msrb.mxu2 %v355_v18 }
  0xea   :  { %v287_v20 = vld [vmem:[%s4187_s1 + $0x808] sm:$0xff]  ;;  %954 = vmatpush.msrb.mxu3 %v423_v19 }
  0xeb   :  { %v223_v21 = vld [vmem:[%s4187_s1 + $0x608] sm:$0xff]  ;;  %916 = vmatpush.msrb.mxu1 %v287_v20  ;;  %v40_v20 = vld [vmem:[%s4187_s1 + $0x50] sm:$0xff] }
  0xec   :  { %v351_v23 = vld [vmem:[%s4187_s1 + $0xa08] sm:$0xff]  ;;  %896 = vmatpush.msrb.mxu0 %v223_v21  ;;  %917 = vmatmul.f32.vlgmr.msrb.gmra.mxu1 %v2307_v27  ;;  %v108_v21 = vld [vmem:[%s4187_s1 + $0x270] sm:$0xff] }
  0xed   :  { %v419_v24 = vld [vmem:[%s4187_s1 + $0xc28] sm:$0xff]  ;;  %936 = vmatpush.msrb.mxu2 %v351_v23  ;;  %897 = vmatmul.f32.vlgmr.msrb.gmra.mxu0 %v2179_v49 }
  0xee   :  { %v539_v25 = vld [vmem:[%s4187_s1 + $0xfe8] sm:$0xff]  ;;  %955 = vmatpush.msrb.mxu3 %v419_v24  ;;  %937 = vmatmul.f32.vlgmr.msrb.gmra.mxu2 %v2325_v33  ;;  %v140_v33 = vld [vmem:[%s4187_s1 + $0x370] sm:$0xff] }
  0xef   :  { %v603_v26 = vld [vmem:[%s4187_s1 + $0x11e8] sm:$0xff]  ;;  %961 = vmatpush.msra.mxu0 %v539_v25  ;;  %1001 = vmatpush.msra.mxu2 %v92_v29  ;;  %v36_v25 = vld [vmem:[%s4187_s1 + $0x30] sm:$0xff] }
  0xf0   :  { %v415_v30 = vld [vmem:[%s4187_s1 + $0xc08] sm:$0xff]  ;;  %981 = vmatpush.msra.mxu1 %v603_v26  ;;  %v104_v26 = vld [vmem:[%s4187_s1 + $0x250] sm:$0xff] }
  0xf1   :  { %v535_v31 = vld [vmem:[%s4187_s1 + $0xfc8] sm:$0xff]  ;;  %956 = vmatpush.msrb.mxu3 %v415_v30  ;;  %1002 = vmatpush.msra.mxu2 %v88_v34  ;;  %v284_v34 = vld [vmem:[%s4187_s1 + $0x7f0] sm:$0xff] }
  0xf2   :  { %v599_v32 = vld [vmem:[%s4187_s1 + $0x11c8] sm:$0xff]  ;;  %962 = vmatpush.msra.mxu0 %v535_v31  ;;  %957 = vmatmul.f32.vlgmr.msrb.gmra.mxu3 %v2293_v22  ;;  %v32_v31 = vld [vmem:[%s4187_s1 + $0x10] sm:$0xff] }
  0xf3   :  { %v531_v36 = vld [vmem:[%s4187_s1 + $0xfa8] sm:$0xff]  ;;  %982 = vmatpush.msra.mxu1 %v599_v32  ;;  %1021 = vmatpush.msra.mxu3 %v156_v35  ;;  %v100_v32 = vld [vmem:[%s4187_s1 + $0x230] sm:$0xff] }
  0xf4   :  { %v595_v37 = vld [vmem:[%s4187_s1 + $0x11a8] sm:$0xff]  ;;  %963 = vmatpush.msra.mxu0 %v531_v36  ;;  %1003 = vmatpush.msra.mxu2 %v84_v38  ;;  %v220_v35 = vld [vmem:[%s4187_s1 + $0x5f0] sm:$0xff] }
  0xf5   :  { %v527_v40 = vld [vmem:[%s4187_s1 + $0xf88] sm:$0xff]  ;;  %983 = vmatpush.msra.mxu1 %v595_v37  ;;  %1022 = vmatpush.msra.mxu3 %v152_v39  ;;  %v348_v36 = vld [vmem:[%s4187_s1 + $0x9f0] sm:$0xff] }
  0xf6   :  { %v591_v41 = vld [vmem:[%s4187_s1 + $0x1188] sm:$0xff]  ;;  %964 = vmatpush.msra.mxu0 %v527_v40  ;;  %1004 = vmatpush.msra.mxu2 %v80_v42  ;;  %v96_v37 = vld [vmem:[%s4187_s1 + $0x210] sm:$0xff] }
  0xf7   :  { %v523_v44 = vld [vmem:[%s4187_s1 + $0xf68] sm:$0xff]  ;;  %984 = vmatpush.msra.mxu1 %v591_v41  ;;  %1023 = vmatpush.msra.mxu3 %v148_v43  ;;  %v216_v38 = vld [vmem:[%s4187_s1 + $0x5d0] sm:$0xff] }
  0xf8   :  { %v587_v45 = vld [vmem:[%s4187_s1 + $0x1168] sm:$0xff]  ;;  %965 = vmatpush.msra.mxu0 %v523_v44  ;;  %1005 = vmatpush.msra.mxu2 %v76_v50  ;;  %v280_v39 = vld [vmem:[%s4187_s1 + $0x7d0] sm:$0xff] }
  0xf9   :  { %v519_v52 = vld [vmem:[%s4187_s1 + $0xf48] sm:$0xff]  ;;  %985 = vmatpush.msra.mxu1 %v587_v45  ;;  %1024 = vmatpush.msra.mxu3 %v144_v51  ;;  %v344_v40 = vld [vmem:[%s4187_s1 + $0x9d0] sm:$0xff] }
  0xfa   :  { %v583_v53 = vld [vmem:[%s4187_s1 + $0x1148] sm:$0xff]  ;;  %966 = vmatpush.msra.mxu0 %v519_v52  ;;  %1006 = vmatpush.msra.mxu2 %v72_v54  ;;  %v412_v41 = vld [vmem:[%s4187_s1 + $0xbf0] sm:$0xff] }
  0xfb   :  { %v515_v55 = vld [vmem:[%s4187_s1 + $0xf28] sm:$0xff]  ;;  %986 = vmatpush.msra.mxu1 %v583_v53  ;;  %1025 = vmatpush.msra.mxu3 %v140_v33  ;;  %v276_v42 = vld [vmem:[%s4187_s1 + $0x7b0] sm:$0xff] }
  0xfc   :  { %v579_v56 = vld [vmem:[%s4187_s1 + $0x1128] sm:$0xff]  ;;  %967 = vmatpush.msra.mxu0 %v515_v55  ;;  %1007 = vmatpush.msra.mxu2 %v68_v57  ;;  %v340_v43 = vld [vmem:[%s4187_s1 + $0x9b0] sm:$0xff] }
  0xfd   :  { %v511_v22 = vld [vmem:[%s4187_s1 + $0xf08] sm:$0xff]  ;;  %987 = vmatpush.msra.mxu1 %v579_v56  ;;  %1026 = vmatpush.msra.mxu3 %v136_v58  ;;  %v408_v44 = vld [vmem:[%s4187_s1 + $0xbd0] sm:$0xff] }
  0xfe   :  { %v575_v59 = vld [vmem:[%s4187_s1 + $0x1108] sm:$0xff]  ;;  %968 = vmatpush.msra.mxu0 %v511_v22  ;;  %1008 = vmatpush.msra.mxu2 %v64_v60  ;;  %v272_v45 = vld [vmem:[%s4187_s1 + $0x790] sm:$0xff] }
  0xff   :  { %v507_v27 = vld [vmem:[%s4187_s1 + $0xee8] sm:$0xff]  ;;  %988 = vmatpush.msra.mxu1 %v575_v59  ;;  %1027 = vmatpush.msra.mxu3 %v132_v61  ;;  %v336_v50 = vld [vmem:[%s4187_s1 + $0x990] sm:$0xff] }
 0x100   :  { %v571_v62 = vld [vmem:[%s4187_s1 + $0x10e8] sm:$0xff]  ;;  %969 = vmatpush.msra.mxu0 %v507_v27  ;;  %1009 = vmatpush.msra.mxu2 %v60_v63  ;;  %v404_v51 = vld [vmem:[%s4187_s1 + $0xbb0] sm:$0xff] }
 0x101   :  { %v503_v1 = vld [vmem:[%s4187_s1 + $0xec8] sm:$0xff]  ;;  %989 = vmatpush.msra.mxu1 %v571_v62  ;;  %1028 = vmatpush.msra.mxu3 %v128_v0  ;;  %v204_v52 = vld [vmem:[%s4187_s1 + $0x570] sm:$0xff] }
 0x102   :  { %v567_v2 = vld [vmem:[%s4187_s1 + $0x10c8] sm:$0xff]  ;;  %970 = vmatpush.msra.mxu0 %v503_v1  ;;  %1010 = vmatpush.msra.mxu2 %v56_v3  ;;  %v268_v53 = vld [vmem:[%s4187_s1 + $0x770] sm:$0xff] }
 0x103   :  { %v499_v5 = vld [vmem:[%s4187_s1 + $0xea8] sm:$0xff]  ;;  %990 = vmatpush.msra.mxu1 %v567_v2  ;;  %1029 = vmatpush.msra.mxu3 %v124_v4  ;;  %v332_v54 = vld [vmem:[%s4187_s1 + $0x970] sm:$0xff] }
 0x104   :  { %v563_v6 = vld [vmem:[%s4187_s1 + $0x10a8] sm:$0xff]  ;;  %971 = vmatpush.msra.mxu0 %v499_v5  ;;  %1011 = vmatpush.msra.mxu2 %v52_v7  ;;  %v400_v33 = vld [vmem:[%s4187_s1 + $0xb90] sm:$0xff] }
 0x105   :  { %v495_v9 = vld [vmem:[%s4187_s1 + $0xe88] sm:$0xff]  ;;  %991 = vmatpush.msra.mxu1 %v563_v6  ;;  %1030 = vmatpush.msra.mxu3 %v120_v8  ;;  %v200_v55 = vld [vmem:[%s4187_s1 + $0x550] sm:$0xff] }
 0x106   :  { %v559_v10 = vld [vmem:[%s4187_s1 + $0x1088] sm:$0xff]  ;;  %972 = vmatpush.msra.mxu0 %v495_v9  ;;  %1012 = vmatpush.msra.mxu2 %v48_v11  ;;  %v264_v56 = vld [vmem:[%s4187_s1 + $0x750] sm:$0xff] }
 0x107   :  { %v491_v13 = vld [vmem:[%s4187_s1 + $0xe68] sm:$0xff]  ;;  %992 = vmatpush.msra.mxu1 %v559_v10  ;;  %1031 = vmatpush.msra.mxu3 %v116_v12  ;;  %v328_v57 = vld [vmem:[%s4187_s1 + $0x950] sm:$0xff] }
 0x108   :  { %v555_v15 = vld [vmem:[%s4187_s1 + $0x1068] sm:$0xff]  ;;  %973 = vmatpush.msra.mxu0 %v491_v13  ;;  %1013 = vmatpush.msra.mxu2 %v44_v16  ;;  %v396_v58 = vld [vmem:[%s4187_s1 + $0xb70] sm:$0xff] }
 0x109   :  { %v487_v18 = vld [vmem:[%s4187_s1 + $0xe48] sm:$0xff]  ;;  %993 = vmatpush.msra.mxu1 %v555_v15  ;;  %1032 = vmatpush.msra.mxu3 %v112_v17  ;;  %v196_v22 = vld [vmem:[%s4187_s1 + $0x530] sm:$0xff] }
 0x10a   :  { %v551_v19 = vld [vmem:[%s4187_s1 + $0x1048] sm:$0xff]  ;;  %974 = vmatpush.msra.mxu0 %v487_v18  ;;  %1014 = vmatpush.msra.mxu2 %v40_v20  ;;  %v260_v59 = vld [vmem:[%s4187_s1 + $0x730] sm:$0xff] }
 0x10b   :  { %v483_v23 = vld [vmem:[%s4187_s1 + $0xe28] sm:$0xff]  ;;  %994 = vmatpush.msra.mxu1 %v551_v19  ;;  %1033 = vmatpush.msra.mxu3 %v108_v21  ;;  %v324_v60 = vld [vmem:[%s4187_s1 + $0x930] sm:$0xff] }
 0x10c   :  { %v547_v24 = vld [vmem:[%s4187_s1 + $0x1028] sm:$0xff]  ;;  %975 = vmatpush.msra.mxu0 %v483_v23  ;;  %1015 = vmatpush.msra.mxu2 %v36_v25  ;;  %v392_v61 = vld [vmem:[%s4187_s1 + $0xb50] sm:$0xff] }
 0x10d   :  { %v479_v29 = vld [vmem:[%s4187_s1 + $0xe08] sm:$0xff]  ;;  %995 = vmatpush.msra.mxu1 %v547_v24  ;;  %1034 = vmatpush.msra.mxu3 %v104_v26  ;;  %v192_v27 = vld [vmem:[%s4187_s1 + $0x510] sm:$0xff] }
 0x10e   :  { %v543_v30 = vld [vmem:[%s4187_s1 + $0x1008] sm:$0xff]  ;;  %976 = vmatpush.msra.mxu0 %v479_v29  ;;  %1016 = vmatpush.msra.mxu2 %v32_v31  ;;  %v256_v62 = vld [vmem:[%s4187_s1 + $0x710] sm:$0xff] }
 0x10f   :  { %996 = vmatpush.msra.mxu1 %v543_v30  ;;  %1035 = vmatpush.msra.mxu3 %v100_v32  ;;  %v320_v63 = vld [vmem:[%s4187_s1 + $0x910] sm:$0xff] }
 0x110   :  { %977 = vmatmul.f32.vlgmr.msra.gmra.mxu0 %v2310_v28  ;;  %1081 = vmatpush.msrb.mxu2 %v348_v36  ;;  %v212_v28 = vld [vmem:[%s4187_s1 + $0x5b0] sm:$0xff] }
 0x111   :  { %1061 = vmatpush.msrb.mxu1 %v284_v34  ;;  %1041 = vmatpush.msrb.mxu0 %v220_v35  ;;  %v388_v0 = vld [vmem:[%s4187_s1 + $0xb30] sm:$0xff] }
 0x112   :  { %1036 = vmatpush.msra.mxu3 %v96_v37  ;;  %997 = vmatmul.f32.vlgmr.msra.gmra.mxu1 %v2449_v14  ;;  %v208_v14 = vld [vmem:[%s4187_s1 + $0x590] sm:$0xff] }
 0x113   :  { %1042 = vmatpush.msrb.mxu0 %v216_v38  ;;  %1062 = vmatpush.msrb.mxu1 %v280_v39  ;;  %v188_v1 = vld [vmem:[%s4187_s1 + $0x4f0] sm:$0xff] }
 0x114   :  { %1082 = vmatpush.msrb.mxu2 %v344_v40  ;;  %1101 = vmatpush.msrb.mxu3 %v412_v41  ;;  %v252_v2 = vld [vmem:[%s4187_s1 + $0x6f0] sm:$0xff] }
 0x115   :  { %1043 = vmatpush.msrb.mxu0 %v212_v28  ;;  %1063 = vmatpush.msrb.mxu1 %v276_v42  ;;  %v316_v3 = vld [vmem:[%s4187_s1 + $0x8f0] sm:$0xff] }
 0x116   :  { %1083 = vmatpush.msrb.mxu2 %v340_v43  ;;  %1102 = vmatpush.msrb.mxu3 %v408_v44  ;;  %v384_v4 = vld [vmem:[%s4187_s1 + $0xb10] sm:$0xff]  ;;  %v93_v44 = vld [vmem:[%s4187_s1 + $0x1f8] sm:$0xff] }
 0x117   :  { %1044 = vmatpush.msrb.mxu0 %v208_v14  ;;  %1064 = vmatpush.msrb.mxu1 %v272_v45  ;;  %v184_v5 = vld [vmem:[%s4187_s1 + $0x4d0] sm:$0xff] }
 0x118   :  { %1084 = vmatpush.msrb.mxu2 %v336_v50  ;;  %1103 = vmatpush.msrb.mxu3 %v404_v51  ;;  %v248_v6 = vld [vmem:[%s4187_s1 + $0x6d0] sm:$0xff]  ;;  %v89_v51 = vld [vmem:[%s4187_s1 + $0x1d8] sm:$0xff] }
 0x119   :  { %1045 = vmatpush.msrb.mxu0 %v204_v52  ;;  %1065 = vmatpush.msrb.mxu1 %v268_v53  ;;  %v312_v7 = vld [vmem:[%s4187_s1 + $0x8d0] sm:$0xff] }
 0x11a   :  { %1085 = vmatpush.msrb.mxu2 %v332_v54  ;;  %1104 = vmatpush.msrb.mxu3 %v400_v33  ;;  %v380_v8 = vld [vmem:[%s4187_s1 + $0xaf0] sm:$0xff]  ;;  %v85_v33 = vld [vmem:[%s4187_s1 + $0x1b8] sm:$0xff] }
 0x11b   :  { %1046 = vmatpush.msrb.mxu0 %v200_v55  ;;  %1066 = vmatpush.msrb.mxu1 %v264_v56  ;;  %v180_v9 = vld [vmem:[%s4187_s1 + $0x4b0] sm:$0xff] }
 0x11c   :  { %1086 = vmatpush.msrb.mxu2 %v328_v57  ;;  %1105 = vmatpush.msrb.mxu3 %v396_v58  ;;  %v244_v10 = vld [vmem:[%s4187_s1 + $0x6b0] sm:$0xff]  ;;  %v81_v58 = vld [vmem:[%s4187_s1 + $0x198] sm:$0xff] }
 0x11d   :  { %1047 = vmatpush.msrb.mxu0 %v196_v22  ;;  %1067 = vmatpush.msrb.mxu1 %v260_v59  ;;  %v308_v11 = vld [vmem:[%s4187_s1 + $0x8b0] sm:$0xff]  ;;  %v3099_v22 = vld.sshfl [vmem:[#allocation1 + $0x20] sm:$0xff pattern:$0x73625140] }
 0x11e   :  { %1087 = vmatpush.msrb.mxu2 %v324_v60  ;;  %1106 = vmatpush.msrb.mxu3 %v392_v61  ;;  %v376_v12 = vld [vmem:[%s4187_s1 + $0xad0] sm:$0xff] }
 0x11f   :  { %1048 = vmatpush.msrb.mxu0 %v192_v27  ;;  %1068 = vmatpush.msrb.mxu1 %v256_v62  ;;  %v176_v13 = vld [vmem:[%s4187_s1 + $0x490] sm:$0xff]  ;;  %v77_v27 = vld [vmem:[%s4187_s1 + $0x178] sm:$0xff]  ;;  %v3115_v62 = vld.sshfl [vmem:[#allocation1 + $0x28] sm:$0xff pattern:$0x73625140] }
 0x120   :  { %1088 = vmatpush.msrb.mxu2 %v320_v63  ;;  %1107 = vmatpush.msrb.mxu3 %v388_v0  ;;  %v240_v15 = vld [vmem:[%s4187_s1 + $0x690] sm:$0xff] }
 0x121   :  { %1049 = vmatpush.msrb.mxu0 %v188_v1  ;;  %1069 = vmatpush.msrb.mxu1 %v252_v2  ;;  %v304_v16 = vld [vmem:[%s4187_s1 + $0x890] sm:$0xff]  ;;  %v73_v2 = vld [vmem:[%s4187_s1 + $0x158] sm:$0xff] }
 0x122   :  { %1089 = vmatpush.msrb.mxu2 %v316_v3  ;;  %1108 = vmatpush.msrb.mxu3 %v384_v4  ;;  %v372_v17 = vld [vmem:[%s4187_s1 + $0xab0] sm:$0xff] }
 0x123   :  { %1050 = vmatpush.msrb.mxu0 %v184_v5  ;;  %1070 = vmatpush.msrb.mxu1 %v248_v6  ;;  %v172_v18 = vld [vmem:[%s4187_s1 + $0x470] sm:$0xff]  ;;  %v69_v6 = vld [vmem:[%s4187_s1 + $0x138] sm:$0xff] }
 0x124   :  { %1090 = vmatpush.msrb.mxu2 %v312_v7  ;;  %1109 = vmatpush.msrb.mxu3 %v380_v8  ;;  %v236_v19 = vld [vmem:[%s4187_s1 + $0x670] sm:$0xff] }
 0x125   :  { %1051 = vmatpush.msrb.mxu0 %v180_v9  ;;  %1071 = vmatpush.msrb.mxu1 %v244_v10  ;;  %v300_v20 = vld [vmem:[%s4187_s1 + $0x870] sm:$0xff]  ;;  %v65_v10 = vld [vmem:[%s4187_s1 + $0x118] sm:$0xff] }
 0x126   :  { %1091 = vmatpush.msrb.mxu2 %v308_v11  ;;  %1110 = vmatpush.msrb.mxu3 %v376_v12  ;;  %v368_v21 = vld [vmem:[%s4187_s1 + $0xa90] sm:$0xff] }
 0x127   :  { %1052 = vmatpush.msrb.mxu0 %v176_v13  ;;  %1072 = vmatpush.msrb.mxu1 %v240_v15  ;;  %v168_v23 = vld [vmem:[%s4187_s1 + $0x450] sm:$0xff]  ;;  %v61_v15 = vld [vmem:[%s4187_s1 + $0xf8] sm:$0xff] }
 0x128   :  { %1092 = vmatpush.msrb.mxu2 %v304_v16  ;;  %1111 = vmatpush.msrb.mxu3 %v372_v17  ;;  %v232_v24 = vld [vmem:[%s4187_s1 + $0x650] sm:$0xff] }
 0x129   :  { %1053 = vmatpush.msrb.mxu0 %v172_v18  ;;  %1073 = vmatpush.msrb.mxu1 %v236_v19  ;;  %v296_v25 = vld [vmem:[%s4187_s1 + $0x850] sm:$0xff]  ;;  %v57_v19 = vld [vmem:[%s4187_s1 + $0xd8] sm:$0xff] }
 0x12a   :  { %v364_v26 = vld [vmem:[%s4187_s1 + $0xa70] sm:$0xff]  ;;  %1093 = vmatpush.msrb.mxu2 %v300_v20  ;;  %1112 = vmatpush.msrb.mxu3 %v368_v21 }
 0x12b   :  { %v164_v29 = vld [vmem:[%s4187_s1 + $0x430] sm:$0xff]  ;;  %1054 = vmatpush.msrb.mxu0 %v168_v23  ;;  %1074 = vmatpush.msrb.mxu1 %v232_v24  ;;  %v53_v24 = vld [vmem:[%s4187_s1 + $0xb8] sm:$0xff] }
 0x12c   :  { %v228_v30 = vld [vmem:[%s4187_s1 + $0x630] sm:$0xff]  ;;  %1094 = vmatpush.msrb.mxu2 %v296_v25  ;;  %1113 = vmatpush.msrb.mxu3 %v364_v26 }
 0x12d   :  { %v292_v31 = vld [vmem:[%s4187_s1 + $0x830] sm:$0xff]  ;;  %1055 = vmatpush.msrb.mxu0 %v164_v29  ;;  %1075 = vmatpush.msrb.mxu1 %v228_v30  ;;  %v49_v30 = vld [vmem:[%s4187_s1 + $0x98] sm:$0xff] }
 0x12e   :  { %v360_v32 = vld [vmem:[%s4187_s1 + $0xa50] sm:$0xff]  ;;  %1095 = vmatpush.msrb.mxu2 %v292_v31  ;;  %1037 = vmatmul.f32.vlgmr.msra.gmra.mxu3 %v2175_v47 }
 0x12f   :  { %v160_v34 = vld [vmem:[%s4187_s1 + $0x410] sm:$0xff]  ;;  %1114 = vmatpush.msrb.mxu3 %v360_v32  ;;  %1017 = vmatmul.f32.vlgmr.msra.gmra.mxu2 %v2173_v46 }
 0x130   :  { %v224_v35 = vld [vmem:[%s4187_s1 + $0x610] sm:$0xff]  ;;  %1056 = vmatpush.msrb.mxu0 %v160_v34 }
 0x131   :  { %v288_v36 = vld [vmem:[%s4187_s1 + $0x810] sm:$0xff]  ;;  %1076 = vmatpush.msrb.mxu1 %v224_v35  ;;  %1057 = vmatmul.f32.vlgmr.msrb.gmra.mxu0 %v2177_v48  ;;  %v45_v35 = vld [vmem:[%s4187_s1 + $0x78] sm:$0xff] }
 0x132   :  { %v356_v37 = vld [vmem:[%s4187_s1 + $0xa30] sm:$0xff]  ;;  %1096 = vmatpush.msrb.mxu2 %v288_v36  ;;  %1077 = vmatmul.f32.vlgmr.msrb.gmra.mxu1 %v2179_v49 }
 0x133   :  { %v476_v38 = vld [vmem:[%s4187_s1 + $0xdf0] sm:$0xff]  ;;  %1115 = vmatpush.msrb.mxu3 %v356_v37 }
 0x134   :  { %v540_v39 = vld [vmem:[%s4187_s1 + $0xff0] sm:$0xff]  ;;  %1121 = vmatpush.msra.mxu0 %v476_v38 }
 0x135   :  { %v604_v40 = vld [vmem:[%s4187_s1 + $0x11f0] sm:$0xff]  ;;  %1141 = vmatpush.msra.mxu1 %v540_v39  ;;  %v41_v39 = vld [vmem:[%s4187_s1 + $0x58] sm:$0xff] }
 0x136   :  { %v352_v41 = vld [vmem:[%s4187_s1 + $0xa10] sm:$0xff]  ;;  %1161 = vmatpush.msra.mxu2 %v604_v40 }
 0x137   :  { %v472_v28 = vld [vmem:[%s4187_s1 + $0xdd0] sm:$0xff]  ;;  %1116 = vmatpush.msrb.mxu3 %v352_v41  ;;  %1097 = vmatmul.f32.vlgmr.msrb.gmra.mxu2 %v3099_v22 }
 0x138   :  { %v536_v42 = vld [vmem:[%s4187_s1 + $0xfd0] sm:$0xff]  ;;  %1122 = vmatpush.msra.mxu0 %v472_v28  ;;  %1117 = vmatmul.f32.vlgmr.msrb.gmra.mxu3 %v3115_v62 }
 0x139   :  { %v600_v43 = vld [vmem:[%s4187_s1 + $0x11d0] sm:$0xff]  ;;  %1142 = vmatpush.msra.mxu1 %v536_v42  ;;  %1181 = vmatpush.msra.mxu3 %v93_v44  ;;  %v37_v42 = vld [vmem:[%s4187_s1 + $0x38] sm:$0xff] }
 0x13a   :  { %v468_v14 = vld [vmem:[%s4187_s1 + $0xdb0] sm:$0xff]  ;;  %1162 = vmatpush.msra.mxu2 %v600_v43  ;;  %v157_v43 = vld [vmem:[%s4187_s1 + $0x3f8] sm:$0xff] }
 0x13b   :  { %v532_v45 = vld [vmem:[%s4187_s1 + $0xfb0] sm:$0xff]  ;;  %1123 = vmatpush.msra.mxu0 %v468_v14  ;;  %1182 = vmatpush.msra.mxu3 %v89_v51  ;;  %v221_v44 = vld [vmem:[%s4187_s1 + $0x5f8] sm:$0xff]  ;;  %v3254_v51 = vld.sshfl [vmem:[#allocation1] sm:$0xff pattern:$0x73625140] }
 0x13c   :  { %v596_v50 = vld [vmem:[%s4187_s1 + $0x11b0] sm:$0xff]  ;;  %1143 = vmatpush.msra.mxu1 %v532_v45  ;;  %v285_v14 = vld [vmem:[%s4187_s1 + $0x7f8] sm:$0xff] }
 0x13d   :  { %v464_v52 = vld [vmem:[%s4187_s1 + $0xd90] sm:$0xff]  ;;  %1163 = vmatpush.msra.mxu2 %v596_v50  ;;  %1183 = vmatpush.msra.mxu3 %v85_v33  ;;  %v33_v45 = vld [vmem:[%s4187_s1 + $0x18] sm:$0xff] }
 0x13e   :  { %v528_v53 = vld [vmem:[%s4187_s1 + $0xf90] sm:$0xff]  ;;  %1124 = vmatpush.msra.mxu0 %v464_v52  ;;  %v153_v52 = vld [vmem:[%s4187_s1 + $0x3d8] sm:$0xff] }
 0x13f   :  { %v592_v54 = vld [vmem:[%s4187_s1 + $0x1190] sm:$0xff]  ;;  %1144 = vmatpush.msra.mxu1 %v528_v53  ;;  %1184 = vmatpush.msra.mxu3 %v81_v58  ;;  %v217_v53 = vld [vmem:[%s4187_s1 + $0x5d8] sm:$0xff] }
 0x140   :  { %v460_v55 = vld [vmem:[%s4187_s1 + $0xd70] sm:$0xff]  ;;  %1164 = vmatpush.msra.mxu2 %v592_v54  ;;  %v281_v54 = vld [vmem:[%s4187_s1 + $0x7d8] sm:$0xff] }
 0x141   :  { %v524_v56 = vld [vmem:[%s4187_s1 + $0xf70] sm:$0xff]  ;;  %1125 = vmatpush.msra.mxu0 %v460_v55  ;;  %1185 = vmatpush.msra.mxu3 %v77_v27  ;;  %v349_v33 = vld [vmem:[%s4187_s1 + $0x9f8] sm:$0xff] }
 0x142   :  { %v588_v57 = vld [vmem:[%s4187_s1 + $0x1170] sm:$0xff]  ;;  %1145 = vmatpush.msra.mxu1 %v524_v56  ;;  %v149_v55 = vld [vmem:[%s4187_s1 + $0x3b8] sm:$0xff] }
 0x143   :  { %v456_v59 = vld [vmem:[%s4187_s1 + $0xd50] sm:$0xff]  ;;  %1165 = vmatpush.msra.mxu2 %v588_v57  ;;  %1186 = vmatpush.msra.mxu3 %v73_v2  ;;  %v3272_v56 = vld.sshfl [vmem:[#allocation1 + $0x38] sm:$0xff pattern:$0x73625140] }
 0x144   :  { %v520_v60 = vld [vmem:[%s4187_s1 + $0xf50] sm:$0xff]  ;;  %1126 = vmatpush.msra.mxu0 %v456_v59  ;;  %v213_v57 = vld [vmem:[%s4187_s1 + $0x5b8] sm:$0xff] }
 0x145   :  { %v584_v61 = vld [vmem:[%s4187_s1 + $0x1150] sm:$0xff]  ;;  %1146 = vmatpush.msra.mxu1 %v520_v60  ;;  %1187 = vmatpush.msra.mxu3 %v69_v6  ;;  %v277_v58 = vld [vmem:[%s4187_s1 + $0x7b8] sm:$0xff] }
 0x146   :  { %v452_v63 = vld [vmem:[%s4187_s1 + $0xd30] sm:$0xff]  ;;  %1166 = vmatpush.msra.mxu2 %v584_v61  ;;  %v345_v59 = vld [vmem:[%s4187_s1 + $0x9d8] sm:$0xff] }
 0x147   :  { %v516_v0 = vld [vmem:[%s4187_s1 + $0xf30] sm:$0xff]  ;;  %1127 = vmatpush.msra.mxu0 %v452_v63  ;;  %1188 = vmatpush.msra.mxu3 %v65_v10  ;;  %v145_v60 = vld [vmem:[%s4187_s1 + $0x398] sm:$0xff] }
 0x148   :  { %v580_v1 = vld [vmem:[%s4187_s1 + $0x1130] sm:$0xff]  ;;  %1147 = vmatpush.msra.mxu1 %v516_v0  ;;  %v209_v61 = vld [vmem:[%s4187_s1 + $0x598] sm:$0xff] }
 0x149   :  { %v448_v3 = vld [vmem:[%s4187_s1 + $0xd10] sm:$0xff]  ;;  %1167 = vmatpush.msra.mxu2 %v580_v1  ;;  %1189 = vmatpush.msra.mxu3 %v61_v15  ;;  %v273_v27 = vld [vmem:[%s4187_s1 + $0x798] sm:$0xff] }
 0x14a   :  { %v512_v4 = vld [vmem:[%s4187_s1 + $0xf10] sm:$0xff]  ;;  %1128 = vmatpush.msra.mxu0 %v448_v3  ;;  %v341_v63 = vld [vmem:[%s4187_s1 + $0x9b8] sm:$0xff] }
 0x14b   :  { %v576_v5 = vld [vmem:[%s4187_s1 + $0x1110] sm:$0xff]  ;;  %1148 = vmatpush.msra.mxu1 %v512_v4  ;;  %1190 = vmatpush.msra.mxu3 %v57_v19  ;;  %v141_v0 = vld [vmem:[%s4187_s1 + $0x378] sm:$0xff] }
 0x14c   :  { %v444_v7 = vld [vmem:[%s4187_s1 + $0xcf0] sm:$0xff]  ;;  %1168 = vmatpush.msra.mxu2 %v576_v5  ;;  %v205_v1 = vld [vmem:[%s4187_s1 + $0x578] sm:$0xff] }
 0x14d   :  { %v508_v8 = vld [vmem:[%s4187_s1 + $0xef0] sm:$0xff]  ;;  %1129 = vmatpush.msra.mxu0 %v444_v7  ;;  %1191 = vmatpush.msra.mxu3 %v53_v24  ;;  %v269_v2 = vld [vmem:[%s4187_s1 + $0x778] sm:$0xff] }
 0x14e   :  { %v572_v9 = vld [vmem:[%s4187_s1 + $0x10f0] sm:$0xff]  ;;  %1149 = vmatpush.msra.mxu1 %v508_v8  ;;  %v337_v3 = vld [vmem:[%s4187_s1 + $0x998] sm:$0xff] }
 0x14f   :  { %v440_v11 = vld [vmem:[%s4187_s1 + $0xcd0] sm:$0xff]  ;;  %1169 = vmatpush.msra.mxu2 %v572_v9  ;;  %1192 = vmatpush.msra.mxu3 %v49_v30  ;;  %v137_v4 = vld [vmem:[%s4187_s1 + $0x358] sm:$0xff] }
 0x150   :  { %v504_v12 = vld [vmem:[%s4187_s1 + $0xed0] sm:$0xff]  ;;  %1130 = vmatpush.msra.mxu0 %v440_v11  ;;  %v201_v5 = vld [vmem:[%s4187_s1 + $0x558] sm:$0xff] }
 0x151   :  { %v568_v13 = vld [vmem:[%s4187_s1 + $0x10d0] sm:$0xff]  ;;  %1150 = vmatpush.msra.mxu1 %v504_v12  ;;  %1193 = vmatpush.msra.mxu3 %v45_v35  ;;  %v265_v6 = vld [vmem:[%s4187_s1 + $0x758] sm:$0xff] }
 0x152   :  { %v436_v16 = vld [vmem:[%s4187_s1 + $0xcb0] sm:$0xff]  ;;  %1170 = vmatpush.msra.mxu2 %v568_v13  ;;  %v333_v7 = vld [vmem:[%s4187_s1 + $0x978] sm:$0xff] }
 0x153   :  { %v500_v17 = vld [vmem:[%s4187_s1 + $0xeb0] sm:$0xff]  ;;  %1131 = vmatpush.msra.mxu0 %v436_v16  ;;  %1194 = vmatpush.msra.mxu3 %v41_v39  ;;  %v133_v8 = vld [vmem:[%s4187_s1 + $0x338] sm:$0xff] }
 0x154   :  { %v564_v18 = vld [vmem:[%s4187_s1 + $0x10b0] sm:$0xff]  ;;  %1151 = vmatpush.msra.mxu1 %v500_v17  ;;  %v197_v9 = vld [vmem:[%s4187_s1 + $0x538] sm:$0xff] }
 0x155   :  { %v432_v20 = vld [vmem:[%s4187_s1 + $0xc90] sm:$0xff]  ;;  %1171 = vmatpush.msra.mxu2 %v564_v18  ;;  %1195 = vmatpush.msra.mxu3 %v37_v42  ;;  %v261_v10 = vld [vmem:[%s4187_s1 + $0x738] sm:$0xff] }
 0x156   :  { %v496_v21 = vld [vmem:[%s4187_s1 + $0xe90] sm:$0xff]  ;;  %1132 = vmatpush.msra.mxu0 %v432_v20  ;;  %v329_v11 = vld [vmem:[%s4187_s1 + $0x958] sm:$0xff] }
 0x157   :  { %v560_v23 = vld [vmem:[%s4187_s1 + $0x1090] sm:$0xff]  ;;  %1152 = vmatpush.msra.mxu1 %v496_v21  ;;  %1196 = vmatpush.msra.mxu3 %v33_v45  ;;  %v129_v12 = vld [vmem:[%s4187_s1 + $0x318] sm:$0xff] }
 0x158   :  { %v428_v25 = vld [vmem:[%s4187_s1 + $0xc70] sm:$0xff]  ;;  %1172 = vmatpush.msra.mxu2 %v560_v23  ;;  %v193_v13 = vld [vmem:[%s4187_s1 + $0x518] sm:$0xff]  ;;  %1197 = vmatmul.f32.vlgmr.msra.gmra.mxu3 %v2173_v46 }
 0x159   :  { %v492_v26 = vld [vmem:[%s4187_s1 + $0xe70] sm:$0xff]  ;;  %1133 = vmatpush.msra.mxu0 %v428_v25  ;;  %1261 = vmatpush.msrb.mxu3 %v349_v33  ;;  %v257_v15 = vld [vmem:[%s4187_s1 + $0x718] sm:$0xff] }
 0x15a   :  { %v556_v29 = vld [vmem:[%s4187_s1 + $0x1070] sm:$0xff]  ;;  %1153 = vmatpush.msra.mxu1 %v492_v26  ;;  %v325_v16 = vld [vmem:[%s4187_s1 + $0x938] sm:$0xff] }
 0x15b   :  { %v424_v31 = vld [vmem:[%s4187_s1 + $0xc50] sm:$0xff]  ;;  %1173 = vmatpush.msra.mxu2 %v556_v29  ;;  %1262 = vmatpush.msrb.mxu3 %v345_v59  ;;  %v125_v17 = vld [vmem:[%s4187_s1 + $0x2f8] sm:$0xff] }
 0x15c   :  { %v488_v32 = vld [vmem:[%s4187_s1 + $0xe50] sm:$0xff]  ;;  %1134 = vmatpush.msra.mxu0 %v424_v31  ;;  %v189_v18 = vld [vmem:[%s4187_s1 + $0x4f8] sm:$0xff] }
 0x15d   :  { %v552_v34 = vld [vmem:[%s4187_s1 + $0x1050] sm:$0xff]  ;;  %1154 = vmatpush.msra.mxu1 %v488_v32  ;;  %1263 = vmatpush.msrb.mxu3 %v341_v63  ;;  %v253_v19 = vld [vmem:[%s4187_s1 + $0x6f8] sm:$0xff] }
 0x15e   :  { %v420_v36 = vld [vmem:[%s4187_s1 + $0xc30] sm:$0xff]  ;;  %1174 = vmatpush.msra.mxu2 %v552_v34  ;;  %v321_v20 = vld [vmem:[%s4187_s1 + $0x918] sm:$0xff] }
 0x15f   :  { %v484_v37 = vld [vmem:[%s4187_s1 + $0xe30] sm:$0xff]  ;;  %1135 = vmatpush.msra.mxu0 %v420_v36  ;;  %1264 = vmatpush.msrb.mxu3 %v337_v3  ;;  %v121_v21 = vld [vmem:[%s4187_s1 + $0x2d8] sm:$0xff] }
 0x160   :  { %v548_v38 = vld [vmem:[%s4187_s1 + $0x1030] sm:$0xff]  ;;  %1155 = vmatpush.msra.mxu1 %v484_v37  ;;  %v185_v23 = vld [vmem:[%s4187_s1 + $0x4d8] sm:$0xff] }
 0x161   :  { %v416_v40 = vld [vmem:[%s4187_s1 + $0xc10] sm:$0xff]  ;;  %1175 = vmatpush.msra.mxu2 %v548_v38  ;;  %1265 = vmatpush.msrb.mxu3 %v333_v7  ;;  %v249_v24 = vld [vmem:[%s4187_s1 + $0x6d8] sm:$0xff] }
 0x162   :  { %v480_v41 = vld [vmem:[%s4187_s1 + $0xe10] sm:$0xff]  ;;  %1136 = vmatpush.msra.mxu0 %v416_v40  ;;  %v317_v25 = vld [vmem:[%s4187_s1 + $0x8f8] sm:$0xff] }
 0x163   :  { %v544_v28 = vld [vmem:[%s4187_s1 + $0x1010] sm:$0xff]  ;;  %1156 = vmatpush.msra.mxu1 %v480_v41  ;;  %1266 = vmatpush.msrb.mxu3 %v329_v11  ;;  %v117_v26 = vld [vmem:[%s4187_s1 + $0x2b8] sm:$0xff] }
 0x164   :  { %1176 = vmatpush.msra.mxu2 %v544_v28  ;;  %v3251_v50 = vld.sshfl [vmem:[#allocation1 + $0x30] sm:$0xff pattern:$0x73625140]  ;;  %1201 = vmatpush.msrb.mxu0 %v157_v43  ;;  %v181_v29 = vld [vmem:[%s4187_s1 + $0x4b8] sm:$0xff] }
 0x165   :  { %1137 = vmatmul.f32.vlgmr.msra.gmra.mxu0 %v3251_v50  ;;  %1177 = vmatmul.f32.vlgmr.msra.gmra.mxu2 %v3254_v51  ;;  %v245_v30 = vld [vmem:[%s4187_s1 + $0x6b8] sm:$0xff] }
 0x166   :  { %1221 = vmatpush.msrb.mxu1 %v221_v44  ;;  %1241 = vmatpush.msrb.mxu2 %v285_v14  ;;  %v313_v31 = vld [vmem:[%s4187_s1 + $0x8d8] sm:$0xff] }
 0x167   :  { %1157 = vmatmul.f32.vlgmr.msra.gmra.mxu1 %v3272_v56  ;;  %1202 = vmatpush.msrb.mxu0 %v153_v52  ;;  %v113_v32 = vld [vmem:[%s4187_s1 + $0x298] sm:$0xff] }
 0x168   :  { %1222 = vmatpush.msrb.mxu1 %v217_v53  ;;  %1242 = vmatpush.msrb.mxu2 %v281_v54  ;;  %v177_v34 = vld [vmem:[%s4187_s1 + $0x498] sm:$0xff] }
 0x169   :  { %1203 = vmatpush.msrb.mxu0 %v149_v55  ;;  %1267 = vmatpush.msrb.mxu3 %v325_v16  ;;  %v241_v35 = vld [vmem:[%s4187_s1 + $0x698] sm:$0xff]  ;;  %v3511_v16 = vpop.f32.mrf.mxu1 }
 0x16a   :  { %1223 = vmatpush.msrb.mxu1 %v213_v57  ;;  %1243 = vmatpush.msrb.mxu2 %v277_v58  ;;  %v309_v36 = vld [vmem:[%s4187_s1 + $0x8b8] sm:$0xff] }
 0x16b   :  { %1204 = vmatpush.msrb.mxu0 %v145_v60  ;;  %1268 = vmatpush.msrb.mxu3 %v321_v20  ;;  %v109_v37 = vld [vmem:[%s4187_s1 + $0x278] sm:$0xff] }
 0x16c   :  { %1224 = vmatpush.msrb.mxu1 %v209_v61  ;;  %1244 = vmatpush.msrb.mxu2 %v273_v27  ;;  %v173_v38 = vld [vmem:[%s4187_s1 + $0x478] sm:$0xff] }
 0x16d   :  { %1205 = vmatpush.msrb.mxu0 %v141_v0  ;;  %1269 = vmatpush.msrb.mxu3 %v317_v25  ;;  %v237_v39 = vld [vmem:[%s4187_s1 + $0x678] sm:$0xff] }
 0x16e   :  { %1225 = vmatpush.msrb.mxu1 %v205_v1  ;;  %1245 = vmatpush.msrb.mxu2 %v269_v2  ;;  %v305_v40 = vld [vmem:[%s4187_s1 + $0x898] sm:$0xff] }
 0x16f   :  { %1206 = vmatpush.msrb.mxu0 %v137_v4  ;;  %1270 = vmatpush.msrb.mxu3 %v313_v31  ;;  %v105_v41 = vld [vmem:[%s4187_s1 + $0x258] sm:$0xff] }
 0x170   :  { %1226 = vmatpush.msrb.mxu1 %v201_v5  ;;  %1246 = vmatpush.msrb.mxu2 %v265_v6  ;;  %v169_v28 = vld [vmem:[%s4187_s1 + $0x458] sm:$0xff] }
 0x171   :  { %1207 = vmatpush.msrb.mxu0 %v133_v8  ;;  %1271 = vmatpush.msrb.mxu3 %v309_v36  ;;  %v233_v42 = vld [vmem:[%s4187_s1 + $0x658] sm:$0xff] }
 0x172   :  { %1227 = vmatpush.msrb.mxu1 %v197_v9  ;;  %1247 = vmatpush.msrb.mxu2 %v261_v10  ;;  %v301_v43 = vld [vmem:[%s4187_s1 + $0x878] sm:$0xff] }
 0x173   :  { %1208 = vmatpush.msrb.mxu0 %v129_v12  ;;  %v101_v44 = vld [vmem:[%s4187_s1 + $0x238] sm:$0xff]  ;;  %1272 = vmatpush.msrb.mxu3 %v305_v40 }
 0x174   :  { %1228 = vmatpush.msrb.mxu1 %v193_v13  ;;  %1248 = vmatpush.msrb.mxu2 %v257_v15  ;;  %v165_v14 = vld [vmem:[%s4187_s1 + $0x438] sm:$0xff] }
 0x175   :  { %1209 = vmatpush.msrb.mxu0 %v125_v17  ;;  %v229_v45 = vld [vmem:[%s4187_s1 + $0x638] sm:$0xff]  ;;  %1273 = vmatpush.msrb.mxu3 %v301_v43 }
 0x176   :  { %1229 = vmatpush.msrb.mxu1 %v189_v18  ;;  %1249 = vmatpush.msrb.mxu2 %v253_v19  ;;  %v297_v52 = vld [vmem:[%s4187_s1 + $0x858] sm:$0xff] }
 0x177   :  { %1210 = vmatpush.msrb.mxu0 %v121_v21  ;;  %v97_v53 = vld [vmem:[%s4187_s1 + $0x218] sm:$0xff]  ;;  %1274 = vmatpush.msrb.mxu3 %v297_v52  ;;  %v3537_v21 = vpop.f32.mrf.mxu0 }
 0x178   :  { %1230 = vmatpush.msrb.mxu1 %v185_v23  ;;  %1250 = vmatpush.msrb.mxu2 %v249_v24  ;;  %v161_v54 = vld [vmem:[%s4187_s1 + $0x418] sm:$0xff]  ;;  %v3539_v23 = vpop.f32.mrf.mxu2 }
 0x179   :  { %1211 = vmatpush.msrb.mxu0 %v117_v26  ;;  %v225_v33 = vld [vmem:[%s4187_s1 + $0x618] sm:$0xff] }
 0x17a   :  { %1231 = vmatpush.msrb.mxu1 %v181_v29  ;;  %1251 = vmatpush.msrb.mxu2 %v245_v30  ;;  %v293_v55 = vld [vmem:[%s4187_s1 + $0x838] sm:$0xff] }
 0x17b   :  { %1212 = vmatpush.msrb.mxu0 %v113_v32  ;;  %v413_v57 = vld [vmem:[%s4187_s1 + $0xbf8] sm:$0xff]  ;;  %1275 = vmatpush.msrb.mxu3 %v293_v55 }
 0x17c   :  { %1232 = vmatpush.msrb.mxu1 %v177_v34  ;;  %1252 = vmatpush.msrb.mxu2 %v241_v35  ;;  %v477_v58 = vld [vmem:[%s4187_s1 + $0xdf8] sm:$0xff]  ;;  %v3565_v34 = vpop.f32.mrf.mxu3 }
 0x17d   :  { %1213 = vmatpush.msrb.mxu0 %v109_v37  ;;  %v541_v59 = vld [vmem:[%s4187_s1 + $0xff8] sm:$0xff] }
 0x17e   :  { %1233 = vmatpush.msrb.mxu1 %v173_v38  ;;  %1253 = vmatpush.msrb.mxu2 %v237_v39  ;;  %v289_v60 = vld [vmem:[%s4187_s1 + $0x818] sm:$0xff]  ;;  %v3579_v39 = vpop.f32.mrf.mxu1 }
 0x17f   :  { %1214 = vmatpush.msrb.mxu0 %v105_v41  ;;  %v409_v61 = vld [vmem:[%s4187_s1 + $0xbd8] sm:$0xff]  ;;  %1276 = vmatpush.msrb.mxu3 %v289_v60 }
 0x180   :  { %1234 = vmatpush.msrb.mxu1 %v169_v28  ;;  %1254 = vmatpush.msrb.mxu2 %v233_v42  ;;  %v473_v27 = vld [vmem:[%s4187_s1 + $0xdd8] sm:$0xff] }
 0x181   :  { %1215 = vmatpush.msrb.mxu0 %v101_v44  ;;  %v537_v63 = vld [vmem:[%s4187_s1 + $0xfd8] sm:$0xff]  ;;  %1277 = vmatmul.f32.vlgmr.msrb.gmra.mxu3 %v3099_v22 }
 0x182   :  { %1235 = vmatpush.msrb.mxu1 %v165_v14  ;;  %1255 = vmatpush.msrb.mxu2 %v229_v45  ;;  %v605_v0 = vld [vmem:[%s4187_s1 + $0x11f8] sm:$0xff]  ;;  %v3602_v14 = vld [vmem:[%s4188_s2] sm:$0xf] }
 0x183   :  { %1216 = vmatpush.msrb.mxu0 %v97_v53  ;;  %v405_v1 = vld [vmem:[%s4187_s1 + $0xbb8] sm:$0xff]  ;;  %1341 = vmatpush.msra.mxu3 %v605_v0  ;;  %v3610_v53 = vpop.f32.mrf.mxu0 }
 0x184   :  { %1236 = vmatpush.msrb.mxu1 %v161_v54  ;;  %1256 = vmatpush.msrb.mxu2 %v225_v33  ;;  %v469_v2 = vld [vmem:[%s4187_s1 + $0xdb8] sm:$0xff]  ;;  %v3612_v54 = vpop.f32.mrf.mxu2 }
 0x185   :  { %1281 = vmatpush.msra.mxu0 %v413_v57  ;;  %v533_v3 = vld [vmem:[%s4187_s1 + $0xfb8] sm:$0xff]  ;;  %1257 = vmatmul.f32.vlgmr.msrb.gmra.mxu2 %v2179_v49 }
 0x186   :  { %1301 = vmatpush.msra.mxu1 %v477_v58  ;;  %1321 = vmatpush.msra.mxu2 %v541_v59  ;;  %v601_v4 = vld [vmem:[%s4187_s1 + $0x11d8] sm:$0xff]  ;;  %v608_v59 = vperm.slane %v3602_v14, 0 }
 0x187   :  { %1282 = vmatpush.msra.mxu0 %v409_v61  ;;  %v401_v5 = vld [vmem:[%s4187_s1 + $0xb98] sm:$0xff]  ;;  %1342 = vmatpush.msra.mxu3 %v601_v4 }
 0x188   :  { %1302 = vmatpush.msra.mxu1 %v473_v27  ;;  %1322 = vmatpush.msra.mxu2 %v537_v63  ;;  %v465_v6 = vld [vmem:[%s4187_s1 + $0xd98] sm:$0xff]  ;;  %v609_v27 = vperm.slane %v3602_v14, 1 }
 0x189   :  { %1283 = vmatpush.msra.mxu0 %v405_v1  ;;  %v529_v46 = vld [vmem:[%s4187_s1 + $0xf98] sm:$0xff]  ;;  %1237 = vmatmul.f32.vlgmr.msrb.gmra.mxu1 %v2177_v48  ;;  %v3640_v1 = vpop.f32.mrf.mxu3 }
 0x18a   :  { %1303 = vmatpush.msra.mxu1 %v469_v2  ;;  %v597_v7 = vld [vmem:[%s4187_s1 + $0x11b8] sm:$0xff]  ;;  %1323 = vmatpush.msra.mxu2 %v533_v3  ;;  %v838_v2 = vpop.f32.mrf.mxu1 }
 0x18b   :  { %v397_v8 = vld [vmem:[%s4187_s1 + $0xb78] sm:$0xff]  ;;  %1284 = vmatpush.msra.mxu0 %v401_v5  ;;  %1343 = vmatpush.msra.mxu3 %v597_v7 }
 0x18c   :  { %1304 = vmatpush.msra.mxu1 %v465_v6  ;;  %v461_v9 = vld [vmem:[%s4187_s1 + $0xd78] sm:$0xff]  ;;  %1324 = vmatpush.msra.mxu2 %v529_v46  ;;  %v659_v46 = vadd.f32 %v3537_v21, %v608_v59  ;;  %v1443_v59 = vld [vmem:[%s4189_s3 + $0x270] sm:$0xff] }
 0x18d   :  { %v525_v10 = vld [vmem:[%s4187_s1 + $0xf78] sm:$0xff]  ;;  %1285 = vmatpush.msra.mxu0 %v397_v8 }
 0x18e   :  { %v593_v11 = vld [vmem:[%s4187_s1 + $0x1198] sm:$0xff]  ;;  %1305 = vmatpush.msra.mxu1 %v461_v9  ;;  %1325 = vmatpush.msra.mxu2 %v525_v10  ;;  %v839_v9 = vadd.f32 %v838_v2, %v609_v27  ;;  %v3661_v10 = vpop.f32.mrf.mxu0  ;;  %v1441_v27 = vld [vmem:[%s4189_s3 + $0x260] sm:$0xff] }
 0x18f   :  { %v393_v12 = vld [vmem:[%s4187_s1 + $0xb58] sm:$0xff]  ;;  %1344 = vmatpush.msra.mxu3 %v593_v11  ;;  %1217 = vmatmul.f32.vlgmr.msrb.gmra.mxu0 %v2175_v47  ;;  %v858_v11 = vpop.f32.mrf.mxu2  ;;  %v1373_v2 = vld [vmem:[%s4189_s3 + $0x40] sm:$0xff] }
 0x190   :  { %v457_v13 = vld [vmem:[%s4187_s1 + $0xd58] sm:$0xff]  ;;  %1286 = vmatpush.msra.mxu0 %v393_v12  ;;  %v1395_v12 = vld [vmem:[%s4189_s3 + $0xf0] sm:$0xff] }
 0x191   :  { %v521_v15 = vld [vmem:[%s4187_s1 + $0xf58] sm:$0xff]  ;;  %1306 = vmatpush.msra.mxu1 %v457_v13  ;;  %v1427_v13 = vld [vmem:[%s4189_s3 + $0x1f0] sm:$0xff] }
 0x192   :  { %v589_v49 = vld [vmem:[%s4187_s1 + $0x1178] sm:$0xff]  ;;  %1326 = vmatpush.msra.mxu2 %v521_v15 }
 0x193   :  { %v389_v17 = vld [vmem:[%s4187_s1 + $0xb38] sm:$0xff]  ;;  %1345 = vmatpush.msra.mxu3 %v589_v49  ;;  %v679_v49 = vadd.f32 %v3511_v16, %v659_v46  ;;  %v878_v16 = vpop.f32.mrf.mxu3  ;;  %v1403_v46 = vld [vmem:[%s4189_s3 + $0x130] sm:$0xff] }
 0x194   :  { %v453_v18 = vld [vmem:[%s4187_s1 + $0xd38] sm:$0xff]  ;;  %1287 = vmatpush.msra.mxu0 %v389_v17  ;;  %v1393_v17 = vld [vmem:[%s4189_s3 + $0xe0] sm:$0xff] }
 0x195   :  { %v517_v47 = vld [vmem:[%s4187_s1 + $0xf38] sm:$0xff]  ;;  %1307 = vmatpush.msra.mxu1 %v453_v18  ;;  %v859_v18 = vadd.f32 %v858_v11, %v839_v9  ;;  %v1369_v11 = vld [vmem:[%s4189_s3 + $0x20] sm:$0xff] }
 0x196   :  { %v585_v19 = vld [vmem:[%s4187_s1 + $0x1158] sm:$0xff]  ;;  %1327 = vmatpush.msra.mxu2 %v517_v47  ;;  %v1425_v47 = vld [vmem:[%s4189_s3 + $0x1e0] sm:$0xff] }
 0x197   :  { %v385_v22 = vld [vmem:[%s4187_s1 + $0xb18] sm:$0xff]  ;;  %1346 = vmatpush.msra.mxu3 %v585_v19  ;;  %v1459_v19 = vld [vmem:[%s4189_s3 + $0x2f0] sm:$0xff]  ;;  %v879_v21 = vadd.f32 %v878_v16, %v859_v18  ;;  %v1433_v18 = vld [vmem:[%s4189_s3 + $0x220] sm:$0xff] }
 0x198   :  { %v449_v20 = vld [vmem:[%s4187_s1 + $0xd18] sm:$0xff]  ;;  %1288 = vmatpush.msra.mxu0 %v385_v22  ;;  %v1457_v22 = vld [vmem:[%s4189_s3 + $0x2e0] sm:$0xff] }
 0x199   :  { %v513_v24 = vld [vmem:[%s4187_s1 + $0xf18] sm:$0xff]  ;;  %1308 = vmatpush.msra.mxu1 %v449_v20  ;;  %v699_v20 = vadd.f32 %v3539_v23, %v679_v49  ;;  %v1387_v23 = vld [vmem:[%s4189_s3 + $0xb0] sm:$0xff] }
 0x19a   :  { %v581_v48 = vld [vmem:[%s4187_s1 + $0x1138] sm:$0xff]  ;;  %1328 = vmatpush.msra.mxu2 %v513_v24  ;;  %v1455_v24 = vld [vmem:[%s4189_s3 + $0x2d0] sm:$0xff] }
 0x19b   :  { %v381_v25 = vld [vmem:[%s4187_s1 + $0xaf8] sm:$0xff]  ;;  %1347 = vmatpush.msra.mxu3 %v581_v48  ;;  %v898_v48 = vpop.f32.mrf.mxu0 }
 0x19c   :  { %v445_v26 = vld [vmem:[%s4187_s1 + $0xcf8] sm:$0xff]  ;;  %1289 = vmatpush.msra.mxu0 %v381_v25  ;;  %v1419_v25 = vld [vmem:[%s4189_s3 + $0x1b0] sm:$0xff] }
 0x19d   :  { %v509_v29 = vld [vmem:[%s4187_s1 + $0xef8] sm:$0xff]  ;;  %1309 = vmatpush.msra.mxu1 %v445_v26  ;;  %v1453_v26 = vld [vmem:[%s4189_s3 + $0x2c0] sm:$0xff] }
 0x19e   :  { %v577_v30 = vld [vmem:[%s4187_s1 + $0x1118] sm:$0xff]  ;;  %1329 = vmatpush.msra.mxu2 %v509_v29  ;;  %v719_v29 = vadd.f32 %v3565_v34, %v699_v20  ;;  %v1383_v34 = vld [vmem:[%s4189_s3 + $0x90] sm:$0xff]  ;;  %v1394_v20 = vld [vmem:[%s4189_s3 + $0xe8] sm:$0xff] }
 0x19f   :  { %v377_v31 = vld [vmem:[%s4187_s1 + $0xad8] sm:$0xff]  ;;  %1348 = vmatpush.msra.mxu3 %v577_v30  ;;  %v1385_v30 = vld [vmem:[%s4189_s3 + $0xa0] sm:$0xff] }
 0x1a0   :  { %v441_v32 = vld [vmem:[%s4187_s1 + $0xcd8] sm:$0xff]  ;;  %1290 = vmatpush.msra.mxu0 %v377_v31  ;;  %v899_v31 = vadd.f32 %v898_v48, %v879_v21  ;;  %v1426_v21 = vld [vmem:[%s4189_s3 + $0x1e8] sm:$0xff] }
 0x1a1   :  { %v505_v35 = vld [vmem:[%s4187_s1 + $0xed8] sm:$0xff]  ;;  %1310 = vmatpush.msra.mxu1 %v441_v32  ;;  %v1417_v32 = vld [vmem:[%s4189_s3 + $0x1a0] sm:$0xff] }
 0x1a2   :  { %v573_v36 = vld [vmem:[%s4187_s1 + $0x10f8] sm:$0xff]  ;;  %1330 = vmatpush.msra.mxu2 %v505_v35  ;;  %v1451_v35 = vld [vmem:[%s4189_s3 + $0x2b0] sm:$0xff] }
 0x1a3   :  { %v373_v37 = vld [vmem:[%s4187_s1 + $0xab8] sm:$0xff]  ;;  %1349 = vmatpush.msra.mxu3 %v573_v36  ;;  %v918_v36 = vpop.f32.mrf.mxu1 }
 0x1a4   :  { %v437_v38 = vld [vmem:[%s4187_s1 + $0xcb8] sm:$0xff]  ;;  %1291 = vmatpush.msra.mxu0 %v373_v37  ;;  %v1415_v37 = vld [vmem:[%s4189_s3 + $0x190] sm:$0xff] }
 0x1a5   :  { %v501_v40 = vld [vmem:[%s4187_s1 + $0xeb8] sm:$0xff]  ;;  %1311 = vmatpush.msra.mxu1 %v437_v38  ;;  %v1449_v38 = vld [vmem:[%s4189_s3 + $0x2a0] sm:$0xff] }
 0x1a6   :  { %v569_v41 = vld [vmem:[%s4187_s1 + $0x10d8] sm:$0xff]  ;;  %1331 = vmatpush.msra.mxu2 %v501_v40  ;;  %v739_v40 = vadd.f32 %v3610_v53, %v719_v29  ;;  %v1445_v53 = vld [vmem:[%s4189_s3 + $0x280] sm:$0xff] }
 0x1a7   :  { %v369_v28 = vld [vmem:[%s4187_s1 + $0xa98] sm:$0xff]  ;;  %1350 = vmatpush.msra.mxu3 %v569_v41  ;;  %v1381_v41 = vld [vmem:[%s4189_s3 + $0x80] sm:$0xff] }
 0x1a8   :  { %v433_v42 = vld [vmem:[%s4187_s1 + $0xc98] sm:$0xff]  ;;  %1292 = vmatpush.msra.mxu0 %v369_v28  ;;  %v919_v28 = vadd.f32 %v918_v36, %v899_v31  ;;  %v1422_v31 = vld [vmem:[%s4189_s3 + $0x1c8] sm:$0xff] }
 0x1a9   :  { %v497_v43 = vld [vmem:[%s4187_s1 + $0xe98] sm:$0xff]  ;;  %1312 = vmatpush.msra.mxu1 %v433_v42  ;;  %v1413_v42 = vld [vmem:[%s4189_s3 + $0x180] sm:$0xff] }
 0x1aa   :  { %v565_v44 = vld [vmem:[%s4187_s1 + $0x10b8] sm:$0xff]  ;;  %1332 = vmatpush.msra.mxu2 %v497_v43  ;;  %v1447_v43 = vld [vmem:[%s4189_s3 + $0x290] sm:$0xff] }
 0x1ab   :  { %v365_v45 = vld [vmem:[%s4187_s1 + $0xa78] sm:$0xff]  ;;  %1351 = vmatpush.msra.mxu3 %v565_v44  ;;  %v938_v44 = vpop.f32.mrf.mxu2  ;;  %v998_v9 = vpop.f32.mrf.mxu1 }
 0x1ac   :  { %v429_v52 = vld [vmem:[%s4187_s1 + $0xc78] sm:$0xff]  ;;  %1293 = vmatpush.msra.mxu0 %v365_v45  ;;  %v1379_v45 = vld [vmem:[%s4189_s3 + $0x70] sm:$0xff] }
 0x1ad   :  { %v493_v33 = vld [vmem:[%s4187_s1 + $0xe78] sm:$0xff]  ;;  %1313 = vmatpush.msra.mxu1 %v429_v52  ;;  %v1411_v52 = vld [vmem:[%s4189_s3 + $0x170] sm:$0xff] }
 0x1ae   :  { %v561_v55 = vld [vmem:[%s4187_s1 + $0x1098] sm:$0xff]  ;;  %1333 = vmatpush.msra.mxu2 %v493_v33  ;;  %v759_v33 = vadd.f32 %v3579_v39, %v739_v40  ;;  %v1375_v39 = vld [vmem:[%s4189_s3 + $0x50] sm:$0xff]  ;;  %v1454_v40 = vld [vmem:[%s4189_s3 + $0x2c8] sm:$0xff] }
 0x1af   :  { %v361_v57 = vld [vmem:[%s4187_s1 + $0xa58] sm:$0xff]  ;;  %1352 = vmatpush.msra.mxu3 %v561_v55  ;;  %v1377_v55 = vld [vmem:[%s4189_s3 + $0x60] sm:$0xff] }
 0x1b0   :  { %v425_v58 = vld [vmem:[%s4187_s1 + $0xc58] sm:$0xff]  ;;  %1294 = vmatpush.msra.mxu0 %v361_v57  ;;  %v939_v57 = vadd.f32 %v938_v44, %v919_v28 }
 0x1b1   :  { %v489_v60 = vld [vmem:[%s4187_s1 + $0xe58] sm:$0xff]  ;;  %1314 = vmatpush.msra.mxu1 %v425_v58  ;;  %v1409_v58 = vld [vmem:[%s4189_s3 + $0x160] sm:$0xff] }
 0x1b2   :  { %v557_v61 = vld [vmem:[%s4187_s1 + $0x1078] sm:$0xff]  ;;  %1334 = vmatpush.msra.mxu2 %v489_v60  ;;  %v958_v60 = vpop.f32.mrf.mxu3 }
 0x1b3   :  { %v357_v63 = vld [vmem:[%s4187_s1 + $0xa38] sm:$0xff]  ;;  %1353 = vmatpush.msra.mxu3 %v557_v61  ;;  %v1407_v61 = vld [vmem:[%s4189_s3 + $0x150] sm:$0xff] }
 0x1b4   :  { %v421_v0 = vld [vmem:[%s4187_s1 + $0xc38] sm:$0xff]  ;;  %1295 = vmatpush.msra.mxu0 %v357_v63  ;;  %v779_v63 = vadd.f32 %v3612_v54, %v759_v33  ;;  %v1371_v54 = vld [vmem:[%s4189_s3 + $0x30] sm:$0xff] }
 0x1b5   :  { %v485_v3 = vld [vmem:[%s4187_s1 + $0xe38] sm:$0xff]  ;;  %1315 = vmatpush.msra.mxu1 %v421_v0  ;;  %v978_v0 = vpop.f32.mrf.mxu0  ;;  %v1491_v33 = vld [vmem:[%s4189_s3 + $0x3f0] sm:$0xff] }
 0x1b6   :  { %v553_v4 = vld [vmem:[%s4187_s1 + $0x1058] sm:$0xff]  ;;  %1335 = vmatpush.msra.mxu2 %v485_v3  ;;  %v959_v3 = vadd.f32 %v958_v60, %v939_v57  ;;  %v1414_v57 = vld [vmem:[%s4189_s3 + $0x188] sm:$0xff] }
 0x1b7   :  { %v353_v5 = vld [vmem:[%s4187_s1 + $0xa18] sm:$0xff]  ;;  %1354 = vmatpush.msra.mxu3 %v553_v4  ;;  %v1405_v4 = vld [vmem:[%s4189_s3 + $0x140] sm:$0xff] }
 0x1b8   :  { %v417_v6 = vld [vmem:[%s4187_s1 + $0xc18] sm:$0xff]  ;;  %1296 = vmatpush.msra.mxu0 %v353_v5  ;;  %v1439_v5 = vld [vmem:[%s4189_s3 + $0x250] sm:$0xff] }
 0x1b9   :  { %v481_v7 = vld [vmem:[%s4187_s1 + $0xe18] sm:$0xff]  ;;  %1316 = vmatpush.msra.mxu1 %v417_v6  ;;  %1297 = vmatmul.f32.vlgmr.msra.gmra.mxu0 %v3115_v62  ;;  %v1391_v62 = vld [vmem:[%s4189_s3 + $0xd0] sm:$0xff]  ;;  %v979_v6 = vadd.f32 %v978_v0, %v959_v3  ;;  %v1446_v0 = vld [vmem:[%s4189_s3 + $0x288] sm:$0xff] }
 0x1ba   :  { %v549_v8 = vld [vmem:[%s4187_s1 + $0x1038] sm:$0xff]  ;;  %1336 = vmatpush.msra.mxu2 %v481_v7  ;;  %1499 = vmatpush.msrb.mxu0 %v1395_v12  ;;  %v1437_v7 = vld [vmem:[%s4189_s3 + $0x240] sm:$0xff]  ;;  %v1410_v3 = vld [vmem:[%s4189_s3 + $0x168] sm:$0xff] }
 0x1bb   :  { %1355 = vmatpush.msra.mxu3 %v549_v8  ;;  %v545_v15 = vld [vmem:[%s4187_s1 + $0x1018] sm:$0xff]  ;;  %1337 = vmatmul.f32.vlgmr.msra.gmra.mxu2 %v3272_v56  ;;  %v1423_v56 = vld [vmem:[%s4189_s3 + $0x1d0] sm:$0xff]  ;;  %v799_v8 = vadd.f32 %v3640_v1, %v779_v63  ;;  %v1401_v12 = vld [vmem:[%s4189_s3 + $0x120] sm:$0xff]  ;;  %v3806_v49 = vadd.f32 %v998_v9, %v979_v6  ;;  %s1756_s1 = sshll.u32 %s4193_s7, 4  ;;  %s1757_s1 = int_to_ptr.hbm [resolvable:$true] %s1756_s1 }
 0x1bc   :  { %1519 = vmatpush.msrb.mxu1 %v1427_v13  ;;  %1500 = vmatpush.msrb.mxu0 %v1393_v17  ;;  %v1435_v13 = vld [vmem:[%s4189_s3 + $0x230] sm:$0xff]  ;;  %v1396_v16 = vld [vmem:[%s4189_s3 + $0xf8] sm:$0xff]  ;;  %v1378_v63 = vld [vmem:[%s4189_s3 + $0x68] sm:$0xff] }
 0x1bd   :  { %1356 = vmatpush.msra.mxu3 %v545_v15  ;;  %1317 = vmatmul.f32.vlgmr.msra.gmra.mxu1 %v3251_v50  ;;  %v1389_v50 = vld [vmem:[%s4189_s3 + $0xc0] sm:$0xff]  ;;  %v3801_v15 = vadd.f32 %v3661_v10, %v799_v8  ;;  %v1367_v1 = vld [vmem:[%s4189_s3 + $0x10] sm:$0xff]  ;;  %v1392_v48 = vld [vmem:[%s4189_s3 + $0xd8] sm:$0xff]  ;;  %v1058_v28 = vpop.f32.mrf.mxu0 }
 0x1be   :  { %1357 = vmatmul.f32.vlgmr.msra.gmra.mxu3 %v3254_v51  ;;  %1520 = vmatpush.msrb.mxu1 %v1425_v47  ;;  %v1421_v51 = vld [vmem:[%s4189_s3 + $0x1c0] sm:$0xff]  ;;  %v1399_v17 = vld [vmem:[%s4189_s3 + $0x110] sm:$0xff]  ;;  %v1456_v36 = vld [vmem:[%s4189_s3 + $0x2d8] sm:$0xff] }
 0x1bf   :  { %1539 = vmatpush.msrb.mxu2 %v1459_v19  ;;  %1501 = vmatpush.msrb.mxu0 %v1391_v62  ;;  %v1365_v10 = vld [vmem:[%s4189_s3] sm:$0xff]  ;;  %v1361_v19 = vmax.f32 %v3801_v15, 0.0  ;;  %v1362_v62 = vmax.f32 %v3806_v49, 0.0  ;;  %v1416_v44 = vld [vmem:[%s4189_s3 + $0x198] sm:$0xff]  ;;  %v1374_v8 = vld [vmem:[%s4189_s3 + $0x48] sm:$0xff] }
 0x1c0   :  { %1521 = vmatpush.msrb.mxu1 %v1423_v56  ;;  %v1397_v47 = vld [vmem:[%s4189_s3 + $0x100] sm:$0xff]  ;;  %v1428_v56 = vld [vmem:[%s4189_s3 + $0x1f8] sm:$0xff]  ;;  %1559 = vmatpush.msrb.mxu3 %v1491_v33  ;;  %v1442_v9 = vld [vmem:[%s4189_s3 + $0x268] sm:$0xff] }
 0x1c1   :  { %1540 = vmatpush.msrb.mxu2 %v1457_v22  ;;  %1502 = vmatpush.msrb.mxu0 %v1389_v50  ;;  %v1431_v22 = vld [vmem:[%s4189_s3 + $0x210] sm:$0xff]  ;;  %v610_v50 = vperm.slane %v3602_v14, 2  ;;  %v1448_v60 = vld [vmem:[%s4189_s3 + $0x298] sm:$0xff]  ;;  %v1478_v33 = vld [vmem:[%s4189_s3 + $0x388] sm:$0xff] }
 0x1c2   :  { %1522 = vmatpush.msrb.mxu1 %v1421_v51  ;;  %v1018_v51 = vpop.f32.mrf.mxu2  ;;  %v1408_v6 = vld [vmem:[%s4189_s3 + $0x158] sm:$0xff]  ;;  %v1471_v15 = vld [vmem:[%s4189_s3 + $0x350] sm:$0xff] }
 0x1c3   :  { %1541 = vmatpush.msrb.mxu2 %v1455_v24  ;;  %1503 = vmatpush.msrb.mxu0 %v1387_v23  ;;  %v1429_v24 = vld [vmem:[%s4189_s3 + $0x200] sm:$0xff]  ;;  %v1460_v23 = vld [vmem:[%s4189_s3 + $0x2f8] sm:$0xff]  ;;  %v1019_v29 = vadd.f32 %v1018_v51, %v610_v50  ;;  %v1467_v49 = vld [vmem:[%s4189_s3 + $0x330] sm:$0xff] }
 0x1c4   :  { %1523 = vmatpush.msrb.mxu1 %v1419_v25  ;;  %v1424_v25 = vld [vmem:[%s4189_s3 + $0x1d8] sm:$0xff]  ;;  %v1477_v50 = vld [vmem:[%s4189_s3 + $0x380] sm:$0xff] }
 0x1c5   :  { %1542 = vmatpush.msrb.mxu2 %v1453_v26  ;;  %1504 = vmatpush.msrb.mxu0 %v1385_v30  ;;  %v1390_v26 = vld [vmem:[%s4189_s3 + $0xc8] sm:$0xff] }
 0x1c6   :  { %1524 = vmatpush.msrb.mxu1 %v1417_v32  ;;  %v1458_v30 = vld [vmem:[%s4189_s3 + $0x2e8] sm:$0xff]  ;;  %v1038_v32 = vpop.f32.mrf.mxu3 }
 0x1c7   :  { %1543 = vmatpush.msrb.mxu2 %v1451_v35  ;;  %1505 = vmatpush.msrb.mxu0 %v1383_v34  ;;  %v1388_v35 = vld [vmem:[%s4189_s3 + $0xb8] sm:$0xff] }
 0x1c8   :  { %1525 = vmatpush.msrb.mxu1 %v1415_v37  ;;  %v1420_v34 = vld [vmem:[%s4189_s3 + $0x1b8] sm:$0xff]  ;;  %v1039_v37 = vadd.f32 %v1038_v32, %v1019_v29  ;;  %v1434_v29 = vld [vmem:[%s4189_s3 + $0x228] sm:$0xff] }
 0x1c9   :  { %1544 = vmatpush.msrb.mxu2 %v1449_v38  ;;  %1506 = vmatpush.msrb.mxu0 %v1381_v41  ;;  %v1386_v38 = vld [vmem:[%s4189_s3 + $0xa8] sm:$0xff]  ;;  %v1432_v32 = vld [vmem:[%s4189_s3 + $0x218] sm:$0xff] }
 0x1ca   :  { %1526 = vmatpush.msrb.mxu1 %v1413_v42  ;;  %v1418_v41 = vld [vmem:[%s4189_s3 + $0x1a8] sm:$0xff]  ;;  %v1384_v42 = vld [vmem:[%s4189_s3 + $0x98] sm:$0xff] }
 0x1cb   :  { %1545 = vmatpush.msrb.mxu2 %v1447_v43  ;;  %1507 = vmatpush.msrb.mxu0 %v1379_v45  ;;  %v1452_v43 = vld [vmem:[%s4189_s3 + $0x2b8] sm:$0xff]  ;;  %v1059_v45 = vadd.f32 %v1058_v28, %v1039_v37 }
 0x1cc   :  { %1527 = vmatpush.msrb.mxu1 %v1411_v52  ;;  %v1382_v52 = vld [vmem:[%s4189_s3 + $0x88] sm:$0xff]  ;;  %v1492_v28 = vld [vmem:[%s4189_s3 + $0x3f8] sm:$0xff] }
 0x1cd   :  { %1546 = vmatpush.msrb.mxu2 %v1445_v53  ;;  %1508 = vmatpush.msrb.mxu0 %v1377_v55  ;;  %v1450_v53 = vld [vmem:[%s4189_s3 + $0x2a8] sm:$0xff]  ;;  %v1078_v55 = vpop.f32.mrf.mxu1 }
 0x1ce   :  { %1528 = vmatpush.msrb.mxu1 %v1409_v58  ;;  %v1489_v58 = vld [vmem:[%s4189_s3 + $0x3e0] sm:$0xff] }
 0x1cf   :  { %1547 = vmatpush.msrb.mxu2 %v1443_v59  ;;  %1509 = vmatpush.msrb.mxu0 %v1375_v39  ;;  %v1380_v59 = vld [vmem:[%s4189_s3 + $0x78] sm:$0xff] }
 0x1d0   :  { %1529 = vmatpush.msrb.mxu1 %v1407_v61  ;;  %v1412_v39 = vld [vmem:[%s4189_s3 + $0x178] sm:$0xff]  ;;  %v1487_v61 = vld [vmem:[%s4189_s3 + $0x3d0] sm:$0xff]  ;;  %1560 = vmatpush.msrb.mxu3 %v1489_v58  ;;  %v611_v58 = vperm.slane %v3602_v14, 3  ;;  %v1466_v14 = vld [vmem:[%s4189_s3 + $0x328] sm:$0xff] }
 0x1d1   :  { %1548 = vmatpush.msrb.mxu2 %v1441_v27  ;;  %1510 = vmatpush.msrb.mxu0 %v1373_v2  ;;  %v1079_v27 = vadd.f32 %v1078_v55, %v1059_v45  ;;  %v1098_v2 = vpop.f32.mrf.mxu2  ;;  %v1484_v45 = vld [vmem:[%s4189_s3 + $0x3b8] sm:$0xff] }
 0x1d2   :  { %1530 = vmatpush.msrb.mxu1 %v1405_v4  ;;  %v1485_v4 = vld [vmem:[%s4189_s3 + $0x3c0] sm:$0xff]  ;;  %1561 = vmatpush.msrb.mxu3 %v1487_v61  ;;  %v1476_v55 = vld [vmem:[%s4189_s3 + $0x378] sm:$0xff] }
 0x1d3   :  { %1549 = vmatpush.msrb.mxu2 %v1439_v5  ;;  %1511 = vmatpush.msrb.mxu0 %v1371_v54  ;;  %v1376_v5 = vld [vmem:[%s4189_s3 + $0x58] sm:$0xff] }
 0x1d4   :  { %1531 = vmatpush.msrb.mxu1 %v1403_v46  ;;  %v1444_v54 = vld [vmem:[%s4189_s3 + $0x278] sm:$0xff]  ;;  %v1483_v46 = vld [vmem:[%s4189_s3 + $0x3b0] sm:$0xff]  ;;  %1562 = vmatpush.msrb.mxu3 %v1485_v4  ;;  %v1462_v4 = vld [vmem:[%s4189_s3 + $0x308] sm:$0xff] }
 0x1d5   :  { %1550 = vmatpush.msrb.mxu2 %v1437_v7  ;;  %1512 = vmatpush.msrb.mxu0 %v1369_v11  ;;  %v1099_v7 = vadd.f32 %v1098_v2, %v1079_v27  ;;  %v1118_v11 = vpop.f32.mrf.mxu3  ;;  %v1468_v61 = vld [vmem:[%s4189_s3 + $0x338] sm:$0xff] }
 0x1d6   :  { %1532 = vmatpush.msrb.mxu1 %v1401_v12  ;;  %v1406_v12 = vld [vmem:[%s4189_s3 + $0x148] sm:$0xff]  ;;  %1563 = vmatpush.msrb.mxu3 %v1483_v46 }
 0x1d7   :  { %1551 = vmatpush.msrb.mxu2 %v1435_v13  ;;  %1513 = vmatpush.msrb.mxu0 %v1367_v1  ;;  %v1481_v13 = vld [vmem:[%s4189_s3 + $0x3a0] sm:$0xff]  ;;  %v1372_v1 = vld [vmem:[%s4189_s3 + $0x38] sm:$0xff] }
 0x1d8   :  { %1533 = vmatpush.msrb.mxu1 %v1399_v17  ;;  %v1440_v17 = vld [vmem:[%s4189_s3 + $0x258] sm:$0xff]  ;;  %1564 = vmatpush.msrb.mxu3 %v1481_v13 }
 0x1d9   :  { %1552 = vmatpush.msrb.mxu2 %v1433_v18  ;;  %1514 = vmatpush.msrb.mxu0 %v1365_v10  ;;  %v1404_v18 = vld [vmem:[%s4189_s3 + $0x138] sm:$0xff]  ;;  %v1479_v10 = vld [vmem:[%s4189_s3 + $0x390] sm:$0xff] }
 0x1da   :  { %1534 = vmatpush.msrb.mxu1 %v1397_v47  ;;  %1515 = vmatmul.f32.vlgmr.msrb.gmra.mxu0 %v1361_v19  ;;  %v1119_v47 = vadd.f32 %v1118_v11, %v1099_v7 }
 0x1db   :  { %1535 = vmatmul.f32.vlgmr.msrb.gmra.mxu1 %v1362_v62  ;;  %1579 = vmatpush.msra.mxu0 %v1396_v16  ;;  %v1370_v16 = vld [vmem:[%s4189_s3 + $0x28] sm:$0xff] }
 0x1dc   :  { %1599 = vmatpush.msra.mxu1 %v1428_v56  ;;  %1553 = vmatpush.msrb.mxu2 %v1431_v22  ;;  %v1438_v56 = vld [vmem:[%s4189_s3 + $0x248] sm:$0xff] }
 0x1dd   :  { %1580 = vmatpush.msra.mxu0 %v1394_v20  ;;  %v1402_v22 = vld [vmem:[%s4189_s3 + $0x128] sm:$0xff]  ;;  %1565 = vmatpush.msrb.mxu3 %v1479_v10 }
 0x1de   :  { %1600 = vmatpush.msra.mxu1 %v1426_v21  ;;  %1554 = vmatpush.msrb.mxu2 %v1429_v24  ;;  %v1368_v21 = vld [vmem:[%s4189_s3 + $0x18] sm:$0xff] }
 0x1df   :  { %1581 = vmatpush.msra.mxu0 %v1392_v48  ;;  %v1436_v24 = vld [vmem:[%s4189_s3 + $0x238] sm:$0xff]  ;;  %1566 = vmatpush.msrb.mxu3 %v1477_v50  ;;  %v1688_v50 = vld [vmem:[%s4191_s5 + $0xe8] sm:$0xff] }
 0x1e0   :  { %1619 = vmatpush.msra.mxu2 %v1460_v23  ;;  %1601 = vmatpush.msra.mxu1 %v1424_v25  ;;  %v1400_v48 = vld [vmem:[%s4189_s3 + $0x118] sm:$0xff]  ;;  %v1475_v23 = vld [vmem:[%s4189_s3 + $0x370] sm:$0xff]  ;;  %v1366_v25 = vld [vmem:[%s4189_s3 + $0x8] sm:$0xff] }
 0x1e1   :  { %1582 = vmatpush.msra.mxu0 %v1390_v26  ;;  %1567 = vmatpush.msrb.mxu3 %v1475_v23  ;;  %v1669_v23 = vld [vmem:[%s4191_s5 + $0x50] sm:$0xff] }
 0x1e2   :  { %1620 = vmatpush.msra.mxu2 %v1458_v30  ;;  %1602 = vmatpush.msra.mxu1 %v1422_v31  ;;  %v1138_v20 = vpop.f32.mrf.mxu0  ;;  %v1398_v30 = vld [vmem:[%s4189_s3 + $0x108] sm:$0xff] }
 0x1e3   :  { %1583 = vmatpush.msra.mxu0 %v1388_v35  ;;  %v1139_v51 = vadd.f32 %v1138_v20, %v1119_v47  ;;  %v1674_v47 = vld [vmem:[%s4191_s5 + $0x78] sm:$0xff]  ;;  %v1689_v20 = vld [vmem:[%s4191_s5 + $0xf0] sm:$0xff] }
 0x1e4   :  { %1621 = vmatpush.msra.mxu2 %v1456_v36  ;;  %1603 = vmatpush.msra.mxu1 %v1420_v34  ;;  %v1158_v26 = vpop.f32.mrf.mxu1  ;;  %v1430_v34 = vld [vmem:[%s4189_s3 + $0x208] sm:$0xff] }
 0x1e5   :  { %1584 = vmatpush.msra.mxu0 %v1386_v38  ;;  %v1159_v31 = vadd.f32 %v1158_v26, %v1139_v51  ;;  %v1473_v38 = vld [vmem:[%s4189_s3 + $0x360] sm:$0xff]  ;;  %v1668_v26 = vld [vmem:[%s4191_s5 + $0x48] sm:$0xff] }
 0x1e6   :  { %1622 = vmatpush.msra.mxu2 %v1454_v40  ;;  %1604 = vmatpush.msra.mxu1 %v1418_v41  ;;  %v1463_v40 = vld [vmem:[%s4189_s3 + $0x310] sm:$0xff]  ;;  %v1461_v41 = vld [vmem:[%s4189_s3 + $0x300] sm:$0xff] }
 0x1e7   :  { %1585 = vmatpush.msra.mxu0 %v1384_v42  ;;  %1568 = vmatpush.msrb.mxu3 %v1473_v38  ;;  %v1490_v42 = vld [vmem:[%s4189_s3 + $0x3e8] sm:$0xff]  ;;  %v1687_v51 = vld [vmem:[%s4191_s5 + $0xe0] sm:$0xff] }
 0x1e8   :  { %1623 = vmatpush.msra.mxu2 %v1452_v43  ;;  %1605 = vmatpush.msra.mxu1 %v1416_v44  ;;  %v1178_v35 = vpop.f32.mrf.mxu2  ;;  %v1488_v43 = vld [vmem:[%s4189_s3 + $0x3d8] sm:$0xff]  ;;  %v1486_v44 = vld [vmem:[%s4189_s3 + $0x3c8] sm:$0xff]  ;;  %v1663_v38 = vld [vmem:[%s4191_s5 + $0x20] sm:$0xff] }
 0x1e9   :  { %1586 = vmatpush.msra.mxu0 %v1382_v52  ;;  %v1179_v36 = vadd.f32 %v1178_v35, %v1159_v31  ;;  %1569 = vmatpush.msrb.mxu3 %v1471_v15  ;;  %v1482_v52 = vld [vmem:[%s4189_s3 + $0x3a8] sm:$0xff]  ;;  %v1683_v31 = vld [vmem:[%s4191_s5 + $0xc0] sm:$0xff]  ;;  %v1682_v35 = vld [vmem:[%s4191_s5 + $0xb8] sm:$0xff] }
 0x1ea   :  { %1624 = vmatpush.msra.mxu2 %v1450_v53  ;;  %1606 = vmatpush.msra.mxu1 %v1414_v57  ;;  %v1480_v53 = vld [vmem:[%s4189_s3 + $0x398] sm:$0xff]  ;;  %v1474_v57 = vld [vmem:[%s4189_s3 + $0x368] sm:$0xff] }
 0x1eb   :  { %1587 = vmatpush.msra.mxu0 %v1380_v59  ;;  %v1363_v37 = vmax.f32 %v1179_v36, 0.0  ;;  %v1198_v59 = vpop.f32.mrf.mxu3  ;;  %v1665_v36 = vld [vmem:[%s4191_s5 + $0x30] sm:$0xff]  ;;  %v1662_v15 = vld [vmem:[%s4191_s5 + $0x18] sm:$0xff] }
 0x1ec   :  { %1625 = vmatpush.msra.mxu2 %v1448_v60  ;;  %1607 = vmatpush.msra.mxu1 %v1412_v39  ;;  %v1472_v60 = vld [vmem:[%s4189_s3 + $0x358] sm:$0xff]  ;;  %v1470_v39 = vld [vmem:[%s4189_s3 + $0x348] sm:$0xff]  ;;  %v1199_v27 = vadd.f32 %v1198_v59, %v611_v58 }
 0x1ed   :  { %1588 = vmatpush.msra.mxu0 %v1378_v63  ;;  %1555 = vmatmul.f32.vlgmr.msrb.gmra.mxu2 %v1363_v37 }
 0x1ee   :  { %1626 = vmatpush.msra.mxu2 %v1446_v0  ;;  %1608 = vmatpush.msra.mxu1 %v1410_v3  ;;  %v1464_v0 = vld [vmem:[%s4189_s3 + $0x318] sm:$0xff] }
 0x1ef   :  { %1589 = vmatpush.msra.mxu0 %v1376_v5 }
 0x1f0   :  { %1627 = vmatpush.msra.mxu2 %v1444_v54  ;;  %1609 = vmatpush.msra.mxu1 %v1408_v6 }
 0x1f1   :  { %1590 = vmatpush.msra.mxu0 %v1374_v8 }
 0x1f2   :  { %1628 = vmatpush.msra.mxu2 %v1442_v9  ;;  %1610 = vmatpush.msra.mxu1 %v1406_v12 }
 0x1f3   :  { %1591 = vmatpush.msra.mxu0 %v1372_v1 }
 0x1f4   :  { %1629 = vmatpush.msra.mxu2 %v1440_v17  ;;  %1611 = vmatpush.msra.mxu1 %v1404_v18 }
 0x1f5   :  { %1592 = vmatpush.msra.mxu0 %v1370_v16  ;;  %v1673_v16 = vld [vmem:[%s4191_s5 + $0x70] sm:$0xff] }
 0x1f6   :  { %1630 = vmatpush.msra.mxu2 %v1438_v56  ;;  %1612 = vmatpush.msra.mxu1 %v1402_v22  ;;  %v1690_v56 = vld [vmem:[%s4191_s5 + $0xf8] sm:$0xff]  ;;  %v1672_v22 = vld [vmem:[%s4191_s5 + $0x68] sm:$0xff] }
 0x1f7   :  { %1593 = vmatpush.msra.mxu0 %v1368_v21  ;;  %v1671_v21 = vld [vmem:[%s4191_s5 + $0x60] sm:$0xff] }
 0x1f8   :  { %1631 = vmatpush.msra.mxu2 %v1436_v24  ;;  %1613 = vmatpush.msra.mxu1 %v1400_v48  ;;  %v1670_v24 = vld [vmem:[%s4191_s5 + $0x58] sm:$0xff] }
 0x1f9   :  { %1594 = vmatpush.msra.mxu0 %v1366_v25  ;;  %v1686_v48 = vld [vmem:[%s4191_s5 + $0xd8] sm:$0xff]  ;;  %v1685_v25 = vld [vmem:[%s4191_s5 + $0xd0] sm:$0xff] }
 0x1fa   :  { %1632 = vmatpush.msra.mxu2 %v1434_v29  ;;  %1614 = vmatpush.msra.mxu1 %v1398_v30  ;;  %v1684_v29 = vld [vmem:[%s4191_s5 + $0xc8] sm:$0xff]  ;;  %v1667_v30 = vld [vmem:[%s4191_s5 + $0x40] sm:$0xff] }
 0x1fb   :  { %1595 = vmatmul.f32.vlgmr.msra.gmra.mxu0 %v1361_v19  ;;  %1615 = vmatmul.f32.vlgmr.msra.gmra.mxu1 %v1362_v62  ;;  %v1469_v19 = vld [vmem:[%s4189_s3 + $0x340] sm:$0xff] }
 0x1fc   :  { %1633 = vmatpush.msra.mxu2 %v1432_v32  ;;  %1570 = vmatpush.msrb.mxu3 %v1469_v19  ;;  %v1465_v62 = vld [vmem:[%s4189_s3 + $0x320] sm:$0xff]  ;;  %v1666_v32 = vld [vmem:[%s4191_s5 + $0x38] sm:$0xff]  ;;  %v1661_v19 = vld [vmem:[%s4191_s5 + $0x10] sm:$0xff] }
 0x1fd   :  { %1695 = vmatpush.msrb.mxu0 %v1674_v47  ;;  %1715 = vmatpush.msrb.mxu1 %v1690_v56 }
 0x1fe   :  { %1634 = vmatpush.msra.mxu2 %v1430_v34  ;;  %1571 = vmatpush.msrb.mxu3 %v1467_v49  ;;  %v1681_v34 = vld [vmem:[%s4191_s5 + $0xb0] sm:$0xff]  ;;  %v1660_v49 = vld [vmem:[%s4191_s5 + $0x8] sm:$0xff] }
 0x1ff   :  { %1635 = vmatmul.f32.vlgmr.msra.gmra.mxu2 %v1363_v37  ;;  %1696 = vmatpush.msrb.mxu0 %v1673_v16  ;;  %v1664_v37 = vld [vmem:[%s4191_s5 + $0x28] sm:$0xff] }
 0x200   :  { %1572 = vmatpush.msrb.mxu3 %v1465_v62  ;;  %1716 = vmatpush.msrb.mxu1 %v1689_v20  ;;  %v1680_v62 = vld [vmem:[%s4191_s5 + $0xa8] sm:$0xff] }
 0x201   :  { %1697 = vmatpush.msrb.mxu0 %v1672_v22 }
 0x202   :  { %1573 = vmatpush.msrb.mxu3 %v1463_v40  ;;  %1717 = vmatpush.msrb.mxu1 %v1688_v50  ;;  %v1659_v40 = vld [vmem:[%s4191_s5] sm:$0xff] }
 0x203   :  { %1698 = vmatpush.msrb.mxu0 %v1671_v21 }
 0x204   :  { %1574 = vmatpush.msrb.mxu3 %v1461_v41  ;;  %v1278_v46 = vpop.f32.mrf.mxu3  ;;  %1718 = vmatpush.msrb.mxu1 %v1687_v51  ;;  %v1679_v41 = vld [vmem:[%s4191_s5 + $0xa0] sm:$0xff] }
 0x205   :  { %1699 = vmatpush.msrb.mxu0 %v1670_v24 }
 0x206   :  { %1639 = vmatpush.msra.mxu3 %v1492_v28  ;;  %v1238_v3 = vpop.f32.mrf.mxu1  ;;  %1719 = vmatpush.msrb.mxu1 %v1686_v48  ;;  %v1678_v28 = vld [vmem:[%s4191_s5 + $0x98] sm:$0xff] }
 0x207   :  { %1700 = vmatpush.msrb.mxu0 %v1669_v23 }
 0x208   :  { %1640 = vmatpush.msra.mxu3 %v1490_v42  ;;  %v1258_v54 = vpop.f32.mrf.mxu2  ;;  %1720 = vmatpush.msrb.mxu1 %v1685_v25  ;;  %v1677_v42 = vld [vmem:[%s4191_s5 + $0x90] sm:$0xff] }
 0x209   :  { %1701 = vmatpush.msrb.mxu0 %v1668_v26 }
 0x20a   :  { %1641 = vmatpush.msra.mxu3 %v1488_v43  ;;  %1721 = vmatpush.msrb.mxu1 %v1684_v29  ;;  %v1676_v43 = vld [vmem:[%s4191_s5 + $0x88] sm:$0xff] }
 0x20b   :  { %1702 = vmatpush.msrb.mxu0 %v1667_v30 }
 0x20c   :  { %1642 = vmatpush.msra.mxu3 %v1486_v44  ;;  %v1218_v63 = vpop.f32.mrf.mxu0  ;;  %1722 = vmatpush.msrb.mxu1 %v1683_v31  ;;  %v1675_v44 = vld [vmem:[%s4191_s5 + $0x80] sm:$0xff] }
 0x20d   :  { %v1219_v2 = vadd.f32 %v1218_v63, %v1199_v27  ;;  %1703 = vmatpush.msrb.mxu0 %v1666_v32 }
 0x20e   :  { %1643 = vmatpush.msra.mxu3 %v1484_v45  ;;  %1723 = vmatpush.msrb.mxu1 %v1682_v35  ;;  %v1493_v45 = vld [vmem:[%s4190_s4] sm:$0x3] }
 0x20f   :  { %v1239_v5 = vadd.f32 %v1238_v3, %v1219_v2  ;;  %1704 = vmatpush.msrb.mxu0 %v1665_v36  ;;  %v1496_v59 = vperm.slane %v1493_v45, 1 }
 0x210   :  { %1644 = vmatpush.msra.mxu3 %v1482_v52  ;;  %1724 = vmatpush.msrb.mxu1 %v1681_v34  ;;  %v1495_v52 = vperm.slane %v1493_v45, 0 }
 0x211   :  { %v1259_v6 = vadd.f32 %v1258_v54, %v1239_v5  ;;  %1705 = vmatpush.msrb.mxu0 %v1664_v37  ;;  %v1766_v54 = vld [vmem:[%s4192_s6] ss:$0 sm:$0xff]  ;;  %s1802_s6 = smov [#allocation2]  }
 0x212   :  { %1645 = vmatpush.msra.mxu3 %v1480_v53  ;;  %1725 = vmatpush.msrb.mxu1 %v1680_v62  ;;  %s1754_s22 = sshll.u32 %s1802_s6, 4  ;;  %s1755_s22 = int_to_ptr.vmem [resolvable:$true] %s1754_s22 }
 0x213   :  { %v1279_v7 = vadd.f32 %v1278_v46, %v1259_v6  ;;  %1706 = vmatpush.msrb.mxu0 %v1663_v38 }
 0x214   :  { %1646 = vmatpush.msra.mxu3 %v1478_v33  ;;  %1726 = vmatpush.msrb.mxu1 %v1679_v41 }
 0x215   :  { %1707 = vmatpush.msrb.mxu0 %v1662_v15 }
 0x216   :  { %1647 = vmatpush.msra.mxu3 %v1476_v55  ;;  %1727 = vmatpush.msrb.mxu1 %v1678_v28 }
 0x217   :  { %1708 = vmatpush.msrb.mxu0 %v1661_v19 }
 0x218   :  { %1648 = vmatpush.msra.mxu3 %v1474_v57  ;;  %1728 = vmatpush.msrb.mxu1 %v1677_v42 }
 0x219   :  { %1709 = vmatpush.msrb.mxu0 %v1660_v49 }
 0x21a   :  { %1649 = vmatpush.msra.mxu3 %v1472_v60  ;;  %1729 = vmatpush.msrb.mxu1 %v1676_v43 }
 0x21b   :  { %1710 = vmatpush.msrb.mxu0 %v1659_v40 }
 0x21c   :  { %1650 = vmatpush.msra.mxu3 %v1470_v39  ;;  %1730 = vmatpush.msrb.mxu1 %v1675_v44 }
 0x21e   :  { %1651 = vmatpush.msra.mxu3 %v1468_v61 }
 0x220   :  { %1652 = vmatpush.msra.mxu3 %v1466_v14 }
 0x222   :  { %1653 = vmatpush.msra.mxu3 %v1464_v0 }
 0x224   :  { %1654 = vmatpush.msra.mxu3 %v1462_v4 }
 0x236   :  { %v1298_v8 = vpop.f32.mrf.mxu0 }
 0x237   :  { %v1299_v9 = vadd.f32 %v1298_v8, %v1279_v7 }
 0x23a   :  { %v1318_v11 = vpop.f32.mrf.mxu1 }
 0x23b   :  { %v1319_v12 = vadd.f32 %v1318_v11, %v1299_v9 }
 0x23e   :  { %v1338_v13 = vpop.f32.mrf.mxu2 }
 0x23f   :  { %v1339_v1 = vadd.f32 %v1338_v13, %v1319_v12 }
 0x241   :  { %v1358_v17 = vpop.f32.mrf.mxu3 }
 0x242   :  { %v1359_v18 = vadd.f32 %v1358_v17, %v1339_v1 }
 0x244   :  { %v1364_v10 = vmax.f32 %v1359_v18, 0.0 }
 0x246   :  { %1575 = vmatmul.f32.vlgmr.msrb.gmra.mxu3 %v1364_v10 }
 0x24e   :  { %1655 = vmatmul.f32.vlgmr.msra.gmra.mxu3 %v1364_v10 }
 0x257   :  { %v1516_v53 = vpop.f32.mrf.mxu0 }
 0x258   :  { %v1517_v33 = vadd.f32 %v1516_v53, %v1495_v52  ;;  %v1536_v57 = vpop.f32.mrf.mxu1 }
 0x25a   :  { %v1537_v58 = vadd.f32 %v1536_v57, %v1517_v33 }
 0x270   :  { %v1556_v55 = vpop.f32.mrf.mxu2 }
 0x271   :  { %v1557_v39 = vadd.f32 %v1556_v55, %v1537_v58 }
 0x278   :  { %v1596_v60 = vpop.f32.mrf.mxu0  ;;  %v1616_v14 = vpop.f32.mrf.mxu1 }
 0x279   :  { %v1597_v27 = vadd.f32 %v1596_v60, %v1496_v59 }
 0x27b   :  { %v1617_v2 = vadd.f32 %v1616_v14, %v1597_v27 }
 0x282   :  { %v1636_v0 = vpop.f32.mrf.mxu2 }
 0x283   :  { %v1637_v3 = vadd.f32 %v1636_v0, %v1617_v2 }
 0x2c9   :  { %v1576_v61 = vpop.f32.mrf.mxu3 }
 0x2ca   :  { %v1577_v63 = vadd.f32 %v1576_v61, %v1557_v39 }
 0x2cc   :  { %1711 = vmatmul.f32.vlgmr.msrb.gmra.mxu0 %v1577_v63 }
 0x2d1   :  { %v1656_v4 = vpop.f32.mrf.mxu3 }
 0x2d2   :  { %v1657_v5 = vadd.f32 %v1656_v4, %v1637_v3 }
 0x2d4   :  { %1731 = vmatmul.f32.vlgmr.msrb.gmra.mxu1 %v1657_v5 }
 0x349   :  { %v1712_v6 = vpop.f32.mrf.mxu0 }
 0x34a   :  { %v1713_v46 = vadd.f32 %v1766_v54, %v1712_v6 }
 0x351   :  { %v1732_v7 = vpop.f32.mrf.mxu1 }
 0x352   :  { %v1733_v8 = vadd.f32 %v1732_v7, %v1713_v46 }
 0x354   :  { %v1736_v9 = vsel %vm1735_vm0, %v1733_v8, -inf }
 0x355   :  { %1737 = vmax.xlane.f32.xlu0 %v1736_v9 }
 0x3c8   :  { %v1738_v11 = vpop.xlane.xlu0 %1737 }
 0x3c9   :  { %v1739_v12 = vsub.f32 %v1733_v8, %v1738_v11 }
 0x3cb   :  { %v1740_v13 = vmul.f32 1.442695, %v1739_v12 }
 0x3cd   :  { %1767 = vpow2.f32 %v1740_v13 }
 0x3d3   :  { %v1768_v1 = vpop.eup %1767 }
 0x3d4   :  { %v1742_v17 = vsel %vm1735_vm0, %v1768_v1, 0.0 }
 0x3d5   :  { %1743 = vadd.xlane.f32.xlu0 %v1742_v17 }
 0x448   :  { %v1744_v18 = vpop.xlane.xlu0 %1743 }
 0x449   :  { %1769 = vlog2.f32 %v1744_v18 }
 0x44f   :  { %v1770_v10 = vpop.eup %1769 }
 0x450   :  { %v1746_v47 = vmul.f32 0.6931472, %v1770_v10 }
 0x452   :  { %v1747_v16 = vsub.f32 %v1739_v12, %v1746_v47 }
 0x454   :  { %1748 = vst.msk [vmem:[#allocation2] sm:$0x3] %vm1735_vm0, %v1747_v16 }
 0x455   :  { %1759 = dma.vmem_to_hbm [thread:$0]  %s1755_s22, 32, %s1757_s1, [#allocation3]  }
 0x456   :  { %1800 = dma.done.wait [#allocation3], 32  }
 0x457   :  { %1801 = vsyncadd [#allocation3], 4294967264 }
 0x458   :  { %1764 = vsyncpa [#allocation3], 1 }

</bundles_post_ra>
